<compile_context>
chip_gen: v6e
topology: v6e:2x2x1
jax: 0.10.0
libtpu: 0.0.40
codegen_flags: <defaults>
</compile_context>

<pallas_src>
import jax
import jax.numpy as jnp
from jax.experimental import pallas as pl
from jax.experimental.pallas import tpu as pltpu

IN_DIM = 768
HIDDEN_DIM = 3072
OUT_DIM = 768
LN_EPS = 1e-12


def _proj_layer_kernel(x_ref, ln_g_ref, ln_b_ref, w1_ref, b1_ref,
                       w2_ref, b2_ref, o_ref):
    x_in = x_ref[...]                                   # (tm, D) f32

    # ---- LayerNorm(eps=1e-12) over last dim (kept in f32) ----
    mean = jnp.mean(x_in, axis=-1, keepdims=True)
    centered = x_in - mean
    var = jnp.mean(centered * centered, axis=-1, keepdims=True)
    inv_std = jax.lax.rsqrt(var + LN_EPS)
    x_ln = centered * inv_std * ln_g_ref[...] + ln_b_ref[...]

    # ---- dense1: bf16 operands on the MXU, f32 accumulation ----
    h = jnp.dot(x_ln.astype(jnp.bfloat16), w1_ref[...],
                preferred_element_type=jnp.float32)
    h = h + b1_ref[...]

    # ---- QuickGELU: x * sigmoid(1.702 * x) ----
    # sigmoid(z) = 0.5*(tanh(z/2)+1): one EUP tanh instead of exp + divide.
    h = h * (0.5 * (jnp.tanh(0.851 * h) + 1.0))

    # ---- dense2: bf16 operands on the MXU, f32 accumulation ----
    y = jnp.dot(h.astype(jnp.bfloat16), w2_ref[...],
                preferred_element_type=jnp.float32)
    y = y + b2_ref[...]

    # ---- dropout (eval / inference: identity) + residual (f32) ----
    o_ref[...] = y + x_in


def _const_block_spec(shape):
    """BlockSpec for a grid-invariant operand: constant index_map, single buffer."""
    index_map = lambda i: (0,) * len(shape)
    try:
        return pl.BlockSpec(shape, index_map,
                            pipeline_mode=pl.Buffered(buffer_count=1))
    except TypeError:
        # Older jax without pipeline_mode: default double-buffering.
        # (Weights then take ~18 MiB; still under the 48 MiB vmem limit.)
        return pl.BlockSpec(shape, index_map)


def _round_up(x, m):
    return (x + m - 1) // m * m


def prepare_params(params):
    """One-time (outside jit) conversion: weights -> bf16, params reshaped."""
    return {
        "ln_gamma": params["ln_gamma"].reshape(1, IN_DIM).astype(jnp.float32),
        "ln_beta": params["ln_beta"].reshape(1, IN_DIM).astype(jnp.float32),
        "w1": params["w1"].astype(jnp.bfloat16),                    # (D, H)
        "b1": params["b1"].reshape(1, HIDDEN_DIM).astype(jnp.float32),
        "w2": params["w2"].astype(jnp.bfloat16),                    # (H, D)
        "b2": params["b2"].reshape(1, OUT_DIM).astype(jnp.float32),
    }


@jax.jit
def proj_layer_forward(x, prepared):
    """x: (B, S, 768) float32.  prepared: output of prepare_params()."""
    B, S, D = x.shape
    assert D == IN_DIM
    M = B * S

    # Adaptive row tiling: pad only to the sublane (8) requirement; no forced
    # 2-step grid (single-TC v5e/v6e gain nothing from it, and at small M the
    # op is weight-DMA bound anyway).  Large M -> 512-row tiles, multi-step
    # "parallel" grid that v7x megacore can shard.
    Mp = _round_up(M, 8)
    tm = min(512, Mp)
    num_tiles = pl.cdiv(Mp, tm)
    Mp = num_tiles * tm

    x2d = x.reshape(M, D)
    if Mp != M:
        x2d = jnp.pad(x2d, ((0, Mp - M), (0, 0)))

    flops = 2 * Mp * (IN_DIM * HIDDEN_DIM + HIDDEN_DIM * OUT_DIM)
    bytes_accessed = (
        (IN_DIM * HIDDEN_DIM + HIDDEN_DIM * OUT_DIM) * 2          # bf16 weights
        + (2 * IN_DIM + HIDDEN_DIM + OUT_DIM) * 4                 # ln params + biases
        + 2 * Mp * IN_DIM * 4                                     # x in + out
    )
    cost = pl.CostEstimate(flops=flops,
                           transcendentals=Mp * HIDDEN_DIM,       # tanh
                           bytes_accessed=bytes_accessed)

    out = pl.pallas_call(
        _proj_layer_kernel,
        out_shape=jax.ShapeDtypeStruct((Mp, OUT_DIM), jnp.float32),
        grid_spec=pltpu.PrefetchScalarGridSpec(
            num_scalar_prefetch=0,
            grid=(num_tiles,),
            in_specs=[
                pl.BlockSpec((tm, D), lambda i: (i, 0)),          # x (streamed)
                _const_block_spec((1, D)),                        # ln gamma
                _const_block_spec((1, D)),                        # ln beta
                _const_block_spec((D, HIDDEN_DIM)),               # w1 (bf16)
                _const_block_spec((1, HIDDEN_DIM)),               # b1
                _const_block_spec((HIDDEN_DIM, OUT_DIM)),         # w2 (bf16)
                _const_block_spec((1, OUT_DIM)),                  # b2
            ],
            out_specs=pl.BlockSpec((tm, OUT_DIM), lambda i: (i, 0)),
        ),
        compiler_params=pltpu.CompilerParams(
            dimension_semantics=("parallel",),
            vmem_limit_bytes=48 * 1024 * 1024,   # fits v7x (64 MiB) and v5e/v6e
        ),
        cost_estimate=cost,
    )(x2d, prepared["ln_gamma"], prepared["ln_beta"],
      prepared["w1"], prepared["b1"], prepared["w2"], prepared["b2"])

    return out[:M].reshape(B, S, OUT_DIM)


def _proj_layer_ref(x, prepared):
    """Pure-JAX f32 reference matching nn.Module semantics (eval mode)."""
    mean = jnp.mean(x, axis=-1, keepdims=True)
    var = jnp.mean((x - mean) ** 2, axis=-1, keepdims=True)
    x_ln = (x - mean) / jnp.sqrt(var + LN_EPS)
    x_ln = x_ln * prepared["ln_gamma"][0] + prepared["ln_beta"][0]
    h = x_ln @ prepared["w1"].astype(jnp.float32) + prepared["b1"][0]
    h = h * jax.nn.sigmoid(1.702 * h)
    y = h @ prepared["w2"].astype(jnp.float32) + prepared["b2"][0]
    return y + x


def init_params(key):
    k1, k2, k3, k4 = jax.random.split(key, 4)
    # Deterministic synthetic init (shapes from ProjLayer.__init__).
    return {
        "w1": jax.random.normal(k1, (IN_DIM, HIDDEN_DIM), jnp.float32) * 0.02,
        "b1": jax.random.normal(k2, (HIDDEN_DIM,), jnp.float32) * 0.02,
        "w2": jax.random.normal(k3, (HIDDEN_DIM, OUT_DIM), jnp.float32) * 0.02,
        "b2": jax.random.normal(k4, (OUT_DIM,), jnp.float32) * 0.02,
        "ln_gamma": jnp.ones((IN_DIM,), jnp.float32),
        "ln_beta": jnp.zeros((IN_DIM,), jnp.float32),
    }


if __name__ == "__main__":
    key = jax.random.PRNGKey(0)
    kx, kp = jax.random.split(key)

    # Shapes implied by forward_ctx_embeddings: (batch, num_query_tokens, 768)
    B, S = 2, 8
    x = jax.random.normal(kx, (B, S, IN_DIM), jnp.float32)
    params = init_params(kp)
    prepared = prepare_params(params)     # one-time bf16 cast, outside jit

    out = proj_layer_forward(x, prepared)
    out = jax.block_until_ready(out)

    ref = _proj_layer_ref(x, prepared)
    assert out.shape == (B, S, OUT_DIM)
    # bf16 MXU operands (f32 accumulate) => small drift vs the f32 reference.
    assert jnp.allclose(out, ref, atol=3e-2, rtol=3e-2), "mismatch vs JAX reference"

    print("KERNEL_OK")
</pallas_src>

<mosaic_0001>
module attributes {stable_mosaic.version = 11 : i64} {
  func.func @_proj_layer_kernel(%arg0: i32, %arg1: memref<16x768xf32, #tpu.memory_space<vmem>>, %arg2: memref<1x768xf32, #tpu.memory_space<vmem>>, %arg3: memref<1x768xf32, #tpu.memory_space<vmem>>, %arg4: memref<768x3072xbf16, #tpu.memory_space<vmem>>, %arg5: memref<1x3072xf32, #tpu.memory_space<vmem>>, %arg6: memref<3072x768xbf16, #tpu.memory_space<vmem>>, %arg7: memref<1x768xf32, #tpu.memory_space<vmem>>, %arg8: memref<16x768xf32, #tpu.memory_space<vmem>>) attributes {dimension_semantics = [#tpu.dimension_semantics<parallel>], iteration_bounds = array<i64: 1>, scalar_prefetch = 0 : i64, scratch_operands = 0 : i64, tpu.core_type = #tpu.core_type<tc>, window_params = [{transform_indices = @transform_0, window_bounds = array<i64: 16, 768>}, {pipeline_mode = #tpu.pipeline_mode<synchronous>, transform_indices = @transform_1, window_bounds = array<i64: 1, 768>}, {pipeline_mode = #tpu.pipeline_mode<synchronous>, transform_indices = @transform_2, window_bounds = array<i64: 1, 768>}, {pipeline_mode = #tpu.pipeline_mode<synchronous>, transform_indices = @transform_3, window_bounds = array<i64: 768, 3072>}, {pipeline_mode = #tpu.pipeline_mode<synchronous>, transform_indices = @transform_4, window_bounds = array<i64: 1, 3072>}, {pipeline_mode = #tpu.pipeline_mode<synchronous>, transform_indices = @transform_5, window_bounds = array<i64: 3072, 768>}, {pipeline_mode = #tpu.pipeline_mode<synchronous>, transform_indices = @transform_6, window_bounds = array<i64: 1, 768>}, {transform_indices = @transform_7, window_bounds = array<i64: 16, 768>}]} {
    %c0 = arith.constant 0 : index
    %c0_0 = arith.constant 0 : index
    %0 = vector.load %arg1[%c0, %c0_0] : memref<16x768xf32, #tpu.memory_space<vmem>>, vector<16x768xf32>
    %cst = arith.constant dense<0.000000e+00> : vector<16xf32>
    %1 = vector.multi_reduction <add>, %0, %cst [1] : vector<16x768xf32> to vector<16xf32>
    %2 = vector.shape_cast %1 : vector<16xf32> to vector<16x1xf32>
    %cst_1 = arith.constant 7.680000e+02 : f32
    %3 = vector.broadcast %cst_1 : f32 to vector<16x1xf32>
    %4 = arith.divf %2, %3 : vector<16x1xf32>
    %5 = vector.broadcast %4 : vector<16x1xf32> to vector<16x768xf32>
    %6 = arith.subf %0, %5 : vector<16x768xf32>
    %7 = arith.mulf %6, %6 : vector<16x768xf32>
    %cst_2 = arith.constant dense<0.000000e+00> : vector<16xf32>
    %8 = vector.multi_reduction <add>, %7, %cst_2 [1] : vector<16x768xf32> to vector<16xf32>
    %9 = vector.shape_cast %8 : vector<16xf32> to vector<16x1xf32>
    %cst_3 = arith.constant 7.680000e+02 : f32
    %10 = vector.broadcast %cst_3 : f32 to vector<16x1xf32>
    %11 = arith.divf %9, %10 : vector<16x1xf32>
    %cst_4 = arith.constant 9.99999996E-13 : f32
    %12 = vector.broadcast %cst_4 : f32 to vector<16x1xf32>
    %13 = arith.addf %11, %12 : vector<16x1xf32>
    %14 = math.rsqrt %13 : vector<16x1xf32>
    %15 = vector.broadcast %14 : vector<16x1xf32> to vector<16x768xf32>
    %16 = arith.mulf %6, %15 : vector<16x768xf32>
    %c0_5 = arith.constant 0 : index
    %c0_6 = arith.constant 0 : index
    %17 = vector.load %arg2[%c0_5, %c0_6] : memref<1x768xf32, #tpu.memory_space<vmem>>, vector<1x768xf32>
    %18 = vector.broadcast %17 : vector<1x768xf32> to vector<16x768xf32>
    %19 = arith.mulf %16, %18 : vector<16x768xf32>
    %c0_7 = arith.constant 0 : index
    %c0_8 = arith.constant 0 : index
    %20 = vector.load %arg3[%c0_7, %c0_8] : memref<1x768xf32, #tpu.memory_space<vmem>>, vector<1x768xf32>
    %21 = vector.broadcast %20 : vector<1x768xf32> to vector<16x768xf32>
    %22 = arith.addf %19, %21 : vector<16x768xf32>
    %23 = arith.truncf %22 : vector<16x768xf32> to vector<16x768xbf16>
    %c0_9 = arith.constant 0 : index
    %c0_10 = arith.constant 0 : index
    %24 = vector.load %arg4[%c0_9, %c0_10] : memref<768x3072xbf16, #tpu.memory_space<vmem>>, vector<768x3072xbf16>
    %cst_11 = arith.constant dense<0.000000e+00> : vector<16x3072xf32>
    %25 = tpu.matmul %23, %24, %cst_11 {dimension_numbers = #tpu.dot_dimension_numbers<[1], [0], [0], [1], [0, 0, 1, 1], [], []>} : vector<16x768xbf16>, vector<768x3072xbf16>, vector<16x3072xf32> -> vector<16x3072xf32>
    %c0_12 = arith.constant 0 : index
    %c0_13 = arith.constant 0 : index
    %26 = vector.load %arg5[%c0_12, %c0_13] : memref<1x3072xf32, #tpu.memory_space<vmem>>, vector<1x3072xf32>
    %27 = vector.broadcast %26 : vector<1x3072xf32> to vector<16x3072xf32>
    %28 = arith.addf %25, %27 : vector<16x3072xf32>
    %cst_14 = arith.constant 8.510000e-01 : f32
    %29 = vector.broadcast %cst_14 : f32 to vector<16x3072xf32>
    %30 = arith.mulf %29, %28 : vector<16x3072xf32>
    %31 = math.tanh %30 : vector<16x3072xf32>
    %cst_15 = arith.constant 1.000000e+00 : f32
    %32 = vector.broadcast %cst_15 : f32 to vector<16x3072xf32>
    %33 = arith.addf %31, %32 : vector<16x3072xf32>
    %cst_16 = arith.constant 5.000000e-01 : f32
    %34 = vector.broadcast %cst_16 : f32 to vector<16x3072xf32>
    %35 = arith.mulf %34, %33 : vector<16x3072xf32>
    %36 = arith.mulf %28, %35 : vector<16x3072xf32>
    %37 = arith.truncf %36 : vector<16x3072xf32> to vector<16x3072xbf16>
    %c0_17 = arith.constant 0 : index
    %c0_18 = arith.constant 0 : index
    %38 = vector.load %arg6[%c0_17, %c0_18] : memref<3072x768xbf16, #tpu.memory_space<vmem>>, vector<3072x768xbf16>
    %cst_19 = arith.constant dense<0.000000e+00> : vector<16x768xf32>
    %39 = tpu.matmul %37, %38, %cst_19 {dimension_numbers = #tpu.dot_dimension_numbers<[1], [0], [0], [1], [0, 0, 1, 1], [], []>} : vector<16x3072xbf16>, vector<3072x768xbf16>, vector<16x768xf32> -> vector<16x768xf32>
    %c0_20 = arith.constant 0 : index
    %c0_21 = arith.constant 0 : index
    %40 = vector.load %arg7[%c0_20, %c0_21] : memref<1x768xf32, #tpu.memory_space<vmem>>, vector<1x768xf32>
    %41 = vector.broadcast %40 : vector<1x768xf32> to vector<16x768xf32>
    %42 = arith.addf %39, %41 : vector<16x768xf32>
    %43 = arith.addf %42, %0 : vector<16x768xf32>
    %c0_22 = arith.constant 0 : index
    %c0_23 = arith.constant 0 : index
    %44 = vector.load %arg8[%c0_22, %c0_23] : memref<16x768xf32, #tpu.memory_space<vmem>>, vector<16x768xf32>
    tpu.vector_store %arg8[%c0_22, %c0_23], %43 {strides = array<i32>} : memref<16x768xf32, #tpu.memory_space<vmem>>, vector<16x768xf32>,
    return
  }
  func.func @transform_0(%arg0: i32) -> (i32, i32) {
    %c0_i32 = arith.constant 0 : i32
    %c0_i32_0 = arith.constant 0 : i32
    return %arg0, %c0_i32 : i32, i32
  }
  func.func @transform_1(%arg0: i32) -> (i32, i32) {
    %c0_i32 = arith.constant 0 : i32
    %c0_i32_0 = arith.constant 0 : i32
    %c0_i32_1 = arith.constant 0 : i32
    return %c0_i32, %c0_i32_0 : i32, i32
  }
  func.func @transform_2(%arg0: i32) -> (i32, i32) {
    %c0_i32 = arith.constant 0 : i32
    %c0_i32_0 = arith.constant 0 : i32
    %c0_i32_1 = arith.constant 0 : i32
    return %c0_i32, %c0_i32_0 : i32, i32
  }
  func.func @transform_3(%arg0: i32) -> (i32, i32) {
    %c0_i32 = arith.constant 0 : i32
    %c0_i32_0 = arith.constant 0 : i32
    %c0_i32_1 = arith.constant 0 : i32
    return %c0_i32, %c0_i32_0 : i32, i32
  }
  func.func @transform_4(%arg0: i32) -> (i32, i32) {
    %c0_i32 = arith.constant 0 : i32
    %c0_i32_0 = arith.constant 0 : i32
    %c0_i32_1 = arith.constant 0 : i32
    return %c0_i32, %c0_i32_0 : i32, i32
  }
  func.func @transform_5(%arg0: i32) -> (i32, i32) {
    %c0_i32 = arith.constant 0 : i32
    %c0_i32_0 = arith.constant 0 : i32
    %c0_i32_1 = arith.constant 0 : i32
    return %c0_i32, %c0_i32_0 : i32, i32
  }
  func.func @transform_6(%arg0: i32) -> (i32, i32) {
    %c0_i32 = arith.constant 0 : i32
    %c0_i32_0 = arith.constant 0 : i32
    %c0_i32_1 = arith.constant 0 : i32
    return %c0_i32, %c0_i32_0 : i32, i32
  }
  func.func @transform_7(%arg0: i32) -> (i32, i32) {
    %c0_i32 = arith.constant 0 : i32
    %c0_i32_0 = arith.constant 0 : i32
    return %arg0, %c0_i32 : i32, i32
  }
}

</mosaic_0001>

<bundles_post_ra>
// kernel: proj_layer_forward.1
= control target key start
LH: loop header
LB: loop body
LE: loop exit
PB: predicated region body
PF: predicated region fallthrough
CT: control target
= control target key end

     0   :  { %12 = vsyncpa [#allocation3], 0  ;;  %s23103_s0 = inlined_call_operand.hbm [shape: f32[16,768], index: 0, kind: input, shape index: {}]   ;;  %s23104_s1 = inlined_call_operand.hbm [shape: f32[1,768], index: 1, kind: input, shape index: {}]   ;;  %s23105_s2 = inlined_call_operand.hbm [shape: f32[1,768], index: 2, kind: input, shape index: {}]   ;;  %s23106_s3 = inlined_call_operand.hbm [shape: bf16[768,3072], index: 3, kind: input, shape index: {}]   ;;  %s23107_s4 = inlined_call_operand.hbm [shape: f32[1,3072], index: 4, kind: input, shape index: {}]   ;;  %s23108_s5 = inlined_call_operand.hbm [shape: bf16[3072,768], index: 5, kind: input, shape index: {}]   ;;  %s23109_s6 = inlined_call_operand.hbm [shape: f32[1,768], index: 6, kind: input, shape index: {}]   ;;  %s23110_s7 = inlined_call_operand.hbm [shape: f32[16,768], index: 7, kind: output, shape index: {}]  }
   0x1   :  { %13 = vsyncpa [#allocation6], 0 }
   0x2   :  { %14 = vsyncpa [#allocation9], 0 }
   0x3   :  { %15 = vsyncpa [#allocation12], 0 }
   0x4   :  { %16 = vsyncpa [#allocation4], 0  ;;  %s22027_s24 = smov [#allocation5]   ;;  %s22028_s26 = smov [#allocation8]  }
   0x5   :  { %s35_s25 = sshll.u32 %s22027_s24, 4  ;;  %s54_s27 = sshll.u32 %s22028_s26, 4  ;;  %s36_s25 = int_to_ptr.vmem [resolvable:$true] %s35_s25  ;;  %s55_s27 = int_to_ptr.vmem [resolvable:$true] %s54_s27 }
   0x6   :  { %s21865_s28 = scalar_lea.vmem %s36_s25, 96  ;;  %p21870_p1 = scmp.lt.s32.totalorder %s36_s25, %s36_s25 }
   0x7   :  { %p21866_p0 = scmp.ne.s32.totalorder %s36_s25, %s21865_s28  ;;  %p21871_p2 = scmp.lt.s32.totalorder %s21865_s28, %s21865_s28 }
   0x9   :  { %p21872_p3 = por %p21871_p2, %p21870_p1 }
   0xb   :  { %p21873_p4 = pnand %p21872_p3, %p21866_p0 }
   0xd   :  { %21876 = shalt.err (!%p21873_p4)
}
   0xe   :  { %38 = dma.hbm_to_vmem [thread:$0]  %s23104_s1, 96, %s36_s25, [#allocation6]  }
   0xf   :  { %s21885_s8 = scalar_lea.vmem %s55_s27, 147456  ;;  %p21890_p6 = scmp.lt.s32.totalorder %s55_s27, %s55_s27 }
  0x10   :  { %p21886_p5 = scmp.ne.s32.totalorder %s55_s27, %s21885_s8  ;;  %p21891_p7 = scmp.lt.s32.totalorder %s21885_s8, %s21885_s8 }
  0x12   :  { %p21892_p8 = por %p21891_p7, %p21890_p6 }
  0x14   :  { %p21893_p9 = pnand %p21892_p8, %p21886_p5 }
  0x16   :  { %21896 = shalt.err (!%p21893_p9)
}
  0x17   :  { %s22029_s9 = smov 1536   ;;  %s22030_s10 = smov 96  }
  0x18   :  { %60 = dma.hbm_to_vmem [thread:$0]  %s23106_s3, 147456, %s55_s27, [#allocation9], %s22029_s9, %s22029_s9, %s22030_s10  }
  0x19   :  { %s22031_s13 = smov [#allocation11]  }
  0x1a   :  { %s76_s14 = sshll.u32 %s22031_s13, 4  ;;  %s77_s14 = int_to_ptr.vmem [resolvable:$true] %s76_s14 }
  0x1b   :  { %s21905_s15 = scalar_lea.vmem %s77_s14, 147456  ;;  %p21910_p11 = scmp.lt.s32.totalorder %s77_s14, %s77_s14 }
  0x1c   :  { %p21906_p10 = scmp.ne.s32.totalorder %s77_s14, %s21905_s15  ;;  %p21911_p12 = scmp.lt.s32.totalorder %s21905_s15, %s21905_s15 }
  0x1e   :  { %p21912_p13 = por %p21911_p12, %p21910_p11 }
  0x20   :  { %p21913_p0 = pnand %p21912_p13, %p21906_p10 }
  0x22   :  { %21916 = shalt.err (!%p21913_p0)
}
  0x23   :  { %s22032_s1 = smov 384   ;;  %s22033_s16 = smov 24  }
  0x24   :  { %82 = dma.hbm_to_vmem [thread:$0]  %s23108_s5, 147456, %s77_s14, [#allocation12], %s22032_s1, %s22032_s1, %s22033_s16  }
  0x25   :  { %s22034_s19 = smov [#allocation2]  }
  0x26   :  { %s22_s20 = sshll.u32 %s22034_s19, 4  ;;  %s23_s20 = int_to_ptr.vmem [resolvable:$true] %s22_s20 }
  0x27   :  { %s21925_s3 = scalar_lea.vmem %s23_s20, 1536  ;;  %p21930_p2 = scmp.lt.s32.totalorder %s23_s20, %s23_s20 }
  0x28   :  { %p21926_p1 = scmp.ne.s32.totalorder %s23_s20, %s21925_s3  ;;  %p21931_p3 = scmp.lt.s32.totalorder %s21925_s3, %s21925_s3 }
  0x2a   :  { %p21932_p4 = por %p21931_p3, %p21930_p2 }
  0x2c   :  { %p21933_p5 = pnand %p21932_p4, %p21926_p1 }
  0x2e   :  { %21936 = shalt.err (!%p21933_p5)
}
  0x2f   :  { %s22035_s21 = smov 768   ;;  %s22036_s22 = smov 48  }
  0x30   :  { %28 = dma.hbm_to_vmem [thread:$0]  %s23103_s0, 1536, %s23_s20, [#allocation3], %s22035_s21, %s22035_s21, %s22036_s22  }
  0x31   :  { %s22037_s5 = smov [#allocation7]   ;;  %s22038_s26 = smov [#allocation10]  }
  0x32   :  { %s45_s25 = sshll.u32 %s22037_s5, 4  ;;  %s67_s27 = sshll.u32 %s22038_s26, 4  ;;  %s46_s25 = int_to_ptr.vmem [resolvable:$true] %s45_s25  ;;  %s68_s27 = int_to_ptr.vmem [resolvable:$true] %s67_s27 }
  0x33   :  { %s21945_s28 = scalar_lea.vmem %s46_s25, 96  ;;  %p21950_p7 = scmp.lt.s32.totalorder %s46_s25, %s46_s25 }
  0x34   :  { %p21946_p6 = scmp.ne.s32.totalorder %s46_s25, %s21945_s28  ;;  %p21951_p8 = scmp.lt.s32.totalorder %s21945_s28, %s21945_s28 }
  0x36   :  { %p21952_p9 = por %p21951_p8, %p21950_p7 }
  0x38   :  { %p21953_p10 = pnand %p21952_p9, %p21946_p6 }
  0x3a   :  { %21956 = shalt.err (!%p21953_p10)
}
  0x3b   :  { %48 = dma.hbm_to_vmem [thread:$0]  %s23105_s2, 96, %s46_s25, [#allocation6]  }
  0x3c   :  { %s21965_s8 = scalar_lea.vmem %s68_s27, 384  ;;  %p21970_p12 = scmp.lt.s32.totalorder %s68_s27, %s68_s27 }
  0x3d   :  { %p21966_p11 = scmp.ne.s32.totalorder %s68_s27, %s21965_s8  ;;  %p21971_p13 = scmp.lt.s32.totalorder %s21965_s8, %s21965_s8 }
  0x3f   :  { %p21972_p0 = por %p21971_p13, %p21970_p12 }
  0x41   :  { %p21973_p1 = pnand %p21972_p0, %p21966_p11 }
  0x43   :  { %21976 = shalt.err (!%p21973_p1)
}
  0x44   :  { %70 = dma.hbm_to_vmem [thread:$0]  %s23107_s4, 384, %s68_s27, [#allocation9]  }
  0x45   :  { %s22039_s10 = smov [#allocation13]  }
  0x46   :  { %s89_s11 = sshll.u32 %s22039_s10, 4  ;;  %s90_s11 = int_to_ptr.vmem [resolvable:$true] %s89_s11 }
  0x47   :  { %s21985_s12 = scalar_lea.vmem %s90_s11, 96  ;;  %p21990_p3 = scmp.lt.s32.totalorder %s90_s11, %s90_s11 }
  0x48   :  { %p21986_p2 = scmp.ne.s32.totalorder %s90_s11, %s21985_s12  ;;  %p21991_p4 = scmp.lt.s32.totalorder %s21985_s12, %s21985_s12 }
  0x4a   :  { %p21992_p5 = por %p21991_p4, %p21990_p3 }
  0x4c   :  { %p21993_p6 = pnand %p21992_p5, %p21986_p2 }
  0x4e   :  { %21996 = shalt.err (!%p21993_p6)
}
  0x4f   :  { %92 = dma.hbm_to_vmem [thread:$0]  %s23109_s6, 96, %s90_s11, [#allocation12]  }
  0x50   :  { %22017 = dma.done.wait [#allocation3], 1536  }
  0x51   :  { %22018 = vsyncadd [#allocation3], 4294965760 }
  0x52   :  { %22019 = dma.done.wait [#allocation6], 192  }
  0x53   :  { %22020 = vsyncadd [#allocation6], 4294967104 }
  0x54   :  { %22021 = dma.done.wait [#allocation9], 147840  }
  0x55   :  { %22022 = vsyncadd [#allocation9], 4294819456 }
  0x56   :  { %22023 = dma.done.wait [#allocation12], 147552  }
  0x57   :  { %22024 = vsyncadd [#allocation12], 4294819744  ;;  %v114_v0 = vld [vmem:[#allocation2] sm:$0xff]  ;;  %v115_v1 = vld [vmem:[#allocation2 + $0x8] sm:$0xff]  ;;  %s22040_s4 = smov [#allocation14]  }
  0x58   :  { %v116_v2 = vld [vmem:[#allocation2 + $0x10] sm:$0xff]  ;;  %v117_v3 = vld [vmem:[#allocation2 + $0x18] sm:$0xff]  ;;  %v126_v4 = vadd.f32 %v115_v1, %v114_v0  ;;  %v122_v7 = vld [vmem:[#allocation2 + $0x40] sm:$0xff]  ;;  %s17664_s6 = sshll.u32 %s22040_s4, 4  ;;  %s17665_s6 = int_to_ptr.vmem [resolvable:$true] %s17664_s6 }
  0x59   :  { %v120_v5 = vld [vmem:[#allocation2 + $0x30] sm:$0xff]  ;;  %v121_v6 = vld [vmem:[#allocation2 + $0x38] sm:$0xff]  ;;  %v118_v8 = vld [vmem:[#allocation2 + $0x20] sm:$0xff]  ;;  %s21997_s14 = scalar_lea.vmem %s17665_s6, 1536  ;;  %p22002_p8 = scmp.lt.s32.totalorder %s17665_s6, %s17665_s6 }
  0x5a   :  { %v127_v9 = vadd.f32 %v126_v4, %v116_v2  ;;  %v123_v10 = vld [vmem:[#allocation2 + $0x48] sm:$0xff]  ;;  %v133_v11 = vadd.f32 %v121_v6, %v120_v5  ;;  %v124_v13 = vld [vmem:[#allocation2 + $0x50] sm:$0xff]  ;;  %v125_v16 = vld [vmem:[#allocation2 + $0x58] sm:$0xff]  ;;  %p21998_p7 = scmp.ne.s32.totalorder %s17665_s6, %s21997_s14  ;;  %p22003_p9 = scmp.lt.s32.totalorder %s21997_s14, %s21997_s14 }
  0x5b   :  { %v119_v12 = vld [vmem:[#allocation2 + $0x28] sm:$0xff] }
  0x5c   :  { %v128_v14 = vadd.f32 %v127_v9, %v117_v3  ;;  %v134_v15 = vadd.f32 %v133_v11, %v122_v7  ;;  %v461_v22 = vld [vmem:[#allocation8 + $0x540] sm:$0xff]  ;;  %p22004_p10 = por %p22003_p9, %p22002_p8 }
  0x5d   :  { %v473_v23 = vld [vmem:[#allocation8 + $0x5a0] sm:$0xff] }
  0x5e   :  { %v129_v17 = vadd.f32 %v128_v14, %v118_v8  ;;  %v135_v18 = vadd.f32 %v134_v15, %v123_v10  ;;  %v845_v24 = vld [vmem:[#allocation8 + $0x1140] sm:$0xff]  ;;  %v17848_v25 = vcombine.high %v461_v22, %v473_v23  ;;  %v17847_v27 = vcombine.low %v461_v22, %v473_v23  ;;  %p22005_p11 = pnand %p22004_p10, %p21998_p7 }
  0x5f   :  { %v857_v26 = vld [vmem:[#allocation8 + $0x11a0] sm:$0xff] }
  0x60   :  { %v130_v19 = vadd.f32 %v129_v17, %v119_v12  ;;  %v136_v20 = vadd.f32 %v135_v18, %v124_v13  ;;  %v437_v28 = vld [vmem:[#allocation8 + $0x480] sm:$0xff]  ;;  %v18232_v30 = vcombine.high %v845_v24, %v857_v26  ;;  %v18231_v31 = vcombine.low %v845_v24, %v857_v26  ;;  %7331 = vmatprep.subr.bf16.mxu0 %v17848_v25 }
  0x61   :  { %v449_v29 = vld [vmem:[#allocation8 + $0x4e0] sm:$0xff]  ;;  %7332 = vmatpush1.bf16.msra.mxu0 %v17847_v27 }
  0x62   :  { %131 = vadd.xlane.f32.xlu0 %v130_v19  ;;  %v137_v21 = vadd.f32 %v136_v20, %v125_v16  ;;  %v17824_v32 = vcombine.high %v437_v28, %v449_v29  ;;  %v821_v33 = vld [vmem:[#allocation8 + $0x1080] sm:$0xff]  ;;  %7374 = vmatprep.subr.bf16.mxu1 %v18232_v30  ;;  %v17823_v40 = vcombine.low %v437_v28, %v449_v29 }
  0x63   :  { %v833_v34 = vld [vmem:[#allocation8 + $0x10e0] sm:$0xff]  ;;  %7375 = vmatpush1.bf16.msra.mxu1 %v18231_v31 }
  0x64   :  { %v413_v35 = vld [vmem:[#allocation8 + $0x3c0] sm:$0xff]  ;;  %v18208_v36 = vcombine.high %v821_v33, %v833_v34  ;;  %7333 = vmatprep.subr.bf16.mxu0 %v17824_v32  ;;  %v18207_v41 = vcombine.low %v821_v33, %v833_v34  ;;  %v21825_v32 = vld [vmem:[#allocation2] sm:$0xff] }
  0x65   :  { %v425_v37 = vld [vmem:[#allocation8 + $0x420] sm:$0xff]  ;;  %7334 = vmatpush1.bf16.msra.mxu0 %v17823_v40 }
  0x66   :  { %138 = vadd.xlane.f32.xlu0 %v137_v21  ;;  %v797_v38 = vld [vmem:[#allocation8 + $0xfc0] sm:$0xff]  ;;  %v17800_v42 = vcombine.high %v413_v35, %v425_v37  ;;  %7376 = vmatprep.subr.bf16.mxu1 %v18208_v36  ;;  %v17799_v48 = vcombine.low %v413_v35, %v425_v37 }
  0x67   :  { %v809_v39 = vld [vmem:[#allocation8 + $0x1020] sm:$0xff]  ;;  %7377 = vmatpush1.bf16.msra.mxu1 %v18207_v41 }
  0x68   :  { %v18184_v43 = vcombine.high %v797_v38, %v809_v39  ;;  %v389_v44 = vld [vmem:[#allocation8 + $0x300] sm:$0xff]  ;;  %7335 = vmatprep.subr.bf16.mxu0 %v17800_v42  ;;  %v18183_v49 = vcombine.low %v797_v38, %v809_v39  ;;  %v21828_v39 = vld [vmem:[#allocation2 + $0x18] sm:$0xff] }
  0x69   :  { %v401_v45 = vld [vmem:[#allocation8 + $0x360] sm:$0xff]  ;;  %7336 = vmatpush1.bf16.msra.mxu0 %v17799_v48 }
  0x6a   :  { %v773_v46 = vld [vmem:[#allocation8 + $0xf00] sm:$0xff]  ;;  %v17776_v50 = vcombine.high %v389_v44, %v401_v45  ;;  %7378 = vmatprep.subr.bf16.mxu1 %v18184_v43  ;;  %v17775_v56 = vcombine.low %v389_v44, %v401_v45  ;;  %v21829_v44 = vld [vmem:[#allocation2 + $0x20] sm:$0xff] }
  0x6b   :  { %v785_v47 = vld [vmem:[#allocation8 + $0xf60] sm:$0xff]  ;;  %7379 = vmatpush1.bf16.msra.mxu1 %v18183_v49 }
  0x6c   :  { %v18160_v51 = vcombine.high %v773_v46, %v785_v47  ;;  %v365_v52 = vld [vmem:[#allocation8 + $0x240] sm:$0xff]  ;;  %7337 = vmatprep.subr.bf16.mxu0 %v17776_v50  ;;  %v18159_v59 = vcombine.low %v773_v46, %v785_v47  ;;  %v21831_v50 = vld [vmem:[#allocation2 + $0x38] sm:$0xff] }
  0x6d   :  { %v377_v53 = vld [vmem:[#allocation8 + $0x2a0] sm:$0xff]  ;;  %7338 = vmatpush1.bf16.msra.mxu0 %v17775_v56 }
  0x6e   :  { %v749_v54 = vld [vmem:[#allocation8 + $0xe40] sm:$0xff]  ;;  %v17752_v60 = vcombine.high %v365_v52, %v377_v53  ;;  %7380 = vmatprep.subr.bf16.mxu1 %v18160_v51  ;;  %v17751_v0 = vcombine.low %v365_v52, %v377_v53  ;;  %v21832_v52 = vld [vmem:[#allocation2 + $0x40] sm:$0xff] }
  0x6f   :  { %v761_v55 = vld [vmem:[#allocation8 + $0xea0] sm:$0xff]  ;;  %7381 = vmatpush1.bf16.msra.mxu1 %v18159_v59 }
  0x70   :  { %v341_v57 = vld [vmem:[#allocation8 + $0x180] sm:$0xff]  ;;  %v18136_v63 = vcombine.high %v749_v54, %v761_v55  ;;  %7339 = vmatprep.subr.bf16.mxu0 %v17752_v60  ;;  %v18135_v3 = vcombine.low %v749_v54, %v761_v55 }
  0x71   :  { %v353_v58 = vld [vmem:[#allocation8 + $0x1e0] sm:$0xff]  ;;  %7340 = vmatpush1.bf16.msra.mxu0 %v17751_v0 }
  0x72   :  { %v725_v61 = vld [vmem:[#allocation8 + $0xd80] sm:$0xff]  ;;  %v17728_v4 = vcombine.high %v341_v57, %v353_v58  ;;  %7382 = vmatprep.subr.bf16.mxu1 %v18136_v63  ;;  %v17727_v8 = vcombine.low %v341_v57, %v353_v58 }
  0x73   :  { %v737_v62 = vld [vmem:[#allocation8 + $0xde0] sm:$0xff]  ;;  %7383 = vmatpush1.bf16.msra.mxu1 %v18135_v3 }
  0x74   :  { %v317_v1 = vld [vmem:[#allocation8 + $0xc0] sm:$0xff]  ;;  %v18112_v7 = vcombine.high %v725_v61, %v737_v62  ;;  %7341 = vmatprep.subr.bf16.mxu0 %v17728_v4  ;;  %v18111_v11 = vcombine.low %v725_v61, %v737_v62 }
  0x75   :  { %v329_v2 = vld [vmem:[#allocation8 + $0x120] sm:$0xff]  ;;  %7342 = vmatpush1.bf16.msra.mxu0 %v17727_v8 }
  0x76   :  { %v701_v5 = vld [vmem:[#allocation8 + $0xcc0] sm:$0xff]  ;;  %v17704_v12 = vcombine.high %v317_v1, %v329_v2  ;;  %7384 = vmatprep.subr.bf16.mxu1 %v18112_v7  ;;  %v17703_v16 = vcombine.low %v317_v1, %v329_v2 }
  0x77   :  { %v713_v6 = vld [vmem:[#allocation8 + $0xd20] sm:$0xff]  ;;  %7385 = vmatpush1.bf16.msra.mxu1 %v18111_v11 }
  0x78   :  { %v293_v9 = vld [vmem:[#allocation8] sm:$0xff]  ;;  %v18088_v15 = vcombine.high %v701_v5, %v713_v6  ;;  %7343 = vmatprep.subr.bf16.mxu0 %v17704_v12  ;;  %v18087_v19 = vcombine.low %v701_v5, %v713_v6  ;;  %v21836_v6 = vld [vmem:[#allocation2 + $0x58] sm:$0xff] }
  0x79   :  { %v305_v10 = vld [vmem:[#allocation8 + $0x60] sm:$0xff]  ;;  %7344 = vmatpush1.bf16.msra.mxu0 %v17703_v16 }
  0x7a   :  { %v677_v13 = vld [vmem:[#allocation8 + $0xc00] sm:$0xff]  ;;  %v17680_v20 = vcombine.high %v293_v9, %v305_v10  ;;  %7386 = vmatprep.subr.bf16.mxu1 %v18088_v15  ;;  %v17679_v24 = vcombine.low %v293_v9, %v305_v10 }
  0x7b   :  { %v689_v14 = vld [vmem:[#allocation8 + $0xc60] sm:$0xff]  ;;  %7387 = vmatpush1.bf16.msra.mxu1 %v18087_v19 }
  0x7c   :  { %v653_v17 = vld [vmem:[#allocation8 + $0xb40] sm:$0xff]  ;;  %v18064_v23 = vcombine.high %v677_v13, %v689_v14  ;;  %7345 = vmatprep.subr.bf16.mxu0 %v17680_v20  ;;  %v18063_v25 = vcombine.low %v677_v13, %v689_v14 }
  0x7d   :  { %v665_v18 = vld [vmem:[#allocation8 + $0xba0] sm:$0xff]  ;;  %7346 = vmatpush1.bf16.msra.mxu0 %v17679_v24 }
  0x7e   :  { %v1037_v21 = vld [vmem:[#allocation8 + $0x1740] sm:$0xff]  ;;  %v18040_v26 = vcombine.high %v653_v17, %v665_v18  ;;  %7388 = vmatprep.subr.bf16.mxu1 %v18064_v23  ;;  %v18039_v28 = vcombine.low %v653_v17, %v665_v18 }
  0x7f   :  { %v1049_v22 = vld [vmem:[#allocation8 + $0x17a0] sm:$0xff]  ;;  %7389 = vmatpush1.bf16.msra.mxu1 %v18063_v25 }
  0x80   :  { %v18424_v27 = vcombine.high %v1037_v21, %v1049_v22  ;;  %7347 = vmatprep.subr.bf16.mxu0 %v18040_v26  ;;  %v18423_v29 = vcombine.low %v1037_v21, %v1049_v22  ;;  %v21826_v34 = vld [vmem:[#allocation2 + $0x8] sm:$0xff]  ;;  %v21827_v36 = vld [vmem:[#allocation2 + $0x10] sm:$0xff] }
  0x81   :  { %7348 = vmatpush2.bf16.msra.mxu0 %v18039_v28  ;;  %v21830_v48 = vld [vmem:[#allocation2 + $0x30] sm:$0xff]  ;;  %v21833_v54 = vld [vmem:[#allocation2 + $0x28] sm:$0xff] }
  0x82   :  { %7390 = vmatprep.subr.bf16.mxu1 %v18424_v27  ;;  %v21834_v58 = vld [vmem:[#allocation2 + $0x48] sm:$0xff]  ;;  %v21835_v0 = vld [vmem:[#allocation2 + $0x50] sm:$0xff] }
  0x83   :  { %7391 = vmatpush2.bf16.msra.mxu1 %v18423_v29  ;;  %v629_v16 = vld [vmem:[#allocation8 + $0xa80] sm:$0xff] }
  0x84   :  { %v641_v17 = vld [vmem:[#allocation8 + $0xae0] sm:$0xff] }
  0x85   :  { %v1013_v18 = vld [vmem:[#allocation8 + $0x1680] sm:$0xff]  ;;  %v18016_v19 = vcombine.high %v629_v16, %v641_v17  ;;  %v18015_v22 = vcombine.low %v629_v16, %v641_v17 }
  0x86   :  { %v1025_v20 = vld [vmem:[#allocation8 + $0x16e0] sm:$0xff] }
  0x87   :  { %v18400_v21 = vcombine.high %v1013_v18, %v1025_v20  ;;  %v18399_v23 = vcombine.low %v1013_v18, %v1025_v20  ;;  %7349 = vmatprep.subr.bf16.mxu0 %v18016_v19  ;;  %v605_v24 = vld [vmem:[#allocation8 + $0x9c0] sm:$0xff] }
  0x88   :  { %7350 = vmatpush2.bf16.msra.mxu0 %v18015_v22  ;;  %v617_v25 = vld [vmem:[#allocation8 + $0xa20] sm:$0xff]  ;;  %v22157_v22 = vld [vmem:[#allocation8 + $0x548] sm:$0xff] }
  0x89   :  { %7392 = vmatprep.subr.bf16.mxu1 %v18400_v21  ;;  %v989_v26 = vld [vmem:[#allocation8 + $0x15c0] sm:$0xff]  ;;  %v17992_v27 = vcombine.high %v605_v24, %v617_v25 }
  0x8a   :  { %7393 = vmatpush2.bf16.msra.mxu1 %v18399_v23  ;;  %v1001_v28 = vld [vmem:[#allocation8 + $0x1620] sm:$0xff] }
  0x8b   :  { %v18376_v29 = vcombine.high %v989_v26, %v1001_v28  ;;  %7351 = vmatprep.subr.bf16.mxu0 %v17992_v27  ;;  %v22153_v20 = vld [vmem:[#allocation8 + $0x1d40] sm:$0xff] }
  0x8c   :  { %v22155_v21 = vld [vmem:[#allocation8 + $0x1da0] sm:$0xff] }
  0x8d   :  { %7394 = vmatprep.subr.bf16.mxu1 %v18376_v29  ;;  %v18616_v23 = vcombine.high %v22153_v20, %v22155_v21 }
  0xeb   :  { %v132_v30 = vpop.xlane.xlu0 %131 }
  0xec   :  { %v141_v31 = vmul.f32 0.0013020834, %v132_v30  ;;  %v17991_v30 = vcombine.low %v605_v24, %v617_v25  ;;  %v22161_v24 = vld [vmem:[#allocation8 + $0x5a8] sm:$0xff]  ;;  %v18615_v25 = vcombine.low %v22153_v20, %v22155_v21 }
  0xed   :  { %v17850_v27 = vcombine.high %v22157_v22, %v22161_v24 }
  0xee   :  { %v22105_v33 = vsub.f32 %v21825_v32, %v141_v31  ;;  %v22107_v35 = vsub.f32 %v21826_v34, %v141_v31  ;;  %v22109_v37 = vsub.f32 %v21827_v36, %v141_v31  ;;  %v22111_v40 = vsub.f32 %v21828_v39, %v141_v31  ;;  %7352 = vmatpush2.bf16.msra.mxu0 %v17991_v30  ;;  %v581_v32 = vld [vmem:[#allocation8 + $0x900] sm:$0xff] }
  0xef   :  { %v139_v38 = vpop.xlane.xlu0 %138  ;;  %v22117_v45 = vsub.f32 %v21829_v44, %v141_v31  ;;  %v22127_v55 = vsub.f32 %v21833_v54, %v141_v31  ;;  %v18375_v31 = vcombine.low %v989_v26, %v1001_v28  ;;  %v593_v34 = vld [vmem:[#allocation8 + $0x960] sm:$0xff]  ;;  %v17849_v26 = vcombine.low %v22157_v22, %v22161_v24 }
  0xf0   :  { %v142_v41 = vmul.f32 0.0013020834, %v139_v38  ;;  %v155_v42 = vmul.f32 %v22105_v33, %v22105_v33  ;;  %v156_v43 = vmul.f32 %v22107_v35, %v22107_v35  ;;  %v157_v46 = vmul.f32 %v22109_v37, %v22109_v37  ;;  %v965_v36 = vld [vmem:[#allocation8 + $0x1500] sm:$0xff] }
  0xf1   :  { %v158_v56 = vmul.f32 %v22111_v40, %v22111_v40  ;;  %v159_v62 = vmul.f32 %v22117_v45, %v22117_v45  ;;  %v160_v4 = vmul.f32 %v22127_v55, %v22127_v55  ;;  %7395 = vmatpush2.bf16.msra.mxu1 %v18375_v31  ;;  %v17968_v38 = vcombine.high %v581_v32, %v593_v34  ;;  %v977_v39 = vld [vmem:[#allocation8 + $0x1560] sm:$0xff] }
  0xf2   :  { %v167_v47 = vadd.f32 %v156_v43, %v155_v42  ;;  %v22121_v49 = vsub.f32 %v21830_v48, %v142_v41  ;;  %v22123_v51 = vsub.f32 %v21831_v50, %v142_v41  ;;  %v22125_v53 = vsub.f32 %v21832_v52, %v142_v41  ;;  %v557_v42 = vld [vmem:[#allocation8 + $0x840] sm:$0xff] }
  0xf3   :  { %v22131_v59 = vsub.f32 %v21834_v58, %v142_v41  ;;  %v22139_v1 = vsub.f32 %v21835_v0, %v142_v41  ;;  %v22145_v7 = vsub.f32 %v21836_v6, %v142_v41  ;;  %v17967_v41 = vcombine.low %v581_v32, %v593_v34  ;;  %v569_v43 = vld [vmem:[#allocation8 + $0x8a0] sm:$0xff]  ;;  %7353 = vmatprep.subr.bf16.mxu0 %v17968_v38 }
  0xf4   :  { %v168_v57 = vadd.f32 %v167_v47, %v157_v46  ;;  %v161_v60 = vmul.f32 %v22121_v49, %v22121_v49  ;;  %v162_v61 = vmul.f32 %v22123_v51, %v22123_v51  ;;  %v163_v2 = vmul.f32 %v22125_v53, %v22125_v53  ;;  %v941_v48 = vld [vmem:[#allocation8 + $0x1440] sm:$0xff] }
  0xf5   :  { %v164_v8 = vmul.f32 %v22131_v59, %v22131_v59  ;;  %v165_v11 = vmul.f32 %v22139_v1, %v22139_v1  ;;  %v166_v13 = vmul.f32 %v22145_v7, %v22145_v7  ;;  %v18352_v44 = vcombine.high %v965_v36, %v977_v39  ;;  %v953_v50 = vld [vmem:[#allocation8 + $0x14a0] sm:$0xff]  ;;  %7354 = vmatpush2.bf16.msra.mxu0 %v17967_v41 }
  0xf6   :  { %v169_v63 = vadd.f32 %v168_v57, %v158_v56  ;;  %v174_v3 = vadd.f32 %v162_v61, %v161_v60  ;;  %v18351_v46 = vcombine.low %v965_v36, %v977_v39  ;;  %v17944_v47 = vcombine.high %v557_v42, %v569_v43  ;;  %v533_v52 = vld [vmem:[#allocation8 + $0x780] sm:$0xff] }
  0xf7   :  { %v18328_v54 = vcombine.high %v941_v48, %v953_v50  ;;  %v545_v56 = vld [vmem:[#allocation8 + $0x7e0] sm:$0xff]  ;;  %7396 = vmatprep.subr.bf16.mxu1 %v18352_v44  ;;  %v17943_v60 = vcombine.low %v557_v42, %v569_v43  ;;  %v18327_v61 = vcombine.low %v941_v48, %v953_v50  ;;  %v201_v34 = vlaneseq  ;;  %v199_v42 = vld [vmem:[#allocation5] sm:$0x3f] }
  0xf8   :  { %v170_v5 = vadd.f32 %v169_v63, %v159_v62  ;;  %v175_v9 = vadd.f32 %v174_v3, %v163_v2  ;;  %v917_v57 = vld [vmem:[#allocation8 + $0x1380] sm:$0xff]  ;;  %7397 = vmatpush2.bf16.msra.mxu1 %v18351_v46  ;;  %7355 = vmatprep.subr.bf16.mxu0 %v17944_v47  ;;  %v17920_v62 = vcombine.high %v533_v52, %v545_v56  ;;  %v243_v47 = vld [vmem:[#allocation7] sm:$0x3f] }
  0xf9   :  { %v929_v58 = vld [vmem:[#allocation8 + $0x13e0] sm:$0xff]  ;;  %7398 = vmatprep.subr.bf16.mxu1 %v18328_v54  ;;  %7356 = vmatpush2.bf16.msra.mxu0 %v17943_v60  ;;  %v22169_v38 = vshrl.u32 %v201_v34, 7 }
  0xfa   :  { %v171_v10 = vadd.f32 %v170_v5, %v160_v4  ;;  %v176_v12 = vadd.f32 %v175_v9, %v164_v8  ;;  %v509_v63 = vld [vmem:[#allocation8 + $0x6c0] sm:$0xff]  ;;  %v18304_v2 = vcombine.high %v917_v57, %v929_v58  ;;  %v17919_v5 = vcombine.low %v533_v52, %v545_v56  ;;  %7357 = vmatprep.subr.bf16.mxu0 %v17920_v62 }
  0xfb   :  { %v521_v0 = vld [vmem:[#allocation8 + $0x720] sm:$0xff]  ;;  %v18303_v9 = vcombine.low %v917_v57, %v929_v58  ;;  %v22172_v39 = vsub.s32 1, %v22169_v38  ;;  %v22175_v41 = vsub.s32 3, %v22169_v38  ;;  %v22178_v43 = vsub.s32 0, %v22169_v38 }
  0xfc   :  { %172 = vadd.xlane.f32.xlu1 %v171_v10  ;;  %v177_v14 = vadd.f32 %v176_v12, %v165_v11  ;;  %v893_v3 = vld [vmem:[#allocation8 + $0x12c0] sm:$0xff]  ;;  %7399 = vmatpush2.bf16.msra.mxu1 %v18327_v61  ;;  %v17896_v10 = vcombine.high %v509_v63, %v521_v0  ;;  %v22181_v44 = vsub.s32 2, %v22169_v38  ;;  %v22184_v46 = vsub.s32 4, %v22169_v38 }
  0xfd   :  { %v905_v4 = vld [vmem:[#allocation8 + $0x1320] sm:$0xff]  ;;  %7400 = vmatprep.subr.bf16.mxu1 %v18304_v2  ;;  %7358 = vmatpush2.bf16.msra.mxu0 %v17919_v5  ;;  %23128 = vst [vmem:[#allocation20_spill] sm:$0xff] %v22175_v41  ;;  %23129 = vst [vmem:[#allocation21_spill] sm:$0xff] %v22178_v43  ;;  %v22187_v48 = vsub.s32 5, %v22169_v38  ;;  %v208_v50 = vrot.slane %v199_v42, %v22172_v39  ;;  %v216_v52 = vrot.slane %v199_v42, %v22175_v41 }
  0xfe   :  { %v178_v15 = vadd.f32 %v177_v14, %v166_v13  ;;  %v485_v6 = vld [vmem:[#allocation8 + $0x600] sm:$0xff]  ;;  %v18280_v12 = vcombine.high %v893_v3, %v905_v4  ;;  %v17895_v14 = vcombine.low %v509_v63, %v521_v0  ;;  %7359 = vmatprep.subr.bf16.mxu0 %v17896_v10  ;;  %23130 = vst [vmem:[#allocation22_spill] sm:$0xff] %v22181_v44  ;;  %23131 = vst [vmem:[#allocation23_spill] sm:$0xff] %v22184_v46 }
  0xff   :  { %v497_v8 = vld [vmem:[#allocation8 + $0x660] sm:$0xff]  ;;  %23132 = vst [vmem:[#allocation24_spill] sm:$0xff] %v22187_v48  ;;  %v204_v56 = vrot.slane %v199_v42, %v22178_v43  ;;  %v212_v57 = vrot.slane %v199_v42, %v22181_v44  ;;  %v220_v58 = vrot.slane %v199_v42, %v22184_v46  ;;  %v252_v0 = vrot.slane %v243_v47, %v22172_v39 }
 0x100   :  { %179 = vadd.xlane.f32.xlu1 %v178_v15  ;;  %v869_v11 = vld [vmem:[#allocation8 + $0x1200] sm:$0xff]  ;;  %7401 = vmatpush2.bf16.msra.mxu1 %v18303_v9  ;;  %v18279_v15 = vcombine.low %v893_v3, %v905_v4  ;;  %v17872_v16 = vcombine.high %v485_v6, %v497_v8  ;;  %v17871_v18 = vcombine.low %v485_v6, %v497_v8 }
 0x101   :  { %v881_v13 = vld [vmem:[#allocation8 + $0x1260] sm:$0xff]  ;;  %7402 = vmatprep.subr.bf16.mxu1 %v18280_v12  ;;  %7360 = vmatpush2.bf16.msra.mxu0 %v17895_v14  ;;  %v224_v3 = vrot.slane %v199_v42, %v22187_v48  ;;  %v260_v8 = vrot.slane %v243_v47, %v22175_v41  ;;  %v264_v10 = vrot.slane %v243_v47, %v22184_v46  ;;  %v450_v42 = vld [vmem:[#allocation8 + $0x4e8] sm:$0xff] }
 0x102   :  { %v18256_v17 = vcombine.high %v869_v11, %v881_v13  ;;  %7361 = vmatprep.subr.bf16.mxu0 %v17872_v16  ;;  %v18255_v19 = vcombine.low %v869_v11, %v881_v13 }
 0x104   :  { %7403 = vmatpush2.bf16.msra.mxu1 %v18279_v15 }
 0x105   :  { %7404 = vmatprep.subr.bf16.mxu1 %v18256_v17  ;;  %7362 = vmatpush2.bf16.msra.mxu0 %v17871_v18 }
 0x106   :  { %7417 = vmatprep.subr.bf16.mxu0 %v18616_v23 }
 0x108   :  { %7405 = vmatpush2.bf16.msra.mxu1 %v18255_v19 }
 0x109   :  { %7460 = vmatprep.subr.bf16.mxu1 %v17850_v27 }
 0x185   :  { %v173_v28 = vpop.xlane.xlu1 %172 }
 0x186   :  { %v181_v29 = vmul.f32 0.0013020834, %v173_v28 }
 0x188   :  { %v183_v30 = vadd.f32 1e-12, %v181_v29  ;;  %v1205_v29 = vld [vmem:[#allocation8 + $0x1c80] sm:$0xff] }
 0x189   :  { %v180_v31 = vpop.xlane.xlu1 %179 }
 0x18a   :  { %21725 = vrsqrt.f32 %v183_v30  ;;  %v182_v32 = vmul.f32 0.0013020834, %v180_v31  ;;  %v1217_v30 = vld [vmem:[#allocation8 + $0x1ce0] sm:$0xff] }
 0x18c   :  { %v184_v36 = vadd.f32 1e-12, %v182_v32 }
 0x18e   :  { %21727 = vrsqrt.f32 %v184_v36 }
 0x197   :  { %v21726_v54 = vpop.eup %21725 }
 0x198   :  { %v188_v60 = vmul.f32 %v21726_v54, %v22107_v35  ;;  %v190_v61 = vmul.f32 %v21726_v54, %v22111_v40  ;;  %v187_v62 = vmul.f32 %v21726_v54, %v22105_v33  ;;  %v189_v63 = vmul.f32 %v21726_v54, %v22109_v37 }
 0x199   :  { %v192_v2 = vmul.f32 %v21726_v54, %v22127_v55  ;;  %v191_v4 = vmul.f32 %v21726_v54, %v22117_v45  ;;  %v248_v35 = vrot.slane %v243_v47, %v22178_v43  ;;  %v256_v40 = vrot.slane %v243_v47, %v22181_v44 }
 0x19a   :  { %v232_v5 = vmul.f32 %v208_v50, %v188_v60  ;;  %v234_v6 = vmul.f32 %v216_v52, %v190_v61  ;;  %v268_v33 = vrot.slane %v243_v47, %v22187_v48  ;;  %v231_v12 = vmul.f32 %v204_v56, %v187_v62 }
 0x19b   :  { %v21728_v9 = vpop.eup %21727  ;;  %v235_v37 = vmul.f32 %v220_v58, %v191_v4  ;;  %v233_v45 = vmul.f32 %v212_v57, %v189_v63  ;;  %v236_v16 = vmul.f32 %v224_v3, %v192_v2  ;;  %v18592_v63 = vcombine.high %v1205_v29, %v1217_v30  ;;  %v1193_v2 = vld [vmem:[#allocation8 + $0x1c20] sm:$0xff] }
 0x19c   :  { %v194_v55 = vmul.f32 %v21728_v9, %v22123_v51  ;;  %v196_v11 = vmul.f32 %v21728_v9, %v22131_v59  ;;  %v276_v13 = vadd.f32 %v252_v0, %v232_v5  ;;  %v193_v14 = vmul.f32 %v21728_v9, %v22121_v49  ;;  %v438_v51 = vld [vmem:[#allocation8 + $0x488] sm:$0xff] }
 0x19d   :  { %v195_v15 = vmul.f32 %v21728_v9, %v22125_v53  ;;  %v278_v19 = vadd.f32 %v260_v8, %v234_v6  ;;  %v198_v23 = vmul.f32 %v21728_v9, %v22145_v7  ;;  %v197_v59 = vmul.f32 %v21728_v9, %v22139_v1 }
 0x19e   :  { %v238_v17 = vmul.f32 %v208_v50, %v194_v55  ;;  %v240_v18 = vmul.f32 %v216_v52, %v196_v11  ;;  %v237_v27 = vmul.f32 %v204_v56, %v193_v14  ;;  %v279_v31 = vadd.f32 %v264_v10, %v235_v37  ;;  %v390_v37 = vld [vmem:[#allocation8 + $0x308] sm:$0xff] }
 0x19f   :  { %v239_v28 = vmul.f32 %v212_v57, %v195_v15  ;;  %v275_v36 = vadd.f32 %v248_v35, %v231_v12  ;;  %v242_v49 = vmul.f32 %v224_v3, %v198_v23  ;;  %v277_v47 = vadd.f32 %v256_v40, %v233_v45  ;;  %v1181_v57 = vld [vmem:[#allocation8 + $0x1bc0] sm:$0xff]  ;;  %v426_v3 = vld [vmem:[#allocation8 + $0x428] sm:$0xff] }
 0x1a0   :  { %v282_v32 = vadd.f32 %v252_v0, %v238_v17  ;;  %v284_v34 = vadd.f32 %v260_v8, %v240_v18  ;;  %v281_v53 = vadd.f32 %v248_v35, %v237_v27  ;;  %v241_v52 = vmul.f32 %v220_v58, %v197_v59  ;;  %v414_v58 = vld [vmem:[#allocation8 + $0x3c8] sm:$0xff]  ;;  %v1157_v35 = vld [vmem:[#allocation8 + $0x1b00] sm:$0xff] }
 0x1a1   :  { %v283_v50 = vadd.f32 %v256_v40, %v239_v28  ;;  %v286_v56 = vadd.f32 %v268_v33, %v242_v49  ;;  %v280_v1 = vadd.f32 %v268_v33, %v236_v16  ;;  %v17826_v0 = vcombine.high %v438_v51, %v450_v42  ;;  %v1169_v33 = vld [vmem:[#allocation8 + $0x1b60] sm:$0xff]  ;;  %v366_v55 = vld [vmem:[#allocation8 + $0x248] sm:$0xff] }
 0x1a2   :  { %v22213_v54 = vpack.c.bf16 %v282_v32, %v276_v13  ;;  %v22215_v7 = vpack.c.bf16 %v284_v34, %v278_v19  ;;  %v22217_v60 = vpack.c.bf16 %v281_v53, %v275_v36  ;;  %v285_v62 = vadd.f32 %v264_v10, %v241_v52  ;;  %v402_v10 = vld [vmem:[#allocation8 + $0x368] sm:$0xff]  ;;  %v1109_v15 = vld [vmem:[#allocation8 + $0x1980] sm:$0xff] }
 0x1a3   :  { %v22219_v61 = vpack.c.bf16 %v283_v50, %v277_v47  ;;  %v22225_v4 = vpack.c.bf16 %v286_v56, %v280_v1  ;;  %v18591_v6 = vcombine.low %v1205_v29, %v1217_v30  ;;  %v17825_v8 = vcombine.low %v438_v51, %v450_v42  ;;  %v378_v11 = vld [vmem:[#allocation8 + $0x2a8] sm:$0xff]  ;;  %v1121_v16 = vld [vmem:[#allocation8 + $0x19e0] sm:$0xff] }
 0x1a4   :  { %7363 = vmatprep.mubr.bf16.mxu0 %v22213_v54  ;;  %7406 = vmatprep.mubr.bf16.mxu1 %v22215_v7  ;;  %v22227_v5 = vpack.c.bf16 %v285_v62, %v279_v31  ;;  %v18568_v9 = vcombine.high %v1181_v57, %v1193_v2  ;;  %v17802_v40 = vcombine.high %v414_v58, %v426_v3  ;;  %v342_v17 = vld [vmem:[#allocation8 + $0x188] sm:$0xff]  ;;  %v1085_v29 = vld [vmem:[#allocation8 + $0x18c0] sm:$0xff] }
 0x1a5   :  { %7364 = vmatmul.mubr.bf16.vlgmr.msra.gmra.mxu0 %v22217_v60  ;;  %7407 = vmatmul.mubr.bf16.vlgmr.msra.gmra.mxu1 %v22219_v61  ;;  %v18567_v20 = vcombine.low %v1181_v57, %v1193_v2  ;;  %v17801_v21 = vcombine.low %v414_v58, %v426_v3  ;;  %v18544_v22 = vcombine.high %v1157_v35, %v1169_v33  ;;  %v354_v18 = vld [vmem:[#allocation8 + $0x1e8] sm:$0xff]  ;;  %v1097_v30 = vld [vmem:[#allocation8 + $0x1920] sm:$0xff] }
 0x1a6   :  { %7418 = vmatpush1.bf16.msra.mxu0 %v18615_v25  ;;  %7461 = vmatpush1.bf16.msra.mxu1 %v17849_v26  ;;  %v17778_v24 = vcombine.high %v390_v37, %v402_v10  ;;  %v1133_v25 = vld [vmem:[#allocation8 + $0x1a40] sm:$0xff]  ;;  %v18543_v12 = vcombine.low %v1157_v35, %v1169_v33  ;;  %v17777_v45 = vcombine.low %v390_v37, %v402_v10  ;;  %v318_v51 = vld [vmem:[#allocation8 + $0xc8] sm:$0xff] }
 0x1a7   :  { %7449 = vmatprep.mubr.bf16.mxu0 %v22225_v4  ;;  %7492 = vmatprep.mubr.bf16.mxu1 %v22213_v54  ;;  %v1145_v26 = vld [vmem:[#allocation8 + $0x1aa0] sm:$0xff]  ;;  %v17754_v14 = vcombine.high %v366_v55, %v378_v11  ;;  %v17753_v23 = vcombine.low %v366_v55, %v378_v11  ;;  %v18496_v27 = vcombine.high %v1109_v15, %v1121_v16  ;;  %v330_v59 = vld [vmem:[#allocation8 + $0x128] sm:$0xff] }
 0x1a8   :  { %7419 = vmatprep.subr.bf16.mxu0 %v18592_v63  ;;  %7462 = vmatprep.subr.bf16.mxu1 %v17826_v0  ;;  %v18520_v13 = vcombine.high %v1133_v25, %v1145_v26  ;;  %v18519_v19 = vcombine.low %v1133_v25, %v1145_v26  ;;  %v17730_v28 = vcombine.high %v342_v17, %v354_v18  ;;  %v1061_v49 = vld [vmem:[#allocation8 + $0x1800] sm:$0xff]  ;;  %v294_v53 = vld [vmem:[#allocation8 + $0x8] sm:$0xff] }
 0x1a9   :  { %v18495_v31 = vcombine.low %v1109_v15, %v1121_v16  ;;  %v17729_v32 = vcombine.low %v342_v17, %v354_v18  ;;  %v18472_v34 = vcombine.high %v1085_v29, %v1097_v30  ;;  %v17706_v36 = vcombine.high %v318_v51, %v330_v59  ;;  %v1073_v42 = vld [vmem:[#allocation8 + $0x1860] sm:$0xff]  ;;  %v306_v47 = vld [vmem:[#allocation8 + $0x68] sm:$0xff] }
 0x1aa   :  { %7420 = vmatpush1.bf16.msra.mxu0 %v18591_v6  ;;  %7463 = vmatpush1.bf16.msra.mxu1 %v17825_v8  ;;  %v18471_v50 = vcombine.low %v1085_v29, %v1097_v30  ;;  %v17705_v52 = vcombine.low %v318_v51, %v330_v59  ;;  %v18448_v56 = vcombine.high %v1061_v49, %v1073_v42  ;;  %v1421_v1 = vld [vmem:[#allocation8 + $0x2340] sm:$0xff]  ;;  %v654_v63 = vld [vmem:[#allocation8 + $0xb48] sm:$0xff] }
 0x1ab   :  { %7421 = vmatprep.subr.bf16.mxu0 %v18568_v9  ;;  %7464 = vmatprep.subr.bf16.mxu1 %v17802_v40  ;;  %v17682_v57 = vcombine.high %v294_v53, %v306_v47  ;;  %v1433_v62 = vld [vmem:[#allocation8 + $0x23a0] sm:$0xff]  ;;  %v666_v0 = vld [vmem:[#allocation8 + $0xba8] sm:$0xff]  ;;  %v18447_v2 = vcombine.low %v1061_v49, %v1073_v42  ;;  %v17681_v58 = vcombine.low %v294_v53, %v306_v47 }
 0x1ac   :  { %v18808_v3 = vcombine.high %v1421_v1, %v1433_v62  ;;  %v18042_v6 = vcombine.high %v654_v63, %v666_v0  ;;  %v1397_v8 = vld [vmem:[#allocation8 + $0x2280] sm:$0xff]  ;;  %v630_v9 = vld [vmem:[#allocation8 + $0xa88] sm:$0xff]  ;;  %v18807_v33 = vcombine.low %v1421_v1, %v1433_v62  ;;  %v18041_v37 = vcombine.low %v654_v63, %v666_v0 }
 0x1ad   :  { %v1409_v35 = vld [vmem:[#allocation8 + $0x22e0] sm:$0xff]  ;;  %v642_v40 = vld [vmem:[#allocation8 + $0xae8] sm:$0xff] }
 0x1ae   :  { %7422 = vmatpush1.bf16.msra.mxu0 %v18567_v20  ;;  %7465 = vmatpush1.bf16.msra.mxu1 %v17801_v21  ;;  %v18784_v10 = vcombine.high %v1397_v8, %v1409_v35  ;;  %v18018_v20 = vcombine.high %v630_v9, %v642_v40  ;;  %v1373_v21 = vld [vmem:[#allocation8 + $0x21c0] sm:$0xff]  ;;  %v618_v25 = vld [vmem:[#allocation8 + $0xa28] sm:$0xff]  ;;  %v18783_v26 = vcombine.low %v1397_v8, %v1409_v35 }
 0x1af   :  { %7423 = vmatprep.subr.bf16.mxu0 %v18544_v22  ;;  %7466 = vmatprep.subr.bf16.mxu1 %v17778_v24  ;;  %v1385_v22 = vld [vmem:[#allocation8 + $0x2220] sm:$0xff]  ;;  %v606_v24 = vld [vmem:[#allocation8 + $0x9c8] sm:$0xff]  ;;  %v18017_v55 = vcombine.low %v630_v9, %v642_v40 }
 0x1b0   :  { %v18760_v11 = vcombine.high %v1373_v21, %v1385_v22  ;;  %v594_v15 = vld [vmem:[#allocation8 + $0x968] sm:$0xff]  ;;  %v18759_v16 = vcombine.low %v1373_v21, %v1385_v22  ;;  %v17993_v17 = vcombine.low %v606_v24, %v618_v25 }
 0x1b1   :  { %v570_v29 = vld [vmem:[#allocation8 + $0x8a8] sm:$0xff] }
 0x1b2   :  { %7424 = vmatpush1.bf16.msra.mxu0 %v18543_v12  ;;  %7467 = vmatpush1.bf16.msra.mxu1 %v17777_v45  ;;  %v17994_v12 = vcombine.high %v606_v24, %v618_v25  ;;  %v1349_v45 = vld [vmem:[#allocation8 + $0x2100] sm:$0xff]  ;;  %v546_v49 = vld [vmem:[#allocation8 + $0x7e8] sm:$0xff] }
 0x1b3   :  { %7425 = vmatprep.subr.bf16.mxu0 %v18520_v13  ;;  %7468 = vmatprep.subr.bf16.mxu1 %v17754_v14  ;;  %v1361_v13 = vld [vmem:[#allocation8 + $0x2160] sm:$0xff]  ;;  %v582_v14 = vld [vmem:[#allocation8 + $0x908] sm:$0xff] }
 0x1b4   :  { %v18736_v18 = vcombine.high %v1349_v45, %v1361_v13  ;;  %v18735_v30 = vcombine.low %v1349_v45, %v1361_v13  ;;  %v17969_v51 = vcombine.low %v582_v14, %v594_v15  ;;  %v522_v1 = vld [vmem:[#allocation8 + $0x728] sm:$0xff] }
 0x1b5   :  { %v498_v8 = vld [vmem:[#allocation8 + $0x668] sm:$0xff] }
 0x1b6   :  { %7426 = vmatpush1.bf16.msra.mxu0 %v18519_v19  ;;  %7469 = vmatpush1.bf16.msra.mxu1 %v17753_v23  ;;  %v17970_v19 = vcombine.high %v582_v14, %v594_v15  ;;  %v1325_v23 = vld [vmem:[#allocation8 + $0x2040] sm:$0xff]  ;;  %v1242_v21 = vld [vmem:[#allocation8 + $0x1da8] sm:$0xff] }
 0x1b7   :  { %7427 = vmatprep.subr.bf16.mxu0 %v18496_v27  ;;  %7470 = vmatprep.subr.bf16.mxu1 %v17730_v28  ;;  %v1337_v27 = vld [vmem:[#allocation8 + $0x20a0] sm:$0xff]  ;;  %v558_v28 = vld [vmem:[#allocation8 + $0x848] sm:$0xff] }
 0x1b8   :  { %v18712_v59 = vcombine.high %v1325_v23, %v1337_v27  ;;  %v18711_v42 = vcombine.low %v1325_v23, %v1337_v27  ;;  %v17945_v53 = vcombine.low %v558_v28, %v570_v29  ;;  %v1218_v45 = vld [vmem:[#allocation8 + $0x1ce8] sm:$0xff] }
 0x1b9   :  { %v1194_v23 = vld [vmem:[#allocation8 + $0x1c28] sm:$0xff] }
 0x1ba   :  { %7428 = vmatpush1.bf16.msra.mxu0 %v18495_v31  ;;  %7471 = vmatpush1.bf16.msra.mxu1 %v17729_v32  ;;  %v17946_v31 = vcombine.high %v558_v28, %v570_v29  ;;  %v1301_v32 = vld [vmem:[#allocation8 + $0x1f80] sm:$0xff] }
 0x1bb   :  { %7429 = vmatprep.subr.bf16.mxu0 %v18472_v34  ;;  %7472 = vmatprep.subr.bf16.mxu1 %v17706_v36  ;;  %v1313_v34 = vld [vmem:[#allocation8 + $0x1fe0] sm:$0xff]  ;;  %v534_v36 = vld [vmem:[#allocation8 + $0x788] sm:$0xff] }
 0x1bc   :  { %v18688_v47 = vcombine.high %v1301_v32, %v1313_v34  ;;  %v18687_v62 = vcombine.low %v1301_v32, %v1313_v34  ;;  %v17921_v63 = vcombine.low %v534_v36, %v546_v49  ;;  %v1170_v32 = vld [vmem:[#allocation8 + $0x1b68] sm:$0xff] }
 0x1be   :  { %7430 = vmatpush1.bf16.msra.mxu0 %v18471_v50  ;;  %7473 = vmatpush1.bf16.msra.mxu1 %v17705_v52  ;;  %v17922_v50 = vcombine.high %v534_v36, %v546_v49  ;;  %v1277_v52 = vld [vmem:[#allocation8 + $0x1ec0] sm:$0xff] }
 0x1bf   :  { %7431 = vmatprep.subr.bf16.mxu0 %v18448_v56  ;;  %7474 = vmatprep.subr.bf16.mxu1 %v17682_v57  ;;  %v1289_v56 = vld [vmem:[#allocation8 + $0x1f20] sm:$0xff]  ;;  %v510_v57 = vld [vmem:[#allocation8 + $0x6c8] sm:$0xff] }
 0x1c0   :  { %v18664_v0 = vcombine.high %v1277_v52, %v1289_v56  ;;  %v18663_v35 = vcombine.low %v1277_v52, %v1289_v56  ;;  %v17897_v9 = vcombine.low %v510_v57, %v522_v1  ;;  %v1146_v52 = vld [vmem:[#allocation8 + $0x1aa8] sm:$0xff] }
 0x1c2   :  { %7432 = vmatpush1.bf16.msra.mxu0 %v18447_v2  ;;  %7475 = vmatpush1.bf16.msra.mxu1 %v17681_v58  ;;  %v17898_v2 = vcombine.high %v510_v57, %v522_v1  ;;  %v1253_v58 = vld [vmem:[#allocation8 + $0x1e00] sm:$0xff] }
 0x1c3   :  { %7433 = vmatprep.subr.bf16.mxu0 %v18808_v3  ;;  %7476 = vmatprep.subr.bf16.mxu1 %v18042_v6  ;;  %v1265_v3 = vld [vmem:[#allocation8 + $0x1e60] sm:$0xff]  ;;  %v486_v6 = vld [vmem:[#allocation8 + $0x608] sm:$0xff] }
 0x1c4   :  { %v18640_v40 = vcombine.high %v1253_v58, %v1265_v3  ;;  %v18639_v22 = vcombine.low %v1253_v58, %v1265_v3  ;;  %v17873_v24 = vcombine.low %v486_v6, %v498_v8  ;;  %v1122_v58 = vld [vmem:[#allocation8 + $0x19e8] sm:$0xff] }
 0x1c6   :  { %7434 = vmatpush2.bf16.msra.mxu0 %v18807_v33  ;;  %7477 = vmatpush2.bf16.msra.mxu1 %v18041_v37  ;;  %v17874_v33 = vcombine.high %v486_v6, %v498_v8  ;;  %v846_v37 = vld [vmem:[#allocation8 + $0x1148] sm:$0xff] }
 0x1c7   :  { %7435 = vmatprep.subr.bf16.mxu0 %v18784_v10  ;;  %7478 = vmatprep.subr.bf16.mxu1 %v18018_v20  ;;  %v858_v10 = vld [vmem:[#allocation8 + $0x11a8] sm:$0xff] }
 0x1c8   :  { %v1230_v20 = vld [vmem:[#allocation8 + $0x1d48] sm:$0xff]  ;;  %v18234_v25 = vcombine.high %v846_v37, %v858_v10  ;;  %v18233_v13 = vcombine.low %v846_v37, %v858_v10 }
 0x1c9   :  { %v18617_v14 = vcombine.low %v1230_v20, %v1242_v21  ;;  %v1098_v37 = vld [vmem:[#allocation8 + $0x1928] sm:$0xff] }
 0x1ca   :  { %7436 = vmatpush2.bf16.msra.mxu0 %v18783_v26  ;;  %7479 = vmatpush2.bf16.msra.mxu1 %v18017_v55  ;;  %v18618_v26 = vcombine.high %v1230_v20, %v1242_v21  ;;  %v822_v55 = vld [vmem:[#allocation8 + $0x1088] sm:$0xff] }
 0x1cb   :  { %7437 = vmatprep.subr.bf16.mxu0 %v18760_v11  ;;  %7480 = vmatprep.subr.bf16.mxu1 %v17994_v12  ;;  %v834_v11 = vld [vmem:[#allocation8 + $0x10e8] sm:$0xff] }
 0x1cc   :  { %v1206_v12 = vld [vmem:[#allocation8 + $0x1c88] sm:$0xff]  ;;  %v18210_v15 = vcombine.high %v822_v55, %v834_v11  ;;  %v18209_v27 = vcombine.low %v822_v55, %v834_v11 }
 0x1cd   :  { %v18593_v28 = vcombine.low %v1206_v12, %v1218_v45  ;;  %v1074_v55 = vld [vmem:[#allocation8 + $0x1868] sm:$0xff] }
 0x1ce   :  { %7438 = vmatpush2.bf16.msra.mxu0 %v18759_v16  ;;  %7481 = vmatpush2.bf16.msra.mxu1 %v17993_v17  ;;  %v18594_v16 = vcombine.high %v1206_v12, %v1218_v45  ;;  %v798_v17 = vld [vmem:[#allocation8 + $0xfc8] sm:$0xff] }
 0x1cf   :  { %7439 = vmatprep.subr.bf16.mxu0 %v18736_v18  ;;  %7482 = vmatprep.subr.bf16.mxu1 %v17970_v19  ;;  %v810_v18 = vld [vmem:[#allocation8 + $0x1028] sm:$0xff] }
 0x1d0   :  { %v1182_v19 = vld [vmem:[#allocation8 + $0x1bc8] sm:$0xff]  ;;  %v18186_v29 = vcombine.high %v798_v17, %v810_v18  ;;  %v18185_v34 = vcombine.low %v798_v17, %v810_v18 }
 0x1d1   :  { %v18569_v36 = vcombine.low %v1182_v19, %v1194_v23  ;;  %v1434_v17 = vld [vmem:[#allocation8 + $0x23a8] sm:$0xff] }
 0x1d2   :  { %7440 = vmatpush2.bf16.msra.mxu0 %v18735_v30  ;;  %7483 = vmatpush2.bf16.msra.mxu1 %v17969_v51  ;;  %v18570_v30 = vcombine.high %v1182_v19, %v1194_v23  ;;  %v774_v51 = vld [vmem:[#allocation8 + $0xf08] sm:$0xff] }
 0x1d3   :  { %7441 = vmatprep.subr.bf16.mxu0 %v18712_v59  ;;  %7484 = vmatprep.subr.bf16.mxu1 %v17946_v31  ;;  %v786_v59 = vld [vmem:[#allocation8 + $0xf68] sm:$0xff] }
 0x1d4   :  { %v1158_v31 = vld [vmem:[#allocation8 + $0x1b08] sm:$0xff]  ;;  %v18162_v49 = vcombine.high %v774_v51, %v786_v59  ;;  %v18161_v56 = vcombine.low %v774_v51, %v786_v59 }
 0x1d5   :  { %v18545_v57 = vcombine.low %v1158_v31, %v1170_v32  ;;  %v1410_v51 = vld [vmem:[#allocation8 + $0x22e8] sm:$0xff] }
 0x1d6   :  { %7442 = vmatpush2.bf16.msra.mxu0 %v18711_v42  ;;  %7485 = vmatpush2.bf16.msra.mxu1 %v17945_v53  ;;  %v18546_v42 = vcombine.high %v1158_v31, %v1170_v32  ;;  %v750_v53 = vld [vmem:[#allocation8 + $0xe48] sm:$0xff] }
 0x1d7   :  { %7443 = vmatprep.subr.bf16.mxu0 %v18688_v47  ;;  %7486 = vmatprep.subr.bf16.mxu1 %v17922_v50  ;;  %v762_v47 = vld [vmem:[#allocation8 + $0xea8] sm:$0xff] }
 0x1d8   :  { %v1134_v50 = vld [vmem:[#allocation8 + $0x1a48] sm:$0xff]  ;;  %v18138_v1 = vcombine.high %v750_v53, %v762_v47  ;;  %v18137_v3 = vcombine.low %v750_v53, %v762_v47 }
 0x1d9   :  { %v18521_v6 = vcombine.low %v1134_v50, %v1146_v52  ;;  %v1386_v53 = vld [vmem:[#allocation8 + $0x2228] sm:$0xff] }
 0x1da   :  { %7444 = vmatpush2.bf16.msra.mxu0 %v18687_v62  ;;  %7487 = vmatpush2.bf16.msra.mxu1 %v17921_v63  ;;  %v726_v62 = vld [vmem:[#allocation8 + $0xd88] sm:$0xff] }
 0x1db   :  { %7445 = vmatprep.subr.bf16.mxu0 %v18664_v0  ;;  %7488 = vmatprep.subr.bf16.mxu1 %v17898_v2  ;;  %v738_v63 = vld [vmem:[#allocation8 + $0xde8] sm:$0xff]  ;;  %v18522_v2 = vcombine.high %v1134_v50, %v1146_v52 }
 0x1dc   :  { %v1110_v0 = vld [vmem:[#allocation8 + $0x1988] sm:$0xff]  ;;  %v18114_v8 = vcombine.high %v726_v62, %v738_v63  ;;  %v18113_v10 = vcombine.low %v726_v62, %v738_v63 }
 0x1dd   :  { %v18497_v20 = vcombine.low %v1110_v0, %v1122_v58  ;;  %v1362_v63 = vld [vmem:[#allocation8 + $0x2168] sm:$0xff] }
 0x1de   :  { %7446 = vmatpush2.bf16.msra.mxu0 %v18663_v35  ;;  %7489 = vmatpush2.bf16.msra.mxu1 %v17897_v9  ;;  %v702_v35 = vld [vmem:[#allocation8 + $0xcc8] sm:$0xff] }
 0x1df   :  { %7447 = vmatprep.subr.bf16.mxu0 %v18640_v40  ;;  %7490 = vmatprep.subr.bf16.mxu1 %v17874_v33  ;;  %v714_v9 = vld [vmem:[#allocation8 + $0xd28] sm:$0xff]  ;;  %v18498_v33 = vcombine.high %v1110_v0, %v1122_v58 }
 0x1e0   :  { %v1086_v40 = vld [vmem:[#allocation8 + $0x18c8] sm:$0xff]  ;;  %v18090_v21 = vcombine.high %v702_v35, %v714_v9  ;;  %v18089_v11 = vcombine.low %v702_v35, %v714_v9 }
 0x1e1   :  { %v18473_v12 = vcombine.low %v1086_v40, %v1098_v37  ;;  %v1338_v9 = vld [vmem:[#allocation8 + $0x20a8] sm:$0xff] }
 0x1e2   :  { %7448 = vmatpush2.bf16.msra.mxu0 %v18639_v22  ;;  %7491 = vmatpush2.bf16.msra.mxu1 %v17873_v24  ;;  %v678_v22 = vld [vmem:[#allocation8 + $0xc08] sm:$0xff] }
 0x1e3   :  { %7503 = vmatprep.subr.bf16.mxu0 %v18234_v25  ;;  %7546 = vmatprep.subr.bf16.mxu1 %v18618_v26  ;;  %v690_v24 = vld [vmem:[#allocation8 + $0xc68] sm:$0xff]  ;;  %v18474_v26 = vcombine.high %v1086_v40, %v1098_v37 }
 0x1e4   :  { %v1062_v25 = vld [vmem:[#allocation8 + $0x1808] sm:$0xff]  ;;  %v18066_v45 = vcombine.high %v678_v22, %v690_v24  ;;  %v18065_v18 = vcombine.low %v678_v22, %v690_v24 }
 0x1e5   :  { %7450 = vmatmul.mubr.bf16.vlgmr.msra.gmra.mxu0 %v22227_v5  ;;  %7493 = vmatmul.mubr.bf16.vlgmr.msra.gmra.mxu1 %v22217_v60  ;;  %v18449_v19 = vcombine.low %v1062_v25, %v1074_v55  ;;  %v1314_v24 = vld [vmem:[#allocation8 + $0x1fe8] sm:$0xff] }
 0x1e6   :  { %7504 = vmatpush1.bf16.msra.mxu0 %v18233_v13  ;;  %7535 = vmatprep.mubr.bf16.mxu0 %v22215_v7  ;;  %v1038_v13 = vld [vmem:[#allocation8 + $0x1748] sm:$0xff] }
 0x1e7   :  { %7547 = vmatpush1.bf16.msra.mxu1 %v18617_v14  ;;  %7578 = vmatprep.mubr.bf16.mxu1 %v22225_v4  ;;  %v1050_v14 = vld [vmem:[#allocation8 + $0x17a8] sm:$0xff] }
 0x1e8   :  { %7505 = vmatprep.subr.bf16.mxu0 %v18210_v15  ;;  %7548 = vmatprep.subr.bf16.mxu1 %v18594_v16  ;;  %v1422_v15 = vld [vmem:[#allocation8 + $0x2348] sm:$0xff]  ;;  %v18450_v16 = vcombine.high %v1062_v25, %v1074_v55  ;;  %v18426_v23 = vcombine.high %v1038_v13, %v1050_v14  ;;  %v18425_v59 = vcombine.low %v1038_v13, %v1050_v14 }
 0x1e9   :  { %v18809_v31 = vcombine.low %v1422_v15, %v1434_v17  ;;  %v1290_v14 = vld [vmem:[#allocation8 + $0x1f28] sm:$0xff] }
 0x1ea   :  { %7506 = vmatpush1.bf16.msra.mxu0 %v18209_v27  ;;  %v1014_v27 = vld [vmem:[#allocation8 + $0x1688] sm:$0xff] }
 0x1eb   :  { %7549 = vmatpush1.bf16.msra.mxu1 %v18593_v28  ;;  %7507 = vmatprep.subr.bf16.mxu0 %v18186_v29  ;;  %v1026_v28 = vld [vmem:[#allocation8 + $0x16e8] sm:$0xff] }
 0x1ec   :  { %7550 = vmatprep.subr.bf16.mxu1 %v18570_v30  ;;  %v1398_v29 = vld [vmem:[#allocation8 + $0x2288] sm:$0xff]  ;;  %v18810_v30 = vcombine.high %v1422_v15, %v1434_v17  ;;  %v18402_v32 = vcombine.high %v1014_v27, %v1026_v28  ;;  %v18401_v47 = vcombine.low %v1014_v27, %v1026_v28 }
 0x1ed   :  { %v18785_v50 = vcombine.low %v1398_v29, %v1410_v51  ;;  %v1266_v28 = vld [vmem:[#allocation8 + $0x1e68] sm:$0xff] }
 0x1ee   :  { %7508 = vmatpush1.bf16.msra.mxu0 %v18185_v34  ;;  %v990_v34 = vld [vmem:[#allocation8 + $0x15c8] sm:$0xff] }
 0x1ef   :  { %7551 = vmatpush1.bf16.msra.mxu1 %v18569_v36  ;;  %7509 = vmatprep.subr.bf16.mxu0 %v18162_v49  ;;  %v1002_v36 = vld [vmem:[#allocation8 + $0x1628] sm:$0xff] }
 0x1f0   :  { %7552 = vmatprep.subr.bf16.mxu1 %v18546_v42  ;;  %v1374_v49 = vld [vmem:[#allocation8 + $0x21c8] sm:$0xff]  ;;  %v18786_v42 = vcombine.high %v1398_v29, %v1410_v51  ;;  %v18378_v52 = vcombine.high %v990_v34, %v1002_v36  ;;  %v18377_v0 = vcombine.low %v990_v34, %v1002_v36  ;;  %v859_v36 = vld [vmem:[#allocation8 + $0x11b0] sm:$0xff] }
 0x1f1   :  { %v18762_v62 = vcombine.high %v1374_v49, %v1386_v53 }
 0x1f2   :  { %7510 = vmatpush1.bf16.msra.mxu0 %v18161_v56  ;;  %v966_v56 = vld [vmem:[#allocation8 + $0x1508] sm:$0xff] }
 0x1f3   :  { %7553 = vmatpush1.bf16.msra.mxu1 %v18545_v57  ;;  %7511 = vmatprep.subr.bf16.mxu0 %v18138_v1  ;;  %v978_v57 = vld [vmem:[#allocation8 + $0x1568] sm:$0xff] }
 0x1f4   :  { %7554 = vmatprep.subr.bf16.mxu1 %v18522_v2  ;;  %v1350_v1 = vld [vmem:[#allocation8 + $0x2108] sm:$0xff]  ;;  %v18761_v2 = vcombine.low %v1374_v49, %v1386_v53  ;;  %v18354_v58 = vcombine.high %v966_v56, %v978_v57  ;;  %v18353_v40 = vcombine.low %v966_v56, %v978_v57  ;;  %v823_v56 = vld [vmem:[#allocation8 + $0x1090] sm:$0xff] }
 0x1f5   :  { %v18738_v35 = vcombine.high %v1350_v1, %v1362_v63  ;;  %v835_v57 = vld [vmem:[#allocation8 + $0x10f0] sm:$0xff] }
 0x1f6   :  { %7512 = vmatpush1.bf16.msra.mxu0 %v18137_v3  ;;  %v942_v3 = vld [vmem:[#allocation8 + $0x1448] sm:$0xff] }
 0x1f7   :  { %7555 = vmatpush1.bf16.msra.mxu1 %v18521_v6  ;;  %7513 = vmatprep.subr.bf16.mxu0 %v18114_v8  ;;  %v954_v6 = vld [vmem:[#allocation8 + $0x14a8] sm:$0xff] }
 0x1f8   :  { %7556 = vmatprep.subr.bf16.mxu1 %v18498_v33  ;;  %v1326_v8 = vld [vmem:[#allocation8 + $0x2048] sm:$0xff]  ;;  %v18737_v33 = vcombine.low %v1350_v1, %v1362_v63  ;;  %v18330_v37 = vcombine.high %v942_v3, %v954_v6  ;;  %v18329_v25 = vcombine.low %v942_v3, %v954_v6  ;;  %v18212_v3 = vcombine.high %v823_v56, %v835_v57  ;;  %v811_v6 = vld [vmem:[#allocation8 + $0x1030] sm:$0xff] }
 0x1f9   :  { %v18714_v22 = vcombine.high %v1326_v8, %v1338_v9 }
 0x1fa   :  { %7514 = vmatpush1.bf16.msra.mxu0 %v18113_v10  ;;  %v918_v10 = vld [vmem:[#allocation8 + $0x1388] sm:$0xff] }
 0x1fb   :  { %7557 = vmatpush1.bf16.msra.mxu1 %v18497_v20  ;;  %7515 = vmatprep.subr.bf16.mxu0 %v18090_v21  ;;  %v930_v20 = vld [vmem:[#allocation8 + $0x13e8] sm:$0xff] }
 0x1fc   :  { %7558 = vmatprep.subr.bf16.mxu1 %v18474_v26  ;;  %v1302_v21 = vld [vmem:[#allocation8 + $0x1f88] sm:$0xff]  ;;  %v18713_v26 = vcombine.low %v1326_v8, %v1338_v9  ;;  %v18306_v55 = vcombine.high %v918_v10, %v930_v20  ;;  %v18305_v15 = vcombine.low %v918_v10, %v930_v20  ;;  %v775_v10 = vld [vmem:[#allocation8 + $0xf10] sm:$0xff] }
 0x1fd   :  { %v18690_v13 = vcombine.high %v1302_v21, %v1314_v24  ;;  %v787_v20 = vld [vmem:[#allocation8 + $0xf70] sm:$0xff] }
 0x1fe   :  { %7516 = vmatpush1.bf16.msra.mxu0 %v18089_v11  ;;  %v894_v11 = vld [vmem:[#allocation8 + $0x12c8] sm:$0xff] }
 0x1ff   :  { %7559 = vmatpush1.bf16.msra.mxu1 %v18473_v12  ;;  %7517 = vmatprep.subr.bf16.mxu0 %v18066_v45  ;;  %v906_v12 = vld [vmem:[#allocation8 + $0x1328] sm:$0xff] }
 0x200   :  { %7560 = vmatprep.subr.bf16.mxu1 %v18450_v16  ;;  %v1278_v45 = vld [vmem:[#allocation8 + $0x1ec8] sm:$0xff]  ;;  %v18689_v16 = vcombine.low %v1302_v21, %v1314_v24  ;;  %v18282_v17 = vcombine.high %v894_v11, %v906_v12  ;;  %v18281_v29 = vcombine.low %v894_v11, %v906_v12  ;;  %v751_v11 = vld [vmem:[#allocation8 + $0xe50] sm:$0xff] }
 0x201   :  { %v18666_v27 = vcombine.high %v1278_v45, %v1290_v14  ;;  %v763_v12 = vld [vmem:[#allocation8 + $0xeb0] sm:$0xff] }
 0x202   :  { %7518 = vmatpush1.bf16.msra.mxu0 %v18065_v18  ;;  %v870_v18 = vld [vmem:[#allocation8 + $0x1208] sm:$0xff] }
 0x203   :  { %7561 = vmatpush1.bf16.msra.mxu1 %v18449_v19  ;;  %7519 = vmatprep.subr.bf16.mxu0 %v18426_v23  ;;  %v882_v19 = vld [vmem:[#allocation8 + $0x1268] sm:$0xff] }
 0x204   :  { %7562 = vmatprep.subr.bf16.mxu1 %v18810_v30  ;;  %v1254_v23 = vld [vmem:[#allocation8 + $0x1e08] sm:$0xff]  ;;  %v18665_v30 = vcombine.low %v1278_v45, %v1290_v14  ;;  %v18258_v51 = vcombine.high %v870_v18, %v882_v19  ;;  %v18257_v49 = vcombine.low %v870_v18, %v882_v19  ;;  %v727_v18 = vld [vmem:[#allocation8 + $0xd90] sm:$0xff] }
 0x205   :  { %v18642_v34 = vcombine.high %v1254_v23, %v1266_v28  ;;  %v739_v19 = vld [vmem:[#allocation8 + $0xdf0] sm:$0xff] }
 0x206   :  { %7520 = vmatpush2.bf16.msra.mxu0 %v18425_v59  ;;  %v463_v59 = vld [vmem:[#allocation8 + $0x550] sm:$0xff] }
 0x207   :  { %7563 = vmatpush2.bf16.msra.mxu1 %v18809_v31  ;;  %7521 = vmatprep.subr.bf16.mxu0 %v18402_v32  ;;  %v475_v31 = vld [vmem:[#allocation8 + $0x5b0] sm:$0xff] }
 0x208   :  { %7564 = vmatprep.subr.bf16.mxu1 %v18786_v42  ;;  %v847_v32 = vld [vmem:[#allocation8 + $0x1150] sm:$0xff]  ;;  %v18641_v42 = vcombine.low %v1254_v23, %v1266_v28  ;;  %v17852_v53 = vcombine.high %v463_v59, %v475_v31  ;;  %v17851_v1 = vcombine.low %v463_v59, %v475_v31 }
 0x209   :  { %v703_v59 = vld [vmem:[#allocation8 + $0xcd0] sm:$0xff] }
 0x20a   :  { %7522 = vmatpush2.bf16.msra.mxu0 %v18401_v47  ;;  %v439_v47 = vld [vmem:[#allocation8 + $0x490] sm:$0xff] }
 0x20b   :  { %7565 = vmatpush2.bf16.msra.mxu1 %v18785_v50  ;;  %7523 = vmatprep.subr.bf16.mxu0 %v18378_v52  ;;  %v451_v50 = vld [vmem:[#allocation8 + $0x4f0] sm:$0xff]  ;;  %v18236_v52 = vcombine.high %v847_v32, %v859_v36 }
 0x20c   :  { %7566 = vmatprep.subr.bf16.mxu1 %v18762_v62  ;;  %v18235_v62 = vcombine.low %v847_v32, %v859_v36  ;;  %v17828_v63 = vcombine.high %v439_v47, %v451_v50  ;;  %v17827_v8 = vcombine.low %v439_v47, %v451_v50  ;;  %v715_v31 = vld [vmem:[#allocation8 + $0xd30] sm:$0xff] }
 0x20d   :  { %v679_v47 = vld [vmem:[#allocation8 + $0xc10] sm:$0xff] }
 0x20e   :  { %7524 = vmatpush2.bf16.msra.mxu0 %v18377_v0  ;;  %v415_v0 = vld [vmem:[#allocation8 + $0x3d0] sm:$0xff] }
 0x20f   :  { %7567 = vmatpush2.bf16.msra.mxu1 %v18761_v2  ;;  %7525 = vmatprep.subr.bf16.mxu0 %v18354_v58  ;;  %v427_v2 = vld [vmem:[#allocation8 + $0x430] sm:$0xff] }
 0x210   :  { %7568 = vmatprep.subr.bf16.mxu1 %v18738_v35  ;;  %v799_v58 = vld [vmem:[#allocation8 + $0xfd0] sm:$0xff]  ;;  %v18211_v35 = vcombine.low %v823_v56, %v835_v57  ;;  %v17804_v9 = vcombine.high %v415_v0, %v427_v2  ;;  %v17803_v21 = vcombine.low %v415_v0, %v427_v2  ;;  %v18091_v56 = vcombine.low %v703_v59, %v715_v31 }
 0x211   :  { %v691_v50 = vld [vmem:[#allocation8 + $0xc70] sm:$0xff] }
 0x212   :  { %7526 = vmatpush2.bf16.msra.mxu0 %v18353_v40  ;;  %v18188_v40 = vcombine.high %v799_v58, %v811_v6  ;;  %v1039_v0 = vld [vmem:[#allocation8 + $0x1750] sm:$0xff] }
 0x213   :  { %7569 = vmatpush2.bf16.msra.mxu1 %v18737_v33  ;;  %7527 = vmatprep.subr.bf16.mxu0 %v18330_v37  ;;  %v391_v33 = vld [vmem:[#allocation8 + $0x310] sm:$0xff] }
 0x214   :  { %7570 = vmatprep.subr.bf16.mxu1 %v18714_v22  ;;  %v403_v37 = vld [vmem:[#allocation8 + $0x370] sm:$0xff]  ;;  %v18187_v22 = vcombine.low %v799_v58, %v811_v6 }
 0x215   :  { %v17780_v24 = vcombine.high %v391_v33, %v403_v37  ;;  %v17779_v45 = vcombine.low %v391_v33, %v403_v37  ;;  %v1051_v2 = vld [vmem:[#allocation8 + $0x17b0] sm:$0xff] }
 0x216   :  { %7528 = vmatpush2.bf16.msra.mxu0 %v18329_v25  ;;  %v18164_v25 = vcombine.high %v775_v10, %v787_v20  ;;  %v1027_v33 = vld [vmem:[#allocation8 + $0x16f0] sm:$0xff] }
 0x217   :  { %7571 = vmatpush2.bf16.msra.mxu1 %v18713_v26  ;;  %7529 = vmatprep.subr.bf16.mxu0 %v18306_v55  ;;  %v367_v26 = vld [vmem:[#allocation8 + $0x250] sm:$0xff] }
 0x218   :  { %7572 = vmatprep.subr.bf16.mxu1 %v18690_v13  ;;  %v379_v55 = vld [vmem:[#allocation8 + $0x2b0] sm:$0xff]  ;;  %v18163_v13 = vcombine.low %v775_v10, %v787_v20  ;;  %v18427_v10 = vcombine.low %v1039_v0, %v1051_v2 }
 0x219   :  { %v17756_v14 = vcombine.high %v367_v26, %v379_v55  ;;  %v17755_v23 = vcombine.low %v367_v26, %v379_v55  ;;  %v1003_v26 = vld [vmem:[#allocation8 + $0x1630] sm:$0xff] }
 0x21a   :  { %7530 = vmatpush2.bf16.msra.mxu0 %v18305_v15  ;;  %v18140_v15 = vcombine.high %v751_v11, %v763_v12 }
 0x21b   :  { %7573 = vmatpush2.bf16.msra.mxu1 %v18689_v16  ;;  %7531 = vmatprep.subr.bf16.mxu0 %v18282_v17  ;;  %v343_v16 = vld [vmem:[#allocation8 + $0x190] sm:$0xff] }
 0x21c   :  { %7574 = vmatprep.subr.bf16.mxu1 %v18666_v27  ;;  %v355_v17 = vld [vmem:[#allocation8 + $0x1f0] sm:$0xff]  ;;  %v18139_v27 = vcombine.low %v751_v11, %v763_v12 }
 0x21d   :  { %v17732_v28 = vcombine.high %v343_v16, %v355_v17  ;;  %v17731_v32 = vcombine.low %v343_v16, %v355_v17  ;;  %v979_v16 = vld [vmem:[#allocation8 + $0x1570] sm:$0xff] }
 0x21e   :  { %7532 = vmatpush2.bf16.msra.mxu0 %v18281_v29  ;;  %v18116_v29 = vcombine.high %v727_v18, %v739_v19 }
 0x21f   :  { %7575 = vmatpush2.bf16.msra.mxu1 %v18665_v30  ;;  %7533 = vmatprep.subr.bf16.mxu0 %v18258_v51  ;;  %v319_v30 = vld [vmem:[#allocation8 + $0xd0] sm:$0xff] }
 0x220   :  { %7576 = vmatprep.subr.bf16.mxu1 %v18642_v34  ;;  %v331_v51 = vld [vmem:[#allocation8 + $0x130] sm:$0xff]  ;;  %v18115_v34 = vcombine.low %v727_v18, %v739_v19 }
 0x221   :  { %v17708_v36 = vcombine.high %v319_v30, %v331_v51 }
 0x222   :  { %7534 = vmatpush2.bf16.msra.mxu0 %v18257_v49  ;;  %v18092_v49 = vcombine.high %v703_v59, %v715_v31 }
 0x223   :  { %7577 = vmatpush2.bf16.msra.mxu1 %v18641_v42  ;;  %7589 = vmatprep.subr.bf16.mxu0 %v17852_v53  ;;  %v295_v42 = vld [vmem:[#allocation8 + $0x10] sm:$0xff] }
 0x224   :  { %7632 = vmatprep.subr.bf16.mxu1 %v18236_v52  ;;  %v307_v53 = vld [vmem:[#allocation8 + $0x70] sm:$0xff]  ;;  %v17707_v52 = vcombine.low %v319_v30, %v331_v51 }
 0x225   :  { %7536 = vmatmul.mubr.bf16.vlgmr.msra.gmra.mxu0 %v22219_v61  ;;  %v17684_v57 = vcombine.high %v295_v42, %v307_v53  ;;  %v17683_v58 = vcombine.low %v295_v42, %v307_v53  ;;  %v955_v30 = vld [vmem:[#allocation8 + $0x14b0] sm:$0xff] }
 0x226   :  { %7579 = vmatmul.mubr.bf16.vlgmr.msra.gmra.mxu1 %v22227_v5  ;;  %7590 = vmatpush1.bf16.msra.mxu0 %v17851_v1  ;;  %v18068_v1 = vcombine.high %v679_v47, %v691_v50  ;;  %v931_v42 = vld [vmem:[#allocation8 + $0x13f0] sm:$0xff] }
 0x227   :  { %7621 = vmatprep.mubr.bf16.mxu0 %v22213_v54  ;;  %7633 = vmatpush1.bf16.msra.mxu1 %v18235_v62  ;;  %v655_v62 = vld [vmem:[#allocation8 + $0xb50] sm:$0xff] }
 0x228   :  { %7664 = vmatprep.mubr.bf16.mxu1 %v22215_v7  ;;  %7591 = vmatprep.subr.bf16.mxu0 %v17828_v63  ;;  %v667_v63 = vld [vmem:[#allocation8 + $0xbb0] sm:$0xff] }
 0x229   :  { %7634 = vmatprep.subr.bf16.mxu1 %v18212_v3  ;;  %v18067_v3 = vcombine.low %v679_v47, %v691_v50  ;;  %v18044_v6 = vcombine.high %v655_v62, %v667_v63  ;;  %v18043_v37 = vcombine.low %v655_v62, %v667_v63  ;;  %v907_v62 = vld [vmem:[#allocation8 + $0x1330] sm:$0xff] }
 0x22a   :  { %7592 = vmatpush1.bf16.msra.mxu0 %v17827_v8  ;;  %v18428_v8 = vcombine.high %v1039_v0, %v1051_v2 }
 0x22b   :  { %7635 = vmatpush1.bf16.msra.mxu1 %v18211_v35  ;;  %7593 = vmatprep.subr.bf16.mxu0 %v17804_v9  ;;  %v631_v35 = vld [vmem:[#allocation8 + $0xa90] sm:$0xff] }
 0x22c   :  { %7636 = vmatprep.subr.bf16.mxu1 %v18188_v40  ;;  %v643_v9 = vld [vmem:[#allocation8 + $0xaf0] sm:$0xff] }
 0x22d   :  { %v1015_v40 = vld [vmem:[#allocation8 + $0x1690] sm:$0xff]  ;;  %v18020_v20 = vcombine.high %v631_v35, %v643_v9  ;;  %v18019_v55 = vcombine.low %v631_v35, %v643_v9 }
 0x22e   :  { %7594 = vmatpush1.bf16.msra.mxu0 %v17803_v21  ;;  %v607_v21 = vld [vmem:[#allocation8 + $0x9d0] sm:$0xff]  ;;  %v18403_v11 = vcombine.low %v1015_v40, %v1027_v33 }
 0x22f   :  { %7637 = vmatpush1.bf16.msra.mxu1 %v18187_v22  ;;  %7595 = vmatprep.subr.bf16.mxu0 %v17780_v24  ;;  %v619_v22 = vld [vmem:[#allocation8 + $0xa30] sm:$0xff] }
 0x230   :  { %7638 = vmatprep.subr.bf16.mxu1 %v18164_v25  ;;  %v991_v24 = vld [vmem:[#allocation8 + $0x15d0] sm:$0xff]  ;;  %v18404_v25 = vcombine.high %v1015_v40, %v1027_v33  ;;  %v17996_v12 = vcombine.high %v607_v21, %v619_v22  ;;  %v17995_v17 = vcombine.low %v607_v21, %v619_v22  ;;  %v464_v21 = vld [vmem:[#allocation8 + $0x558] sm:$0xff] }
 0x231   :  { %v18379_v18 = vcombine.low %v991_v24, %v1003_v26  ;;  %v883_v35 = vld [vmem:[#allocation8 + $0x1270] sm:$0xff]  ;;  %v476_v22 = vld [vmem:[#allocation8 + $0x5b8] sm:$0xff] }
 0x232   :  { %7596 = vmatpush1.bf16.msra.mxu0 %v17779_v45  ;;  %v583_v45 = vld [vmem:[#allocation8 + $0x910] sm:$0xff] }
 0x233   :  { %7639 = vmatpush1.bf16.msra.mxu1 %v18163_v13  ;;  %7597 = vmatprep.subr.bf16.mxu0 %v17756_v14  ;;  %v595_v13 = vld [vmem:[#allocation8 + $0x970] sm:$0xff] }
 0x234   :  { %7640 = vmatprep.subr.bf16.mxu1 %v18140_v15  ;;  %v967_v14 = vld [vmem:[#allocation8 + $0x1510] sm:$0xff]  ;;  %v18380_v15 = vcombine.high %v991_v24, %v1003_v26  ;;  %v17972_v19 = vcombine.high %v583_v45, %v595_v13  ;;  %v17971_v51 = vcombine.low %v583_v45, %v595_v13 }
 0x235   :  { %v18355_v59 = vcombine.low %v967_v14, %v979_v16  ;;  %v1219_v45 = vld [vmem:[#allocation8 + $0x1cf0] sm:$0xff] }
 0x236   :  { %7598 = vmatpush1.bf16.msra.mxu0 %v17755_v23  ;;  %v559_v23 = vld [vmem:[#allocation8 + $0x850] sm:$0xff] }
 0x237   :  { %7641 = vmatpush1.bf16.msra.mxu1 %v18139_v27  ;;  %7599 = vmatprep.subr.bf16.mxu0 %v17732_v28  ;;  %v571_v27 = vld [vmem:[#allocation8 + $0x8b0] sm:$0xff] }
 0x238   :  { %7642 = vmatprep.subr.bf16.mxu1 %v18116_v29  ;;  %v943_v28 = vld [vmem:[#allocation8 + $0x1450] sm:$0xff]  ;;  %v18356_v29 = vcombine.high %v967_v14, %v979_v16  ;;  %v17948_v31 = vcombine.high %v559_v23, %v571_v27  ;;  %v17947_v53 = vcombine.low %v559_v23, %v571_v27  ;;  %v452_v16 = vld [vmem:[#allocation8 + $0x4f8] sm:$0xff] }
 0x239   :  { %v18331_v47 = vcombine.low %v943_v28, %v955_v30  ;;  %v1195_v23 = vld [vmem:[#allocation8 + $0x1c30] sm:$0xff] }
 0x23a   :  { %7600 = vmatpush1.bf16.msra.mxu0 %v17731_v32  ;;  %v535_v32 = vld [vmem:[#allocation8 + $0x790] sm:$0xff] }
 0x23b   :  { %7643 = vmatpush1.bf16.msra.mxu1 %v18115_v34  ;;  %7601 = vmatprep.subr.bf16.mxu0 %v17708_v36  ;;  %v547_v34 = vld [vmem:[#allocation8 + $0x7f0] sm:$0xff] }
 0x23c   :  { %7644 = vmatprep.subr.bf16.mxu1 %v18092_v49  ;;  %v919_v36 = vld [vmem:[#allocation8 + $0x1390] sm:$0xff]  ;;  %v18332_v49 = vcombine.high %v943_v28, %v955_v30  ;;  %v17924_v50 = vcombine.high %v535_v32, %v547_v34  ;;  %v17923_v63 = vcombine.low %v535_v32, %v547_v34  ;;  %v416_v30 = vld [vmem:[#allocation8 + $0x3d8] sm:$0xff] }
 0x23d   :  { %v18307_v0 = vcombine.low %v919_v36, %v931_v42 }
 0x23e   :  { %7602 = vmatpush1.bf16.msra.mxu0 %v17707_v52  ;;  %v511_v52 = vld [vmem:[#allocation8 + $0x6d0] sm:$0xff] }
 0x23f   :  { %7645 = vmatpush1.bf16.msra.mxu1 %v18091_v56  ;;  %7603 = vmatprep.subr.bf16.mxu0 %v17684_v57  ;;  %v523_v56 = vld [vmem:[#allocation8 + $0x730] sm:$0xff] }
 0x240   :  { %7646 = vmatprep.subr.bf16.mxu1 %v18068_v1  ;;  %v895_v57 = vld [vmem:[#allocation8 + $0x12d0] sm:$0xff]  ;;  %v18308_v1 = vcombine.high %v919_v36, %v931_v42  ;;  %v17900_v2 = vcombine.high %v511_v52, %v523_v56  ;;  %v17899_v9 = vcombine.low %v511_v52, %v523_v56  ;;  %v392_v56 = vld [vmem:[#allocation8 + $0x318] sm:$0xff] }
 0x241   :  { %v18283_v40 = vcombine.low %v895_v57, %v907_v62 }
 0x242   :  { %7604 = vmatpush1.bf16.msra.mxu0 %v17683_v58  ;;  %v487_v58 = vld [vmem:[#allocation8 + $0x610] sm:$0xff] }
 0x243   :  { %7647 = vmatpush1.bf16.msra.mxu1 %v18067_v3  ;;  %7605 = vmatprep.subr.bf16.mxu0 %v18044_v6  ;;  %v499_v3 = vld [vmem:[#allocation8 + $0x670] sm:$0xff]  ;;  %v18284_v6 = vcombine.high %v895_v57, %v907_v62  ;;  %v404_v57 = vld [vmem:[#allocation8 + $0x378] sm:$0xff] }
 0x244   :  { %7648 = vmatprep.subr.bf16.mxu1 %v18428_v8  ;;  %v871_v8 = vld [vmem:[#allocation8 + $0x1210] sm:$0xff]  ;;  %v17876_v33 = vcombine.high %v487_v58, %v499_v3  ;;  %v17875_v24 = vcombine.low %v487_v58, %v499_v3  ;;  %v17782_v3 = vcombine.high %v392_v56, %v404_v57 }
 0x246   :  { %7606 = vmatpush2.bf16.msra.mxu0 %v18043_v37  ;;  %v18260_v37 = vcombine.high %v871_v8, %v883_v35 }
 0x247   :  { %7649 = vmatpush2.bf16.msra.mxu1 %v18427_v10  ;;  %7607 = vmatprep.subr.bf16.mxu0 %v18020_v20  ;;  %v1231_v10 = vld [vmem:[#allocation8 + $0x1d50] sm:$0xff] }
 0x248   :  { %7650 = vmatprep.subr.bf16.mxu1 %v18404_v25  ;;  %v1243_v20 = vld [vmem:[#allocation8 + $0x1db0] sm:$0xff]  ;;  %v18259_v25 = vcombine.low %v871_v8, %v883_v35  ;;  %v368_v35 = vld [vmem:[#allocation8 + $0x258] sm:$0xff] }
 0x249   :  { %v18620_v26 = vcombine.high %v1231_v10, %v1243_v20  ;;  %v18619_v13 = vcombine.low %v1231_v10, %v1243_v20  ;;  %v1147_v8 = vld [vmem:[#allocation8 + $0x1ab0] sm:$0xff] }
 0x24a   :  { %7608 = vmatpush2.bf16.msra.mxu0 %v18019_v55  ;;  %v22245_v55 = vld [vmem:[#allocation10] sm:$0xff]  ;;  %v1111_v20 = vld [vmem:[#allocation8 + $0x1990] sm:$0xff] }
 0x24b   :  { %7651 = vmatpush2.bf16.msra.mxu1 %v18403_v11  ;;  %7609 = vmatprep.subr.bf16.mxu0 %v17996_v12  ;;  %v17854_v11 = vcombine.high %v464_v21, %v476_v22  ;;  %v1207_v12 = vld [vmem:[#allocation8 + $0x1c90] sm:$0xff]  ;;  %v1454_v14 = vrot.slane %v22245_v55, %v22178_v43 }
 0x24c   :  { %7652 = vmatprep.subr.bf16.mxu1 %v18380_v15  ;;  %v440_v15 = vld [vmem:[#allocation8 + $0x498] sm:$0xff] }
 0x24d   :  { %v17829_v36 = vcombine.low %v440_v15, %v452_v16 }
 0x24e   :  { %7610 = vmatpush2.bf16.msra.mxu0 %v17995_v17  ;;  %v17853_v17 = vcombine.low %v464_v21, %v476_v22  ;;  %v1123_v21 = vld [vmem:[#allocation8 + $0x19f0] sm:$0xff]  ;;  %v344_v22 = vld [vmem:[#allocation8 + $0x198] sm:$0xff] }
 0x24f   :  { %7653 = vmatpush2.bf16.msra.mxu1 %v18379_v18  ;;  %7611 = vmatprep.subr.bf16.mxu0 %v17972_v19  ;;  %v18596_v18 = vcombine.high %v1207_v12, %v1219_v45  ;;  %v1183_v19 = vld [vmem:[#allocation8 + $0x1bd0] sm:$0xff] }
 0x250   :  { %7654 = vmatprep.subr.bf16.mxu1 %v18356_v29  ;;  %v17830_v29 = vcombine.high %v440_v15, %v452_v16  ;;  %v18571_v62 = vcombine.low %v1183_v19, %v1195_v23  ;;  %v332_v15 = vld [vmem:[#allocation8 + $0x138] sm:$0xff]  ;;  %v18499_v16 = vcombine.low %v1111_v20, %v1123_v21 }
 0x252   :  { %7612 = vmatpush2.bf16.msra.mxu0 %v17971_v51  ;;  %v428_v51 = vld [vmem:[#allocation8 + $0x438] sm:$0xff] }
 0x253   :  { %7655 = vmatpush2.bf16.msra.mxu1 %v18355_v59  ;;  %7613 = vmatprep.subr.bf16.mxu0 %v17948_v31  ;;  %v18595_v31 = vcombine.low %v1207_v12, %v1219_v45  ;;  %v1087_v45 = vld [vmem:[#allocation8 + $0x18d0] sm:$0xff] }
 0x254   :  { %7656 = vmatprep.subr.bf16.mxu1 %v18332_v49  ;;  %v18572_v49 = vcombine.high %v1183_v19, %v1195_v23  ;;  %v1063_v23 = vld [vmem:[#allocation8 + $0x1810] sm:$0xff] }
 0x256   :  { %7614 = vmatpush2.bf16.msra.mxu0 %v17947_v53  ;;  %v17806_v53 = vcombine.high %v416_v30, %v428_v51 }
 0x257   :  { %7657 = vmatpush2.bf16.msra.mxu1 %v18331_v47  ;;  %7615 = vmatprep.subr.bf16.mxu0 %v17924_v50  ;;  %v1159_v47 = vld [vmem:[#allocation8 + $0x1b10] sm:$0xff] }
 0x258   :  { %7658 = vmatprep.subr.bf16.mxu1 %v18308_v1  ;;  %v1171_v50 = vld [vmem:[#allocation8 + $0x1b70] sm:$0xff] }
 0x25a   :  { %7616 = vmatpush2.bf16.msra.mxu0 %v17923_v63 }
 0x25b   :  { %7659 = vmatpush2.bf16.msra.mxu1 %v18307_v0  ;;  %7617 = vmatprep.subr.bf16.mxu0 %v17900_v2  ;;  %v17805_v0 = vcombine.low %v416_v30, %v428_v51  ;;  %v18548_v2 = vcombine.high %v1159_v47, %v1171_v50 }
 0x25c   :  { %7660 = vmatprep.subr.bf16.mxu1 %v18284_v6  ;;  %v1135_v6 = vld [vmem:[#allocation8 + $0x1a50] sm:$0xff] }
 0x25e   :  { %7618 = vmatpush2.bf16.msra.mxu0 %v17899_v9  ;;  %v380_v9 = vld [vmem:[#allocation8 + $0x2b8] sm:$0xff] }
 0x25f   :  { %7661 = vmatpush2.bf16.msra.mxu1 %v18283_v40  ;;  %7619 = vmatprep.subr.bf16.mxu0 %v17876_v33  ;;  %v18547_v40 = vcombine.low %v1159_v47, %v1171_v50  ;;  %v17781_v33 = vcombine.low %v392_v56, %v404_v57  ;;  %v17758_v10 = vcombine.high %v368_v35, %v380_v9  ;;  %v668_v47 = vld [vmem:[#allocation8 + $0xbb8] sm:$0xff] }
 0x260   :  { %7662 = vmatprep.subr.bf16.mxu1 %v18260_v37  ;;  %v18524_v37 = vcombine.high %v1135_v6, %v1147_v8 }
 0x262   :  { %7620 = vmatpush2.bf16.msra.mxu0 %v17875_v24  ;;  %v356_v24 = vld [vmem:[#allocation8 + $0x1f8] sm:$0xff] }
 0x263   :  { %7663 = vmatpush2.bf16.msra.mxu1 %v18259_v25  ;;  %7675 = vmatprep.subr.bf16.mxu0 %v18620_v26  ;;  %v18523_v25 = vcombine.low %v1135_v6, %v1147_v8  ;;  %v17757_v26 = vcombine.low %v368_v35, %v380_v9  ;;  %v17734_v12 = vcombine.high %v344_v22, %v356_v24  ;;  %v1375_v35 = vld [vmem:[#allocation8 + $0x21d0] sm:$0xff] }
 0x264   :  { %7718 = vmatprep.subr.bf16.mxu1 %v17854_v11  ;;  %v18500_v11 = vcombine.high %v1111_v20, %v1123_v21  ;;  %v1387_v9 = vld [vmem:[#allocation8 + $0x2230] sm:$0xff] }
 0x265   :  { %7622 = vmatmul.mubr.bf16.vlgmr.msra.gmra.mxu0 %v22217_v60  ;;  %v7365_v27 = vpop.f32.mrf.mxu0  ;;  %v7408_v28 = vpop.f32.mrf.mxu1  ;;  %v18764_v20 = vcombine.high %v1375_v35, %v1387_v9 }
 0x266   :  { %7665 = vmatmul.mubr.bf16.vlgmr.msra.gmra.mxu1 %v22219_v61  ;;  %v7366_v59 = vadd.f32 %v7365_v27, %v1454_v14  ;;  %7676 = vmatpush1.bf16.msra.mxu0 %v18619_v13  ;;  %v1099_v13 = vld [vmem:[#allocation8 + $0x1930] sm:$0xff] }
 0x267   :  { %7707 = vmatprep.mubr.bf16.mxu0 %v22225_v4  ;;  %7719 = vmatpush1.bf16.msra.mxu1 %v17853_v17  ;;  %v22252_v32 = vpop.f32.mrf.mxu0  ;;  %v22254_v34 = vpop.f32.mrf.mxu1  ;;  %v17733_v17 = vcombine.low %v344_v22, %v356_v24  ;;  %v1075_v27 = vld [vmem:[#allocation8 + $0x1870] sm:$0xff]  ;;  %v18475_v30 = vcombine.low %v1087_v45, %v1099_v13 }
 0x268   :  { %v22256_v42 = vadd.f32 %v7408_v28, %v7366_v59  ;;  %7750 = vmatprep.mubr.bf16.mxu1 %v22213_v54  ;;  %7677 = vmatprep.subr.bf16.mxu0 %v18596_v18  ;;  %v18476_v18 = vcombine.high %v1087_v45, %v1099_v13  ;;  %v296_v28 = vld [vmem:[#allocation8 + $0x18] sm:$0xff]  ;;  %v18452_v59 = vcombine.high %v1063_v23, %v1075_v27  ;;  %v1351_v22 = vld [vmem:[#allocation8 + $0x2110] sm:$0xff] }
 0x269   :  { %7720 = vmatprep.subr.bf16.mxu1 %v17830_v29  ;;  %v7369_v52 = vpop.f32.mrf.mxu0  ;;  %v7412_v63 = vpop.f32.mrf.mxu1  ;;  %v308_v29 = vld [vmem:[#allocation8 + $0x78] sm:$0xff]  ;;  %v18451_v50 = vcombine.low %v1063_v23, %v1075_v27  ;;  %v1363_v24 = vld [vmem:[#allocation8 + $0x2170] sm:$0xff] }
 0x26a   :  { %v7370_v1 = vadd.f32 %v7369_v52, %v1454_v14  ;;  %7678 = vmatpush1.bf16.msra.mxu0 %v18595_v31  ;;  %v320_v14 = vld [vmem:[#allocation8 + $0xd8] sm:$0xff]  ;;  %v17686_v31 = vcombine.high %v296_v28, %v308_v29  ;;  %v17685_v52 = vcombine.low %v296_v28, %v308_v29  ;;  %v18740_v45 = vcombine.high %v1351_v22, %v1363_v24  ;;  %v1303_v28 = vld [vmem:[#allocation8 + $0x1f90] sm:$0xff] }
 0x26b   :  { %7721 = vmatpush1.bf16.msra.mxu1 %v17829_v36  ;;  %7679 = vmatprep.subr.bf16.mxu0 %v18572_v49  ;;  %v17710_v19 = vcombine.high %v320_v14, %v332_v15  ;;  %v17709_v51 = vcombine.low %v320_v14, %v332_v15  ;;  %v1423_v36 = vld [vmem:[#allocation8 + $0x2350] sm:$0xff] }
 0x26c   :  { %v22259_v58 = vadd.f32 %v7412_v63, %v7370_v1  ;;  %7722 = vmatprep.subr.bf16.mxu1 %v17806_v53  ;;  %v1435_v49 = vld [vmem:[#allocation8 + $0x23b0] sm:$0xff]  ;;  %v656_v53 = vld [vmem:[#allocation8 + $0xb58] sm:$0xff] }
 0x26d   :  { %v18812_v56 = vcombine.high %v1423_v36, %v1435_v49  ;;  %v18046_v57 = vcombine.high %v656_v53, %v668_v47  ;;  %v1399_v1 = vld [vmem:[#allocation8 + $0x2290] sm:$0xff]  ;;  %v632_v63 = vld [vmem:[#allocation8 + $0xa98] sm:$0xff] }
 0x26e   :  { %7680 = vmatpush1.bf16.msra.mxu0 %v18571_v62  ;;  %v1411_v62 = vld [vmem:[#allocation8 + $0x22f0] sm:$0xff] }
 0x26f   :  { %7723 = vmatpush1.bf16.msra.mxu1 %v17805_v0  ;;  %7681 = vmatprep.subr.bf16.mxu0 %v18548_v2  ;;  %v644_v0 = vld [vmem:[#allocation8 + $0xaf8] sm:$0xff]  ;;  %v18811_v2 = vcombine.low %v1423_v36, %v1435_v49  ;;  %v18788_v6 = vcombine.high %v1399_v1, %v1411_v62  ;;  %v1327_v14 = vld [vmem:[#allocation8 + $0x2050] sm:$0xff] }
 0x270   :  { %7724 = vmatprep.subr.bf16.mxu1 %v17782_v3  ;;  %v18045_v3 = vcombine.low %v656_v53, %v668_v47  ;;  %v18022_v8 = vcombine.high %v632_v63, %v644_v0  ;;  %v1339_v15 = vld [vmem:[#allocation8 + $0x20b0] sm:$0xff] }
 0x271   :  { %v18716_v23 = vcombine.high %v1327_v14, %v1339_v15  ;;  %v1315_v29 = vld [vmem:[#allocation8 + $0x1ff0] sm:$0xff] }
 0x272   :  { %7682 = vmatpush1.bf16.msra.mxu0 %v18547_v40  ;;  %v608_v40 = vld [vmem:[#allocation8 + $0x9d8] sm:$0xff]  ;;  %v18692_v36 = vcombine.high %v1303_v28, %v1315_v29  ;;  %v1279_v53 = vld [vmem:[#allocation8 + $0x1ed0] sm:$0xff] }
 0x273   :  { %7725 = vmatpush1.bf16.msra.mxu1 %v17781_v33  ;;  %7683 = vmatprep.subr.bf16.mxu0 %v18524_v37  ;;  %v620_v33 = vld [vmem:[#allocation8 + $0xa38] sm:$0xff]  ;;  %v18787_v37 = vcombine.low %v1399_v1, %v1411_v62  ;;  %v1291_v47 = vld [vmem:[#allocation8 + $0x1f30] sm:$0xff] }
 0x274   :  { %7726 = vmatprep.subr.bf16.mxu1 %v17758_v10  ;;  %v18021_v10 = vcombine.low %v632_v63, %v644_v0  ;;  %v17998_v21 = vcombine.high %v608_v40, %v620_v33  ;;  %v18668_v1 = vcombine.high %v1279_v53, %v1291_v47  ;;  %v1255_v63 = vld [vmem:[#allocation8 + $0x1e10] sm:$0xff] }
 0x275   :  { %v1267_v0 = vld [vmem:[#allocation8 + $0x1e70] sm:$0xff] }
 0x276   :  { %7684 = vmatpush1.bf16.msra.mxu0 %v18523_v25  ;;  %v584_v25 = vld [vmem:[#allocation8 + $0x918] sm:$0xff] }
 0x277   :  { %7727 = vmatpush1.bf16.msra.mxu1 %v17757_v26  ;;  %7685 = vmatprep.subr.bf16.mxu0 %v18500_v11  ;;  %v596_v26 = vld [vmem:[#allocation8 + $0x978] sm:$0xff]  ;;  %v18763_v11 = vcombine.low %v1375_v35, %v1387_v9  ;;  %v18644_v35 = vcombine.high %v1255_v63, %v1267_v0 }
 0x278   :  { %7728 = vmatprep.subr.bf16.mxu1 %v17734_v12  ;;  %v17997_v12 = vcombine.low %v608_v40, %v620_v33  ;;  %v17974_v13 = vcombine.high %v584_v25, %v596_v26  ;;  %v848_v40 = vld [vmem:[#allocation8 + $0x1158] sm:$0xff] }
 0x279   :  { %v860_v33 = vld [vmem:[#allocation8 + $0x11b8] sm:$0xff] }
 0x27a   :  { %7686 = vmatpush1.bf16.msra.mxu0 %v18499_v16  ;;  %v560_v16 = vld [vmem:[#allocation8 + $0x858] sm:$0xff] }
 0x27b   :  { %7729 = vmatpush1.bf16.msra.mxu1 %v17733_v17  ;;  %7687 = vmatprep.subr.bf16.mxu0 %v18476_v18  ;;  %v572_v17 = vld [vmem:[#allocation8 + $0x8b8] sm:$0xff]  ;;  %v18739_v18 = vcombine.low %v1351_v22, %v1363_v24  ;;  %v18238_v22 = vcombine.high %v848_v40, %v860_v33 }
 0x27c   :  { %7730 = vmatprep.subr.bf16.mxu1 %v17710_v19  ;;  %v17973_v19 = vcombine.low %v584_v25, %v596_v26  ;;  %v17950_v27 = vcombine.high %v560_v16, %v572_v17  ;;  %v824_v25 = vld [vmem:[#allocation8 + $0x1098] sm:$0xff] }
 0x27d   :  { %v836_v26 = vld [vmem:[#allocation8 + $0x10f8] sm:$0xff] }
 0x27e   :  { %7688 = vmatpush1.bf16.msra.mxu0 %v18475_v30  ;;  %v536_v30 = vld [vmem:[#allocation8 + $0x798] sm:$0xff] }
 0x27f   :  { %7731 = vmatpush1.bf16.msra.mxu1 %v17709_v51  ;;  %7689 = vmatprep.subr.bf16.mxu0 %v18452_v59  ;;  %v548_v51 = vld [vmem:[#allocation8 + $0x7f8] sm:$0xff]  ;;  %v18715_v59 = vcombine.low %v1327_v14, %v1339_v15  ;;  %v18214_v15 = vcombine.high %v824_v25, %v836_v26 }
 0x280   :  { %7732 = vmatprep.subr.bf16.mxu1 %v17686_v31  ;;  %v17949_v31 = vcombine.low %v560_v16, %v572_v17  ;;  %v17926_v49 = vcombine.high %v536_v30, %v548_v51  ;;  %v800_v16 = vld [vmem:[#allocation8 + $0xfd8] sm:$0xff] }
 0x281   :  { %v812_v17 = vld [vmem:[#allocation8 + $0x1038] sm:$0xff] }
 0x282   :  { %7690 = vmatpush1.bf16.msra.mxu0 %v18451_v50  ;;  %v512_v50 = vld [vmem:[#allocation8 + $0x6d8] sm:$0xff] }
 0x283   :  { %7733 = vmatpush1.bf16.msra.mxu1 %v17685_v52  ;;  %7691 = vmatprep.subr.bf16.mxu0 %v18812_v56  ;;  %v524_v52 = vld [vmem:[#allocation8 + $0x738] sm:$0xff]  ;;  %v18691_v56 = vcombine.low %v1303_v28, %v1315_v29  ;;  %v18213_v29 = vcombine.low %v824_v25, %v836_v26 }
 0x284   :  { %7734 = vmatprep.subr.bf16.mxu1 %v18046_v57  ;;  %v17925_v57 = vcombine.low %v536_v30, %v548_v51  ;;  %v17902_v62 = vcombine.high %v512_v50, %v524_v52  ;;  %v704_v25 = vld [vmem:[#allocation8 + $0xcd8] sm:$0xff] }
 0x285   :  { %v716_v26 = vld [vmem:[#allocation8 + $0xd38] sm:$0xff] }
 0x286   :  { %7692 = vmatpush2.bf16.msra.mxu0 %v18811_v2  ;;  %v488_v2 = vld [vmem:[#allocation8 + $0x618] sm:$0xff] }
 0x287   :  { %7735 = vmatpush2.bf16.msra.mxu1 %v18045_v3  ;;  %7693 = vmatprep.subr.bf16.mxu0 %v18788_v6  ;;  %v500_v3 = vld [vmem:[#allocation8 + $0x678] sm:$0xff]  ;;  %v18667_v6 = vcombine.low %v1279_v53, %v1291_v47 }
 0x288   :  { %7736 = vmatprep.subr.bf16.mxu1 %v18022_v8  ;;  %v17901_v8 = vcombine.low %v512_v50, %v524_v52  ;;  %v17878_v9 = vcombine.high %v488_v2, %v500_v3  ;;  %v1160_v47 = vld [vmem:[#allocation8 + $0x1b18] sm:$0xff] }
 0x289   :  { %v1172_v50 = vld [vmem:[#allocation8 + $0x1b78] sm:$0xff] }
 0x28a   :  { %7694 = vmatpush2.bf16.msra.mxu0 %v18787_v37  ;;  %v1232_v37 = vld [vmem:[#allocation8 + $0x1d58] sm:$0xff] }
 0x28b   :  { %7737 = vmatpush2.bf16.msra.mxu1 %v18021_v10  ;;  %7695 = vmatprep.subr.bf16.mxu0 %v18764_v20  ;;  %v1244_v10 = vld [vmem:[#allocation8 + $0x1db8] sm:$0xff]  ;;  %v18643_v20 = vcombine.low %v1255_v63, %v1267_v0  ;;  %v18550_v63 = vcombine.high %v1160_v47, %v1172_v50 }
 0x28c   :  { %7738 = vmatprep.subr.bf16.mxu1 %v17998_v21  ;;  %v17877_v21 = vcombine.low %v488_v2, %v500_v3  ;;  %v18622_v24 = vcombine.high %v1232_v37, %v1244_v10  ;;  %v18621_v14 = vcombine.low %v1232_v37, %v1244_v10  ;;  %v752_v0 = vld [vmem:[#allocation8 + $0xe58] sm:$0xff] }
 0x28d   :  { %v764_v2 = vld [vmem:[#allocation8 + $0xeb8] sm:$0xff] }
 0x28e   :  { %7696 = vmatpush2.bf16.msra.mxu0 %v18763_v11  ;;  %v18237_v11 = vcombine.low %v848_v40, %v860_v33  ;;  %v1136_v3 = vld [vmem:[#allocation8 + $0x1a58] sm:$0xff] }
 0x28f   :  { %7739 = vmatpush2.bf16.msra.mxu1 %v17997_v12  ;;  %7697 = vmatprep.subr.bf16.mxu0 %v18740_v45  ;;  %v1208_v12 = vld [vmem:[#allocation8 + $0x1c98] sm:$0xff] }
 0x290   :  { %7740 = vmatprep.subr.bf16.mxu1 %v17974_v13  ;;  %v1220_v45 = vld [vmem:[#allocation8 + $0x1cf8] sm:$0xff]  ;;  %v22261_v13 = vpop.f32.mrf.mxu0 }
 0x291   :  { %v18597_v51 = vcombine.low %v1208_v12, %v1220_v45  ;;  %v728_v40 = vld [vmem:[#allocation8 + $0xd98] sm:$0xff] }
 0x292   :  { %7698 = vmatpush2.bf16.msra.mxu0 %v18739_v18  ;;  %v740_v33 = vld [vmem:[#allocation8 + $0xdf8] sm:$0xff] }
 0x293   :  { %7741 = vmatpush2.bf16.msra.mxu1 %v17973_v19  ;;  %7699 = vmatprep.subr.bf16.mxu0 %v18716_v23  ;;  %v18598_v19 = vcombine.high %v1208_v12, %v1220_v45  ;;  %v1184_v23 = vld [vmem:[#allocation8 + $0x1bd8] sm:$0xff]  ;;  %v18117_v45 = vcombine.low %v728_v40, %v740_v33 }
 0x294   :  { %7742 = vmatprep.subr.bf16.mxu1 %v17950_v27  ;;  %v1196_v27 = vld [vmem:[#allocation8 + $0x1c38] sm:$0xff] }
 0x295   :  { %v1112_v37 = vld [vmem:[#allocation8 + $0x1998] sm:$0xff] }
 0x296   :  { %7700 = vmatpush2.bf16.msra.mxu0 %v18715_v59  ;;  %v18190_v59 = vcombine.high %v800_v16, %v812_v17  ;;  %v1124_v10 = vld [vmem:[#allocation8 + $0x19f8] sm:$0xff] }
 0x297   :  { %7743 = vmatpush2.bf16.msra.mxu1 %v17949_v31  ;;  %7701 = vmatprep.subr.bf16.mxu0 %v18692_v36  ;;  %v18574_v36 = vcombine.high %v1184_v23, %v1196_v27  ;;  %v1100_v12 = vld [vmem:[#allocation8 + $0x1938] sm:$0xff] }
 0x298   :  { %7744 = vmatprep.subr.bf16.mxu1 %v17926_v49  ;;  %v776_v49 = vld [vmem:[#allocation8 + $0xf18] sm:$0xff] }
 0x29a   :  { %7702 = vmatpush2.bf16.msra.mxu0 %v18691_v56  ;;  %v18189_v56 = vcombine.low %v800_v16, %v812_v17  ;;  %v18094_v16 = vcombine.high %v704_v25, %v716_v26 }
 0x29b   :  { %7745 = vmatpush2.bf16.msra.mxu1 %v17925_v57  ;;  %7703 = vmatprep.subr.bf16.mxu0 %v18668_v1  ;;  %v18573_v57 = vcombine.low %v1184_v23, %v1196_v27  ;;  %v692_v23 = vld [vmem:[#allocation8 + $0xc78] sm:$0xff] }
 0x29c   :  { %7746 = vmatprep.subr.bf16.mxu1 %v17902_v62  ;;  %v1064_v27 = vld [vmem:[#allocation8 + $0x1818] sm:$0xff] }
 0x29e   :  { %7704 = vmatpush2.bf16.msra.mxu0 %v18667_v6  ;;  %v1148_v6 = vld [vmem:[#allocation8 + $0x1ab8] sm:$0xff] }
 0x29f   :  { %7747 = vmatpush2.bf16.msra.mxu1 %v17901_v8  ;;  %7705 = vmatprep.subr.bf16.mxu0 %v18644_v35  ;;  %v18142_v35 = vcombine.high %v752_v0, %v764_v2 }
 0x2a0   :  { %7748 = vmatprep.subr.bf16.mxu1 %v17878_v9  ;;  %v18526_v9 = vcombine.high %v1136_v3, %v1148_v6 }
 0x2a2   :  { %7706 = vmatpush2.bf16.msra.mxu0 %v18643_v20  ;;  %v18141_v20 = vcombine.low %v752_v0, %v764_v2 }
 0x2a3   :  { %7749 = vmatpush2.bf16.msra.mxu1 %v17877_v21  ;;  %7761 = vmatprep.subr.bf16.mxu0 %v18238_v22  ;;  %v18525_v21 = vcombine.low %v1136_v3, %v1148_v6  ;;  %v18118_v22 = vcombine.high %v728_v40, %v740_v33 }
 0x2a4   :  { %7804 = vmatprep.subr.bf16.mxu1 %v18622_v24  ;;  %v18502_v24 = vcombine.high %v1112_v37, %v1124_v10 }
 0x2a5   :  { %v7451_v18 = vpop.f32.mrf.mxu0  ;;  %7708 = vmatmul.mubr.bf16.vlgmr.msra.gmra.mxu0 %v22227_v5 }
 0x2a6   :  { %v22265_v28 = vadd.f32 %v7451_v18, %v22256_v42  ;;  %7751 = vmatmul.mubr.bf16.vlgmr.msra.gmra.mxu1 %v22217_v60  ;;  %7762 = vmatpush1.bf16.msra.mxu0 %v18237_v11  ;;  %v788_v42 = vld [vmem:[#allocation8 + $0xf78] sm:$0xff] }
 0x2a7   :  { %7793 = vmatprep.mubr.bf16.mxu0 %v22215_v7  ;;  %7805 = vmatpush1.bf16.msra.mxu1 %v18621_v14  ;;  %v22269_v30 = vpop.f32.mrf.mxu0  ;;  %v18166_v1 = vcombine.high %v776_v49, %v788_v42  ;;  %v18165_v8 = vcombine.low %v776_v49, %v788_v42  ;;  %v1088_v11 = vld [vmem:[#allocation8 + $0x18d8] sm:$0xff] }
 0x2a8   :  { %v8879_v31 = vmul.f32 0.851, %v22265_v28  ;;  %7836 = vmatprep.mubr.bf16.mxu1 %v22225_v4  ;;  %7763 = vmatprep.subr.bf16.mxu0 %v18214_v15  ;;  %v18501_v15 = vcombine.low %v1112_v37, %v1124_v10  ;;  %v18478_v18 = vcombine.high %v1088_v11, %v1100_v12 }
 0x2a9   :  { %v7455_v53 = vpop.f32.mrf.mxu0  ;;  %7806 = vmatprep.subr.bf16.mxu1 %v18598_v19  ;;  %v680_v19 = vld [vmem:[#allocation8 + $0xc18] sm:$0xff] }
 0x2aa   :  { %21729 = vtanh.f32 %v8879_v31  ;;  %v22274_v52 = vadd.f32 %v7455_v53, %v22259_v58  ;;  %7764 = vmatpush1.bf16.msra.mxu0 %v18213_v29  ;;  %v18549_v58 = vcombine.low %v1160_v47, %v1172_v50  ;;  %v1076_v29 = vld [vmem:[#allocation8 + $0x1878] sm:$0xff]  ;;  %v18477_v31 = vcombine.low %v1088_v11, %v1100_v12 }
 0x2ab   :  { %7807 = vmatpush1.bf16.msra.mxu1 %v18597_v51  ;;  %7765 = vmatprep.subr.bf16.mxu0 %v18190_v59  ;;  %v18093_v51 = vcombine.low %v704_v25, %v716_v26  ;;  %v18454_v53 = vcombine.high %v1064_v27, %v1076_v29  ;;  %v1040_v47 = vld [vmem:[#allocation8 + $0x1758] sm:$0xff] }
 0x2ac   :  { %v8903_v62 = vmul.f32 0.851, %v22274_v52  ;;  %7808 = vmatprep.subr.bf16.mxu1 %v18574_v36  ;;  %v18070_v36 = vcombine.high %v680_v19, %v692_v23  ;;  %v1052_v50 = vld [vmem:[#allocation8 + $0x17b8] sm:$0xff] }
 0x2ad   :  { %v18430_v0 = vcombine.high %v1040_v47, %v1052_v50  ;;  %v18429_v33 = vcombine.low %v1040_v47, %v1052_v50  ;;  %v968_v12 = vld [vmem:[#allocation8 + $0x1518] sm:$0xff] }
 0x2ae   :  { %21731 = vtanh.f32 %v8903_v62  ;;  %7766 = vmatpush1.bf16.msra.mxu0 %v18189_v56  ;;  %v1424_v56 = vld [vmem:[#allocation8 + $0x2358] sm:$0xff]  ;;  %v18069_v62 = vcombine.low %v680_v19, %v692_v23 }
 0x2af   :  { %7809 = vmatpush1.bf16.msra.mxu1 %v18573_v57  ;;  %7767 = vmatprep.subr.bf16.mxu0 %v18166_v1  ;;  %v1436_v57 = vld [vmem:[#allocation8 + $0x23b8] sm:$0xff] }
 0x2b0   :  { %7810 = vmatprep.subr.bf16.mxu1 %v18550_v63  ;;  %v18453_v63 = vcombine.low %v1064_v27, %v1076_v29  ;;  %v18814_v6 = vcombine.high %v1424_v56, %v1436_v57  ;;  %v18813_v37 = vcombine.low %v1424_v56, %v1436_v57  ;;  %v944_v23 = vld [vmem:[#allocation8 + $0x1458] sm:$0xff] }
 0x2b1   :  { %v956_v27 = vld [vmem:[#allocation8 + $0x14b8] sm:$0xff] }
 0x2b2   :  { %7768 = vmatpush1.bf16.msra.mxu0 %v18165_v8  ;;  %v1016_v8 = vld [vmem:[#allocation8 + $0x1698] sm:$0xff]  ;;  %v18333_v56 = vcombine.low %v944_v23, %v956_v27 }
 0x2b3   :  { %7811 = vmatpush1.bf16.msra.mxu1 %v18549_v58  ;;  %7769 = vmatprep.subr.bf16.mxu0 %v18142_v35  ;;  %v1028_v58 = vld [vmem:[#allocation8 + $0x16f8] sm:$0xff] }
 0x2b4   :  { %7812 = vmatprep.subr.bf16.mxu1 %v18526_v9  ;;  %v1400_v35 = vld [vmem:[#allocation8 + $0x2298] sm:$0xff]  ;;  %v18406_v10 = vcombine.high %v1016_v8, %v1028_v58 }
 0x2b5   :  { %v1412_v9 = vld [vmem:[#allocation8 + $0x22f8] sm:$0xff] }
 0x2b6   :  { %7770 = vmatpush1.bf16.msra.mxu0 %v18141_v20  ;;  %v18790_v20 = vcombine.high %v1400_v35, %v1412_v9  ;;  %v18789_v25 = vcombine.low %v1400_v35, %v1412_v9  ;;  %v1328_v29 = vld [vmem:[#allocation8 + $0x2058] sm:$0xff] }
 0x2b7   :  { %v21730_v14 = vpop.eup %21729  ;;  %7813 = vmatpush1.bf16.msra.mxu1 %v18525_v21  ;;  %7771 = vmatprep.subr.bf16.mxu0 %v18118_v22  ;;  %v992_v21 = vld [vmem:[#allocation8 + $0x15d8] sm:$0xff] }
 0x2b8   :  { %v8975_v17 = vadd.f32 1.0, %v21730_v14  ;;  %7814 = vmatprep.subr.bf16.mxu1 %v18502_v24  ;;  %v1376_v22 = vld [vmem:[#allocation8 + $0x21d8] sm:$0xff]  ;;  %v18405_v24 = vcombine.low %v1016_v8, %v1028_v58 }
 0x2b9   :  { %v1352_v14 = vld [vmem:[#allocation8 + $0x2118] sm:$0xff] }
 0x2ba   :  { %7772 = vmatpush1.bf16.msra.mxu0 %v18117_v45  ;;  %v9023_v49 = vmul.f32 0.5, %v8975_v17  ;;  %v980_v45 = vld [vmem:[#allocation8 + $0x1578] sm:$0xff] }
 0x2bb   :  { %v21732_v59 = vpop.eup %21731  ;;  %7815 = vmatpush1.bf16.msra.mxu1 %v18501_v15  ;;  %7773 = vmatprep.subr.bf16.mxu0 %v18094_v16  ;;  %v1364_v15 = vld [vmem:[#allocation8 + $0x2178] sm:$0xff] }
 0x2bc   :  { %v8999_v42 = vadd.f32 1.0, %v21732_v59  ;;  %7816 = vmatprep.subr.bf16.mxu1 %v18478_v18  ;;  %v9071_v2 = vmul.f32 %v9023_v49, %v22265_v28  ;;  %v1004_v28 = vld [vmem:[#allocation8 + $0x1638] sm:$0xff]  ;;  %v18358_v18 = vcombine.high %v968_v12, %v980_v45  ;;  %v18742_v19 = vcombine.high %v1352_v14, %v1364_v15 }
 0x2bd   :  { %v18382_v26 = vcombine.high %v992_v21, %v1004_v28  ;;  %v18381_v16 = vcombine.low %v992_v21, %v1004_v28  ;;  %v18357_v59 = vcombine.low %v968_v12, %v980_v45  ;;  %v1304_v47 = vld [vmem:[#allocation8 + $0x1f98] sm:$0xff]  ;;  %v849_v12 = vld [vmem:[#allocation8 + $0x1160] sm:$0xff] }
 0x2be   :  { %v9047_v1 = vmul.f32 0.5, %v8999_v42  ;;  %7774 = vmatpush1.bf16.msra.mxu0 %v18093_v51  ;;  %v1340_v51 = vld [vmem:[#allocation8 + $0x20b8] sm:$0xff]  ;;  %v861_v45 = vld [vmem:[#allocation8 + $0x11c0] sm:$0xff] }
 0x2bf   :  { %7817 = vmatpush1.bf16.msra.mxu1 %v18477_v31  ;;  %7775 = vmatprep.subr.bf16.mxu0 %v18070_v36  ;;  %v18741_v31 = vcombine.low %v1352_v14, %v1364_v15  ;;  %v18334_v36 = vcombine.high %v944_v23, %v956_v27  ;;  %v18718_v49 = vcombine.high %v1328_v29, %v1340_v51  ;;  %v920_v42 = vld [vmem:[#allocation8 + $0x1398] sm:$0xff]  ;;  %v441_v23 = vld [vmem:[#allocation8 + $0x4a0] sm:$0xff] }
 0x2c0   :  { %v9095_v3 = vmul.f32 %v9047_v1, %v22274_v52  ;;  %7818 = vmatprep.subr.bf16.mxu1 %v18454_v53  ;;  %v1388_v52 = vld [vmem:[#allocation8 + $0x2238] sm:$0xff]  ;;  %v18717_v57 = vcombine.low %v1328_v29, %v1340_v51  ;;  %v453_v27 = vld [vmem:[#allocation8 + $0x500] sm:$0xff] }
 0x2c1   :  { %v18766_v11 = vcombine.high %v1376_v22, %v1388_v52  ;;  %v18765_v17 = vcombine.low %v1376_v22, %v1388_v52  ;;  %v932_v53 = vld [vmem:[#allocation8 + $0x13f8] sm:$0xff]  ;;  %v825_v51 = vld [vmem:[#allocation8 + $0x10a0] sm:$0xff] }
 0x2c2   :  { %v22279_v40 = vpack.c.bf16 %v9095_v3, %v9071_v2  ;;  %7776 = vmatpush1.bf16.msra.mxu0 %v18069_v62  ;;  %v1316_v50 = vld [vmem:[#allocation8 + $0x1ff8] sm:$0xff]  ;;  %v18310_v1 = vcombine.high %v920_v42, %v932_v53  ;;  %v18309_v8 = vcombine.low %v920_v42, %v932_v53  ;;  %v17832_v53 = vcombine.high %v441_v23, %v453_v27 }
 0x2c3   :  { %7819 = vmatpush1.bf16.msra.mxu1 %v18453_v63  ;;  %7777 = vmatprep.subr.bf16.mxu0 %v18430_v0  ;;  %v18694_v62 = vcombine.high %v1304_v47, %v1316_v50  ;;  %v896_v63 = vld [vmem:[#allocation8 + $0x12d8] sm:$0xff]  ;;  %v18693_v58 = vcombine.low %v1304_v47, %v1316_v50  ;;  %v429_v47 = vld [vmem:[#allocation8 + $0x440] sm:$0xff] }
 0x2c4   :  { %23133 = vst [vmem:[#allocation25_spill] sm:$0xff] %v22279_v40  ;;  %7820 = vmatprep.subr.bf16.mxu1 %v18814_v6  ;;  %v908_v0 = vld [vmem:[#allocation8 + $0x1338] sm:$0xff]  ;;  %v22281_v6 = vpop.f32.mrf.mxu1 }
 0x2c5   :  { %v1280_v2 = vld [vmem:[#allocation8 + $0x1ed8] sm:$0xff]  ;;  %v18286_v35 = vcombine.high %v896_v63, %v908_v0  ;;  %v18285_v28 = vcombine.low %v896_v63, %v908_v0  ;;  %v17831_v0 = vcombine.low %v441_v23, %v453_v27 }
 0x2c6   :  { %7778 = vmatpush2.bf16.msra.mxu0 %v18429_v33  ;;  %v1292_v3 = vld [vmem:[#allocation8 + $0x1f38] sm:$0xff]  ;;  %v7494_v9 = vpop.f32.mrf.mxu1 }
 0x2c7   :  { %7821 = vmatpush2.bf16.msra.mxu1 %v18813_v37  ;;  %7779 = vmatprep.subr.bf16.mxu0 %v18406_v10  ;;  %v18670_v33 = vcombine.high %v1280_v2, %v1292_v3  ;;  %v872_v37 = vld [vmem:[#allocation8 + $0x1218] sm:$0xff]  ;;  %v18669_v22 = vcombine.low %v1280_v2, %v1292_v3 }
 0x2c8   :  { %7822 = vmatprep.subr.bf16.mxu1 %v18790_v20  ;;  %v884_v10 = vld [vmem:[#allocation8 + $0x1278] sm:$0xff] }
 0x2c9   :  { %v1256_v20 = vld [vmem:[#allocation8 + $0x1e18] sm:$0xff]  ;;  %v18262_v52 = vcombine.high %v872_v37, %v884_v10  ;;  %v18261_v14 = vcombine.low %v872_v37, %v884_v10  ;;  %v393_v37 = vld [vmem:[#allocation8 + $0x320] sm:$0xff] }
 0x2ca   :  { %7780 = vmatpush2.bf16.msra.mxu0 %v18405_v24  ;;  %v1268_v21 = vld [vmem:[#allocation8 + $0x1e78] sm:$0xff]  ;;  %v22283_v24 = vpop.f32.mrf.mxu1  ;;  %v405_v10 = vld [vmem:[#allocation8 + $0x380] sm:$0xff] }
 0x2cb   :  { %7823 = vmatpush2.bf16.msra.mxu1 %v18789_v25  ;;  %7781 = vmatprep.subr.bf16.mxu0 %v18382_v26  ;;  %v18646_v25 = vcombine.high %v1256_v20, %v1268_v21  ;;  %v465_v26 = vld [vmem:[#allocation8 + $0x560] sm:$0xff]  ;;  %v18645_v15 = vcombine.low %v1256_v20, %v1268_v21  ;;  %v17783_v23 = vcombine.low %v393_v37, %v405_v10 }
 0x2cc   :  { %7824 = vmatprep.subr.bf16.mxu1 %v18766_v11  ;;  %v477_v11 = vld [vmem:[#allocation8 + $0x5c0] sm:$0xff] }
 0x2cd   :  { %v17855_v29 = vcombine.low %v465_v26, %v477_v11  ;;  %v777_v21 = vld [vmem:[#allocation8 + $0xf20] sm:$0xff] }
 0x2ce   :  { %7782 = vmatpush2.bf16.msra.mxu0 %v18381_v16  ;;  %v17856_v16 = vcombine.high %v465_v26, %v477_v11 }
 0x2cf   :  { %7825 = vmatpush2.bf16.msra.mxu1 %v18765_v17  ;;  %7783 = vmatprep.subr.bf16.mxu0 %v18358_v18  ;;  %v1462_v17 = vrot.slane %v22245_v55, %v22181_v44  ;;  %v7498_v18 = vpop.f32.mrf.mxu1  ;;  %v417_v55 = vld [vmem:[#allocation8 + $0x3e0] sm:$0xff] }
 0x2d0   :  { %7826 = vmatprep.subr.bf16.mxu1 %v18742_v19  ;;  %v18240_v19 = vcombine.high %v849_v12, %v861_v45 }
 0x2d1   :  { %v22289_v42 = vpop.f32.mrf.mxu1 }
 0x2d2   :  { %7784 = vmatpush2.bf16.msra.mxu0 %v18357_v59  ;;  %v837_v59 = vld [vmem:[#allocation8 + $0x1100] sm:$0xff] }
 0x2d3   :  { %7827 = vmatpush2.bf16.msra.mxu1 %v18741_v31  ;;  %7785 = vmatprep.subr.bf16.mxu0 %v18334_v36  ;;  %v22287_v31 = vpop.f32.mrf.mxu0  ;;  %v18239_v36 = vcombine.low %v849_v12, %v861_v45  ;;  %v18215_v3 = vcombine.low %v825_v51, %v837_v59  ;;  %v17784_v12 = vcombine.high %v393_v37, %v405_v10  ;;  %v309_v37 = vld [vmem:[#allocation8 + $0x80] sm:$0xff] }
 0x2d4   :  { %7828 = vmatprep.subr.bf16.mxu1 %v18718_v49  ;;  %v7495_v49 = vadd.f32 %v7494_v9, %v1462_v17 }
 0x2d6   :  { %7786 = vmatpush2.bf16.msra.mxu0 %v18333_v56  ;;  %v18216_v56 = vcombine.high %v825_v51, %v837_v59  ;;  %v345_v59 = vld [vmem:[#allocation8 + $0x1a0] sm:$0xff] }
 0x2d7   :  { %7829 = vmatpush2.bf16.msra.mxu1 %v18717_v57  ;;  %7787 = vmatprep.subr.bf16.mxu0 %v18310_v1  ;;  %v801_v57 = vld [vmem:[#allocation8 + $0xfe0] sm:$0xff] }
 0x2d8   :  { %7830 = vmatprep.subr.bf16.mxu1 %v18694_v62  ;;  %v813_v1 = vld [vmem:[#allocation8 + $0x1040] sm:$0xff] }
 0x2d9   :  { %v18191_v11 = vcombine.low %v801_v57, %v813_v1 }
 0x2da   :  { %7788 = vmatpush2.bf16.msra.mxu0 %v18309_v8  ;;  %v17808_v8 = vcombine.high %v417_v55, %v429_v47 }
 0x2db   :  { %7831 = vmatpush2.bf16.msra.mxu1 %v18693_v58  ;;  %7789 = vmatprep.subr.bf16.mxu0 %v18286_v35  ;;  %v7499_v58 = vadd.f32 %v7498_v18, %v1462_v17  ;;  %v753_v17 = vld [vmem:[#allocation8 + $0xe60] sm:$0xff] }
 0x2dc   :  { %7832 = vmatprep.subr.bf16.mxu1 %v18670_v33  ;;  %v18192_v33 = vcombine.high %v801_v57, %v813_v1  ;;  %v765_v18 = vld [vmem:[#allocation8 + $0xec0] sm:$0xff] }
 0x2dd   :  { %v18144_v51 = vcombine.high %v753_v17, %v765_v18  ;;  %v321_v57 = vld [vmem:[#allocation8 + $0xe0] sm:$0xff] }
 0x2de   :  { %7790 = vmatpush2.bf16.msra.mxu0 %v18285_v28  ;;  %v789_v28 = vld [vmem:[#allocation8 + $0xf80] sm:$0xff] }
 0x2df   :  { %7833 = vmatpush2.bf16.msra.mxu1 %v18669_v22  ;;  %7791 = vmatprep.subr.bf16.mxu0 %v18262_v52  ;;  %v18167_v27 = vcombine.low %v777_v21, %v789_v28  ;;  %v333_v1 = vld [vmem:[#allocation8 + $0x140] sm:$0xff] }
 0x2e0   :  { %7834 = vmatprep.subr.bf16.mxu1 %v18646_v25  ;;  %v17807_v25 = vcombine.low %v417_v55, %v429_v47  ;;  %v18143_v47 = vcombine.low %v753_v17, %v765_v18 }
 0x2e2   :  { %7792 = vmatpush2.bf16.msra.mxu0 %v18261_v14  ;;  %v18168_v14 = vcombine.high %v777_v21, %v789_v28  ;;  %v693_v21 = vld [vmem:[#allocation8 + $0xc80] sm:$0xff] }
 0x2e3   :  { %7835 = vmatpush2.bf16.msra.mxu1 %v18645_v15  ;;  %7847 = vmatprep.subr.bf16.mxu0 %v17856_v16  ;;  %v369_v15 = vld [vmem:[#allocation8 + $0x260] sm:$0xff] }
 0x2e4   :  { %7890 = vmatprep.subr.bf16.mxu1 %v18240_v19  ;;  %v381_v16 = vld [vmem:[#allocation8 + $0x2c0] sm:$0xff] }
 0x2e5   :  { %v7537_v50 = vpop.f32.mrf.mxu0  ;;  %7794 = vmatmul.mubr.bf16.vlgmr.msra.gmra.mxu0 %v22219_v61  ;;  %v17759_v55 = vcombine.low %v369_v15, %v381_v16 }
 0x2e6   :  { %v7538_v62 = vadd.f32 %v7537_v50, %v7495_v49  ;;  %v7580_v63 = vpop.f32.mrf.mxu1  ;;  %7837 = vmatmul.mubr.bf16.vlgmr.msra.gmra.mxu1 %v22227_v5  ;;  %7848 = vmatpush1.bf16.msra.mxu0 %v17855_v29  ;;  %v17760_v29 = vcombine.high %v369_v15, %v381_v16  ;;  %v729_v49 = vld [vmem:[#allocation8 + $0xda0] sm:$0xff] }
 0x2e7   :  { %7879 = vmatprep.mubr.bf16.mxu0 %v22213_v54  ;;  %7891 = vmatpush1.bf16.msra.mxu1 %v18239_v36  ;;  %v22294_v2 = vpop.f32.mrf.mxu0  ;;  %v357_v36 = vld [vmem:[#allocation8 + $0x200] sm:$0xff] }
 0x2e8   :  { %v22296_v35 = vadd.f32 %v7580_v63, %v7538_v62  ;;  %7922 = vmatprep.mubr.bf16.mxu1 %v22215_v7  ;;  %v22299_v9 = vpop.f32.mrf.mxu1  ;;  %7849 = vmatprep.subr.bf16.mxu0 %v17832_v53  ;;  %v741_v53 = vld [vmem:[#allocation8 + $0xe00] sm:$0xff]  ;;  %v17736_v50 = vcombine.high %v345_v59, %v357_v36 }
 0x2e9   :  { %v7541_v20 = vpop.f32.mrf.mxu0  ;;  %7892 = vmatprep.subr.bf16.mxu1 %v18216_v56  ;;  %v18120_v56 = vcombine.high %v729_v49, %v741_v53  ;;  %v705_v62 = vld [vmem:[#allocation8 + $0xce0] sm:$0xff] }
 0x2ea   :  { %v8881_v22 = vmul.f32 0.851, %v22296_v35  ;;  %v7542_v52 = vadd.f32 %v7541_v20, %v7499_v58  ;;  %7850 = vmatpush1.bf16.msra.mxu0 %v17831_v0  ;;  %v7584_v26 = vpop.f32.mrf.mxu1  ;;  %v717_v63 = vld [vmem:[#allocation8 + $0xd40] sm:$0xff]  ;;  %v17735_v0 = vcombine.low %v345_v59, %v357_v36 }
 0x2eb   :  { %7893 = vmatpush1.bf16.msra.mxu1 %v18215_v3  ;;  %7851 = vmatprep.subr.bf16.mxu0 %v17808_v8  ;;  %v18119_v3 = vcombine.low %v729_v49, %v741_v53  ;;  %v17712_v8 = vcombine.high %v321_v57, %v333_v1  ;;  %v18096_v58 = vcombine.high %v705_v62, %v717_v63  ;;  %v681_v20 = vld [vmem:[#allocation8 + $0xc20] sm:$0xff] }
 0x2ec   :  { %21733 = vtanh.f32 %v8881_v22  ;;  %v22302_v45 = vadd.f32 %v7584_v26, %v7542_v52  ;;  %7894 = vmatprep.subr.bf16.mxu1 %v18192_v33  ;;  %v297_v33 = vld [vmem:[#allocation8 + $0x20] sm:$0xff]  ;;  %v17711_v22 = vcombine.low %v321_v57, %v333_v1  ;;  %v18095_v52 = vcombine.low %v705_v62, %v717_v63 }
 0x2ed   :  { %v18072_v26 = vcombine.high %v681_v20, %v693_v21  ;;  %v1041_v15 = vld [vmem:[#allocation8 + $0x1760] sm:$0xff] }
 0x2ee   :  { %v8905_v19 = vmul.f32 0.851, %v22302_v45  ;;  %7852 = vmatpush1.bf16.msra.mxu0 %v17807_v25  ;;  %v17688_v25 = vcombine.high %v297_v33, %v309_v37  ;;  %v1053_v16 = vld [vmem:[#allocation8 + $0x17c0] sm:$0xff] }
 0x2ef   :  { %7895 = vmatpush1.bf16.msra.mxu1 %v18191_v11  ;;  %7853 = vmatprep.subr.bf16.mxu0 %v17784_v12  ;;  %v657_v11 = vld [vmem:[#allocation8 + $0xb60] sm:$0xff] }
 0x2f0   :  { %21735 = vtanh.f32 %v8905_v19  ;;  %7896 = vmatprep.subr.bf16.mxu1 %v18168_v14  ;;  %v669_v12 = vld [vmem:[#allocation8 + $0xbc0] sm:$0xff]  ;;  %v17687_v19 = vcombine.low %v297_v33, %v309_v37 }
 0x2f1   :  { %v633_v59 = vld [vmem:[#allocation8 + $0xaa0] sm:$0xff] }
 0x2f2   :  { %7854 = vmatpush1.bf16.msra.mxu0 %v17783_v23  ;;  %v18071_v23 = vcombine.low %v681_v20, %v693_v21  ;;  %v645_v36 = vld [vmem:[#allocation8 + $0xb00] sm:$0xff] }
 0x2f3   :  { %7897 = vmatpush1.bf16.msra.mxu1 %v18167_v27  ;;  %7855 = vmatprep.subr.bf16.mxu0 %v17760_v29  ;;  %v18048_v27 = vcombine.high %v657_v11, %v669_v12  ;;  %v1017_v49 = vld [vmem:[#allocation8 + $0x16a0] sm:$0xff]  ;;  %v18024_v57 = vcombine.high %v633_v59, %v645_v36 }
 0x2f4   :  { %7898 = vmatprep.subr.bf16.mxu1 %v18144_v51  ;;  %v18432_v51 = vcombine.high %v1041_v15, %v1053_v16  ;;  %v1029_v53 = vld [vmem:[#allocation8 + $0x1700] sm:$0xff] }
 0x2f5   :  { %v18408_v62 = vcombine.high %v1017_v49, %v1029_v53  ;;  %v609_v63 = vld [vmem:[#allocation8 + $0x9e0] sm:$0xff] }
 0x2f6   :  { %7856 = vmatpush1.bf16.msra.mxu0 %v17759_v55  ;;  %v585_v37 = vld [vmem:[#allocation8 + $0x920] sm:$0xff] }
 0x2f7   :  { %7899 = vmatpush1.bf16.msra.mxu1 %v18143_v47  ;;  %7857 = vmatprep.subr.bf16.mxu0 %v17736_v50  ;;  %v18047_v50 = vcombine.low %v657_v11, %v669_v12  ;;  %v969_v20 = vld [vmem:[#allocation8 + $0x1520] sm:$0xff] }
 0x2f8   :  { %7900 = vmatprep.subr.bf16.mxu1 %v18120_v56  ;;  %v18431_v56 = vcombine.low %v1041_v15, %v1053_v16  ;;  %v981_v21 = vld [vmem:[#allocation8 + $0x1580] sm:$0xff] }
 0x2f9   :  { %v21734_v10 = vpop.eup %21733  ;;  %v573_v11 = vld [vmem:[#allocation8 + $0x8c0] sm:$0xff]  ;;  %v18359_v16 = vcombine.low %v969_v20, %v981_v21 }
 0x2fa   :  { %v8977_v28 = vadd.f32 1.0, %v21734_v10  ;;  %7858 = vmatpush1.bf16.msra.mxu0 %v17735_v0  ;;  %v621_v0 = vld [vmem:[#allocation8 + $0xa40] sm:$0xff] }
 0x2fb   :  { %7901 = vmatpush1.bf16.msra.mxu1 %v18119_v3  ;;  %7859 = vmatprep.subr.bf16.mxu0 %v17712_v8  ;;  %v993_v3 = vld [vmem:[#allocation8 + $0x15e0] sm:$0xff] }
 0x2fc   :  { %7902 = vmatprep.subr.bf16.mxu1 %v18096_v58  ;;  %v9025_v17 = vmul.f32 0.5, %v8977_v28  ;;  %v1005_v8 = vld [vmem:[#allocation8 + $0x1640] sm:$0xff]  ;;  %v18023_v58 = vcombine.low %v633_v59, %v645_v36  ;;  %v17999_v28 = vcombine.low %v609_v63, %v621_v0 }
 0x2fd   :  { %v21736_v14 = vpop.eup %21735  ;;  %v18384_v33 = vcombine.high %v993_v3, %v1005_v8  ;;  %v597_v10 = vld [vmem:[#allocation8 + $0x980] sm:$0xff] }
 0x2fe   :  { %v9001_v18 = vadd.f32 1.0, %v21736_v14  ;;  %7860 = vmatpush1.bf16.msra.mxu0 %v17711_v22  ;;  %v9073_v55 = vmul.f32 %v9025_v17, %v22296_v35  ;;  %v18407_v35 = vcombine.low %v1017_v49, %v1029_v53  ;;  %v18383_v22 = vcombine.low %v993_v3, %v1005_v8  ;;  %v945_v12 = vld [vmem:[#allocation8 + $0x1460] sm:$0xff] }
 0x2ff   :  { %7903 = vmatpush1.bf16.msra.mxu1 %v18095_v52  ;;  %7861 = vmatprep.subr.bf16.mxu0 %v17688_v25  ;;  %v17976_v52 = vcombine.high %v585_v37, %v597_v10  ;;  %v18360_v25 = vcombine.high %v969_v20, %v981_v21  ;;  %v957_v14 = vld [vmem:[#allocation8 + $0x14c0] sm:$0xff]  ;;  %v17975_v15 = vcombine.low %v585_v37, %v597_v10  ;;  %v466_v21 = vld [vmem:[#allocation8 + $0x568] sm:$0xff] }
 0x300   :  { %v9049_v29 = vmul.f32 0.5, %v9001_v18  ;;  %7904 = vmatprep.subr.bf16.mxu1 %v18072_v26  ;;  %v561_v26 = vld [vmem:[#allocation8 + $0x860] sm:$0xff]  ;;  %v18336_v18 = vcombine.high %v945_v12, %v957_v14  ;;  %v18335_v59 = vcombine.low %v945_v12, %v957_v14 }
 0x301   :  { %v17952_v17 = vcombine.high %v561_v26, %v573_v11  ;;  %v513_v53 = vld [vmem:[#allocation8 + $0x6e0] sm:$0xff] }
 0x302   :  { %v9097_v47 = vmul.f32 %v9049_v29, %v22302_v45  ;;  %7862 = vmatpush1.bf16.msra.mxu0 %v17687_v19  ;;  %v18000_v45 = vcombine.high %v609_v63, %v621_v0  ;;  %v537_v19 = vld [vmem:[#allocation8 + $0x7a0] sm:$0xff] }
 0x303   :  { %7905 = vmatpush1.bf16.msra.mxu1 %v18071_v23  ;;  %7863 = vmatprep.subr.bf16.mxu0 %v18048_v27  ;;  %v549_v23 = vld [vmem:[#allocation8 + $0x800] sm:$0xff] }
 0x304   :  { %v22307_v1 = vpack.c.bf16 %v9097_v47, %v9073_v55  ;;  %7906 = vmatprep.subr.bf16.mxu1 %v18432_v51  ;;  %v921_v27 = vld [vmem:[#allocation8 + $0x13a0] sm:$0xff]  ;;  %v17951_v51 = vcombine.low %v561_v26, %v573_v11  ;;  %v17928_v36 = vcombine.high %v537_v19, %v549_v23 }
 0x305   :  { %v933_v29 = vld [vmem:[#allocation8 + $0x1400] sm:$0xff] }
 0x306   :  { %23134 = vst [vmem:[#allocation26_spill] sm:$0xff] %v22307_v1  ;;  %7864 = vmatpush2.bf16.msra.mxu0 %v18047_v50  ;;  %v18312_v49 = vcombine.high %v921_v27, %v933_v29  ;;  %v525_v55 = vld [vmem:[#allocation8 + $0x740] sm:$0xff]  ;;  %v767_v1 = vld [vmem:[#allocation8 + $0xed0] sm:$0xff] }
 0x307   :  { %7907 = vmatpush2.bf16.msra.mxu1 %v18431_v56  ;;  %7865 = vmatprep.subr.bf16.mxu0 %v18024_v57  ;;  %v897_v47 = vld [vmem:[#allocation8 + $0x12e0] sm:$0xff]  ;;  %v17927_v56 = vcombine.low %v537_v19, %v549_v23  ;;  %v18311_v57 = vcombine.low %v921_v27, %v933_v29  ;;  %v22313_v19 = vpop.f32.mrf.mxu0  ;;  %v22315_v27 = vpop.f32.mrf.mxu1 }
 0x308   :  { %7908 = vmatprep.subr.bf16.mxu1 %v18408_v62  ;;  %v909_v50 = vld [vmem:[#allocation8 + $0x1340] sm:$0xff]  ;;  %v17904_v62 = vcombine.high %v513_v53, %v525_v55 }
 0x309   :  { %v18288_v63 = vcombine.high %v897_v47, %v909_v50  ;;  %v489_v0 = vld [vmem:[#allocation8 + $0x620] sm:$0xff] }
 0x30a   :  { %7866 = vmatpush2.bf16.msra.mxu0 %v18023_v58  ;;  %v501_v3 = vld [vmem:[#allocation8 + $0x680] sm:$0xff] }
 0x30b   :  { %7909 = vmatpush2.bf16.msra.mxu1 %v18407_v35  ;;  %7867 = vmatprep.subr.bf16.mxu0 %v18000_v45  ;;  %v873_v8 = vld [vmem:[#allocation8 + $0x1220] sm:$0xff]  ;;  %v17903_v35 = vcombine.low %v513_v53, %v525_v55  ;;  %v18287_v45 = vcombine.low %v897_v47, %v909_v50  ;;  %v418_v53 = vld [vmem:[#allocation8 + $0x3e8] sm:$0xff] }
 0x30c   :  { %7910 = vmatprep.subr.bf16.mxu1 %v18384_v33  ;;  %v885_v58 = vld [vmem:[#allocation8 + $0x1280] sm:$0xff]  ;;  %v17880_v33 = vcombine.high %v489_v0, %v501_v3  ;;  %v430_v55 = vld [vmem:[#allocation8 + $0x448] sm:$0xff] }
 0x30d   :  { %v18264_v37 = vcombine.high %v873_v8, %v885_v58  ;;  %v1233_v10 = vld [vmem:[#allocation8 + $0x1d60] sm:$0xff] }
 0x30e   :  { %7868 = vmatpush2.bf16.msra.mxu0 %v17999_v28  ;;  %v1245_v20 = vld [vmem:[#allocation8 + $0x1dc0] sm:$0xff]  ;;  %v478_v28 = vld [vmem:[#allocation8 + $0x5c8] sm:$0xff] }
 0x30f   :  { %7911 = vmatpush2.bf16.msra.mxu1 %v18383_v22  ;;  %7869 = vmatprep.subr.bf16.mxu0 %v17976_v52  ;;  %v17879_v22 = vcombine.low %v489_v0, %v501_v3  ;;  %v18263_v52 = vcombine.low %v873_v8, %v885_v58  ;;  %v17858_v26 = vcombine.high %v466_v21, %v478_v28  ;;  %v1209_v11 = vld [vmem:[#allocation8 + $0x1ca0] sm:$0xff] }
 0x310   :  { %7912 = vmatprep.subr.bf16.mxu1 %v18360_v25  ;;  %v18624_v25 = vcombine.high %v1233_v10, %v1245_v20  ;;  %v1221_v12 = vld [vmem:[#allocation8 + $0x1d00] sm:$0xff]  ;;  %v17857_v23 = vcombine.low %v466_v21, %v478_v28  ;;  %v17810_v8 = vcombine.high %v418_v53, %v430_v55  ;;  %v17809_v28 = vcombine.low %v418_v53, %v430_v55 }
 0x311   :  { %v22309_v14 = vld [vmem:[#allocation10] sm:$0xff]  ;;  %v18600_v29 = vcombine.high %v1209_v11, %v1221_v12 }
 0x312   :  { %7870 = vmatpush2.bf16.msra.mxu0 %v17975_v15  ;;  %v1470_v15 = vrot.slane %v22309_v14, %v22184_v46  ;;  %v1161_v58 = vld [vmem:[#allocation8 + $0x1b20] sm:$0xff] }
 0x313   :  { %7913 = vmatpush2.bf16.msra.mxu1 %v18359_v16  ;;  %7871 = vmatprep.subr.bf16.mxu0 %v17952_v17  ;;  %v18623_v16 = vcombine.low %v1233_v10, %v1245_v20  ;;  %v442_v17 = vld [vmem:[#allocation8 + $0x4a8] sm:$0xff] }
 0x314   :  { %7914 = vmatprep.subr.bf16.mxu1 %v18336_v18  ;;  %v454_v18 = vld [vmem:[#allocation8 + $0x508] sm:$0xff] }
 0x316   :  { %7872 = vmatpush2.bf16.msra.mxu0 %v17951_v51  ;;  %v1185_v51 = vld [vmem:[#allocation8 + $0x1be0] sm:$0xff] }
 0x317   :  { %7915 = vmatpush2.bf16.msra.mxu1 %v18335_v59  ;;  %7873 = vmatprep.subr.bf16.mxu0 %v17928_v36  ;;  %v1197_v59 = vld [vmem:[#allocation8 + $0x1c40] sm:$0xff] }
 0x318   :  { %7916 = vmatprep.subr.bf16.mxu1 %v18312_v49  ;;  %v17834_v49 = vcombine.high %v442_v17, %v454_v18  ;;  %v18575_v20 = vcombine.low %v1185_v51, %v1197_v59 }
 0x31a   :  { %7874 = vmatpush2.bf16.msra.mxu0 %v17927_v56  ;;  %v18599_v56 = vcombine.low %v1209_v11, %v1221_v12  ;;  %v1149_v11 = vld [vmem:[#allocation8 + $0x1ac0] sm:$0xff]  ;;  %v370_v12 = vld [vmem:[#allocation8 + $0x268] sm:$0xff] }
 0x31b   :  { %7917 = vmatpush2.bf16.msra.mxu1 %v18311_v57  ;;  %7875 = vmatprep.subr.bf16.mxu0 %v17904_v62  ;;  %v17833_v62 = vcombine.low %v442_v17, %v454_v18 }
 0x31c   :  { %7918 = vmatprep.subr.bf16.mxu1 %v18288_v63  ;;  %v18576_v63 = vcombine.high %v1185_v51, %v1197_v59  ;;  %v1125_v51 = vld [vmem:[#allocation8 + $0x1a00] sm:$0xff]  ;;  %v346_v59 = vld [vmem:[#allocation8 + $0x1a8] sm:$0xff] }
 0x31e   :  { %7876 = vmatpush2.bf16.msra.mxu0 %v17903_v35  ;;  %v1173_v35 = vld [vmem:[#allocation8 + $0x1b80] sm:$0xff] }
 0x31f   :  { %7919 = vmatpush2.bf16.msra.mxu1 %v18287_v45  ;;  %7877 = vmatprep.subr.bf16.mxu0 %v17880_v33  ;;  %v394_v33 = vld [vmem:[#allocation8 + $0x328] sm:$0xff]  ;;  %v18551_v17 = vcombine.low %v1161_v58, %v1173_v35 }
 0x320   :  { %7920 = vmatprep.subr.bf16.mxu1 %v18264_v37  ;;  %v406_v37 = vld [vmem:[#allocation8 + $0x388] sm:$0xff] }
 0x322   :  { %7878 = vmatpush2.bf16.msra.mxu0 %v17879_v22  ;;  %v18552_v22 = vcombine.high %v1161_v58, %v1173_v35 }
 0x323   :  { %7921 = vmatpush2.bf16.msra.mxu1 %v18263_v52  ;;  %7933 = vmatprep.subr.bf16.mxu0 %v18624_v25  ;;  %v17786_v25 = vcombine.high %v394_v33, %v406_v37 }
 0x324   :  { %7976 = vmatprep.subr.bf16.mxu1 %v17858_v26  ;;  %v1137_v26 = vld [vmem:[#allocation8 + $0x1a60] sm:$0xff] }
 0x325   :  { %v7623_v36 = vpop.f32.mrf.mxu0  ;;  %7880 = vmatmul.mubr.bf16.vlgmr.msra.gmra.mxu0 %v22217_v60  ;;  %v18528_v18 = vcombine.high %v1137_v26, %v1149_v11 }
 0x326   :  { %v7624_v47 = vadd.f32 %v7623_v36, %v1470_v15  ;;  %v7666_v50 = vpop.f32.mrf.mxu1  ;;  %7923 = vmatmul.mubr.bf16.vlgmr.msra.gmra.mxu1 %v22219_v61  ;;  %7934 = vmatpush1.bf16.msra.mxu0 %v18623_v16  ;;  %v382_v16 = vld [vmem:[#allocation8 + $0x2c8] sm:$0xff] }
 0x327   :  { %7965 = vmatprep.mubr.bf16.mxu0 %v22225_v4  ;;  %7977 = vmatpush1.bf16.msra.mxu1 %v17857_v23  ;;  %v22320_v57 = vpop.f32.mrf.mxu0  ;;  %v17762_v23 = vcombine.high %v370_v12, %v382_v16  ;;  %v358_v36 = vld [vmem:[#allocation8 + $0x208] sm:$0xff]  ;;  %v17761_v53 = vcombine.low %v370_v12, %v382_v16 }
 0x328   :  { %v22322_v0 = vadd.f32 %v7666_v50, %v7624_v47  ;;  %8008 = vmatprep.mubr.bf16.mxu1 %v22213_v54  ;;  %v22325_v3 = vpop.f32.mrf.mxu1  ;;  %7935 = vmatprep.subr.bf16.mxu0 %v18600_v29  ;;  %v1113_v29 = vld [vmem:[#allocation8 + $0x19a0] sm:$0xff]  ;;  %v17738_v47 = vcombine.high %v346_v59, %v358_v36  ;;  %v17737_v58 = vcombine.low %v346_v59, %v358_v36  ;;  %v658_v12 = vld [vmem:[#allocation8 + $0xb68] sm:$0xff] }
 0x329   :  { %v7627_v45 = vpop.f32.mrf.mxu0  ;;  %7978 = vmatprep.subr.bf16.mxu1 %v17834_v49  ;;  %v18527_v49 = vcombine.low %v1137_v26, %v1149_v11  ;;  %v18504_v55 = vcombine.high %v1113_v29, %v1125_v51  ;;  %v1089_v50 = vld [vmem:[#allocation8 + $0x18e0] sm:$0xff]  ;;  %v670_v16 = vld [vmem:[#allocation8 + $0xbc8] sm:$0xff] }
 0x32a   :  { %v7628_v10 = vadd.f32 %v7627_v45, %v1470_v15  ;;  %7936 = vmatpush1.bf16.msra.mxu0 %v18599_v56  ;;  %v7670_v21 = vpop.f32.mrf.mxu1  ;;  %v17785_v15 = vcombine.low %v394_v33, %v406_v37  ;;  %v1101_v56 = vld [vmem:[#allocation8 + $0x1940] sm:$0xff]  ;;  %v634_v59 = vld [vmem:[#allocation8 + $0xaa8] sm:$0xff] }
 0x32b   :  { %7979 = vmatpush1.bf16.msra.mxu1 %v17833_v62  ;;  %7937 = vmatprep.subr.bf16.mxu0 %v18576_v63  ;;  %v322_v62 = vld [vmem:[#allocation8 + $0xe8] sm:$0xff]  ;;  %v18480_v35 = vcombine.high %v1089_v50, %v1101_v56  ;;  %v1065_v33 = vld [vmem:[#allocation8 + $0x1820] sm:$0xff] }
 0x32c   :  { %v22327_v52 = vadd.f32 %v7670_v21, %v7628_v10  ;;  %7980 = vmatprep.subr.bf16.mxu1 %v17810_v8  ;;  %v334_v63 = vld [vmem:[#allocation8 + $0x148] sm:$0xff]  ;;  %v18503_v8 = vcombine.low %v1113_v29, %v1125_v51  ;;  %v1077_v37 = vld [vmem:[#allocation8 + $0x1880] sm:$0xff]  ;;  %v18479_v21 = vcombine.low %v1089_v50, %v1101_v56 }
 0x32d   :  { %v17714_v45 = vcombine.high %v322_v62, %v334_v63  ;;  %v298_v10 = vld [vmem:[#allocation8 + $0x28] sm:$0xff]  ;;  %v1425_v26 = vld [vmem:[#allocation8 + $0x2360] sm:$0xff] }
 0x32e   :  { %7938 = vmatpush1.bf16.msra.mxu0 %v18575_v20  ;;  %v310_v20 = vld [vmem:[#allocation8 + $0x88] sm:$0xff]  ;;  %v1437_v11 = vld [vmem:[#allocation8 + $0x23c0] sm:$0xff] }
 0x32f   :  { %7981 = vmatpush1.bf16.msra.mxu1 %v17809_v28  ;;  %7939 = vmatprep.subr.bf16.mxu0 %v18552_v22  ;;  %v17713_v28 = vcombine.low %v322_v62, %v334_v63  ;;  %v18456_v22 = vcombine.high %v1065_v33, %v1077_v37  ;;  %v1401_v29 = vld [vmem:[#allocation8 + $0x22a0] sm:$0xff]  ;;  %v646_v36 = vld [vmem:[#allocation8 + $0xb08] sm:$0xff] }
 0x330   :  { %7982 = vmatprep.subr.bf16.mxu1 %v17786_v25  ;;  %v17690_v25 = vcombine.high %v298_v10, %v310_v20  ;;  %v1413_v51 = vld [vmem:[#allocation8 + $0x2300] sm:$0xff]  ;;  %v610_v62 = vld [vmem:[#allocation8 + $0x9e8] sm:$0xff] }
 0x331   :  { %v1377_v50 = vld [vmem:[#allocation8 + $0x21e0] sm:$0xff]  ;;  %v622_v63 = vld [vmem:[#allocation8 + $0xa48] sm:$0xff] }
 0x332   :  { %7940 = vmatpush1.bf16.msra.mxu0 %v18551_v17  ;;  %v18455_v17 = vcombine.low %v1065_v33, %v1077_v37  ;;  %v1389_v56 = vld [vmem:[#allocation8 + $0x2240] sm:$0xff] }
 0x333   :  { %7983 = vmatpush1.bf16.msra.mxu1 %v17785_v15  ;;  %7941 = vmatprep.subr.bf16.mxu0 %v18528_v18  ;;  %v17689_v15 = vcombine.low %v298_v10, %v310_v20  ;;  %v18816_v18 = vcombine.high %v1425_v26, %v1437_v11  ;;  %v1353_v33 = vld [vmem:[#allocation8 + $0x2120] sm:$0xff]  ;;  %v586_v10 = vld [vmem:[#allocation8 + $0x928] sm:$0xff] }
 0x334   :  { %7984 = vmatprep.subr.bf16.mxu1 %v17762_v23  ;;  %v18050_v23 = vcombine.high %v658_v12, %v670_v16  ;;  %v1365_v37 = vld [vmem:[#allocation8 + $0x2180] sm:$0xff]  ;;  %v598_v20 = vld [vmem:[#allocation8 + $0x988] sm:$0xff] }
 0x336   :  { %7942 = vmatpush1.bf16.msra.mxu0 %v18527_v49  ;;  %v18815_v49 = vcombine.low %v1425_v26, %v1437_v11  ;;  %v1329_v26 = vld [vmem:[#allocation8 + $0x2060] sm:$0xff] }
 0x337   :  { %7985 = vmatpush1.bf16.msra.mxu1 %v17761_v53  ;;  %7943 = vmatprep.subr.bf16.mxu0 %v18504_v55  ;;  %v18049_v53 = vcombine.low %v658_v12, %v670_v16  ;;  %v18792_v55 = vcombine.high %v1401_v29, %v1413_v51  ;;  %v1341_v11 = vld [vmem:[#allocation8 + $0x20c0] sm:$0xff]  ;;  %v562_v12 = vld [vmem:[#allocation8 + $0x868] sm:$0xff] }
 0x338   :  { %7986 = vmatprep.subr.bf16.mxu1 %v17738_v47  ;;  %v18026_v47 = vcombine.high %v634_v59, %v646_v36  ;;  %v574_v16 = vld [vmem:[#allocation8 + $0x8c8] sm:$0xff] }
 0x33a   :  { %7944 = vmatpush1.bf16.msra.mxu0 %v18503_v8  ;;  %v18791_v8 = vcombine.low %v1401_v29, %v1413_v51  ;;  %v1305_v29 = vld [vmem:[#allocation8 + $0x1fa0] sm:$0xff] }
 0x33b   :  { %7987 = vmatpush1.bf16.msra.mxu1 %v17737_v58  ;;  %7945 = vmatprep.subr.bf16.mxu0 %v18480_v35  ;;  %v18025_v58 = vcombine.low %v634_v59, %v646_v36  ;;  %v18768_v35 = vcombine.high %v1377_v50, %v1389_v56  ;;  %v1317_v51 = vld [vmem:[#allocation8 + $0x2000] sm:$0xff]  ;;  %v538_v59 = vld [vmem:[#allocation8 + $0x7a8] sm:$0xff] }
 0x33c   :  { %7988 = vmatprep.subr.bf16.mxu1 %v17714_v45  ;;  %v18002_v45 = vcombine.high %v610_v62, %v622_v63  ;;  %v550_v36 = vld [vmem:[#allocation8 + $0x808] sm:$0xff] }
 0x33e   :  { %7946 = vmatpush1.bf16.msra.mxu0 %v18479_v21  ;;  %v18767_v21 = vcombine.low %v1377_v50, %v1389_v56  ;;  %v1281_v50 = vld [vmem:[#allocation8 + $0x1ee0] sm:$0xff] }
 0x33f   :  { %7989 = vmatpush1.bf16.msra.mxu1 %v17713_v28  ;;  %7947 = vmatprep.subr.bf16.mxu0 %v18456_v22  ;;  %v18001_v28 = vcombine.low %v610_v62, %v622_v63  ;;  %v18744_v22 = vcombine.high %v1353_v33, %v1365_v37  ;;  %v1293_v56 = vld [vmem:[#allocation8 + $0x1f40] sm:$0xff]  ;;  %v514_v62 = vld [vmem:[#allocation8 + $0x6e8] sm:$0xff] }
 0x340   :  { %7990 = vmatprep.subr.bf16.mxu1 %v17690_v25  ;;  %v17978_v25 = vcombine.high %v586_v10, %v598_v20  ;;  %v526_v63 = vld [vmem:[#allocation8 + $0x748] sm:$0xff] }
 0x342   :  { %7948 = vmatpush1.bf16.msra.mxu0 %v18455_v17  ;;  %v18743_v17 = vcombine.low %v1353_v33, %v1365_v37  ;;  %v1257_v33 = vld [vmem:[#allocation8 + $0x1e20] sm:$0xff] }
 0x343   :  { %7991 = vmatpush1.bf16.msra.mxu1 %v17689_v15  ;;  %7949 = vmatprep.subr.bf16.mxu0 %v18816_v18  ;;  %v17977_v15 = vcombine.low %v586_v10, %v598_v20  ;;  %v18720_v18 = vcombine.high %v1329_v26, %v1341_v11  ;;  %v1269_v37 = vld [vmem:[#allocation8 + $0x1e80] sm:$0xff]  ;;  %v490_v10 = vld [vmem:[#allocation8 + $0x628] sm:$0xff] }
 0x344   :  { %7992 = vmatprep.subr.bf16.mxu1 %v18050_v23  ;;  %v17954_v23 = vcombine.high %v562_v12, %v574_v16  ;;  %v502_v20 = vld [vmem:[#allocation8 + $0x688] sm:$0xff] }
 0x346   :  { %7950 = vmatpush2.bf16.msra.mxu0 %v18815_v49  ;;  %v18719_v49 = vcombine.low %v1329_v26, %v1341_v11  ;;  %v850_v26 = vld [vmem:[#allocation8 + $0x1168] sm:$0xff] }
 0x347   :  { %7993 = vmatpush2.bf16.msra.mxu1 %v18049_v53  ;;  %7951 = vmatprep.subr.bf16.mxu0 %v18792_v55  ;;  %v17953_v53 = vcombine.low %v562_v12, %v574_v16  ;;  %v18696_v55 = vcombine.high %v1305_v29, %v1317_v51  ;;  %v862_v11 = vld [vmem:[#allocation8 + $0x11c8] sm:$0xff] }
 0x348   :  { %7994 = vmatprep.subr.bf16.mxu1 %v18026_v47  ;;  %v17930_v47 = vcombine.high %v538_v59, %v550_v36  ;;  %v1234_v12 = vld [vmem:[#allocation8 + $0x1d68] sm:$0xff] }
 0x349   :  { %v1246_v16 = vld [vmem:[#allocation8 + $0x1dc8] sm:$0xff] }
 0x34a   :  { %7952 = vmatpush2.bf16.msra.mxu0 %v18791_v8  ;;  %v18695_v8 = vcombine.low %v1305_v29, %v1317_v51  ;;  %v826_v29 = vld [vmem:[#allocation8 + $0x10a8] sm:$0xff] }
 0x34b   :  { %7995 = vmatpush2.bf16.msra.mxu1 %v18025_v58  ;;  %7953 = vmatprep.subr.bf16.mxu0 %v18768_v35  ;;  %v17929_v58 = vcombine.low %v538_v59, %v550_v36  ;;  %v18672_v35 = vcombine.high %v1281_v50, %v1293_v56  ;;  %v838_v51 = vld [vmem:[#allocation8 + $0x1108] sm:$0xff]  ;;  %v18241_v59 = vcombine.low %v850_v26, %v862_v11 }
 0x34c   :  { %7996 = vmatprep.subr.bf16.mxu1 %v18002_v45  ;;  %v17906_v45 = vcombine.high %v514_v62, %v526_v63  ;;  %v1210_v36 = vld [vmem:[#allocation8 + $0x1ca8] sm:$0xff] }
 0x34e   :  { %7954 = vmatpush2.bf16.msra.mxu0 %v18767_v21  ;;  %v18671_v21 = vcombine.low %v1281_v50, %v1293_v56  ;;  %v802_v50 = vld [vmem:[#allocation8 + $0xfe8] sm:$0xff] }
 0x34f   :  { %7997 = vmatpush2.bf16.msra.mxu1 %v18001_v28  ;;  %7955 = vmatprep.subr.bf16.mxu0 %v18744_v22  ;;  %v17905_v28 = vcombine.low %v514_v62, %v526_v63  ;;  %v18648_v22 = vcombine.high %v1257_v33, %v1269_v37  ;;  %v814_v56 = vld [vmem:[#allocation8 + $0x1048] sm:$0xff] }
 0x350   :  { %7998 = vmatprep.subr.bf16.mxu1 %v17978_v25  ;;  %v17882_v25 = vcombine.high %v490_v10, %v502_v20 }
 0x352   :  { %7956 = vmatpush2.bf16.msra.mxu0 %v18743_v17  ;;  %v18647_v17 = vcombine.low %v1257_v33, %v1269_v37 }
 0x353   :  { %7999 = vmatpush2.bf16.msra.mxu1 %v17977_v15  ;;  %7957 = vmatprep.subr.bf16.mxu0 %v18720_v18  ;;  %v17881_v15 = vcombine.low %v490_v10, %v502_v20  ;;  %v18242_v18 = vcombine.high %v850_v26, %v862_v11  ;;  %v18194_v10 = vcombine.high %v802_v50, %v814_v56  ;;  %v1174_v26 = vld [vmem:[#allocation8 + $0x1b88] sm:$0xff] }
 0x354   :  { %8000 = vmatprep.subr.bf16.mxu1 %v17954_v23  ;;  %v18626_v23 = vcombine.high %v1234_v12, %v1246_v16 }
 0x356   :  { %7958 = vmatpush2.bf16.msra.mxu0 %v18719_v49  ;;  %v1222_v49 = vld [vmem:[#allocation8 + $0x1d08] sm:$0xff] }
 0x357   :  { %8001 = vmatpush2.bf16.msra.mxu1 %v17953_v53  ;;  %7959 = vmatprep.subr.bf16.mxu0 %v18696_v55  ;;  %v22329_v53 = vpop.f32.mrf.mxu0  ;;  %v18625_v55 = vcombine.low %v1234_v12, %v1246_v16  ;;  %v18602_v63 = vcombine.high %v1210_v36, %v1222_v49  ;;  %v18601_v37 = vcombine.low %v1210_v36, %v1222_v49 }
 0x358   :  { %8002 = vmatprep.subr.bf16.mxu1 %v17930_v47  ;;  %v18218_v47 = vcombine.high %v826_v29, %v838_v51  ;;  %v18193_v12 = vcombine.low %v802_v50, %v814_v56  ;;  %v742_v50 = vld [vmem:[#allocation8 + $0xe08] sm:$0xff] }
 0x359   :  { %v1114_v56 = vld [vmem:[#allocation8 + $0x19a8] sm:$0xff] }
 0x35a   :  { %7960 = vmatpush2.bf16.msra.mxu0 %v18695_v8  ;;  %v1186_v8 = vld [vmem:[#allocation8 + $0x1be8] sm:$0xff] }
 0x35b   :  { %8003 = vmatpush2.bf16.msra.mxu1 %v17929_v58  ;;  %7961 = vmatprep.subr.bf16.mxu0 %v18672_v35  ;;  %v1198_v58 = vld [vmem:[#allocation8 + $0x1c48] sm:$0xff] }
 0x35c   :  { %8004 = vmatprep.subr.bf16.mxu1 %v17906_v45  ;;  %v18217_v45 = vcombine.low %v826_v29, %v838_v51  ;;  %v18577_v16 = vcombine.low %v1186_v8, %v1198_v58  ;;  %v766_v29 = vld [vmem:[#allocation8 + $0xec8] sm:$0xff] }
 0x35d   :  { %v1138_v51 = vld [vmem:[#allocation8 + $0x1a68] sm:$0xff] }
 0x35e   :  { %7962 = vmatpush2.bf16.msra.mxu0 %v18671_v21  ;;  %v18578_v21 = vcombine.high %v1186_v8, %v1198_v58 }
 0x35f   :  { %8005 = vmatpush2.bf16.msra.mxu1 %v17905_v28  ;;  %7963 = vmatprep.subr.bf16.mxu0 %v18648_v22  ;;  %v778_v28 = vld [vmem:[#allocation8 + $0xf28] sm:$0xff] }
 0x360   :  { %8006 = vmatprep.subr.bf16.mxu1 %v17882_v25  ;;  %v1162_v25 = vld [vmem:[#allocation8 + $0x1b28] sm:$0xff] }
 0x362   :  { %7964 = vmatpush2.bf16.msra.mxu0 %v18647_v17 }
 0x363   :  { %8007 = vmatpush2.bf16.msra.mxu1 %v17881_v15  ;;  %8019 = vmatprep.subr.bf16.mxu0 %v18242_v18  ;;  %v18554_v18 = vcombine.high %v1162_v25, %v1174_v26 }
 0x364   :  { %8062 = vmatprep.subr.bf16.mxu1 %v18626_v23  ;;  %v754_v23 = vld [vmem:[#allocation8 + $0xe68] sm:$0xff] }
 0x365   :  { %v7709_v62 = vpop.f32.mrf.mxu0  ;;  %7966 = vmatmul.mubr.bf16.vlgmr.msra.gmra.mxu0 %v22227_v5  ;;  %v18146_v49 = vcombine.high %v754_v23, %v766_v29 }
 0x366   :  { %v22333_v35 = vadd.f32 %v7709_v62, %v22322_v0  ;;  %8009 = vmatmul.mubr.bf16.vlgmr.msra.gmra.mxu1 %v22217_v60  ;;  %8020 = vmatpush1.bf16.msra.mxu0 %v18241_v59  ;;  %v790_v0 = vld [vmem:[#allocation8 + $0xf88] sm:$0xff] }
 0x367   :  { %8051 = vmatprep.mubr.bf16.mxu0 %v22215_v7  ;;  %8063 = vmatpush1.bf16.msra.mxu1 %v18625_v55  ;;  %v22337_v33 = vpop.f32.mrf.mxu0  ;;  %v18170_v17 = vcombine.high %v778_v28, %v790_v0  ;;  %v1150_v59 = vld [vmem:[#allocation8 + $0x1ac8] sm:$0xff]  ;;  %v18169_v36 = vcombine.low %v778_v28, %v790_v0 }
 0x368   :  { %23135 = vst [vmem:[#allocation27_spill] sm:$0xff] %v22337_v33  ;;  %v8883_v20 = vmul.f32 0.851, %v22333_v35  ;;  %8094 = vmatprep.mubr.bf16.mxu1 %v22225_v4  ;;  %8021 = vmatprep.subr.bf16.mxu0 %v18218_v47  ;;  %v18530_v55 = vcombine.high %v1138_v51, %v1150_v59  ;;  %v730_v47 = vld [vmem:[#allocation8 + $0xda8] sm:$0xff]  ;;  %v18529_v8 = vcombine.low %v1138_v51, %v1150_v59  ;;  %v384_v33 = vld [vmem:[#allocation8 + $0x2d8] sm:$0xff] }
 0x369   :  { %v7713_v22 = vpop.f32.mrf.mxu0  ;;  %8064 = vmatprep.subr.bf16.mxu1 %v18602_v63  ;;  %v1126_v62 = vld [vmem:[#allocation8 + $0x1a08] sm:$0xff]  ;;  %v18145_v63 = vcombine.low %v754_v23, %v766_v29  ;;  %v18122_v58 = vcombine.high %v730_v47, %v742_v50  ;;  %v18121_v28 = vcombine.low %v730_v47, %v742_v50 }
 0x36a   :  { %21737 = vtanh.f32 %v8883_v20  ;;  %v22342_v11 = vadd.f32 %v7713_v22, %v22327_v52  ;;  %8022 = vmatpush1.bf16.msra.mxu0 %v18217_v45  ;;  %v18553_v52 = vcombine.low %v1162_v25, %v1174_v26  ;;  %v18506_v45 = vcombine.high %v1114_v56, %v1126_v62  ;;  %v1090_v20 = vld [vmem:[#allocation8 + $0x18e8] sm:$0xff] }
 0x36b   :  { %8065 = vmatpush1.bf16.msra.mxu1 %v18601_v37  ;;  %8023 = vmatprep.subr.bf16.mxu0 %v18194_v10  ;;  %v706_v37 = vld [vmem:[#allocation8 + $0xce8] sm:$0xff]  ;;  %v18505_v22 = vcombine.low %v1114_v56, %v1126_v62 }
 0x36c   :  { %v8907_v15 = vmul.f32 0.851, %v22342_v11  ;;  %8066 = vmatprep.subr.bf16.mxu1 %v18578_v21  ;;  %v718_v10 = vld [vmem:[#allocation8 + $0xd48] sm:$0xff] }
 0x36d   :  { %v1102_v21 = vld [vmem:[#allocation8 + $0x1948] sm:$0xff]  ;;  %v18098_v25 = vcombine.high %v706_v37, %v718_v10  ;;  %v18097_v23 = vcombine.low %v706_v37, %v718_v10 }
 0x36e   :  { %21739 = vtanh.f32 %v8907_v15  ;;  %8024 = vmatpush1.bf16.msra.mxu0 %v18193_v12  ;;  %v18482_v12 = vcombine.high %v1090_v20, %v1102_v21  ;;  %v1066_v15 = vld [vmem:[#allocation8 + $0x1828] sm:$0xff]  ;;  %v18481_v51 = vcombine.low %v1090_v20, %v1102_v21 }
 0x36f   :  { %8067 = vmatpush1.bf16.msra.mxu1 %v18577_v16  ;;  %8025 = vmatprep.subr.bf16.mxu0 %v18170_v17  ;;  %v682_v16 = vld [vmem:[#allocation8 + $0xc28] sm:$0xff] }
 0x370   :  { %8068 = vmatprep.subr.bf16.mxu1 %v18554_v18  ;;  %v694_v17 = vld [vmem:[#allocation8 + $0xc88] sm:$0xff] }
 0x371   :  { %v1078_v18 = vld [vmem:[#allocation8 + $0x1888] sm:$0xff]  ;;  %v18074_v59 = vcombine.high %v682_v16, %v694_v17 }
 0x372   :  { %8026 = vmatpush1.bf16.msra.mxu0 %v18169_v36  ;;  %v1054_v47 = vld [vmem:[#allocation8 + $0x17c8] sm:$0xff] }
 0x373   :  { %8069 = vmatpush1.bf16.msra.mxu1 %v18553_v52  ;;  %8027 = vmatprep.subr.bf16.mxu0 %v18146_v49  ;;  %v18458_v49 = vcombine.high %v1066_v15, %v1078_v18  ;;  %v1426_v50 = vld [vmem:[#allocation8 + $0x2368] sm:$0xff] }
 0x374   :  { %8070 = vmatprep.subr.bf16.mxu1 %v18530_v55  ;;  %v1042_v55 = vld [vmem:[#allocation8 + $0x1768] sm:$0xff] }
 0x375   :  { %v1438_v56 = vld [vmem:[#allocation8 + $0x23c8] sm:$0xff] }
 0x376   :  { %8028 = vmatpush1.bf16.msra.mxu0 %v18145_v63  ;;  %v18073_v63 = vcombine.low %v682_v16, %v694_v17  ;;  %v18818_v10 = vcombine.high %v1426_v50, %v1438_v56  ;;  %v1018_v20 = vld [vmem:[#allocation8 + $0x16a8] sm:$0xff] }
 0x377   :  { %v21738_v0 = vpop.eup %21737  ;;  %8071 = vmatpush1.bf16.msra.mxu1 %v18529_v8  ;;  %8029 = vmatprep.subr.bf16.mxu0 %v18122_v58  ;;  %v18457_v8 = vcombine.low %v1066_v15, %v1078_v18  ;;  %v18434_v58 = vcombine.high %v1042_v55, %v1054_v47  ;;  %v1030_v21 = vld [vmem:[#allocation8 + $0x1708] sm:$0xff] }
 0x378   :  { %v8979_v26 = vadd.f32 1.0, %v21738_v0  ;;  %8072 = vmatprep.subr.bf16.mxu1 %v18506_v45  ;;  %v1414_v0 = vld [vmem:[#allocation8 + $0x2308] sm:$0xff]  ;;  %v18409_v18 = vcombine.low %v1018_v20, %v1030_v21 }
 0x379   :  { %v994_v17 = vld [vmem:[#allocation8 + $0x15e8] sm:$0xff] }
 0x37a   :  { %8030 = vmatpush1.bf16.msra.mxu0 %v18121_v28  ;;  %v9027_v36 = vmul.f32 0.5, %v8979_v26  ;;  %v1402_v28 = vld [vmem:[#allocation8 + $0x22a8] sm:$0xff]  ;;  %v18817_v26 = vcombine.low %v1426_v50, %v1438_v56 }
 0x37b   :  { %v21740_v29 = vpop.eup %21739  ;;  %8073 = vmatpush1.bf16.msra.mxu1 %v18505_v22  ;;  %8031 = vmatprep.subr.bf16.mxu0 %v18098_v25  ;;  %v18433_v25 = vcombine.low %v1042_v55, %v1054_v47  ;;  %v18794_v16 = vcombine.high %v1402_v28, %v1414_v0  ;;  %v1378_v15 = vld [vmem:[#allocation8 + $0x21e8] sm:$0xff] }
 0x37c   :  { %v9003_v52 = vadd.f32 1.0, %v21740_v29  ;;  %8074 = vmatprep.subr.bf16.mxu1 %v18482_v12  ;;  %v9075_v45 = vmul.f32 %v9027_v36, %v22333_v35  ;;  %v18410_v12 = vcombine.high %v1018_v20, %v1030_v21  ;;  %v1006_v35 = vld [vmem:[#allocation8 + $0x1648] sm:$0xff] }
 0x37d   :  { %v18386_v29 = vcombine.high %v994_v17, %v1006_v35  ;;  %v982_v36 = vld [vmem:[#allocation8 + $0x1588] sm:$0xff]  ;;  %v18385_v55 = vcombine.low %v994_v17, %v1006_v35 }
 0x37e   :  { %v9051_v62 = vmul.f32 0.5, %v9003_v52  ;;  %8032 = vmatpush1.bf16.msra.mxu0 %v18097_v23  ;;  %v18793_v23 = vcombine.low %v1402_v28, %v1414_v0  ;;  %v1354_v52 = vld [vmem:[#allocation8 + $0x2128] sm:$0xff] }
 0x37f   :  { %8075 = vmatpush1.bf16.msra.mxu1 %v18481_v51  ;;  %8033 = vmatprep.subr.bf16.mxu0 %v18074_v59  ;;  %v970_v59 = vld [vmem:[#allocation8 + $0x1528] sm:$0xff] }
 0x380   :  { %v9099_v37 = vmul.f32 %v9051_v62, %v22342_v11  ;;  %8076 = vmatprep.subr.bf16.mxu1 %v18458_v49  ;;  %v1390_v11 = vld [vmem:[#allocation8 + $0x2248] sm:$0xff]  ;;  %v18362_v50 = vcombine.high %v970_v59, %v982_v36 }
 0x381   :  { %v18770_v51 = vcombine.high %v1378_v15, %v1390_v11  ;;  %v1366_v49 = vld [vmem:[#allocation8 + $0x2188] sm:$0xff]  ;;  %v18769_v47 = vcombine.low %v1378_v15, %v1390_v11 }
 0x382   :  { %v22347_v22 = vpack.c.bf16 %v9099_v37, %v9075_v45  ;;  %8034 = vmatpush1.bf16.msra.mxu0 %v18073_v63  ;;  %v18746_v56 = vcombine.high %v1354_v52, %v1366_v49  ;;  %v946_v62 = vld [vmem:[#allocation8 + $0x1468] sm:$0xff]  ;;  %v18361_v45 = vcombine.low %v970_v59, %v982_v36  ;;  %v18745_v37 = vcombine.low %v1354_v52, %v1366_v49 }
 0x383   :  { %8077 = vmatpush1.bf16.msra.mxu1 %v18457_v8  ;;  %8035 = vmatprep.subr.bf16.mxu0 %v18434_v58  ;;  %v958_v63 = vld [vmem:[#allocation8 + $0x14c8] sm:$0xff] }
 0x384   :  { %23136 = vst [vmem:[#allocation28_spill] sm:$0xff] %v22347_v22  ;;  %8078 = vmatprep.subr.bf16.mxu1 %v18818_v10  ;;  %v1330_v8 = vld [vmem:[#allocation8 + $0x2068] sm:$0xff]  ;;  %v18338_v10 = vcombine.high %v946_v62, %v958_v63  ;;  %v383_v22 = vld [vmem:[#allocation8 + $0x2d0] sm:$0xff] }
 0x385   :  { %v1342_v58 = vld [vmem:[#allocation8 + $0x20c8] sm:$0xff] }
 0x386   :  { %8036 = vmatpush2.bf16.msra.mxu0 %v18433_v25  ;;  %v18722_v20 = vcombine.high %v1330_v8, %v1342_v58  ;;  %v922_v21 = vld [vmem:[#allocation8 + $0x13a8] sm:$0xff] }
 0x387   :  { %8079 = vmatpush2.bf16.msra.mxu1 %v18817_v26  ;;  %8037 = vmatprep.subr.bf16.mxu0 %v18410_v12  ;;  %v934_v28 = vld [vmem:[#allocation8 + $0x1408] sm:$0xff]  ;;  %v18337_v26 = vcombine.low %v946_v62, %v958_v63  ;;  %v18721_v12 = vcombine.low %v1330_v8, %v1342_v58  ;;  %v22352_v8 = vsub.s32 6, %v22169_v38 }
 0x388   :  { %8080 = vmatprep.subr.bf16.mxu1 %v18794_v16  ;;  %v1306_v0 = vld [vmem:[#allocation8 + $0x1fa8] sm:$0xff]  ;;  %v18314_v16 = vcombine.high %v922_v21, %v934_v28 }
 0x389   :  { %v1318_v25 = vld [vmem:[#allocation8 + $0x2008] sm:$0xff]  ;;  %23137 = vst [vmem:[#allocation29_spill] sm:$0xff] %v22352_v8 }
 0x38a   :  { %8038 = vmatpush2.bf16.msra.mxu0 %v18409_v18  ;;  %v18698_v17 = vcombine.high %v1306_v0, %v1318_v25  ;;  %v898_v35 = vld [vmem:[#allocation8 + $0x12e8] sm:$0xff] }
 0x38b   :  { %8081 = vmatpush2.bf16.msra.mxu1 %v18793_v23  ;;  %8039 = vmatprep.subr.bf16.mxu0 %v18386_v29  ;;  %v910_v15 = vld [vmem:[#allocation8 + $0x1348] sm:$0xff]  ;;  %v22349_v23 = vpop.f32.mrf.mxu1  ;;  %v18313_v29 = vcombine.low %v922_v21, %v934_v28  ;;  %v863_v21 = vld [vmem:[#allocation8 + $0x11d0] sm:$0xff] }
 0x38c   :  { %8082 = vmatprep.subr.bf16.mxu1 %v18770_v51  ;;  %v1282_v11 = vld [vmem:[#allocation8 + $0x1ee8] sm:$0xff]  ;;  %v18697_v51 = vcombine.low %v1306_v0, %v1318_v25  ;;  %v18290_v59 = vcombine.high %v898_v35, %v910_v15 }
 0x38d   :  { %v1294_v18 = vld [vmem:[#allocation8 + $0x1f48] sm:$0xff]  ;;  %v7752_v36 = vpop.f32.mrf.mxu1 }
 0x38e   :  { %8040 = vmatpush2.bf16.msra.mxu0 %v18385_v55  ;;  %v18674_v52 = vcombine.high %v1282_v11, %v1294_v18  ;;  %v874_v49 = vld [vmem:[#allocation8 + $0x1228] sm:$0xff]  ;;  %v18673_v62 = vcombine.low %v1282_v11, %v1294_v18  ;;  %v827_v11 = vld [vmem:[#allocation8 + $0x10b0] sm:$0xff] }
 0x38f   :  { %8083 = vmatpush2.bf16.msra.mxu1 %v18769_v47  ;;  %8041 = vmatprep.subr.bf16.mxu0 %v18362_v50  ;;  %v886_v55 = vld [vmem:[#allocation8 + $0x1288] sm:$0xff]  ;;  %v22354_v58 = vpop.f32.mrf.mxu1  ;;  %v839_v18 = vld [vmem:[#allocation8 + $0x1110] sm:$0xff] }
 0x390   :  { %8084 = vmatprep.subr.bf16.mxu1 %v18746_v56  ;;  %v1258_v47 = vld [vmem:[#allocation8 + $0x1e28] sm:$0xff]  ;;  %v18289_v56 = vcombine.low %v898_v35, %v910_v15  ;;  %v18266_v63 = vcombine.high %v874_v49, %v886_v55  ;;  %v18265_v28 = vcombine.low %v874_v49, %v886_v55  ;;  %v455_v35 = vld [vmem:[#allocation8 + $0x510] sm:$0xff] }
 0x391   :  { %v1270_v50 = vld [vmem:[#allocation8 + $0x1e88] sm:$0xff]  ;;  %v431_v55 = vld [vmem:[#allocation8 + $0x450] sm:$0xff] }
 0x392   :  { %8042 = vmatpush2.bf16.msra.mxu0 %v18361_v45  ;;  %v18650_v45 = vcombine.high %v1258_v47, %v1270_v50  ;;  %v18649_v0 = vcombine.low %v1258_v47, %v1270_v50  ;;  %v18220_v50 = vcombine.high %v827_v11, %v839_v18 }
 0x393   :  { %8085 = vmatpush2.bf16.msra.mxu1 %v18745_v37  ;;  %8043 = vmatprep.subr.bf16.mxu0 %v18338_v10  ;;  %v467_v37 = vld [vmem:[#allocation8 + $0x570] sm:$0xff] }
 0x394   :  { %8086 = vmatprep.subr.bf16.mxu1 %v18722_v20  ;;  %v479_v10 = vld [vmem:[#allocation8 + $0x5d0] sm:$0xff] }
 0x395   :  { %v851_v20 = vld [vmem:[#allocation8 + $0x1170] sm:$0xff]  ;;  %v17860_v25 = vcombine.high %v467_v37, %v479_v10  ;;  %v17859_v15 = vcombine.low %v467_v37, %v479_v10  ;;  %v18219_v10 = vcombine.low %v827_v11, %v839_v18 }
 0x396   :  { %8044 = vmatpush2.bf16.msra.mxu0 %v18337_v26  ;;  %v1478_v26 = vrot.slane %v22309_v14, %v22352_v8  ;;  %v419_v14 = vld [vmem:[#allocation8 + $0x3f0] sm:$0xff] }
 0x397   :  { %8087 = vmatpush2.bf16.msra.mxu1 %v18721_v12  ;;  %8045 = vmatprep.subr.bf16.mxu0 %v18314_v16  ;;  %v7756_v12 = vpop.f32.mrf.mxu1  ;;  %v18244_v16 = vcombine.high %v851_v20, %v863_v21  ;;  %v17811_v11 = vcombine.low %v419_v14, %v431_v55 }
 0x398   :  { %8088 = vmatprep.subr.bf16.mxu1 %v18698_v17  ;;  %v443_v17 = vld [vmem:[#allocation8 + $0x4b0] sm:$0xff] }
 0x399   :  { %v17836_v49 = vcombine.high %v443_v17, %v455_v35  ;;  %v17835_v37 = vcombine.low %v443_v17, %v455_v35  ;;  %v779_v17 = vld [vmem:[#allocation8 + $0xf30] sm:$0xff] }
 0x39a   :  { %8046 = vmatpush2.bf16.msra.mxu0 %v18313_v29  ;;  %v22358_v29 = vpop.f32.mrf.mxu0  ;;  %v791_v35 = vld [vmem:[#allocation8 + $0xf90] sm:$0xff] }
 0x39b   :  { %8089 = vmatpush2.bf16.msra.mxu1 %v18697_v51  ;;  %8047 = vmatprep.subr.bf16.mxu0 %v18290_v59  ;;  %v18243_v51 = vcombine.low %v851_v20, %v863_v21  ;;  %v7753_v59 = vadd.f32 %v7752_v36, %v1478_v26  ;;  %v17812_v20 = vcombine.high %v419_v14, %v431_v55 }
 0x39c   :  { %8090 = vmatprep.subr.bf16.mxu1 %v18674_v52  ;;  %v22360_v52 = vpop.f32.mrf.mxu1  ;;  %v7757_v21 = vadd.f32 %v7756_v12, %v1478_v26  ;;  %v18171_v14 = vcombine.low %v779_v17, %v791_v35 }
 0x39e   :  { %8048 = vmatpush2.bf16.msra.mxu0 %v18289_v56  ;;  %v803_v56 = vld [vmem:[#allocation8 + $0xff0] sm:$0xff] }
 0x39f   :  { %8091 = vmatpush2.bf16.msra.mxu1 %v18673_v62  ;;  %8049 = vmatprep.subr.bf16.mxu0 %v18266_v63  ;;  %v815_v62 = vld [vmem:[#allocation8 + $0x1050] sm:$0xff] }
 0x3a0   :  { %8092 = vmatprep.subr.bf16.mxu1 %v18650_v45  ;;  %v18195_v12 = vcombine.low %v803_v56, %v815_v62 }
 0x3a2   :  { %8050 = vmatpush2.bf16.msra.mxu0 %v18265_v28 }
 0x3a3   :  { %8093 = vmatpush2.bf16.msra.mxu1 %v18649_v0  ;;  %8105 = vmatprep.subr.bf16.mxu0 %v17860_v25  ;;  %v18196_v25 = vcombine.high %v803_v56, %v815_v62  ;;  %v347_v62 = vld [vmem:[#allocation8 + $0x1b0] sm:$0xff] }
 0x3a4   :  { %8148 = vmatprep.subr.bf16.mxu1 %v18244_v16  ;;  %v395_v16 = vld [vmem:[#allocation8 + $0x330] sm:$0xff] }
 0x3a5   :  { %v7795_v47 = vpop.f32.mrf.mxu0  ;;  %8052 = vmatmul.mubr.bf16.vlgmr.msra.gmra.mxu0 %v22219_v61 }
 0x3a6   :  { %v7796_v63 = vadd.f32 %v7795_v47, %v7753_v59  ;;  %v7838_v45 = vpop.f32.mrf.mxu1  ;;  %8095 = vmatmul.mubr.bf16.vlgmr.msra.gmra.mxu1 %v22227_v5  ;;  %8106 = vmatpush1.bf16.msra.mxu0 %v17859_v15  ;;  %v407_v59 = vld [vmem:[#allocation8 + $0x390] sm:$0xff] }
 0x3a7   :  { %8137 = vmatprep.mubr.bf16.mxu0 %v22213_v54  ;;  %8149 = vmatpush1.bf16.msra.mxu1 %v18243_v51  ;;  %v22365_v36 = vpop.f32.mrf.mxu0  ;;  %v17788_v18 = vcombine.high %v395_v16, %v407_v59 }
 0x3a8   :  { %v22367_v28 = vadd.f32 %v7838_v45, %v7796_v63  ;;  %8180 = vmatprep.mubr.bf16.mxu1 %v22215_v7  ;;  %v22370_v0 = vpop.f32.mrf.mxu1  ;;  %8107 = vmatprep.subr.bf16.mxu0 %v17836_v49  ;;  %v18172_v49 = vcombine.high %v779_v17, %v791_v35  ;;  %v371_v45 = vld [vmem:[#allocation8 + $0x270] sm:$0xff] }
 0x3a9   :  { %23138 = vst [vmem:[#allocation30_spill] sm:$0xff] %v22370_v0  ;;  %v7799_v15 = vpop.f32.mrf.mxu0  ;;  %8150 = vmatprep.subr.bf16.mxu1 %v18220_v50  ;;  %v755_v50 = vld [vmem:[#allocation8 + $0xe70] sm:$0xff]  ;;  %v17764_v55 = vcombine.high %v371_v45, %v383_v22 }
 0x3aa   :  { %v8885_v51 = vmul.f32 0.851, %v22367_v28  ;;  %v7800_v47 = vadd.f32 %v7799_v15, %v7757_v21  ;;  %8108 = vmatpush1.bf16.msra.mxu0 %v17835_v37  ;;  %v7842_v26 = vpop.f32.mrf.mxu1  ;;  %v17787_v21 = vcombine.low %v395_v16, %v407_v59  ;;  %v18148_v56 = vcombine.high %v755_v50, %v767_v1  ;;  %v359_v37 = vld [vmem:[#allocation8 + $0x210] sm:$0xff] }
 0x3ab   :  { %8151 = vmatpush1.bf16.msra.mxu1 %v18219_v10  ;;  %8109 = vmatprep.subr.bf16.mxu0 %v17812_v20  ;;  %v731_v10 = vld [vmem:[#allocation8 + $0xdb0] sm:$0xff]  ;;  %v18147_v15 = vcombine.low %v755_v50, %v767_v1 }
 0x3ac   :  { %21741 = vtanh.f32 %v8885_v51  ;;  %v22373_v63 = vadd.f32 %v7842_v26, %v7800_v47  ;;  %8152 = vmatprep.subr.bf16.mxu1 %v18196_v25  ;;  %v743_v20 = vld [vmem:[#allocation8 + $0xe10] sm:$0xff]  ;;  %v17763_v25 = vcombine.low %v371_v45, %v383_v22  ;;  %v17740_v51 = vcombine.high %v347_v62, %v359_v37 }
 0x3ad   :  { %v18124_v47 = vcombine.high %v731_v10, %v743_v20  ;;  %v323_v16 = vld [vmem:[#allocation8 + $0xf0] sm:$0xff]  ;;  %v18123_v35 = vcombine.low %v731_v10, %v743_v20 }
 0x3ae   :  { %v8909_v40 = vmul.f32 0.851, %v22373_v63  ;;  %8110 = vmatpush1.bf16.msra.mxu0 %v17811_v11  ;;  %v335_v59 = vld [vmem:[#allocation8 + $0x150] sm:$0xff] }
 0x3af   :  { %8153 = vmatpush1.bf16.msra.mxu1 %v18195_v12  ;;  %8111 = vmatprep.subr.bf16.mxu0 %v17788_v18  ;;  %v707_v11 = vld [vmem:[#allocation8 + $0xcf0] sm:$0xff]  ;;  %v17716_v26 = vcombine.high %v323_v16, %v335_v59 }
 0x3b0   :  { %21743 = vtanh.f32 %v8909_v40  ;;  %8154 = vmatprep.subr.bf16.mxu1 %v18172_v49  ;;  %v719_v17 = vld [vmem:[#allocation8 + $0xd50] sm:$0xff]  ;;  %v17739_v40 = vcombine.low %v347_v62, %v359_v37 }
 0x3b1   :  { %v18100_v12 = vcombine.high %v707_v11, %v719_v17  ;;  %v299_v18 = vld [vmem:[#allocation8 + $0x30] sm:$0xff] }
 0x3b2   :  { %8112 = vmatpush1.bf16.msra.mxu0 %v17787_v21  ;;  %v311_v22 = vld [vmem:[#allocation8 + $0x90] sm:$0xff]  ;;  %v17715_v21 = vcombine.low %v323_v16, %v335_v59 }
 0x3b3   :  { %8155 = vmatpush1.bf16.msra.mxu1 %v18171_v14  ;;  %8113 = vmatprep.subr.bf16.mxu0 %v17764_v55  ;;  %v683_v45 = vld [vmem:[#allocation8 + $0xc30] sm:$0xff]  ;;  %v18099_v14 = vcombine.low %v707_v11, %v719_v17  ;;  %v17692_v55 = vcombine.high %v299_v18, %v311_v22 }
 0x3b4   :  { %8156 = vmatprep.subr.bf16.mxu1 %v18148_v56  ;;  %v695_v1 = vld [vmem:[#allocation8 + $0xc90] sm:$0xff] }
 0x3b5   :  { %v18076_v56 = vcombine.high %v683_v45, %v695_v1  ;;  %v659_v62 = vld [vmem:[#allocation8 + $0xb70] sm:$0xff] }
 0x3b6   :  { %8114 = vmatpush1.bf16.msra.mxu0 %v17763_v25  ;;  %v671_v37 = vld [vmem:[#allocation8 + $0xbd0] sm:$0xff] }
 0x3b7   :  { %8157 = vmatpush1.bf16.msra.mxu1 %v18147_v15  ;;  %8115 = vmatprep.subr.bf16.mxu0 %v17740_v51  ;;  %v1043_v20 = vld [vmem:[#allocation8 + $0x1770] sm:$0xff] }
 0x3b8   :  { %8158 = vmatprep.subr.bf16.mxu1 %v18124_v47  ;;  %v1055_v25 = vld [vmem:[#allocation8 + $0x17d0] sm:$0xff]  ;;  %v17691_v47 = vcombine.low %v299_v18, %v311_v22 }
 0x3b9   :  { %v21742_v49 = vpop.eup %21741  ;;  %v18436_v59 = vcombine.high %v1043_v20, %v1055_v25  ;;  %v635_v11 = vld [vmem:[#allocation8 + $0xab0] sm:$0xff]  ;;  %v18435_v18 = vcombine.low %v1043_v20, %v1055_v25 }
 0x3ba   :  { %v8981_v50 = vadd.f32 1.0, %v21742_v49  ;;  %8116 = vmatpush1.bf16.msra.mxu0 %v17739_v40  ;;  %v18075_v49 = vcombine.low %v683_v45, %v695_v1  ;;  %v18052_v40 = vcombine.high %v659_v62, %v671_v37  ;;  %v647_v17 = vld [vmem:[#allocation8 + $0xb10] sm:$0xff] }
 0x3bb   :  { %8159 = vmatpush1.bf16.msra.mxu1 %v18123_v35  ;;  %8117 = vmatprep.subr.bf16.mxu0 %v17716_v26  ;;  %v1019_v35 = vld [vmem:[#allocation8 + $0x16b0] sm:$0xff]  ;;  %v18028_v22 = vcombine.high %v635_v11, %v647_v17 }
 0x3bc   :  { %8160 = vmatprep.subr.bf16.mxu1 %v18100_v12  ;;  %v9029_v15 = vmul.f32 0.5, %v8981_v50  ;;  %v1031_v26 = vld [vmem:[#allocation8 + $0x1710] sm:$0xff]  ;;  %v18051_v50 = vcombine.low %v659_v62, %v671_v37 }
 0x3bd   :  { %v21744_v10 = vpop.eup %21743  ;;  %v18412_v45 = vcombine.high %v1019_v35, %v1031_v26  ;;  %v611_v1 = vld [vmem:[#allocation8 + $0x9f0] sm:$0xff] }
 0x3be   :  { %v9005_v51 = vadd.f32 1.0, %v21744_v10  ;;  %8118 = vmatpush1.bf16.msra.mxu0 %v17715_v21  ;;  %v9077_v12 = vmul.f32 %v9029_v15, %v22367_v28  ;;  %v18027_v10 = vcombine.low %v635_v11, %v647_v17  ;;  %v18411_v28 = vcombine.low %v1019_v35, %v1031_v26  ;;  %v587_v37 = vld [vmem:[#allocation8 + $0x930] sm:$0xff] }
 0x3bf   :  { %8161 = vmatpush1.bf16.msra.mxu1 %v18099_v14  ;;  %8119 = vmatprep.subr.bf16.mxu0 %v17692_v55  ;;  %v623_v14 = vld [vmem:[#allocation8 + $0xa50] sm:$0xff] }
 0x3c0   :  { %v9053_v16 = vmul.f32 0.5, %v9005_v51  ;;  %8162 = vmatprep.subr.bf16.mxu1 %v18076_v56  ;;  %v995_v55 = vld [vmem:[#allocation8 + $0x15f0] sm:$0xff] }
 0x3c1   :  { %v1007_v56 = vld [vmem:[#allocation8 + $0x1650] sm:$0xff] }
 0x3c2   :  { %v9101_v0 = vmul.f32 %v9053_v16, %v22373_v63  ;;  %8120 = vmatpush1.bf16.msra.mxu0 %v17691_v47  ;;  %v18004_v63 = vcombine.high %v611_v1, %v623_v14  ;;  %v18388_v62 = vcombine.high %v995_v55, %v1007_v56  ;;  %v599_v15 = vld [vmem:[#allocation8 + $0x990] sm:$0xff]  ;;  %v18387_v51 = vcombine.low %v995_v55, %v1007_v56 }
 0x3c3   :  { %8163 = vmatpush1.bf16.msra.mxu1 %v18075_v49  ;;  %8121 = vmatprep.subr.bf16.mxu0 %v18052_v40  ;;  %v971_v20 = vld [vmem:[#allocation8 + $0x1530] sm:$0xff]  ;;  %v17980_v47 = vcombine.high %v587_v37, %v599_v15  ;;  %v17979_v17 = vcombine.low %v587_v37, %v599_v15 }
 0x3c4   :  { %v22378_v21 = vpack.c.bf16 %v9101_v0, %v9077_v12  ;;  %8164 = vmatprep.subr.bf16.mxu1 %v18436_v59  ;;  %v983_v25 = vld [vmem:[#allocation8 + $0x1590] sm:$0xff]  ;;  %v18003_v0 = vcombine.low %v611_v1, %v623_v14 }
 0x3c5   :  { %v18364_v49 = vcombine.high %v971_v20, %v983_v25  ;;  %v563_v40 = vld [vmem:[#allocation8 + $0x870] sm:$0xff]  ;;  %v18363_v35 = vcombine.low %v971_v20, %v983_v25 }
 0x3c6   :  { %23139 = vst [vmem:[#allocation31_spill] sm:$0xff] %v22378_v21  ;;  %8122 = vmatpush2.bf16.msra.mxu0 %v18051_v50  ;;  %v575_v16 = vld [vmem:[#allocation8 + $0x8d0] sm:$0xff] }
 0x3c7   :  { %8165 = vmatpush2.bf16.msra.mxu1 %v18435_v18  ;;  %8123 = vmatprep.subr.bf16.mxu0 %v18028_v22  ;;  %v947_v59 = vld [vmem:[#allocation8 + $0x1470] sm:$0xff]  ;;  %v17956_v26 = vcombine.high %v563_v40, %v575_v16  ;;  %v17955_v1 = vcombine.low %v563_v40, %v575_v16 }
 0x3c8   :  { %8166 = vmatprep.subr.bf16.mxu1 %v18412_v45  ;;  %v959_v11 = vld [vmem:[#allocation8 + $0x14d0] sm:$0xff] }
 0x3c9   :  { %v18340_v12 = vcombine.high %v947_v59, %v959_v11  ;;  %v539_v50 = vld [vmem:[#allocation8 + $0x7b0] sm:$0xff]  ;;  %v18339_v14 = vcombine.low %v947_v59, %v959_v11 }
 0x3ca   :  { %8124 = vmatpush2.bf16.msra.mxu0 %v18027_v10  ;;  %v551_v18 = vld [vmem:[#allocation8 + $0x810] sm:$0xff] }
 0x3cb   :  { %8167 = vmatpush2.bf16.msra.mxu1 %v18411_v28  ;;  %8125 = vmatprep.subr.bf16.mxu0 %v18004_v63  ;;  %v923_v22 = vld [vmem:[#allocation8 + $0x13b0] sm:$0xff]  ;;  %v17932_v55 = vcombine.high %v539_v50, %v551_v18  ;;  %v17931_v37 = vcombine.low %v539_v50, %v551_v18 }
 0x3cc   :  { %8168 = vmatprep.subr.bf16.mxu1 %v18388_v62  ;;  %v935_v45 = vld [vmem:[#allocation8 + $0x1410] sm:$0xff] }
 0x3cd   :  { %v18316_v56 = vcombine.high %v923_v22, %v935_v45  ;;  %v515_v10 = vld [vmem:[#allocation8 + $0x6f0] sm:$0xff]  ;;  %v18315_v15 = vcombine.low %v923_v22, %v935_v45  ;;  %v22380_v22 = vld [vmem:[#allocation10 + $0x8] sm:$0xff] }
 0x3ce   :  { %8126 = vmatpush2.bf16.msra.mxu0 %v18003_v0  ;;  %v527_v28 = vld [vmem:[#allocation8 + $0x750] sm:$0xff] }
 0x3cf   :  { %8169 = vmatpush2.bf16.msra.mxu1 %v18387_v51  ;;  %8127 = vmatprep.subr.bf16.mxu0 %v17980_v47  ;;  %v899_v63 = vld [vmem:[#allocation8 + $0x12f0] sm:$0xff]  ;;  %v17908_v20 = vcombine.high %v515_v10, %v527_v28  ;;  %v17907_v40 = vcombine.low %v515_v10, %v527_v28  ;;  %v444_v28 = vld [vmem:[#allocation8 + $0x4b8] sm:$0xff] }
 0x3d0   :  { %8170 = vmatprep.subr.bf16.mxu1 %v18364_v49  ;;  %v911_v62 = vld [vmem:[#allocation8 + $0x1350] sm:$0xff] }
 0x3d1   :  { %v18292_v25 = vcombine.high %v899_v63, %v911_v62  ;;  %v491_v0 = vld [vmem:[#allocation8 + $0x630] sm:$0xff]  ;;  %v18291_v16 = vcombine.low %v899_v63, %v911_v62  ;;  %v456_v63 = vld [vmem:[#allocation8 + $0x518] sm:$0xff]  ;;  %v22384_v62 = vpop.f32.mrf.mxu0 }
 0x3d2   :  { %8128 = vmatpush2.bf16.msra.mxu0 %v17979_v17  ;;  %v503_v51 = vld [vmem:[#allocation8 + $0x690] sm:$0xff] }
 0x3d3   :  { %8171 = vmatpush2.bf16.msra.mxu1 %v18363_v35  ;;  %8129 = vmatprep.subr.bf16.mxu0 %v17956_v26  ;;  %v875_v47 = vld [vmem:[#allocation8 + $0x1230] sm:$0xff]  ;;  %v17884_v59 = vcombine.high %v491_v0, %v503_v51  ;;  %v468_v26 = vld [vmem:[#allocation8 + $0x578] sm:$0xff]  ;;  %v17883_v50 = vcombine.low %v491_v0, %v503_v51 }
 0x3d4   :  { %8172 = vmatprep.subr.bf16.mxu1 %v18340_v12  ;;  %v887_v49 = vld [vmem:[#allocation8 + $0x1290] sm:$0xff]  ;;  %v480_v12 = vld [vmem:[#allocation8 + $0x5d8] sm:$0xff] }
 0x3d5   :  { %v18268_v11 = vcombine.high %v875_v47, %v887_v49  ;;  %v1235_v17 = vld [vmem:[#allocation8 + $0x1d70] sm:$0xff]  ;;  %v18267_v18 = vcombine.low %v875_v47, %v887_v49  ;;  %v17838_v47 = vcombine.high %v444_v28, %v456_v63  ;;  %v420_v49 = vld [vmem:[#allocation8 + $0x3f8] sm:$0xff] }
 0x3d6   :  { %8130 = vmatpush2.bf16.msra.mxu0 %v17955_v1  ;;  %v1247_v35 = vld [vmem:[#allocation8 + $0x1dd0] sm:$0xff]  ;;  %v17862_v1 = vcombine.high %v468_v26, %v480_v12 }
 0x3d7   :  { %8173 = vmatpush2.bf16.msra.mxu1 %v18339_v14  ;;  %8131 = vmatprep.subr.bf16.mxu0 %v17932_v55  ;;  %v18628_v45 = vcombine.high %v1235_v17, %v1247_v35  ;;  %v1211_v14 = vld [vmem:[#allocation8 + $0x1cb0] sm:$0xff]  ;;  %v18627_v10 = vcombine.low %v1235_v17, %v1247_v35  ;;  %v17837_v35 = vcombine.low %v444_v28, %v456_v63 }
 0x3d8   :  { %8174 = vmatprep.subr.bf16.mxu1 %v18316_v56  ;;  %v1223_v55 = vld [vmem:[#allocation8 + $0x1d10] sm:$0xff]  ;;  %v1486_v56 = vrot.slane %v22380_v22, %v22178_v43 }
 0x3d9   :  { %v1199_v0 = vld [vmem:[#allocation8 + $0x1c50] sm:$0xff] }
 0x3da   :  { %8132 = vmatpush2.bf16.msra.mxu0 %v17931_v37  ;;  %v17861_v37 = vcombine.low %v468_v26, %v480_v12 }
 0x3db   :  { %8175 = vmatpush2.bf16.msra.mxu1 %v18315_v15  ;;  %8133 = vmatprep.subr.bf16.mxu0 %v17908_v20  ;;  %v22386_v15 = vpop.f32.mrf.mxu1  ;;  %v18604_v20 = vcombine.high %v1211_v14, %v1223_v55 }
 0x3dc   :  { %8176 = vmatprep.subr.bf16.mxu1 %v18292_v25  ;;  %23140 = vst [vmem:[#allocation32_spill] sm:$0xff] %v22386_v15  ;;  %v1187_v25 = vld [vmem:[#allocation8 + $0x1bf0] sm:$0xff] }
 0x3dd   :  { %v18580_v26 = vcombine.high %v1187_v25, %v1199_v0 }
 0x3de   :  { %8134 = vmatpush2.bf16.msra.mxu0 %v17907_v40  ;;  %v432_v40 = vld [vmem:[#allocation8 + $0x458] sm:$0xff] }
 0x3df   :  { %8177 = vmatpush2.bf16.msra.mxu1 %v18291_v16  ;;  %8135 = vmatprep.subr.bf16.mxu0 %v17884_v59  ;;  %v17813_v28 = vcombine.low %v420_v49, %v432_v40 }
 0x3e0   :  { %8178 = vmatprep.subr.bf16.mxu1 %v18268_v11  ;;  %v18603_v11 = vcombine.low %v1211_v14, %v1223_v55  ;;  %v396_v14 = vld [vmem:[#allocation8 + $0x338] sm:$0xff] }
 0x3e1   :  { %v408_v55 = vld [vmem:[#allocation8 + $0x398] sm:$0xff] }
 0x3e2   :  { %8136 = vmatpush2.bf16.msra.mxu0 %v17883_v50 }
 0x3e3   :  { %8179 = vmatpush2.bf16.msra.mxu1 %v18267_v18  ;;  %8191 = vmatprep.subr.bf16.mxu0 %v18628_v45  ;;  %v17814_v18 = vcombine.high %v420_v49, %v432_v40  ;;  %v1163_v45 = vld [vmem:[#allocation8 + $0x1b30] sm:$0xff]  ;;  %v348_v49 = vld [vmem:[#allocation8 + $0x1b8] sm:$0xff] }
 0x3e4   :  { %8234 = vmatprep.subr.bf16.mxu1 %v17862_v1  ;;  %v1175_v1 = vld [vmem:[#allocation8 + $0x1b90] sm:$0xff]  ;;  %v360_v40 = vld [vmem:[#allocation8 + $0x218] sm:$0xff] }
 0x3e5   :  { %v7881_v51 = vpop.f32.mrf.mxu0  ;;  %8138 = vmatmul.mubr.bf16.vlgmr.msra.gmra.mxu0 %v22217_v60  ;;  %v18556_v63 = vcombine.high %v1163_v45, %v1175_v1 }
 0x3e6   :  { %v7882_v16 = vadd.f32 %v7881_v51, %v1486_v56  ;;  %v7924_v59 = vpop.f32.mrf.mxu1  ;;  %8181 = vmatmul.mubr.bf16.vlgmr.msra.gmra.mxu1 %v22219_v61  ;;  %8192 = vmatpush1.bf16.msra.mxu0 %v18627_v10 }
 0x3e7   :  { %8223 = vmatprep.mubr.bf16.mxu0 %v22225_v4  ;;  %8235 = vmatpush1.bf16.msra.mxu1 %v17861_v37  ;;  %v22391_v17 = vpop.f32.mrf.mxu0  ;;  %v18579_v37 = vcombine.low %v1187_v25, %v1199_v0  ;;  %v1115_v0 = vld [vmem:[#allocation8 + $0x19b0] sm:$0xff] }
 0x3e8   :  { %23141 = vst [vmem:[#allocation33_spill] sm:$0xff] %v22391_v17  ;;  %v22393_v12 = vadd.f32 %v7924_v59, %v7882_v16  ;;  %8266 = vmatprep.mubr.bf16.mxu1 %v22213_v54  ;;  %v22396_v50 = vpop.f32.mrf.mxu1  ;;  %8193 = vmatprep.subr.bf16.mxu0 %v18604_v20  ;;  %v17790_v59 = vcombine.high %v396_v14, %v408_v55  ;;  %v1139_v20 = vld [vmem:[#allocation8 + $0x1a70] sm:$0xff]  ;;  %v372_v17 = vld [vmem:[#allocation8 + $0x278] sm:$0xff] }
 0x3e9   :  { %23142 = vst [vmem:[#allocation34_spill] sm:$0xff] %v22396_v50  ;;  %v7885_v51 = vpop.f32.mrf.mxu0  ;;  %8236 = vmatprep.subr.bf16.mxu1 %v17838_v47  ;;  %v1151_v50 = vld [vmem:[#allocation8 + $0x1ad0] sm:$0xff]  ;;  %v18555_v47 = vcombine.low %v1163_v45, %v1175_v1  ;;  %v17766_v25 = vcombine.high %v372_v17, %v384_v33  ;;  %v324_v1 = vld [vmem:[#allocation8 + $0xf8] sm:$0xff] }
 0x3ea   :  { %v7886_v10 = vadd.f32 %v7885_v51, %v1486_v56  ;;  %8194 = vmatpush1.bf16.msra.mxu0 %v18603_v11  ;;  %v7928_v21 = vpop.f32.mrf.mxu1  ;;  %v17789_v56 = vcombine.low %v396_v14, %v408_v55  ;;  %v18532_v11 = vcombine.high %v1139_v20, %v1151_v50  ;;  %v17742_v51 = vcombine.high %v348_v49, %v360_v40  ;;  %v1103_v45 = vld [vmem:[#allocation8 + $0x1950] sm:$0xff] }
 0x3eb   :  { %8237 = vmatpush1.bf16.msra.mxu1 %v17837_v35  ;;  %8195 = vmatprep.subr.bf16.mxu0 %v18580_v26  ;;  %v1127_v35 = vld [vmem:[#allocation8 + $0x1a10] sm:$0xff]  ;;  %v17765_v26 = vcombine.low %v372_v17, %v384_v33  ;;  %v17741_v55 = vcombine.low %v348_v49, %v360_v40 }
 0x3ec   :  { %v22398_v16 = vadd.f32 %v7928_v21, %v7886_v10  ;;  %8238 = vmatprep.subr.bf16.mxu1 %v17814_v18  ;;  %v18531_v21 = vcombine.low %v1139_v20, %v1151_v50  ;;  %v18508_v18 = vcombine.high %v1115_v0, %v1127_v35  ;;  %v1091_v10 = vld [vmem:[#allocation8 + $0x18f0] sm:$0xff]  ;;  %v18507_v14 = vcombine.low %v1115_v0, %v1127_v35  ;;  %v300_v20 = vld [vmem:[#allocation8 + $0x38] sm:$0xff] }
 0x3ed   :  { %v1079_v50 = vld [vmem:[#allocation8 + $0x1890] sm:$0xff]  ;;  %v18483_v33 = vcombine.low %v1091_v10, %v1103_v45  ;;  %v660_v35 = vld [vmem:[#allocation8 + $0xb78] sm:$0xff] }
 0x3ee   :  { %8196 = vmatpush1.bf16.msra.mxu0 %v18579_v37  ;;  %v336_v37 = vld [vmem:[#allocation8 + $0x158] sm:$0xff]  ;;  %v1439_v0 = vld [vmem:[#allocation8 + $0x23d0] sm:$0xff] }
 0x3ef   :  { %8239 = vmatpush1.bf16.msra.mxu1 %v17813_v28  ;;  %8197 = vmatprep.subr.bf16.mxu0 %v18556_v63  ;;  %v18484_v28 = vcombine.high %v1091_v10, %v1103_v45  ;;  %v17718_v63 = vcombine.high %v324_v1, %v336_v37  ;;  %v17717_v17 = vcombine.low %v324_v1, %v336_v37  ;;  %v1415_v10 = vld [vmem:[#allocation8 + $0x2310] sm:$0xff]  ;;  %v636_v45 = vld [vmem:[#allocation8 + $0xab8] sm:$0xff] }
 0x3f0   :  { %8240 = vmatprep.subr.bf16.mxu1 %v17790_v59  ;;  %v1067_v59 = vld [vmem:[#allocation8 + $0x1830] sm:$0xff] }
 0x3f1   :  { %v18459_v49 = vcombine.low %v1067_v59, %v1079_v50 }
 0x3f2   :  { %8198 = vmatpush1.bf16.msra.mxu0 %v18555_v47  ;;  %v312_v47 = vld [vmem:[#allocation8 + $0x98] sm:$0xff] }
 0x3f3   :  { %8241 = vmatpush1.bf16.msra.mxu1 %v17789_v56  ;;  %8199 = vmatprep.subr.bf16.mxu0 %v18532_v11  ;;  %v18460_v56 = vcombine.high %v1067_v59, %v1079_v50  ;;  %v17694_v11 = vcombine.high %v300_v20, %v312_v47  ;;  %v17693_v40 = vcombine.low %v300_v20, %v312_v47  ;;  %v1391_v59 = vld [vmem:[#allocation8 + $0x2250] sm:$0xff]  ;;  %v612_v50 = vld [vmem:[#allocation8 + $0x9f8] sm:$0xff] }
 0x3f4   :  { %8242 = vmatprep.subr.bf16.mxu1 %v17766_v25  ;;  %v1427_v25 = vld [vmem:[#allocation8 + $0x2370] sm:$0xff] }
 0x3f5   :  { %v18819_v1 = vcombine.low %v1427_v25, %v1439_v0 }
 0x3f6   :  { %8200 = vmatpush1.bf16.msra.mxu0 %v18531_v21  ;;  %v672_v21 = vld [vmem:[#allocation8 + $0xbd8] sm:$0xff] }
 0x3f7   :  { %8243 = vmatpush1.bf16.msra.mxu1 %v17765_v26  ;;  %8201 = vmatprep.subr.bf16.mxu0 %v18508_v18  ;;  %v18820_v26 = vcombine.high %v1427_v25, %v1439_v0  ;;  %v18054_v18 = vcombine.high %v660_v35, %v672_v21  ;;  %v18053_v37 = vcombine.low %v660_v35, %v672_v21  ;;  %v1367_v25 = vld [vmem:[#allocation8 + $0x2190] sm:$0xff]  ;;  %v588_v0 = vld [vmem:[#allocation8 + $0x938] sm:$0xff] }
 0x3f8   :  { %8244 = vmatprep.subr.bf16.mxu1 %v17742_v51  ;;  %v1403_v51 = vld [vmem:[#allocation8 + $0x22b0] sm:$0xff] }
 0x3f9   :  { %v18795_v20 = vcombine.low %v1403_v51, %v1415_v10 }
 0x3fa   :  { %8202 = vmatpush1.bf16.msra.mxu0 %v18507_v14  ;;  %v648_v14 = vld [vmem:[#allocation8 + $0xb18] sm:$0xff] }
 0x3fb   :  { %8245 = vmatpush1.bf16.msra.mxu1 %v17741_v55  ;;  %8203 = vmatprep.subr.bf16.mxu0 %v18484_v28  ;;  %v18796_v55 = vcombine.high %v1403_v51, %v1415_v10  ;;  %v18030_v28 = vcombine.high %v636_v45, %v648_v14  ;;  %v18029_v47 = vcombine.low %v636_v45, %v648_v14  ;;  %v1343_v51 = vld [vmem:[#allocation8 + $0x20d0] sm:$0xff]  ;;  %v564_v10 = vld [vmem:[#allocation8 + $0x878] sm:$0xff] }
 0x3fc   :  { %8246 = vmatprep.subr.bf16.mxu1 %v17718_v63  ;;  %v1379_v63 = vld [vmem:[#allocation8 + $0x21f0] sm:$0xff] }
 0x3fd   :  { %v18771_v35 = vcombine.low %v1379_v63, %v1391_v59 }
 0x3fe   :  { %8204 = vmatpush1.bf16.msra.mxu0 %v18483_v33  ;;  %v624_v33 = vld [vmem:[#allocation8 + $0xa58] sm:$0xff] }
 0x3ff   :  { %8247 = vmatpush1.bf16.msra.mxu1 %v17717_v17  ;;  %8205 = vmatprep.subr.bf16.mxu0 %v18460_v56  ;;  %v18772_v17 = vcombine.high %v1379_v63, %v1391_v59  ;;  %v18006_v56 = vcombine.high %v612_v50, %v624_v33  ;;  %v18005_v21 = vcombine.low %v612_v50, %v624_v33  ;;  %v1319_v63 = vld [vmem:[#allocation8 + $0x2010] sm:$0xff]  ;;  %v540_v59 = vld [vmem:[#allocation8 + $0x7b8] sm:$0xff] }
 0x400   :  { %8248 = vmatprep.subr.bf16.mxu1 %v17694_v11  ;;  %v1355_v11 = vld [vmem:[#allocation8 + $0x2130] sm:$0xff] }
 0x401   :  { %v18747_v45 = vcombine.low %v1355_v11, %v1367_v25 }
 0x402   :  { %8206 = vmatpush1.bf16.msra.mxu0 %v18459_v49  ;;  %v600_v49 = vld [vmem:[#allocation8 + $0x998] sm:$0xff] }
 0x403   :  { %8249 = vmatpush1.bf16.msra.mxu1 %v17693_v40  ;;  %8207 = vmatprep.subr.bf16.mxu0 %v18820_v26  ;;  %v18748_v40 = vcombine.high %v1355_v11, %v1367_v25  ;;  %v17982_v26 = vcombine.high %v588_v0, %v600_v49  ;;  %v17981_v14 = vcombine.low %v588_v0, %v600_v49  ;;  %v1295_v11 = vld [vmem:[#allocation8 + $0x1f50] sm:$0xff]  ;;  %v516_v25 = vld [vmem:[#allocation8 + $0x6f8] sm:$0xff] }
 0x404   :  { %8250 = vmatprep.subr.bf16.mxu1 %v18054_v18  ;;  %v1331_v18 = vld [vmem:[#allocation8 + $0x2070] sm:$0xff] }
 0x405   :  { %v18723_v50 = vcombine.low %v1331_v18, %v1343_v51 }
 0x406   :  { %8208 = vmatpush2.bf16.msra.mxu0 %v18819_v1  ;;  %v576_v1 = vld [vmem:[#allocation8 + $0x8d8] sm:$0xff] }
 0x407   :  { %8251 = vmatpush2.bf16.msra.mxu1 %v18053_v37  ;;  %8209 = vmatprep.subr.bf16.mxu0 %v18796_v55  ;;  %v18724_v37 = vcombine.high %v1331_v18, %v1343_v51  ;;  %v17958_v55 = vcombine.high %v564_v10, %v576_v1  ;;  %v17957_v33 = vcombine.low %v564_v10, %v576_v1  ;;  %v1271_v18 = vld [vmem:[#allocation8 + $0x1e90] sm:$0xff]  ;;  %v492_v51 = vld [vmem:[#allocation8 + $0x638] sm:$0xff] }
 0x408   :  { %8252 = vmatprep.subr.bf16.mxu1 %v18030_v28  ;;  %v1307_v28 = vld [vmem:[#allocation8 + $0x1fb0] sm:$0xff] }
 0x409   :  { %v18699_v0 = vcombine.low %v1307_v28, %v1319_v63 }
 0x40a   :  { %8210 = vmatpush2.bf16.msra.mxu0 %v18795_v20  ;;  %v552_v20 = vld [vmem:[#allocation8 + $0x818] sm:$0xff] }
 0x40b   :  { %8253 = vmatpush2.bf16.msra.mxu1 %v18029_v47  ;;  %8211 = vmatprep.subr.bf16.mxu0 %v18772_v17  ;;  %v18700_v47 = vcombine.high %v1307_v28, %v1319_v63  ;;  %v17934_v17 = vcombine.high %v540_v59, %v552_v20  ;;  %v17933_v49 = vcombine.low %v540_v59, %v552_v20  ;;  %v864_v28 = vld [vmem:[#allocation8 + $0x11d8] sm:$0xff] }
 0x40c   :  { %8254 = vmatprep.subr.bf16.mxu1 %v18006_v56  ;;  %v1283_v56 = vld [vmem:[#allocation8 + $0x1ef0] sm:$0xff]  ;;  %v1236_v63 = vld [vmem:[#allocation8 + $0x1d78] sm:$0xff] }
 0x40d   :  { %v18675_v10 = vcombine.low %v1283_v56, %v1295_v11 }
 0x40e   :  { %8212 = vmatpush2.bf16.msra.mxu0 %v18771_v35  ;;  %v528_v35 = vld [vmem:[#allocation8 + $0x758] sm:$0xff] }
 0x40f   :  { %8255 = vmatpush2.bf16.msra.mxu1 %v18005_v21  ;;  %8213 = vmatprep.subr.bf16.mxu0 %v18748_v40  ;;  %v18676_v21 = vcombine.high %v1283_v56, %v1295_v11  ;;  %v17910_v40 = vcombine.high %v516_v25, %v528_v35  ;;  %v17909_v1 = vcombine.low %v516_v25, %v528_v35  ;;  %v840_v56 = vld [vmem:[#allocation8 + $0x1118] sm:$0xff] }
 0x410   :  { %8256 = vmatprep.subr.bf16.mxu1 %v17982_v26  ;;  %v1259_v26 = vld [vmem:[#allocation8 + $0x1e30] sm:$0xff]  ;;  %v1212_v25 = vld [vmem:[#allocation8 + $0x1cb8] sm:$0xff] }
 0x411   :  { %v18651_v59 = vcombine.low %v1259_v26, %v1271_v18  ;;  %v1224_v35 = vld [vmem:[#allocation8 + $0x1d18] sm:$0xff] }
 0x412   :  { %8214 = vmatpush2.bf16.msra.mxu0 %v18747_v45  ;;  %v504_v45 = vld [vmem:[#allocation8 + $0x698] sm:$0xff] }
 0x413   :  { %8257 = vmatpush2.bf16.msra.mxu1 %v17981_v14  ;;  %8215 = vmatprep.subr.bf16.mxu0 %v18724_v37  ;;  %v18652_v14 = vcombine.high %v1259_v26, %v1271_v18  ;;  %v17886_v37 = vcombine.high %v492_v51, %v504_v45  ;;  %v17885_v20 = vcombine.low %v492_v51, %v504_v45  ;;  %v816_v26 = vld [vmem:[#allocation8 + $0x1058] sm:$0xff] }
 0x414   :  { %8258 = vmatprep.subr.bf16.mxu1 %v17958_v55  ;;  %v852_v55 = vld [vmem:[#allocation8 + $0x1178] sm:$0xff]  ;;  %v18606_v51 = vcombine.high %v1212_v25, %v1224_v35 }
 0x415   :  { %v18245_v11 = vcombine.low %v852_v55, %v864_v28  ;;  %v1188_v45 = vld [vmem:[#allocation8 + $0x1bf8] sm:$0xff] }
 0x416   :  { %8216 = vmatpush2.bf16.msra.mxu0 %v18723_v50  ;;  %v1248_v50 = vld [vmem:[#allocation8 + $0x1dd8] sm:$0xff] }
 0x417   :  { %8259 = vmatpush2.bf16.msra.mxu1 %v17957_v33  ;;  %8217 = vmatprep.subr.bf16.mxu0 %v18700_v47  ;;  %v18246_v33 = vcombine.high %v852_v55, %v864_v28  ;;  %v18630_v47 = vcombine.high %v1236_v63, %v1248_v50  ;;  %v18605_v55 = vcombine.low %v1212_v25, %v1224_v35 }
 0x418   :  { %8260 = vmatprep.subr.bf16.mxu1 %v17934_v17  ;;  %v828_v17 = vld [vmem:[#allocation8 + $0x10b8] sm:$0xff] }
 0x41a   :  { %8218 = vmatpush2.bf16.msra.mxu0 %v18699_v0  ;;  %v22400_v0 = vpop.f32.mrf.mxu0 }
 0x41b   :  { %8261 = vmatpush2.bf16.msra.mxu1 %v17933_v49  ;;  %8219 = vmatprep.subr.bf16.mxu0 %v18676_v21  ;;  %23143 = vst [vmem:[#allocation35_spill] sm:$0xff] %v22400_v0  ;;  %v18629_v49 = vcombine.low %v1236_v63, %v1248_v50  ;;  %v18222_v21 = vcombine.high %v828_v17, %v840_v56 }
 0x41c   :  { %8262 = vmatprep.subr.bf16.mxu1 %v17910_v40  ;;  %v804_v40 = vld [vmem:[#allocation8 + $0xff8] sm:$0xff] }
 0x41d   :  { %v18198_v28 = vcombine.high %v804_v40, %v816_v26 }
 0x41e   :  { %8220 = vmatpush2.bf16.msra.mxu0 %v18675_v10  ;;  %v1200_v10 = vld [vmem:[#allocation8 + $0x1c58] sm:$0xff] }
 0x41f   :  { %8263 = vmatpush2.bf16.msra.mxu1 %v17909_v1  ;;  %8221 = vmatprep.subr.bf16.mxu0 %v18652_v14  ;;  %v18221_v14 = vcombine.low %v828_v17, %v840_v56  ;;  %v18582_v50 = vcombine.high %v1188_v45, %v1200_v10  ;;  %v18197_v56 = vcombine.low %v804_v40, %v816_v26  ;;  %v732_v26 = vld [vmem:[#allocation8 + $0xdb8] sm:$0xff] }
 0x420   :  { %8264 = vmatprep.subr.bf16.mxu1 %v17886_v37 }
 0x422   :  { %8222 = vmatpush2.bf16.msra.mxu0 %v18651_v59  ;;  %v780_v59 = vld [vmem:[#allocation8 + $0xf38] sm:$0xff] }
 0x423   :  { %8265 = vmatpush2.bf16.msra.mxu1 %v17885_v20  ;;  %8277 = vmatprep.subr.bf16.mxu0 %v18246_v33  ;;  %v1164_v33 = vld [vmem:[#allocation8 + $0x1b38] sm:$0xff] }
 0x424   :  { %8320 = vmatprep.subr.bf16.mxu1 %v18630_v47  ;;  %v1176_v47 = vld [vmem:[#allocation8 + $0x1b98] sm:$0xff] }
 0x425   :  { %v7967_v18 = vpop.f32.mrf.mxu0  ;;  %8224 = vmatmul.mubr.bf16.vlgmr.msra.gmra.mxu0 %v22227_v5 }
 0x426   :  { %v22404_v1 = vadd.f32 %v7967_v18, %v22393_v12  ;;  %8267 = vmatmul.mubr.bf16.vlgmr.msra.gmra.mxu1 %v22217_v60  ;;  %8278 = vmatpush1.bf16.msra.mxu0 %v18245_v11  ;;  %v792_v12 = vld [vmem:[#allocation8 + $0xf98] sm:$0xff]  ;;  %v18581_v11 = vcombine.low %v1188_v45, %v1200_v10 }
 0x427   :  { %8309 = vmatprep.mubr.bf16.mxu0 %v22215_v7  ;;  %8321 = vmatpush1.bf16.msra.mxu1 %v18629_v49  ;;  %v22408_v37 = vpop.f32.mrf.mxu0  ;;  %v18174_v25 = vcombine.high %v780_v59, %v792_v12  ;;  %v18558_v49 = vcombine.high %v1164_v33, %v1176_v47  ;;  %v768_v18 = vld [vmem:[#allocation8 + $0xed8] sm:$0xff] }
 0x428   :  { %23144 = vst [vmem:[#allocation36_spill] sm:$0xff] %v22408_v37  ;;  %v8887_v63 = vmul.f32 0.851, %v22404_v1  ;;  %8352 = vmatprep.mubr.bf16.mxu1 %v22225_v4  ;;  %8279 = vmatprep.subr.bf16.mxu0 %v18222_v21  ;;  %v756_v21 = vld [vmem:[#allocation8 + $0xe78] sm:$0xff] }
 0x429   :  { %v7971_v20 = vpop.f32.mrf.mxu0  ;;  %8322 = vmatprep.subr.bf16.mxu1 %v18606_v51  ;;  %v1140_v37 = vld [vmem:[#allocation8 + $0x1a78] sm:$0xff] }
 0x42a   :  { %21745 = vtanh.f32 %v8887_v63  ;;  %v22413_v17 = vadd.f32 %v7971_v20, %v22398_v16  ;;  %8280 = vmatpush1.bf16.msra.mxu0 %v18221_v14  ;;  %v1152_v51 = vld [vmem:[#allocation8 + $0x1ad8] sm:$0xff]  ;;  %v18173_v63 = vcombine.low %v780_v59, %v792_v12  ;;  %v18557_v16 = vcombine.low %v1164_v33, %v1176_v47 }
 0x42b   :  { %8323 = vmatpush1.bf16.msra.mxu1 %v18605_v55  ;;  %8281 = vmatprep.subr.bf16.mxu0 %v18198_v28  ;;  %v18150_v14 = vcombine.high %v756_v21, %v768_v18  ;;  %v18534_v40 = vcombine.high %v1140_v37, %v1152_v51  ;;  %v744_v45 = vld [vmem:[#allocation8 + $0xe18] sm:$0xff]  ;;  %v18149_v28 = vcombine.low %v756_v21, %v768_v18 }
 0x42c   :  { %v8911_v35 = vmul.f32 0.851, %v22413_v17  ;;  %8324 = vmatprep.subr.bf16.mxu1 %v18582_v50  ;;  %v1116_v10 = vld [vmem:[#allocation8 + $0x19b8] sm:$0xff]  ;;  %v18533_v50 = vcombine.low %v1140_v37, %v1152_v51  ;;  %v18126_v20 = vcombine.high %v732_v26, %v744_v45  ;;  %v18125_v33 = vcombine.low %v732_v26, %v744_v45 }
 0x42d   :  { %v1128_v55 = vld [vmem:[#allocation8 + $0x1a18] sm:$0xff] }
 0x42e   :  { %21747 = vtanh.f32 %v8911_v35  ;;  %8282 = vmatpush1.bf16.msra.mxu0 %v18197_v56  ;;  %v18510_v35 = vcombine.high %v1116_v10, %v1128_v55  ;;  %v708_v56 = vld [vmem:[#allocation8 + $0xcf8] sm:$0xff] }
 0x42f   :  { %8325 = vmatpush1.bf16.msra.mxu1 %v18581_v11  ;;  %8283 = vmatprep.subr.bf16.mxu0 %v18174_v25  ;;  %v720_v59 = vld [vmem:[#allocation8 + $0xd58] sm:$0xff]  ;;  %v18509_v25 = vcombine.low %v1116_v10, %v1128_v55 }
 0x430   :  { %8326 = vmatprep.subr.bf16.mxu1 %v18558_v49  ;;  %v1092_v12 = vld [vmem:[#allocation8 + $0x18f8] sm:$0xff]  ;;  %v18102_v49 = vcombine.high %v708_v56, %v720_v59 }
 0x431   :  { %v1104_v11 = vld [vmem:[#allocation8 + $0x1958] sm:$0xff] }
 0x432   :  { %8284 = vmatpush1.bf16.msra.mxu0 %v18173_v63  ;;  %v18486_v21 = vcombine.high %v1092_v12, %v1104_v11  ;;  %v684_v18 = vld [vmem:[#allocation8 + $0xc38] sm:$0xff] }
 0x433   :  { %8327 = vmatpush1.bf16.msra.mxu1 %v18557_v16  ;;  %8285 = vmatprep.subr.bf16.mxu0 %v18150_v14  ;;  %v696_v63 = vld [vmem:[#allocation8 + $0xc98] sm:$0xff]  ;;  %v18101_v16 = vcombine.low %v708_v56, %v720_v59 }
 0x434   :  { %8328 = vmatprep.subr.bf16.mxu1 %v18534_v40  ;;  %v1068_v37 = vld [vmem:[#allocation8 + $0x1838] sm:$0xff]  ;;  %v18485_v40 = vcombine.low %v1092_v12, %v1104_v11  ;;  %v18077_v15 = vcombine.low %v684_v18, %v696_v63 }
 0x435   :  { %v1080_v51 = vld [vmem:[#allocation8 + $0x1898] sm:$0xff] }
 0x436   :  { %8286 = vmatpush1.bf16.msra.mxu0 %v18149_v28  ;;  %v18078_v28 = vcombine.high %v684_v18, %v696_v63  ;;  %v1044_v10 = vld [vmem:[#allocation8 + $0x1778] sm:$0xff] }
 0x437   :  { %v21746_v47 = vpop.eup %21745  ;;  %8329 = vmatpush1.bf16.msra.mxu1 %v18533_v50  ;;  %8287 = vmatprep.subr.bf16.mxu0 %v18126_v20  ;;  %v18462_v50 = vcombine.high %v1068_v37, %v1080_v51  ;;  %v1056_v55 = vld [vmem:[#allocation8 + $0x17d8] sm:$0xff] }
 0x438   :  { %v8983_v0 = vadd.f32 1.0, %v21746_v47  ;;  %8330 = vmatprep.subr.bf16.mxu1 %v18510_v35  ;;  %v1428_v20 = vld [vmem:[#allocation8 + $0x2378] sm:$0xff]  ;;  %v18438_v56 = vcombine.high %v1044_v10, %v1056_v55 }
 0x439   :  { %v1440_v35 = vld [vmem:[#allocation8 + $0x23d8] sm:$0xff] }
 0x43a   :  { %8288 = vmatpush1.bf16.msra.mxu0 %v18125_v33  ;;  %v9031_v26 = vmul.f32 0.5, %v8983_v0  ;;  %v18461_v33 = vcombine.low %v1068_v37, %v1080_v51  ;;  %v18822_v0 = vcombine.high %v1428_v20, %v1440_v35  ;;  %v1020_v11 = vld [vmem:[#allocation8 + $0x16b8] sm:$0xff]  ;;  %v18821_v18 = vcombine.low %v1428_v20, %v1440_v35 }
 0x43b   :  { %v21748_v14 = vpop.eup %21747  ;;  %8331 = vmatpush1.bf16.msra.mxu1 %v18509_v25  ;;  %8289 = vmatprep.subr.bf16.mxu0 %v18102_v49  ;;  %v1032_v25 = vld [vmem:[#allocation8 + $0x1718] sm:$0xff] }
 0x43c   :  { %v9007_v45 = vadd.f32 1.0, %v21748_v14  ;;  %8332 = vmatprep.subr.bf16.mxu1 %v18486_v21  ;;  %v9079_v59 = vmul.f32 %v9031_v26, %v22404_v1  ;;  %v1404_v49 = vld [vmem:[#allocation8 + $0x22b8] sm:$0xff]  ;;  %v18414_v63 = vcombine.high %v1020_v11, %v1032_v25 }
 0x43d   :  { %v1416_v21 = vld [vmem:[#allocation8 + $0x2318] sm:$0xff] }
 0x43e   :  { %v9055_v47 = vmul.f32 0.5, %v9007_v45  ;;  %8290 = vmatpush1.bf16.msra.mxu0 %v18101_v16  ;;  %v18437_v45 = vcombine.low %v1044_v10, %v1056_v55  ;;  %v18798_v37 = vcombine.high %v1404_v49, %v1416_v21  ;;  %v996_v51 = vld [vmem:[#allocation8 + $0x15f8] sm:$0xff] }
 0x43f   :  { %8333 = vmatpush1.bf16.msra.mxu1 %v18485_v40  ;;  %8291 = vmatprep.subr.bf16.mxu0 %v18078_v28  ;;  %v1008_v1 = vld [vmem:[#allocation8 + $0x1658] sm:$0xff]  ;;  %v18413_v40 = vcombine.low %v1020_v11, %v1032_v25  ;;  %v18797_v28 = vcombine.low %v1404_v49, %v1416_v21 }
 0x440   :  { %v9103_v12 = vmul.f32 %v9055_v47, %v22413_v17  ;;  %8334 = vmatprep.subr.bf16.mxu1 %v18462_v50  ;;  %v1380_v16 = vld [vmem:[#allocation8 + $0x21f8] sm:$0xff]  ;;  %v18390_v26 = vcombine.high %v996_v51, %v1008_v1  ;;  %v18389_v20 = vcombine.low %v996_v51, %v1008_v1 }
 0x441   :  { %v1392_v17 = vld [vmem:[#allocation8 + $0x2258] sm:$0xff] }
 0x442   :  { %v22418_v14 = vpack.c.bf16 %v9103_v12, %v9079_v59  ;;  %8292 = vmatpush1.bf16.msra.mxu0 %v18077_v15  ;;  %v18774_v50 = vcombine.high %v1380_v16, %v1392_v17  ;;  %v972_v15 = vld [vmem:[#allocation8 + $0x1538] sm:$0xff]  ;;  %v18773_v35 = vcombine.low %v1380_v16, %v1392_v17 }
 0x443   :  { %8335 = vmatpush1.bf16.msra.mxu1 %v18461_v33  ;;  %8293 = vmatprep.subr.bf16.mxu0 %v18438_v56  ;;  %v984_v10 = vld [vmem:[#allocation8 + $0x1598] sm:$0xff] }
 0x444   :  { %23145 = vst [vmem:[#allocation37_spill] sm:$0xff] %v22418_v14  ;;  %8336 = vmatprep.subr.bf16.mxu1 %v18822_v0  ;;  %v1356_v55 = vld [vmem:[#allocation8 + $0x2138] sm:$0xff]  ;;  %v18366_v33 = vcombine.high %v972_v15, %v984_v10  ;;  %v18365_v25 = vcombine.low %v972_v15, %v984_v10  ;;  %v22420_v10 = vpop.f32.mrf.mxu1 }
 0x445   :  { %v1368_v47 = vld [vmem:[#allocation8 + $0x2198] sm:$0xff]  ;;  %23146 = vst [vmem:[#allocation38_spill] sm:$0xff] %v22420_v10  ;;  %v769_v10 = vld [vmem:[#allocation8 + $0xee0] sm:$0xff] }
 0x446   :  { %8294 = vmatpush2.bf16.msra.mxu0 %v18437_v45  ;;  %v18750_v56 = vcombine.high %v1356_v55, %v1368_v47  ;;  %v948_v59 = vld [vmem:[#allocation8 + $0x1478] sm:$0xff]  ;;  %v18749_v49 = vcombine.low %v1356_v55, %v1368_v47 }
 0x447   :  { %8337 = vmatpush2.bf16.msra.mxu1 %v18821_v18  ;;  %8295 = vmatprep.subr.bf16.mxu0 %v18414_v63  ;;  %v960_v12 = vld [vmem:[#allocation8 + $0x14d8] sm:$0xff] }
 0x448   :  { %8338 = vmatprep.subr.bf16.mxu1 %v18798_v37  ;;  %v1332_v0 = vld [vmem:[#allocation8 + $0x2078] sm:$0xff]  ;;  %v18342_v21 = vcombine.high %v948_v59, %v960_v12  ;;  %v18341_v1 = vcombine.low %v948_v59, %v960_v12 }
 0x449   :  { %v1344_v11 = vld [vmem:[#allocation8 + $0x20d8] sm:$0xff] }
 0x44a   :  { %8296 = vmatpush2.bf16.msra.mxu0 %v18413_v40  ;;  %v18726_v45 = vcombine.high %v1332_v0, %v1344_v11  ;;  %v924_v18 = vld [vmem:[#allocation8 + $0x13b8] sm:$0xff]  ;;  %v18725_v16 = vcombine.low %v1332_v0, %v1344_v11 }
 0x44b   :  { %8339 = vmatpush2.bf16.msra.mxu1 %v18797_v28  ;;  %8297 = vmatprep.subr.bf16.mxu0 %v18390_v26  ;;  %v936_v63 = vld [vmem:[#allocation8 + $0x1418] sm:$0xff] }
 0x44c   :  { %8340 = vmatprep.subr.bf16.mxu1 %v18774_v50  ;;  %v1308_v37 = vld [vmem:[#allocation8 + $0x1fb8] sm:$0xff]  ;;  %v18318_v17 = vcombine.high %v924_v18, %v936_v63  ;;  %v18317_v55 = vcombine.low %v924_v18, %v936_v63  ;;  %v469_v18 = vld [vmem:[#allocation8 + $0x580] sm:$0xff] }
 0x44d   :  { %v1320_v51 = vld [vmem:[#allocation8 + $0x2018] sm:$0xff]  ;;  %v481_v63 = vld [vmem:[#allocation8 + $0x5e0] sm:$0xff] }
 0x44e   :  { %8298 = vmatpush2.bf16.msra.mxu0 %v18389_v20  ;;  %v18702_v40 = vcombine.high %v1308_v37, %v1320_v51  ;;  %v900_v28 = vld [vmem:[#allocation8 + $0x12f8] sm:$0xff]  ;;  %v18701_v47 = vcombine.low %v1308_v37, %v1320_v51  ;;  %v853_v37 = vld [vmem:[#allocation8 + $0x1180] sm:$0xff] }
 0x44f   :  { %8341 = vmatpush2.bf16.msra.mxu1 %v18773_v35  ;;  %8299 = vmatprep.subr.bf16.mxu0 %v18366_v33  ;;  %v912_v26 = vld [vmem:[#allocation8 + $0x1358] sm:$0xff]  ;;  %v8010_v35 = vpop.f32.mrf.mxu1  ;;  %v865_v51 = vld [vmem:[#allocation8 + $0x11e0] sm:$0xff] }
 0x450   :  { %8342 = vmatprep.subr.bf16.mxu1 %v18750_v56  ;;  %v1284_v50 = vld [vmem:[#allocation8 + $0x1ef8] sm:$0xff]  ;;  %v18294_v20 = vcombine.high %v900_v28, %v912_v26  ;;  %v18293_v11 = vcombine.low %v900_v28, %v912_v26  ;;  %v18248_v26 = vcombine.high %v853_v37, %v865_v51 }
 0x451   :  { %v1296_v15 = vld [vmem:[#allocation8 + $0x1f58] sm:$0xff] }
 0x452   :  { %8300 = vmatpush2.bf16.msra.mxu0 %v18365_v25  ;;  %v18678_v33 = vcombine.high %v1284_v50, %v1296_v15  ;;  %v876_v56 = vld [vmem:[#allocation8 + $0x1238] sm:$0xff]  ;;  %v18677_v25 = vcombine.low %v1284_v50, %v1296_v15  ;;  %v445_v50 = vld [vmem:[#allocation8 + $0x4c0] sm:$0xff] }
 0x453   :  { %8343 = vmatpush2.bf16.msra.mxu1 %v18749_v49  ;;  %8301 = vmatprep.subr.bf16.mxu0 %v18342_v21  ;;  %v888_v59 = vld [vmem:[#allocation8 + $0x1298] sm:$0xff]  ;;  %v22422_v21 = vpop.f32.mrf.mxu1  ;;  %v457_v15 = vld [vmem:[#allocation8 + $0x520] sm:$0xff] }
 0x454   :  { %8344 = vmatprep.subr.bf16.mxu1 %v18726_v45  ;;  %v1260_v12 = vld [vmem:[#allocation8 + $0x1e38] sm:$0xff]  ;;  %v18270_v49 = vcombine.high %v876_v56, %v888_v59  ;;  %23147 = vst [vmem:[#allocation39_spill] sm:$0xff] %v22422_v21 }
 0x455   :  { %v1272_v0 = vld [vmem:[#allocation8 + $0x1e98] sm:$0xff]  ;;  %v8014_v28 = vpop.f32.mrf.mxu1 }
 0x456   :  { %8302 = vmatpush2.bf16.msra.mxu0 %v18341_v1  ;;  %v18654_v45 = vcombine.high %v1260_v12, %v1272_v0  ;;  %v18269_v1 = vcombine.low %v876_v56, %v888_v59  ;;  %v18247_v56 = vcombine.low %v853_v37, %v865_v51 }
 0x457   :  { %8345 = vmatpush2.bf16.msra.mxu1 %v18725_v16  ;;  %8303 = vmatprep.subr.bf16.mxu0 %v18318_v17  ;;  %v18653_v16 = vcombine.low %v1260_v12, %v1272_v0  ;;  %v17864_v17 = vcombine.high %v469_v18, %v481_v63  ;;  %v22428_v12 = vpop.f32.mrf.mxu1  ;;  %v17840_v0 = vcombine.high %v445_v50, %v457_v15 }
 0x458   :  { %8346 = vmatprep.subr.bf16.mxu1 %v18702_v40  ;;  %v1494_v40 = vrot.slane %v22380_v22, %v22181_v44  ;;  %23149 = vst [vmem:[#allocation41_spill] sm:$0xff] %v22428_v12  ;;  %v421_v22 = vld [vmem:[#allocation8 + $0x400] sm:$0xff] }
 0x45a   :  { %8304 = vmatpush2.bf16.msra.mxu0 %v18317_v55  ;;  %v17863_v55 = vcombine.low %v469_v18, %v481_v63  ;;  %v8011_v59 = vadd.f32 %v8010_v35, %v1494_v40  ;;  %v817_v18 = vld [vmem:[#allocation8 + $0x1060] sm:$0xff] }
 0x45b   :  { %8347 = vmatpush2.bf16.msra.mxu1 %v18701_v47  ;;  %8305 = vmatprep.subr.bf16.mxu0 %v18294_v20  ;;  %v829_v47 = vld [vmem:[#allocation8 + $0x10c0] sm:$0xff] }
 0x45c   :  { %8348 = vmatprep.subr.bf16.mxu1 %v18678_v33  ;;  %v841_v20 = vld [vmem:[#allocation8 + $0x1120] sm:$0xff]  ;;  %v22426_v33 = vpop.f32.mrf.mxu0 }
 0x45d   :  { %23148 = vst [vmem:[#allocation40_spill] sm:$0xff] %v22426_v33  ;;  %v18223_v37 = vcombine.low %v829_v47, %v841_v20  ;;  %v409_v33 = vld [vmem:[#allocation8 + $0x3a0] sm:$0xff] }
 0x45e   :  { %8306 = vmatpush2.bf16.msra.mxu0 %v18293_v11  ;;  %v433_v11 = vld [vmem:[#allocation8 + $0x460] sm:$0xff] }
 0x45f   :  { %8349 = vmatpush2.bf16.msra.mxu1 %v18677_v25  ;;  %8307 = vmatprep.subr.bf16.mxu0 %v18270_v49  ;;  %v18224_v49 = vcombine.high %v829_v47, %v841_v20  ;;  %v17816_v51 = vcombine.high %v421_v22, %v433_v11  ;;  %v17815_v47 = vcombine.low %v421_v22, %v433_v11 }
 0x460   :  { %8350 = vmatprep.subr.bf16.mxu1 %v18654_v45  ;;  %v805_v45 = vld [vmem:[#allocation8 + $0x1000] sm:$0xff] }
 0x462   :  { %8308 = vmatpush2.bf16.msra.mxu0 %v18269_v1 }
 0x463   :  { %8351 = vmatpush2.bf16.msra.mxu1 %v18653_v16  ;;  %8363 = vmatprep.subr.bf16.mxu0 %v17864_v17  ;;  %v17839_v16 = vcombine.low %v445_v50, %v457_v15  ;;  %v8015_v17 = vadd.f32 %v8014_v28, %v1494_v40  ;;  %v781_v50 = vld [vmem:[#allocation8 + $0xf40] sm:$0xff]  ;;  %v18199_v28 = vcombine.low %v805_v45, %v817_v18 }
 0x464   :  { %8406 = vmatprep.subr.bf16.mxu1 %v18248_v26  ;;  %v793_v15 = vld [vmem:[#allocation8 + $0xfa0] sm:$0xff] }
 0x465   :  { %v8053_v25 = vpop.f32.mrf.mxu0  ;;  %8310 = vmatmul.mubr.bf16.vlgmr.msra.gmra.mxu0 %v22219_v61  ;;  %v18175_v22 = vcombine.low %v781_v50, %v793_v15 }
 0x466   :  { %v8054_v63 = vadd.f32 %v8053_v25, %v8011_v59  ;;  %v8096_v1 = vpop.f32.mrf.mxu1  ;;  %8353 = vmatmul.mubr.bf16.vlgmr.msra.gmra.mxu1 %v22227_v5  ;;  %8364 = vmatpush1.bf16.msra.mxu0 %v17863_v55  ;;  %v18200_v59 = vcombine.high %v805_v45, %v817_v18  ;;  %v397_v25 = vld [vmem:[#allocation8 + $0x340] sm:$0xff] }
 0x467   :  { %8395 = vmatprep.mubr.bf16.mxu0 %v22213_v54  ;;  %8407 = vmatpush1.bf16.msra.mxu1 %v18247_v56  ;;  %v22433_v35 = vpop.f32.mrf.mxu0  ;;  %v17792_v20 = vcombine.high %v397_v25, %v409_v33  ;;  %v349_v18 = vld [vmem:[#allocation8 + $0x1c0] sm:$0xff] }
 0x468   :  { %23150 = vst [vmem:[#allocation42_spill] sm:$0xff] %v22433_v35  ;;  %v22435_v26 = vadd.f32 %v8096_v1, %v8054_v63  ;;  %8438 = vmatprep.mubr.bf16.mxu1 %v22215_v7  ;;  %v22438_v14 = vpop.f32.mrf.mxu1  ;;  %8365 = vmatprep.subr.bf16.mxu0 %v17840_v0  ;;  %v18176_v0 = vcombine.high %v781_v50, %v793_v15  ;;  %v373_v1 = vld [vmem:[#allocation8 + $0x280] sm:$0xff] }
 0x469   :  { %23151 = vst [vmem:[#allocation43_spill] sm:$0xff] %v22438_v14  ;;  %v8057_v55 = vpop.f32.mrf.mxu0  ;;  %8408 = vmatprep.subr.bf16.mxu1 %v18224_v49  ;;  %v385_v14 = vld [vmem:[#allocation8 + $0x2e0] sm:$0xff] }
 0x46a   :  { %v8889_v56 = vmul.f32 0.851, %v22435_v26  ;;  %v8058_v35 = vadd.f32 %v8057_v55, %v8015_v17  ;;  %8366 = vmatpush1.bf16.msra.mxu0 %v17839_v16  ;;  %v8100_v40 = vpop.f32.mrf.mxu1  ;;  %v757_v49 = vld [vmem:[#allocation8 + $0xe80] sm:$0xff]  ;;  %v17791_v17 = vcombine.low %v397_v25, %v409_v33  ;;  %v17768_v11 = vcombine.high %v373_v1, %v385_v14 }
 0x46b   :  { %8409 = vmatpush1.bf16.msra.mxu1 %v18223_v37  ;;  %8367 = vmatprep.subr.bf16.mxu0 %v17816_v51  ;;  %v18152_v45 = vcombine.high %v757_v49, %v769_v10  ;;  %v361_v16 = vld [vmem:[#allocation8 + $0x220] sm:$0xff]  ;;  %v17767_v51 = vcombine.low %v373_v1, %v385_v14 }
 0x46c   :  { %21749 = vtanh.f32 %v8889_v56  ;;  %v22441_v63 = vadd.f32 %v8100_v40, %v8058_v35  ;;  %8410 = vmatprep.subr.bf16.mxu1 %v18200_v59  ;;  %v733_v35 = vld [vmem:[#allocation8 + $0xdc0] sm:$0xff]  ;;  %v18151_v59 = vcombine.low %v757_v49, %v769_v10  ;;  %v17744_v55 = vcombine.high %v349_v18, %v361_v16 }
 0x46d   :  { %v745_v37 = vld [vmem:[#allocation8 + $0xe20] sm:$0xff] }
 0x46e   :  { %v8913_v21 = vmul.f32 0.851, %v22441_v63  ;;  %8368 = vmatpush1.bf16.msra.mxu0 %v17815_v47  ;;  %v18128_v56 = vcombine.high %v733_v35, %v745_v37  ;;  %v325_v33 = vld [vmem:[#allocation8 + $0x100] sm:$0xff]  ;;  %v18127_v15 = vcombine.low %v733_v35, %v745_v37 }
 0x46f   :  { %8411 = vmatpush1.bf16.msra.mxu1 %v18199_v28  ;;  %8369 = vmatprep.subr.bf16.mxu0 %v17792_v20  ;;  %v337_v25 = vld [vmem:[#allocation8 + $0x160] sm:$0xff] }
 0x470   :  { %21751 = vtanh.f32 %v8913_v21  ;;  %8412 = vmatprep.subr.bf16.mxu1 %v18176_v0  ;;  %v709_v47 = vld [vmem:[#allocation8 + $0xd00] sm:$0xff]  ;;  %v17743_v21 = vcombine.low %v349_v18, %v361_v16  ;;  %v17720_v40 = vcombine.high %v325_v33, %v337_v25 }
 0x471   :  { %v721_v50 = vld [vmem:[#allocation8 + $0xd60] sm:$0xff] }
 0x472   :  { %8370 = vmatpush1.bf16.msra.mxu0 %v17791_v17  ;;  %v18104_v28 = vcombine.high %v709_v47, %v721_v50  ;;  %v301_v20 = vld [vmem:[#allocation8 + $0x40] sm:$0xff]  ;;  %v17719_v17 = vcombine.low %v325_v33, %v337_v25 }
 0x473   :  { %8413 = vmatpush1.bf16.msra.mxu1 %v18175_v22  ;;  %8371 = vmatprep.subr.bf16.mxu0 %v17768_v11  ;;  %v313_v14 = vld [vmem:[#allocation8 + $0xa0] sm:$0xff]  ;;  %v18103_v22 = vcombine.low %v709_v47, %v721_v50 }
 0x474   :  { %8414 = vmatprep.subr.bf16.mxu1 %v18152_v45  ;;  %v685_v1 = vld [vmem:[#allocation8 + $0xc40] sm:$0xff]  ;;  %v17696_v11 = vcombine.high %v301_v20, %v313_v14 }
 0x475   :  { %v697_v10 = vld [vmem:[#allocation8 + $0xca0] sm:$0xff] }
 0x476   :  { %8372 = vmatpush1.bf16.msra.mxu0 %v17767_v51  ;;  %v18080_v45 = vcombine.high %v685_v1, %v697_v10  ;;  %v661_v18 = vld [vmem:[#allocation8 + $0xb80] sm:$0xff] }
 0x477   :  { %8415 = vmatpush1.bf16.msra.mxu1 %v18151_v59  ;;  %8373 = vmatprep.subr.bf16.mxu0 %v17744_v55  ;;  %v673_v16 = vld [vmem:[#allocation8 + $0xbe0] sm:$0xff] }
 0x478   :  { %8416 = vmatprep.subr.bf16.mxu1 %v18128_v56  ;;  %v1045_v37 = vld [vmem:[#allocation8 + $0x1780] sm:$0xff]  ;;  %v17695_v56 = vcombine.low %v301_v20, %v313_v14 }
 0x479   :  { %v21750_v0 = vpop.eup %21749  ;;  %v1057_v51 = vld [vmem:[#allocation8 + $0x17e0] sm:$0xff] }
 0x47a   :  { %v8985_v49 = vadd.f32 1.0, %v21750_v0  ;;  %8374 = vmatpush1.bf16.msra.mxu0 %v17743_v21  ;;  %v18079_v0 = vcombine.low %v685_v1, %v697_v10  ;;  %v18056_v21 = vcombine.high %v661_v18, %v673_v16  ;;  %v18440_v25 = vcombine.high %v1045_v37, %v1057_v51  ;;  %v637_v47 = vld [vmem:[#allocation8 + $0xac0] sm:$0xff] }
 0x47b   :  { %8417 = vmatpush1.bf16.msra.mxu1 %v18127_v15  ;;  %8375 = vmatprep.subr.bf16.mxu0 %v17720_v40  ;;  %v649_v50 = vld [vmem:[#allocation8 + $0xb20] sm:$0xff]  ;;  %v18439_v20 = vcombine.low %v1045_v37, %v1057_v51 }
 0x47c   :  { %8418 = vmatprep.subr.bf16.mxu1 %v18104_v28  ;;  %v9033_v59 = vmul.f32 0.5, %v8985_v49  ;;  %v1021_v15 = vld [vmem:[#allocation8 + $0x16c0] sm:$0xff]  ;;  %v18055_v49 = vcombine.low %v661_v18, %v673_v16  ;;  %v18032_v14 = vcombine.high %v637_v47, %v649_v50 }
 0x47d   :  { %v21752_v35 = vpop.eup %21751  ;;  %v1033_v40 = vld [vmem:[#allocation8 + $0x1720] sm:$0xff] }
 0x47e   :  { %v9009_v55 = vadd.f32 1.0, %v21752_v35  ;;  %8376 = vmatpush1.bf16.msra.mxu0 %v17719_v17  ;;  %v9081_v28 = vmul.f32 %v9033_v59, %v22435_v26  ;;  %v18416_v1 = vcombine.high %v1021_v15, %v1033_v40  ;;  %v613_v10 = vld [vmem:[#allocation8 + $0xa00] sm:$0xff]  ;;  %v18031_v35 = vcombine.low %v637_v47, %v649_v50 }
 0x47f   :  { %8419 = vmatpush1.bf16.msra.mxu1 %v18103_v22  ;;  %8377 = vmatprep.subr.bf16.mxu0 %v17696_v11  ;;  %v625_v22 = vld [vmem:[#allocation8 + $0xa60] sm:$0xff]  ;;  %v18415_v26 = vcombine.low %v1021_v15, %v1033_v40 }
 0x480   :  { %v9057_v33 = vmul.f32 0.5, %v9009_v55  ;;  %8420 = vmatprep.subr.bf16.mxu1 %v18080_v45  ;;  %v997_v11 = vld [vmem:[#allocation8 + $0x1600] sm:$0xff] }
 0x481   :  { %v1009_v45 = vld [vmem:[#allocation8 + $0x1660] sm:$0xff] }
 0x482   :  { %v9105_v12 = vmul.f32 %v9057_v33, %v22441_v63  ;;  %8378 = vmatpush1.bf16.msra.mxu0 %v17695_v56  ;;  %v18008_v63 = vcombine.high %v613_v10, %v625_v22  ;;  %v18392_v18 = vcombine.high %v997_v11, %v1009_v45  ;;  %v589_v16 = vld [vmem:[#allocation8 + $0x940] sm:$0xff]  ;;  %v18391_v55 = vcombine.low %v997_v11, %v1009_v45 }
 0x483   :  { %8421 = vmatpush1.bf16.msra.mxu1 %v18079_v0  ;;  %8379 = vmatprep.subr.bf16.mxu0 %v18056_v21  ;;  %v601_v59 = vld [vmem:[#allocation8 + $0x9a0] sm:$0xff] }
 0x484   :  { %v22446_v17 = vpack.c.bf16 %v9105_v12, %v9081_v28  ;;  %8422 = vmatprep.subr.bf16.mxu1 %v18440_v25  ;;  %v973_v37 = vld [vmem:[#allocation8 + $0x1540] sm:$0xff]  ;;  %v18007_v12 = vcombine.low %v613_v10, %v625_v22  ;;  %v17984_v56 = vcombine.high %v589_v16, %v601_v59  ;;  %v17983_v50 = vcombine.low %v589_v16, %v601_v59 }
 0x485   :  { %v985_v51 = vld [vmem:[#allocation8 + $0x15a0] sm:$0xff] }
 0x486   :  { %23152 = vst [vmem:[#allocation44_spill] sm:$0xff] %v22446_v17  ;;  %8380 = vmatpush2.bf16.msra.mxu0 %v18055_v49  ;;  %v18368_v0 = vcombine.high %v973_v37, %v985_v51  ;;  %v565_v21 = vld [vmem:[#allocation8 + $0x880] sm:$0xff]  ;;  %v18367_v15 = vcombine.low %v973_v37, %v985_v51 }
 0x487   :  { %8423 = vmatpush2.bf16.msra.mxu1 %v18439_v20  ;;  %8381 = vmatprep.subr.bf16.mxu0 %v18032_v14  ;;  %v577_v33 = vld [vmem:[#allocation8 + $0x8e0] sm:$0xff] }
 0x488   :  { %8424 = vmatprep.subr.bf16.mxu1 %v18416_v1  ;;  %v949_v25 = vld [vmem:[#allocation8 + $0x1480] sm:$0xff]  ;;  %v17960_v40 = vcombine.high %v565_v21, %v577_v33  ;;  %v17959_v10 = vcombine.low %v565_v21, %v577_v33 }
 0x489   :  { %v961_v47 = vld [vmem:[#allocation8 + $0x14e0] sm:$0xff] }
 0x48a   :  { %8382 = vmatpush2.bf16.msra.mxu0 %v18031_v35  ;;  %v18344_v28 = vcombine.high %v949_v25, %v961_v47  ;;  %v541_v49 = vld [vmem:[#allocation8 + $0x7c0] sm:$0xff]  ;;  %v18343_v22 = vcombine.low %v949_v25, %v961_v47 }
 0x48b   :  { %8425 = vmatpush2.bf16.msra.mxu1 %v18415_v26  ;;  %8383 = vmatprep.subr.bf16.mxu0 %v18008_v63  ;;  %v553_v20 = vld [vmem:[#allocation8 + $0x820] sm:$0xff] }
 0x48c   :  { %8426 = vmatprep.subr.bf16.mxu1 %v18392_v18  ;;  %v925_v14 = vld [vmem:[#allocation8 + $0x13c0] sm:$0xff]  ;;  %v17936_v11 = vcombine.high %v541_v49, %v553_v20  ;;  %v17935_v16 = vcombine.low %v541_v49, %v553_v20 }
 0x48d   :  { %v937_v1 = vld [vmem:[#allocation8 + $0x1420] sm:$0xff] }
 0x48e   :  { %8384 = vmatpush2.bf16.msra.mxu0 %v18007_v12  ;;  %v18320_v45 = vcombine.high %v925_v14, %v937_v1  ;;  %v517_v35 = vld [vmem:[#allocation8 + $0x700] sm:$0xff]  ;;  %v18319_v59 = vcombine.low %v925_v14, %v937_v1 }
 0x48f   :  { %8427 = vmatpush2.bf16.msra.mxu1 %v18391_v55  ;;  %8385 = vmatprep.subr.bf16.mxu0 %v17984_v56  ;;  %v529_v26 = vld [vmem:[#allocation8 + $0x760] sm:$0xff] }
 0x490   :  { %8428 = vmatprep.subr.bf16.mxu1 %v18368_v0  ;;  %v901_v63 = vld [vmem:[#allocation8 + $0x1300] sm:$0xff]  ;;  %v17912_v37 = vcombine.high %v517_v35, %v529_v26  ;;  %v17911_v21 = vcombine.low %v517_v35, %v529_v26  ;;  %v446_v26 = vld [vmem:[#allocation8 + $0x4c8] sm:$0xff] }
 0x491   :  { %v913_v18 = vld [vmem:[#allocation8 + $0x1360] sm:$0xff] }
 0x492   :  { %8386 = vmatpush2.bf16.msra.mxu0 %v17983_v50  ;;  %v18296_v51 = vcombine.high %v901_v63, %v913_v18  ;;  %v493_v12 = vld [vmem:[#allocation8 + $0x640] sm:$0xff]  ;;  %v18295_v33 = vcombine.low %v901_v63, %v913_v18  ;;  %v458_v63 = vld [vmem:[#allocation8 + $0x528] sm:$0xff]  ;;  %v22452_v18 = vpop.f32.mrf.mxu0 }
 0x493   :  { %8429 = vmatpush2.bf16.msra.mxu1 %v18367_v15  ;;  %8387 = vmatprep.subr.bf16.mxu0 %v17960_v40  ;;  %v505_v55 = vld [vmem:[#allocation8 + $0x6a0] sm:$0xff]  ;;  %v470_v40 = vld [vmem:[#allocation8 + $0x588] sm:$0xff]  ;;  %23153 = vst [vmem:[#allocation45_spill] sm:$0xff] %v22452_v18 }
 0x494   :  { %8430 = vmatprep.subr.bf16.mxu1 %v18344_v28  ;;  %v877_v56 = vld [vmem:[#allocation8 + $0x1240] sm:$0xff]  ;;  %v17888_v25 = vcombine.high %v493_v12, %v505_v55  ;;  %v482_v28 = vld [vmem:[#allocation8 + $0x5e8] sm:$0xff]  ;;  %v17887_v49 = vcombine.low %v493_v12, %v505_v55 }
 0x495   :  { %v889_v0 = vld [vmem:[#allocation8 + $0x12a0] sm:$0xff]  ;;  %v17866_v1 = vcombine.high %v470_v40, %v482_v28 }
 0x496   :  { %8388 = vmatpush2.bf16.msra.mxu0 %v17959_v10  ;;  %v18272_v47 = vcombine.high %v877_v56, %v889_v0  ;;  %v1237_v50 = vld [vmem:[#allocation8 + $0x1d80] sm:$0xff]  ;;  %v18271_v20 = vcombine.low %v877_v56, %v889_v0  ;;  %v17842_v56 = vcombine.high %v446_v26, %v458_v63  ;;  %v422_v0 = vld [vmem:[#allocation8 + $0x408] sm:$0xff] }
 0x497   :  { %8431 = vmatpush2.bf16.msra.mxu1 %v18343_v22  ;;  %8389 = vmatprep.subr.bf16.mxu0 %v17936_v11  ;;  %v1249_v15 = vld [vmem:[#allocation8 + $0x1de0] sm:$0xff]  ;;  %v22448_v11 = vld [vmem:[#allocation10 + $0x8] sm:$0xff] }
 0x498   :  { %8432 = vmatprep.subr.bf16.mxu1 %v18320_v45  ;;  %v18632_v14 = vcombine.high %v1237_v50, %v1249_v15  ;;  %v1213_v10 = vld [vmem:[#allocation8 + $0x1cc0] sm:$0xff]  ;;  %v1502_v45 = vrot.slane %v22448_v11, %v22184_v46  ;;  %v18631_v35 = vcombine.low %v1237_v50, %v1249_v15  ;;  %v17841_v15 = vcombine.low %v446_v26, %v458_v63 }
 0x499   :  { %v1225_v22 = vld [vmem:[#allocation8 + $0x1d20] sm:$0xff] }
 0x49a   :  { %8390 = vmatpush2.bf16.msra.mxu0 %v17935_v16  ;;  %v17865_v16 = vcombine.low %v470_v40, %v482_v28  ;;  %v1201_v12 = vld [vmem:[#allocation8 + $0x1c60] sm:$0xff] }
 0x49b   :  { %8433 = vmatpush2.bf16.msra.mxu1 %v18319_v59  ;;  %8391 = vmatprep.subr.bf16.mxu0 %v17912_v37  ;;  %v22454_v59 = vpop.f32.mrf.mxu1  ;;  %v18608_v37 = vcombine.high %v1213_v10, %v1225_v22 }
 0x49c   :  { %8434 = vmatprep.subr.bf16.mxu1 %v18296_v51  ;;  %23154 = vst [vmem:[#allocation46_spill] sm:$0xff] %v22454_v59  ;;  %v1189_v51 = vld [vmem:[#allocation8 + $0x1c00] sm:$0xff]  ;;  %v386_v59 = vld [vmem:[#allocation8 + $0x2e8] sm:$0xff] }
 0x49d   :  { %v18584_v40 = vcombine.high %v1189_v51, %v1201_v12 }
 0x49e   :  { %8392 = vmatpush2.bf16.msra.mxu0 %v17911_v21  ;;  %v434_v21 = vld [vmem:[#allocation8 + $0x468] sm:$0xff] }
 0x49f   :  { %8435 = vmatpush2.bf16.msra.mxu1 %v18295_v33  ;;  %8393 = vmatprep.subr.bf16.mxu0 %v17888_v25  ;;  %v17817_v26 = vcombine.low %v422_v0, %v434_v21 }
 0x4a0   :  { %8436 = vmatprep.subr.bf16.mxu1 %v18272_v47  ;;  %v18607_v47 = vcombine.low %v1213_v10, %v1225_v22  ;;  %v398_v10 = vld [vmem:[#allocation8 + $0x348] sm:$0xff] }
 0x4a1   :  { %v410_v22 = vld [vmem:[#allocation8 + $0x3a8] sm:$0xff] }
 0x4a2   :  { %8394 = vmatpush2.bf16.msra.mxu0 %v17887_v49 }
 0x4a3   :  { %8437 = vmatpush2.bf16.msra.mxu1 %v18271_v20  ;;  %8449 = vmatprep.subr.bf16.mxu0 %v18632_v14  ;;  %v17818_v20 = vcombine.high %v422_v0, %v434_v21  ;;  %v1165_v14 = vld [vmem:[#allocation8 + $0x1b40] sm:$0xff]  ;;  %v350_v0 = vld [vmem:[#allocation8 + $0x1c8] sm:$0xff] }
 0x4a4   :  { %8492 = vmatprep.subr.bf16.mxu1 %v17866_v1  ;;  %v1177_v1 = vld [vmem:[#allocation8 + $0x1ba0] sm:$0xff]  ;;  %v362_v21 = vld [vmem:[#allocation8 + $0x228] sm:$0xff] }
 0x4a5   :  { %v8139_v55 = vpop.f32.mrf.mxu0  ;;  %8396 = vmatmul.mubr.bf16.vlgmr.msra.gmra.mxu0 %v22217_v60  ;;  %v18560_v63 = vcombine.high %v1165_v14, %v1177_v1 }
 0x4a6   :  { %v8140_v33 = vadd.f32 %v8139_v55, %v1502_v45  ;;  %v8182_v25 = vpop.f32.mrf.mxu1  ;;  %8439 = vmatmul.mubr.bf16.vlgmr.msra.gmra.mxu1 %v22219_v61  ;;  %8450 = vmatpush1.bf16.msra.mxu0 %v18631_v35 }
 0x4a7   :  { %8481 = vmatprep.mubr.bf16.mxu0 %v22225_v4  ;;  %8493 = vmatpush1.bf16.msra.mxu1 %v17865_v16  ;;  %v22459_v50 = vpop.f32.mrf.mxu0  ;;  %v18583_v16 = vcombine.low %v1189_v51, %v1201_v12  ;;  %v1117_v12 = vld [vmem:[#allocation8 + $0x19c0] sm:$0xff] }
 0x4a8   :  { %23155 = vst [vmem:[#allocation47_spill] sm:$0xff] %v22459_v50  ;;  %v22461_v28 = vadd.f32 %v8182_v25, %v8140_v33  ;;  %8524 = vmatprep.mubr.bf16.mxu1 %v22213_v54  ;;  %v22464_v49 = vpop.f32.mrf.mxu1  ;;  %8451 = vmatprep.subr.bf16.mxu0 %v18608_v37  ;;  %v17794_v25 = vcombine.high %v398_v10, %v410_v22  ;;  %v1141_v37 = vld [vmem:[#allocation8 + $0x1a80] sm:$0xff]  ;;  %v374_v50 = vld [vmem:[#allocation8 + $0x288] sm:$0xff] }
 0x4a9   :  { %23156 = vst [vmem:[#allocation48_spill] sm:$0xff] %v22464_v49  ;;  %v8143_v55 = vpop.f32.mrf.mxu0  ;;  %8494 = vmatprep.subr.bf16.mxu1 %v17842_v56  ;;  %v1153_v49 = vld [vmem:[#allocation8 + $0x1ae0] sm:$0xff]  ;;  %v18559_v56 = vcombine.low %v1165_v14, %v1177_v1  ;;  %v17770_v51 = vcombine.high %v374_v50, %v386_v59  ;;  %v326_v1 = vld [vmem:[#allocation8 + $0x108] sm:$0xff] }
 0x4aa   :  { %v8144_v35 = vadd.f32 %v8143_v55, %v1502_v45  ;;  %8452 = vmatpush1.bf16.msra.mxu0 %v18607_v47  ;;  %v8186_v17 = vpop.f32.mrf.mxu1  ;;  %v17793_v45 = vcombine.low %v398_v10, %v410_v22  ;;  %v18536_v47 = vcombine.high %v1141_v37, %v1153_v49  ;;  %v17746_v55 = vcombine.high %v350_v0, %v362_v21  ;;  %v1105_v14 = vld [vmem:[#allocation8 + $0x1960] sm:$0xff] }
 0x4ab   :  { %8495 = vmatpush1.bf16.msra.mxu1 %v17841_v15  ;;  %8453 = vmatprep.subr.bf16.mxu0 %v18584_v40  ;;  %v1129_v15 = vld [vmem:[#allocation8 + $0x1a20] sm:$0xff]  ;;  %v17769_v40 = vcombine.low %v374_v50, %v386_v59  ;;  %v17745_v22 = vcombine.low %v350_v0, %v362_v21 }
 0x4ac   :  { %v22466_v33 = vadd.f32 %v8186_v17, %v8144_v35  ;;  %8496 = vmatprep.subr.bf16.mxu1 %v17818_v20  ;;  %v18535_v17 = vcombine.low %v1141_v37, %v1153_v49  ;;  %v18512_v20 = vcombine.high %v1117_v12, %v1129_v15  ;;  %v1093_v35 = vld [vmem:[#allocation8 + $0x1900] sm:$0xff]  ;;  %v18511_v10 = vcombine.low %v1117_v12, %v1129_v15  ;;  %v302_v37 = vld [vmem:[#allocation8 + $0x48] sm:$0xff] }
 0x4ad   :  { %v1081_v49 = vld [vmem:[#allocation8 + $0x18a0] sm:$0xff]  ;;  %v18487_v59 = vcombine.low %v1093_v35, %v1105_v14  ;;  %v662_v15 = vld [vmem:[#allocation8 + $0xb88] sm:$0xff] }
 0x4ae   :  { %8454 = vmatpush1.bf16.msra.mxu0 %v18583_v16  ;;  %v338_v16 = vld [vmem:[#allocation8 + $0x168] sm:$0xff]  ;;  %v1441_v12 = vld [vmem:[#allocation8 + $0x23e0] sm:$0xff] }
 0x4af   :  { %8497 = vmatpush1.bf16.msra.mxu1 %v17817_v26  ;;  %8455 = vmatprep.subr.bf16.mxu0 %v18560_v63  ;;  %v18488_v26 = vcombine.high %v1093_v35, %v1105_v14  ;;  %v17722_v63 = vcombine.high %v326_v1, %v338_v16  ;;  %v17721_v50 = vcombine.low %v326_v1, %v338_v16  ;;  %v1417_v35 = vld [vmem:[#allocation8 + $0x2320] sm:$0xff]  ;;  %v638_v14 = vld [vmem:[#allocation8 + $0xac8] sm:$0xff] }
 0x4b0   :  { %8498 = vmatprep.subr.bf16.mxu1 %v17794_v25  ;;  %v1069_v25 = vld [vmem:[#allocation8 + $0x1840] sm:$0xff] }
 0x4b1   :  { %v18463_v0 = vcombine.low %v1069_v25, %v1081_v49 }
 0x4b2   :  { %8456 = vmatpush1.bf16.msra.mxu0 %v18559_v56  ;;  %v314_v56 = vld [vmem:[#allocation8 + $0xa8] sm:$0xff] }
 0x4b3   :  { %8499 = vmatpush1.bf16.msra.mxu1 %v17793_v45  ;;  %8457 = vmatprep.subr.bf16.mxu0 %v18536_v47  ;;  %v18464_v45 = vcombine.high %v1069_v25, %v1081_v49  ;;  %v17698_v47 = vcombine.high %v302_v37, %v314_v56  ;;  %v17697_v21 = vcombine.low %v302_v37, %v314_v56  ;;  %v1393_v25 = vld [vmem:[#allocation8 + $0x2260] sm:$0xff]  ;;  %v614_v49 = vld [vmem:[#allocation8 + $0xa08] sm:$0xff] }
 0x4b4   :  { %8500 = vmatprep.subr.bf16.mxu1 %v17770_v51  ;;  %v1429_v51 = vld [vmem:[#allocation8 + $0x2380] sm:$0xff] }
 0x4b5   :  { %v18823_v1 = vcombine.low %v1429_v51, %v1441_v12 }
 0x4b6   :  { %8458 = vmatpush1.bf16.msra.mxu0 %v18535_v17  ;;  %v674_v17 = vld [vmem:[#allocation8 + $0xbe8] sm:$0xff] }
 0x4b7   :  { %8501 = vmatpush1.bf16.msra.mxu1 %v17769_v40  ;;  %8459 = vmatprep.subr.bf16.mxu0 %v18512_v20  ;;  %v18824_v40 = vcombine.high %v1429_v51, %v1441_v12  ;;  %v18058_v20 = vcombine.high %v662_v15, %v674_v17  ;;  %v18057_v16 = vcombine.low %v662_v15, %v674_v17  ;;  %v1369_v51 = vld [vmem:[#allocation8 + $0x21a0] sm:$0xff]  ;;  %v590_v12 = vld [vmem:[#allocation8 + $0x948] sm:$0xff] }
 0x4b8   :  { %8502 = vmatprep.subr.bf16.mxu1 %v17746_v55  ;;  %v1405_v55 = vld [vmem:[#allocation8 + $0x22c0] sm:$0xff] }
 0x4b9   :  { %v18799_v37 = vcombine.low %v1405_v55, %v1417_v35 }
 0x4ba   :  { %8460 = vmatpush1.bf16.msra.mxu0 %v18511_v10  ;;  %v650_v10 = vld [vmem:[#allocation8 + $0xb28] sm:$0xff] }
 0x4bb   :  { %8503 = vmatpush1.bf16.msra.mxu1 %v17745_v22  ;;  %8461 = vmatprep.subr.bf16.mxu0 %v18488_v26  ;;  %v18800_v22 = vcombine.high %v1405_v55, %v1417_v35  ;;  %v18034_v26 = vcombine.high %v638_v14, %v650_v10  ;;  %v18033_v56 = vcombine.low %v638_v14, %v650_v10  ;;  %v1345_v55 = vld [vmem:[#allocation8 + $0x20e0] sm:$0xff]  ;;  %v566_v35 = vld [vmem:[#allocation8 + $0x888] sm:$0xff] }
 0x4bc   :  { %8504 = vmatprep.subr.bf16.mxu1 %v17722_v63  ;;  %v1381_v63 = vld [vmem:[#allocation8 + $0x2200] sm:$0xff] }
 0x4bd   :  { %v18775_v15 = vcombine.low %v1381_v63, %v1393_v25 }
 0x4be   :  { %8462 = vmatpush1.bf16.msra.mxu0 %v18487_v59  ;;  %v626_v59 = vld [vmem:[#allocation8 + $0xa68] sm:$0xff] }
 0x4bf   :  { %8505 = vmatpush1.bf16.msra.mxu1 %v17721_v50  ;;  %8463 = vmatprep.subr.bf16.mxu0 %v18464_v45  ;;  %v18776_v50 = vcombine.high %v1381_v63, %v1393_v25  ;;  %v18010_v45 = vcombine.high %v614_v49, %v626_v59  ;;  %v18009_v17 = vcombine.low %v614_v49, %v626_v59  ;;  %v1321_v63 = vld [vmem:[#allocation8 + $0x2020] sm:$0xff]  ;;  %v542_v25 = vld [vmem:[#allocation8 + $0x7c8] sm:$0xff] }
 0x4c0   :  { %8506 = vmatprep.subr.bf16.mxu1 %v17698_v47  ;;  %v1357_v47 = vld [vmem:[#allocation8 + $0x2140] sm:$0xff] }
 0x4c1   :  { %v18751_v14 = vcombine.low %v1357_v47, %v1369_v51 }
 0x4c2   :  { %8464 = vmatpush1.bf16.msra.mxu0 %v18463_v0  ;;  %v602_v0 = vld [vmem:[#allocation8 + $0x9a8] sm:$0xff] }
 0x4c3   :  { %8507 = vmatpush1.bf16.msra.mxu1 %v17697_v21  ;;  %8465 = vmatprep.subr.bf16.mxu0 %v18824_v40  ;;  %v18752_v21 = vcombine.high %v1357_v47, %v1369_v51  ;;  %v17986_v40 = vcombine.high %v590_v12, %v602_v0  ;;  %v17985_v10 = vcombine.low %v590_v12, %v602_v0  ;;  %v1297_v47 = vld [vmem:[#allocation8 + $0x1f60] sm:$0xff]  ;;  %v518_v51 = vld [vmem:[#allocation8 + $0x708] sm:$0xff] }
 0x4c4   :  { %8508 = vmatprep.subr.bf16.mxu1 %v18058_v20  ;;  %v1333_v20 = vld [vmem:[#allocation8 + $0x2080] sm:$0xff] }
 0x4c5   :  { %v18727_v49 = vcombine.low %v1333_v20, %v1345_v55 }
 0x4c6   :  { %8466 = vmatpush2.bf16.msra.mxu0 %v18823_v1  ;;  %v578_v1 = vld [vmem:[#allocation8 + $0x8e8] sm:$0xff] }
 0x4c7   :  { %8509 = vmatpush2.bf16.msra.mxu1 %v18057_v16  ;;  %8467 = vmatprep.subr.bf16.mxu0 %v18800_v22  ;;  %v18728_v16 = vcombine.high %v1333_v20, %v1345_v55  ;;  %v17962_v22 = vcombine.high %v566_v35, %v578_v1  ;;  %v17961_v59 = vcombine.low %v566_v35, %v578_v1  ;;  %v1273_v20 = vld [vmem:[#allocation8 + $0x1ea0] sm:$0xff]  ;;  %v494_v55 = vld [vmem:[#allocation8 + $0x648] sm:$0xff] }
 0x4c8   :  { %8510 = vmatprep.subr.bf16.mxu1 %v18034_v26  ;;  %v1309_v26 = vld [vmem:[#allocation8 + $0x1fc0] sm:$0xff] }
 0x4c9   :  { %v18703_v12 = vcombine.low %v1309_v26, %v1321_v63 }
 0x4ca   :  { %8468 = vmatpush2.bf16.msra.mxu0 %v18799_v37  ;;  %v554_v37 = vld [vmem:[#allocation8 + $0x828] sm:$0xff] }
 0x4cb   :  { %8511 = vmatpush2.bf16.msra.mxu1 %v18033_v56  ;;  %8469 = vmatprep.subr.bf16.mxu0 %v18776_v50  ;;  %v18704_v56 = vcombine.high %v1309_v26, %v1321_v63  ;;  %v17938_v50 = vcombine.high %v542_v25, %v554_v37  ;;  %v17937_v0 = vcombine.low %v542_v25, %v554_v37  ;;  %v866_v26 = vld [vmem:[#allocation8 + $0x11e8] sm:$0xff] }
 0x4cc   :  { %8512 = vmatprep.subr.bf16.mxu1 %v18010_v45  ;;  %v1285_v45 = vld [vmem:[#allocation8 + $0x1f00] sm:$0xff]  ;;  %v1238_v63 = vld [vmem:[#allocation8 + $0x1d88] sm:$0xff] }
 0x4cd   :  { %v18679_v35 = vcombine.low %v1285_v45, %v1297_v47 }
 0x4ce   :  { %8470 = vmatpush2.bf16.msra.mxu0 %v18775_v15  ;;  %v530_v15 = vld [vmem:[#allocation8 + $0x768] sm:$0xff] }
 0x4cf   :  { %8513 = vmatpush2.bf16.msra.mxu1 %v18009_v17  ;;  %8471 = vmatprep.subr.bf16.mxu0 %v18752_v21  ;;  %v18680_v17 = vcombine.high %v1285_v45, %v1297_v47  ;;  %v17914_v21 = vcombine.high %v518_v51, %v530_v15  ;;  %v17913_v1 = vcombine.low %v518_v51, %v530_v15  ;;  %v842_v45 = vld [vmem:[#allocation8 + $0x1128] sm:$0xff] }
 0x4d0   :  { %8514 = vmatprep.subr.bf16.mxu1 %v17986_v40  ;;  %v1261_v40 = vld [vmem:[#allocation8 + $0x1e40] sm:$0xff]  ;;  %v1214_v51 = vld [vmem:[#allocation8 + $0x1cc8] sm:$0xff] }
 0x4d1   :  { %v18655_v25 = vcombine.low %v1261_v40, %v1273_v20  ;;  %v1226_v15 = vld [vmem:[#allocation8 + $0x1d28] sm:$0xff] }
 0x4d2   :  { %8472 = vmatpush2.bf16.msra.mxu0 %v18751_v14  ;;  %v506_v14 = vld [vmem:[#allocation8 + $0x6a8] sm:$0xff] }
 0x4d3   :  { %8515 = vmatpush2.bf16.msra.mxu1 %v17985_v10  ;;  %8473 = vmatprep.subr.bf16.mxu0 %v18728_v16  ;;  %v18656_v10 = vcombine.high %v1261_v40, %v1273_v20  ;;  %v17890_v16 = vcombine.high %v494_v55, %v506_v14  ;;  %v17889_v37 = vcombine.low %v494_v55, %v506_v14  ;;  %v818_v40 = vld [vmem:[#allocation8 + $0x1068] sm:$0xff] }
 0x4d4   :  { %8516 = vmatprep.subr.bf16.mxu1 %v17962_v22  ;;  %v854_v22 = vld [vmem:[#allocation8 + $0x1188] sm:$0xff]  ;;  %v18610_v55 = vcombine.high %v1214_v51, %v1226_v15 }
 0x4d5   :  { %v18249_v47 = vcombine.low %v854_v22, %v866_v26  ;;  %v1190_v14 = vld [vmem:[#allocation8 + $0x1c08] sm:$0xff] }
 0x4d6   :  { %8474 = vmatpush2.bf16.msra.mxu0 %v18727_v49  ;;  %v1250_v49 = vld [vmem:[#allocation8 + $0x1de8] sm:$0xff] }
 0x4d7   :  { %8517 = vmatpush2.bf16.msra.mxu1 %v17961_v59  ;;  %8475 = vmatprep.subr.bf16.mxu0 %v18704_v56  ;;  %v18250_v59 = vcombine.high %v854_v22, %v866_v26  ;;  %v18634_v56 = vcombine.high %v1238_v63, %v1250_v49  ;;  %v18609_v22 = vcombine.low %v1214_v51, %v1226_v15 }
 0x4d8   :  { %8518 = vmatprep.subr.bf16.mxu1 %v17938_v50  ;;  %v830_v50 = vld [vmem:[#allocation8 + $0x10c8] sm:$0xff] }
 0x4da   :  { %8476 = vmatpush2.bf16.msra.mxu0 %v18703_v12  ;;  %v22468_v12 = vpop.f32.mrf.mxu0 }
 0x4db   :  { %8519 = vmatpush2.bf16.msra.mxu1 %v17937_v0  ;;  %8477 = vmatprep.subr.bf16.mxu0 %v18680_v17  ;;  %23157 = vst [vmem:[#allocation49_spill] sm:$0xff] %v22468_v12  ;;  %v18633_v0 = vcombine.low %v1238_v63, %v1250_v49  ;;  %v18226_v17 = vcombine.high %v830_v50, %v842_v45 }
 0x4dc   :  { %8520 = vmatprep.subr.bf16.mxu1 %v17914_v21  ;;  %v806_v21 = vld [vmem:[#allocation8 + $0x1008] sm:$0xff] }
 0x4dd   :  { %v18202_v26 = vcombine.high %v806_v21, %v818_v40 }
 0x4de   :  { %8478 = vmatpush2.bf16.msra.mxu0 %v18679_v35  ;;  %v1202_v35 = vld [vmem:[#allocation8 + $0x1c68] sm:$0xff] }
 0x4df   :  { %8521 = vmatpush2.bf16.msra.mxu1 %v17913_v1  ;;  %8479 = vmatprep.subr.bf16.mxu0 %v18656_v10  ;;  %v18225_v10 = vcombine.low %v830_v50, %v842_v45  ;;  %v18586_v49 = vcombine.high %v1190_v14, %v1202_v35  ;;  %v18201_v45 = vcombine.low %v806_v21, %v818_v40  ;;  %v734_v40 = vld [vmem:[#allocation8 + $0xdc8] sm:$0xff] }
 0x4e0   :  { %8522 = vmatprep.subr.bf16.mxu1 %v17890_v16 }
 0x4e2   :  { %8480 = vmatpush2.bf16.msra.mxu0 %v18655_v25  ;;  %v782_v25 = vld [vmem:[#allocation8 + $0xf48] sm:$0xff] }
 0x4e3   :  { %8523 = vmatpush2.bf16.msra.mxu1 %v17889_v37  ;;  %8535 = vmatprep.subr.bf16.mxu0 %v18250_v59  ;;  %v1166_v59 = vld [vmem:[#allocation8 + $0x1b48] sm:$0xff] }
 0x4e4   :  { %8578 = vmatprep.subr.bf16.mxu1 %v18634_v56  ;;  %v1178_v56 = vld [vmem:[#allocation8 + $0x1ba8] sm:$0xff] }
 0x4e5   :  { %v8225_v20 = vpop.f32.mrf.mxu0  ;;  %8482 = vmatmul.mubr.bf16.vlgmr.msra.gmra.mxu0 %v22227_v5 }
 0x4e6   :  { %v22472_v1 = vadd.f32 %v8225_v20, %v22461_v28  ;;  %8525 = vmatmul.mubr.bf16.vlgmr.msra.gmra.mxu1 %v22217_v60  ;;  %8536 = vmatpush1.bf16.msra.mxu0 %v18249_v47  ;;  %v794_v28 = vld [vmem:[#allocation8 + $0xfa8] sm:$0xff]  ;;  %v18585_v47 = vcombine.low %v1190_v14, %v1202_v35 }
 0x4e7   :  { %8567 = vmatprep.mubr.bf16.mxu0 %v22215_v7  ;;  %8579 = vmatpush1.bf16.msra.mxu1 %v18633_v0  ;;  %v22476_v16 = vpop.f32.mrf.mxu0  ;;  %v18178_v51 = vcombine.high %v782_v25, %v794_v28  ;;  %v18562_v0 = vcombine.high %v1166_v59, %v1178_v56  ;;  %v770_v20 = vld [vmem:[#allocation8 + $0xee8] sm:$0xff] }
 0x4e8   :  { %23158 = vst [vmem:[#allocation50_spill] sm:$0xff] %v22476_v16  ;;  %v8891_v63 = vmul.f32 0.851, %v22472_v1  ;;  %8610 = vmatprep.mubr.bf16.mxu1 %v22225_v4  ;;  %8537 = vmatprep.subr.bf16.mxu0 %v18226_v17  ;;  %v758_v17 = vld [vmem:[#allocation8 + $0xe88] sm:$0xff] }
 0x4e9   :  { %v8229_v37 = vpop.f32.mrf.mxu0  ;;  %8580 = vmatprep.subr.bf16.mxu1 %v18610_v55  ;;  %v1142_v16 = vld [vmem:[#allocation8 + $0x1a88] sm:$0xff] }
 0x4ea   :  { %21753 = vtanh.f32 %v8891_v63  ;;  %v22481_v50 = vadd.f32 %v8229_v37, %v22466_v33  ;;  %8538 = vmatpush1.bf16.msra.mxu0 %v18225_v10  ;;  %v1154_v55 = vld [vmem:[#allocation8 + $0x1ae8] sm:$0xff]  ;;  %v18177_v63 = vcombine.low %v782_v25, %v794_v28  ;;  %v18561_v33 = vcombine.low %v1166_v59, %v1178_v56 }
 0x4eb   :  { %8581 = vmatpush1.bf16.msra.mxu1 %v18609_v22  ;;  %8539 = vmatprep.subr.bf16.mxu0 %v18202_v26  ;;  %v18154_v10 = vcombine.high %v758_v17, %v770_v20  ;;  %v18538_v21 = vcombine.high %v1142_v16, %v1154_v55  ;;  %v746_v14 = vld [vmem:[#allocation8 + $0xe28] sm:$0xff]  ;;  %v18153_v26 = vcombine.low %v758_v17, %v770_v20 }
 0x4ec   :  { %v8915_v15 = vmul.f32 0.851, %v22481_v50  ;;  %8582 = vmatprep.subr.bf16.mxu1 %v18586_v49  ;;  %v1118_v35 = vld [vmem:[#allocation8 + $0x19c8] sm:$0xff]  ;;  %v18537_v49 = vcombine.low %v1142_v16, %v1154_v55  ;;  %v18130_v37 = vcombine.high %v734_v40, %v746_v14  ;;  %v18129_v59 = vcombine.low %v734_v40, %v746_v14 }
 0x4ed   :  { %v1130_v22 = vld [vmem:[#allocation8 + $0x1a28] sm:$0xff] }
 0x4ee   :  { %21755 = vtanh.f32 %v8915_v15  ;;  %8540 = vmatpush1.bf16.msra.mxu0 %v18201_v45  ;;  %v18514_v15 = vcombine.high %v1118_v35, %v1130_v22  ;;  %v710_v45 = vld [vmem:[#allocation8 + $0xd08] sm:$0xff] }
 0x4ef   :  { %8583 = vmatpush1.bf16.msra.mxu1 %v18585_v47  ;;  %8541 = vmatprep.subr.bf16.mxu0 %v18178_v51  ;;  %v722_v25 = vld [vmem:[#allocation8 + $0xd68] sm:$0xff]  ;;  %v18513_v51 = vcombine.low %v1118_v35, %v1130_v22 }
 0x4f0   :  { %8584 = vmatprep.subr.bf16.mxu1 %v18562_v0  ;;  %v1094_v28 = vld [vmem:[#allocation8 + $0x1908] sm:$0xff]  ;;  %v18106_v0 = vcombine.high %v710_v45, %v722_v25 }
 0x4f1   :  { %v1106_v47 = vld [vmem:[#allocation8 + $0x1968] sm:$0xff] }
 0x4f2   :  { %8542 = vmatpush1.bf16.msra.mxu0 %v18177_v63  ;;  %v18490_v17 = vcombine.high %v1094_v28, %v1106_v47  ;;  %v686_v20 = vld [vmem:[#allocation8 + $0xc48] sm:$0xff] }
 0x4f3   :  { %8585 = vmatpush1.bf16.msra.mxu1 %v18561_v33  ;;  %8543 = vmatprep.subr.bf16.mxu0 %v18154_v10  ;;  %v698_v63 = vld [vmem:[#allocation8 + $0xca8] sm:$0xff]  ;;  %v18105_v33 = vcombine.low %v710_v45, %v722_v25 }
 0x4f4   :  { %8586 = vmatprep.subr.bf16.mxu1 %v18538_v21  ;;  %v1070_v16 = vld [vmem:[#allocation8 + $0x1848] sm:$0xff]  ;;  %v18489_v21 = vcombine.low %v1094_v28, %v1106_v47  ;;  %v18081_v18 = vcombine.low %v686_v20, %v698_v63 }
 0x4f5   :  { %v1082_v55 = vld [vmem:[#allocation8 + $0x18a8] sm:$0xff] }
 0x4f6   :  { %8544 = vmatpush1.bf16.msra.mxu0 %v18153_v26  ;;  %v18082_v26 = vcombine.high %v686_v20, %v698_v63  ;;  %v1046_v35 = vld [vmem:[#allocation8 + $0x1788] sm:$0xff] }
 0x4f7   :  { %v21754_v56 = vpop.eup %21753  ;;  %8587 = vmatpush1.bf16.msra.mxu1 %v18537_v49  ;;  %8545 = vmatprep.subr.bf16.mxu0 %v18130_v37  ;;  %v18466_v49 = vcombine.high %v1070_v16, %v1082_v55  ;;  %v1058_v22 = vld [vmem:[#allocation8 + $0x17e8] sm:$0xff] }
 0x4f8   :  { %v8987_v12 = vadd.f32 1.0, %v21754_v56  ;;  %8588 = vmatprep.subr.bf16.mxu1 %v18514_v15  ;;  %v1430_v37 = vld [vmem:[#allocation8 + $0x2388] sm:$0xff]  ;;  %v18442_v45 = vcombine.high %v1046_v35, %v1058_v22 }
 0x4f9   :  { %v1442_v15 = vld [vmem:[#allocation8 + $0x23e8] sm:$0xff] }
 0x4fa   :  { %8546 = vmatpush1.bf16.msra.mxu0 %v18129_v59  ;;  %v9035_v40 = vmul.f32 0.5, %v8987_v12  ;;  %v18465_v59 = vcombine.low %v1070_v16, %v1082_v55  ;;  %v18826_v12 = vcombine.high %v1430_v37, %v1442_v15  ;;  %v1022_v47 = vld [vmem:[#allocation8 + $0x16c8] sm:$0xff]  ;;  %v18825_v20 = vcombine.low %v1430_v37, %v1442_v15 }
 0x4fb   :  { %v21756_v10 = vpop.eup %21755  ;;  %8589 = vmatpush1.bf16.msra.mxu1 %v18513_v51  ;;  %8547 = vmatprep.subr.bf16.mxu0 %v18106_v0  ;;  %v1034_v51 = vld [vmem:[#allocation8 + $0x1728] sm:$0xff] }
 0x4fc   :  { %v9011_v14 = vadd.f32 1.0, %v21756_v10  ;;  %8590 = vmatprep.subr.bf16.mxu1 %v18490_v17  ;;  %v9083_v25 = vmul.f32 %v9035_v40, %v22472_v1  ;;  %v1406_v0 = vld [vmem:[#allocation8 + $0x22c8] sm:$0xff]  ;;  %v18418_v63 = vcombine.high %v1022_v47, %v1034_v51 }
 0x4fd   :  { %v1418_v17 = vld [vmem:[#allocation8 + $0x2328] sm:$0xff] }
 0x4fe   :  { %v9059_v56 = vmul.f32 0.5, %v9011_v14  ;;  %8548 = vmatpush1.bf16.msra.mxu0 %v18105_v33  ;;  %v18441_v14 = vcombine.low %v1046_v35, %v1058_v22  ;;  %v18802_v16 = vcombine.high %v1406_v0, %v1418_v17  ;;  %v998_v55 = vld [vmem:[#allocation8 + $0x1608] sm:$0xff] }
 0x4ff   :  { %8591 = vmatpush1.bf16.msra.mxu1 %v18489_v21  ;;  %8549 = vmatprep.subr.bf16.mxu0 %v18082_v26  ;;  %v1010_v1 = vld [vmem:[#allocation8 + $0x1668] sm:$0xff]  ;;  %v18417_v21 = vcombine.low %v1022_v47, %v1034_v51  ;;  %v18801_v26 = vcombine.low %v1406_v0, %v1418_v17 }
 0x500   :  { %v9107_v28 = vmul.f32 %v9059_v56, %v22481_v50  ;;  %8592 = vmatprep.subr.bf16.mxu1 %v18466_v49  ;;  %v1382_v33 = vld [vmem:[#allocation8 + $0x2208] sm:$0xff]  ;;  %v18394_v40 = vcombine.high %v998_v55, %v1010_v1  ;;  %v18393_v37 = vcombine.low %v998_v55, %v1010_v1 }
 0x501   :  { %v1394_v50 = vld [vmem:[#allocation8 + $0x2268] sm:$0xff] }
 0x502   :  { %v22486_v10 = vpack.c.bf16 %v9107_v28, %v9083_v25  ;;  %8550 = vmatpush1.bf16.msra.mxu0 %v18081_v18  ;;  %v18778_v49 = vcombine.high %v1382_v33, %v1394_v50  ;;  %v974_v18 = vld [vmem:[#allocation8 + $0x1548] sm:$0xff]  ;;  %v18777_v15 = vcombine.low %v1382_v33, %v1394_v50 }
 0x503   :  { %8593 = vmatpush1.bf16.msra.mxu1 %v18465_v59  ;;  %8551 = vmatprep.subr.bf16.mxu0 %v18442_v45  ;;  %v986_v35 = vld [vmem:[#allocation8 + $0x15a8] sm:$0xff] }
 0x504   :  { %23159 = vst [vmem:[#allocation51_spill] sm:$0xff] %v22486_v10  ;;  %8594 = vmatprep.subr.bf16.mxu1 %v18826_v12  ;;  %v1358_v22 = vld [vmem:[#allocation8 + $0x2148] sm:$0xff]  ;;  %v18370_v59 = vcombine.high %v974_v18, %v986_v35  ;;  %v18369_v51 = vcombine.low %v974_v18, %v986_v35  ;;  %v22488_v35 = vpop.f32.mrf.mxu1 }
 0x505   :  { %v1370_v56 = vld [vmem:[#allocation8 + $0x21a8] sm:$0xff]  ;;  %23160 = vst [vmem:[#allocation52_spill] sm:$0xff] %v22488_v35 }
 0x506   :  { %8552 = vmatpush2.bf16.msra.mxu0 %v18441_v14  ;;  %v18754_v45 = vcombine.high %v1358_v22, %v1370_v56  ;;  %v950_v25 = vld [vmem:[#allocation8 + $0x1488] sm:$0xff]  ;;  %v18753_v0 = vcombine.low %v1358_v22, %v1370_v56 }
 0x507   :  { %8595 = vmatpush2.bf16.msra.mxu1 %v18825_v20  ;;  %8553 = vmatprep.subr.bf16.mxu0 %v18418_v63  ;;  %v962_v28 = vld [vmem:[#allocation8 + $0x14e8] sm:$0xff] }
 0x508   :  { %8596 = vmatprep.subr.bf16.mxu1 %v18802_v16  ;;  %v1334_v12 = vld [vmem:[#allocation8 + $0x2088] sm:$0xff]  ;;  %v18346_v17 = vcombine.high %v950_v25, %v962_v28  ;;  %v18345_v1 = vcombine.low %v950_v25, %v962_v28 }
 0x509   :  { %v1346_v47 = vld [vmem:[#allocation8 + $0x20e8] sm:$0xff] }
 0x50a   :  { %8554 = vmatpush2.bf16.msra.mxu0 %v18417_v21  ;;  %v18730_v14 = vcombine.high %v1334_v12, %v1346_v47  ;;  %v926_v20 = vld [vmem:[#allocation8 + $0x13c8] sm:$0xff]  ;;  %v18729_v33 = vcombine.low %v1334_v12, %v1346_v47 }
 0x50b   :  { %8597 = vmatpush2.bf16.msra.mxu1 %v18801_v26  ;;  %8555 = vmatprep.subr.bf16.mxu0 %v18394_v40  ;;  %v938_v63 = vld [vmem:[#allocation8 + $0x1428] sm:$0xff] }
 0x50c   :  { %8598 = vmatprep.subr.bf16.mxu1 %v18778_v49  ;;  %v1310_v16 = vld [vmem:[#allocation8 + $0x1fc8] sm:$0xff]  ;;  %v18322_v50 = vcombine.high %v926_v20, %v938_v63  ;;  %v18321_v22 = vcombine.low %v926_v20, %v938_v63  ;;  %v471_v20 = vld [vmem:[#allocation8 + $0x590] sm:$0xff] }
 0x50d   :  { %v1322_v55 = vld [vmem:[#allocation8 + $0x2028] sm:$0xff]  ;;  %v483_v63 = vld [vmem:[#allocation8 + $0x5f0] sm:$0xff] }
 0x50e   :  { %8556 = vmatpush2.bf16.msra.mxu0 %v18393_v37  ;;  %v18706_v21 = vcombine.high %v1310_v16, %v1322_v55  ;;  %v902_v26 = vld [vmem:[#allocation8 + $0x1308] sm:$0xff]  ;;  %v18705_v56 = vcombine.low %v1310_v16, %v1322_v55  ;;  %v855_v16 = vld [vmem:[#allocation8 + $0x1190] sm:$0xff] }
 0x50f   :  { %8599 = vmatpush2.bf16.msra.mxu1 %v18777_v15  ;;  %8557 = vmatprep.subr.bf16.mxu0 %v18370_v59  ;;  %v914_v40 = vld [vmem:[#allocation8 + $0x1368] sm:$0xff]  ;;  %v8268_v15 = vpop.f32.mrf.mxu1  ;;  %v867_v55 = vld [vmem:[#allocation8 + $0x11f0] sm:$0xff] }
 0x510   :  { %8600 = vmatprep.subr.bf16.mxu1 %v18754_v45  ;;  %v1286_v49 = vld [vmem:[#allocation8 + $0x1f08] sm:$0xff]  ;;  %v18298_v37 = vcombine.high %v902_v26, %v914_v40  ;;  %v18297_v47 = vcombine.low %v902_v26, %v914_v40  ;;  %v18252_v40 = vcombine.high %v855_v16, %v867_v55 }
 0x511   :  { %v1298_v18 = vld [vmem:[#allocation8 + $0x1f68] sm:$0xff] }
 0x512   :  { %8558 = vmatpush2.bf16.msra.mxu0 %v18369_v51  ;;  %v18682_v59 = vcombine.high %v1286_v49, %v1298_v18  ;;  %v878_v45 = vld [vmem:[#allocation8 + $0x1248] sm:$0xff]  ;;  %v18681_v51 = vcombine.low %v1286_v49, %v1298_v18  ;;  %v447_v49 = vld [vmem:[#allocation8 + $0x4d0] sm:$0xff] }
 0x513   :  { %8601 = vmatpush2.bf16.msra.mxu1 %v18753_v0  ;;  %8559 = vmatprep.subr.bf16.mxu0 %v18346_v17  ;;  %v890_v25 = vld [vmem:[#allocation8 + $0x12a8] sm:$0xff]  ;;  %v22490_v17 = vpop.f32.mrf.mxu1  ;;  %v459_v18 = vld [vmem:[#allocation8 + $0x530] sm:$0xff] }
 0x514   :  { %8602 = vmatprep.subr.bf16.mxu1 %v18730_v14  ;;  %v1262_v28 = vld [vmem:[#allocation8 + $0x1e48] sm:$0xff]  ;;  %v18274_v0 = vcombine.high %v878_v45, %v890_v25  ;;  %23161 = vst [vmem:[#allocation53_spill] sm:$0xff] %v22490_v17 }
 0x515   :  { %v1274_v12 = vld [vmem:[#allocation8 + $0x1ea8] sm:$0xff]  ;;  %v8272_v26 = vpop.f32.mrf.mxu1 }
 0x516   :  { %8560 = vmatpush2.bf16.msra.mxu0 %v18345_v1  ;;  %v18658_v14 = vcombine.high %v1262_v28, %v1274_v12  ;;  %v18273_v1 = vcombine.low %v878_v45, %v890_v25  ;;  %v18251_v45 = vcombine.low %v855_v16, %v867_v55 }
 0x517   :  { %8603 = vmatpush2.bf16.msra.mxu1 %v18729_v33  ;;  %8561 = vmatprep.subr.bf16.mxu0 %v18322_v50  ;;  %v18657_v33 = vcombine.low %v1262_v28, %v1274_v12  ;;  %v17868_v50 = vcombine.high %v471_v20, %v483_v63  ;;  %v22496_v28 = vpop.f32.mrf.mxu1  ;;  %v17844_v12 = vcombine.high %v447_v49, %v459_v18 }
 0x518   :  { %8604 = vmatprep.subr.bf16.mxu1 %v18706_v21  ;;  %v1510_v21 = vrot.slane %v22448_v11, %v22352_v8  ;;  %v423_v11 = vld [vmem:[#allocation8 + $0x410] sm:$0xff] }
 0x519   :  { %v411_v8 = vld [vmem:[#allocation8 + $0x3b0] sm:$0xff] }
 0x51a   :  { %8562 = vmatpush2.bf16.msra.mxu0 %v18321_v22  ;;  %v17867_v22 = vcombine.low %v471_v20, %v483_v63  ;;  %v8269_v25 = vadd.f32 %v8268_v15, %v1510_v21  ;;  %v819_v20 = vld [vmem:[#allocation8 + $0x1070] sm:$0xff] }
 0x51b   :  { %8605 = vmatpush2.bf16.msra.mxu1 %v18705_v56  ;;  %8563 = vmatprep.subr.bf16.mxu0 %v18298_v37  ;;  %v831_v56 = vld [vmem:[#allocation8 + $0x10d0] sm:$0xff] }
 0x51c   :  { %8606 = vmatprep.subr.bf16.mxu1 %v18682_v59  ;;  %v843_v37 = vld [vmem:[#allocation8 + $0x1130] sm:$0xff]  ;;  %v22494_v59 = vpop.f32.mrf.mxu0 }
 0x51d   :  { %23162 = vst [vmem:[#allocation54_spill] sm:$0xff] %v22494_v59  ;;  %v18227_v16 = vcombine.low %v831_v56, %v843_v37 }
 0x51e   :  { %8564 = vmatpush2.bf16.msra.mxu0 %v18297_v47  ;;  %v435_v47 = vld [vmem:[#allocation8 + $0x470] sm:$0xff] }
 0x51f   :  { %8607 = vmatpush2.bf16.msra.mxu1 %v18681_v51  ;;  %8565 = vmatprep.subr.bf16.mxu0 %v18274_v0  ;;  %v18228_v0 = vcombine.high %v831_v56, %v843_v37  ;;  %v17820_v55 = vcombine.high %v423_v11, %v435_v47  ;;  %v17819_v56 = vcombine.low %v423_v11, %v435_v47 }
 0x520   :  { %8608 = vmatprep.subr.bf16.mxu1 %v18658_v14  ;;  %v807_v14 = vld [vmem:[#allocation8 + $0x1010] sm:$0xff] }
 0x522   :  { %8566 = vmatpush2.bf16.msra.mxu0 %v18273_v1 }
 0x523   :  { %8609 = vmatpush2.bf16.msra.mxu1 %v18657_v33  ;;  %8621 = vmatprep.subr.bf16.mxu0 %v17868_v50  ;;  %v17843_v33 = vcombine.low %v447_v49, %v459_v18  ;;  %v8273_v50 = vadd.f32 %v8272_v26, %v1510_v21  ;;  %v783_v49 = vld [vmem:[#allocation8 + $0xf50] sm:$0xff]  ;;  %v18203_v26 = vcombine.low %v807_v14, %v819_v20 }
 0x524   :  { %8664 = vmatprep.subr.bf16.mxu1 %v18252_v40  ;;  %v795_v18 = vld [vmem:[#allocation8 + $0xfb0] sm:$0xff] }
 0x525   :  { %v8311_v51 = vpop.f32.mrf.mxu0  ;;  %8568 = vmatmul.mubr.bf16.vlgmr.msra.gmra.mxu0 %v22219_v61  ;;  %v18179_v11 = vcombine.low %v783_v49, %v795_v18 }
 0x526   :  { %v8312_v63 = vadd.f32 %v8311_v51, %v8269_v25  ;;  %v8354_v1 = vpop.f32.mrf.mxu1  ;;  %8611 = vmatmul.mubr.bf16.vlgmr.msra.gmra.mxu1 %v22227_v5  ;;  %8622 = vmatpush1.bf16.msra.mxu0 %v17867_v22  ;;  %v18204_v25 = vcombine.high %v807_v14, %v819_v20  ;;  %v399_v51 = vld [vmem:[#allocation8 + $0x350] sm:$0xff] }
 0x527   :  { %8653 = vmatprep.mubr.bf16.mxu0 %v22213_v54  ;;  %8665 = vmatpush1.bf16.msra.mxu1 %v18251_v45  ;;  %v22501_v15 = vpop.f32.mrf.mxu0  ;;  %v17796_v37 = vcombine.high %v399_v51, %v411_v8  ;;  %v351_v20 = vld [vmem:[#allocation8 + $0x1d0] sm:$0xff] }
 0x528   :  { %23163 = vst [vmem:[#allocation55_spill] sm:$0xff] %v22501_v15  ;;  %v22503_v40 = vadd.f32 %v8354_v1, %v8312_v63  ;;  %8696 = vmatprep.mubr.bf16.mxu1 %v22215_v7  ;;  %v22506_v10 = vpop.f32.mrf.mxu1  ;;  %8623 = vmatprep.subr.bf16.mxu0 %v17844_v12  ;;  %v18180_v12 = vcombine.high %v783_v49, %v795_v18  ;;  %v375_v1 = vld [vmem:[#allocation8 + $0x290] sm:$0xff] }
 0x529   :  { %23164 = vst [vmem:[#allocation56_spill] sm:$0xff] %v22506_v10  ;;  %v8315_v22 = vpop.f32.mrf.mxu0  ;;  %8666 = vmatprep.subr.bf16.mxu1 %v18228_v0  ;;  %v387_v10 = vld [vmem:[#allocation8 + $0x2f0] sm:$0xff] }
 0x52a   :  { %v8893_v45 = vmul.f32 0.851, %v22503_v40  ;;  %v8316_v59 = vadd.f32 %v8315_v22, %v8273_v50  ;;  %8624 = vmatpush1.bf16.msra.mxu0 %v17843_v33  ;;  %v8358_v21 = vpop.f32.mrf.mxu1  ;;  %v759_v0 = vld [vmem:[#allocation8 + $0xe90] sm:$0xff]  ;;  %v17795_v50 = vcombine.low %v399_v51, %v411_v8  ;;  %v17772_v47 = vcombine.high %v375_v1, %v387_v10 }
 0x52b   :  { %8667 = vmatpush1.bf16.msra.mxu1 %v18227_v16  ;;  %8625 = vmatprep.subr.bf16.mxu0 %v17820_v55  ;;  %v771_v15 = vld [vmem:[#allocation8 + $0xef0] sm:$0xff]  ;;  %v17771_v55 = vcombine.low %v375_v1, %v387_v10 }
 0x52c   :  { %21757 = vtanh.f32 %v8893_v45  ;;  %v22509_v63 = vadd.f32 %v8358_v21, %v8316_v59  ;;  %8668 = vmatprep.subr.bf16.mxu1 %v18204_v25  ;;  %v18156_v14 = vcombine.high %v759_v0, %v771_v15  ;;  %v363_v59 = vld [vmem:[#allocation8 + $0x230] sm:$0xff]  ;;  %v18155_v25 = vcombine.low %v759_v0, %v771_v15 }
 0x52d   :  { %v735_v33 = vld [vmem:[#allocation8 + $0xdd0] sm:$0xff]  ;;  %v17748_v22 = vcombine.high %v351_v20, %v363_v59 }
 0x52e   :  { %v8917_v35 = vmul.f32 0.851, %v22509_v63  ;;  %8626 = vmatpush1.bf16.msra.mxu0 %v17819_v56  ;;  %v747_v16 = vld [vmem:[#allocation8 + $0xe30] sm:$0xff] }
 0x52f   :  { %8669 = vmatpush1.bf16.msra.mxu1 %v18203_v26  ;;  %8627 = vmatprep.subr.bf16.mxu0 %v17796_v37  ;;  %v18132_v45 = vcombine.high %v735_v33, %v747_v16  ;;  %v327_v8 = vld [vmem:[#allocation8 + $0x110] sm:$0xff]  ;;  %v18131_v18 = vcombine.low %v735_v33, %v747_v16 }
 0x530   :  { %21759 = vtanh.f32 %v8917_v35  ;;  %8670 = vmatprep.subr.bf16.mxu1 %v18180_v12  ;;  %v339_v51 = vld [vmem:[#allocation8 + $0x170] sm:$0xff]  ;;  %v17747_v35 = vcombine.low %v351_v20, %v363_v59 }
 0x531   :  { %v711_v56 = vld [vmem:[#allocation8 + $0xd10] sm:$0xff]  ;;  %v17724_v21 = vcombine.high %v327_v8, %v339_v51 }
 0x532   :  { %8628 = vmatpush1.bf16.msra.mxu0 %v17795_v50  ;;  %v723_v49 = vld [vmem:[#allocation8 + $0xd70] sm:$0xff]  ;;  %v17723_v50 = vcombine.low %v327_v8, %v339_v51 }
 0x533   :  { %8671 = vmatpush1.bf16.msra.mxu1 %v18179_v11  ;;  %8629 = vmatprep.subr.bf16.mxu0 %v17772_v47  ;;  %v18108_v26 = vcombine.high %v711_v56, %v723_v49  ;;  %v303_v37 = vld [vmem:[#allocation8 + $0x50] sm:$0xff]  ;;  %v18107_v11 = vcombine.low %v711_v56, %v723_v49 }
 0x534   :  { %8672 = vmatprep.subr.bf16.mxu1 %v18156_v14  ;;  %v315_v10 = vld [vmem:[#allocation8 + $0xb0] sm:$0xff] }
 0x535   :  { %v687_v1 = vld [vmem:[#allocation8 + $0xc50] sm:$0xff]  ;;  %v17700_v47 = vcombine.high %v303_v37, %v315_v10 }
 0x536   :  { %8630 = vmatpush1.bf16.msra.mxu0 %v17771_v55  ;;  %v699_v15 = vld [vmem:[#allocation8 + $0xcb0] sm:$0xff] }
 0x537   :  { %8673 = vmatpush1.bf16.msra.mxu1 %v18155_v25  ;;  %8631 = vmatprep.subr.bf16.mxu0 %v17748_v22  ;;  %v18084_v14 = vcombine.high %v687_v1, %v699_v15  ;;  %v663_v20 = vld [vmem:[#allocation8 + $0xb90] sm:$0xff] }
 0x538   :  { %8674 = vmatprep.subr.bf16.mxu1 %v18132_v45  ;;  %v675_v59 = vld [vmem:[#allocation8 + $0xbf0] sm:$0xff]  ;;  %v17699_v45 = vcombine.low %v303_v37, %v315_v10 }
 0x539   :  { %v21758_v12 = vpop.eup %21757  ;;  %v1047_v16 = vld [vmem:[#allocation8 + $0x1790] sm:$0xff] }
 0x53a   :  { %v8989_v0 = vadd.f32 1.0, %v21758_v12  ;;  %8632 = vmatpush1.bf16.msra.mxu0 %v17747_v35  ;;  %v1059_v55 = vld [vmem:[#allocation8 + $0x17f0] sm:$0xff]  ;;  %v18083_v12 = vcombine.low %v687_v1, %v699_v15  ;;  %v18060_v35 = vcombine.high %v663_v20, %v675_v59 }
 0x53b   :  { %8675 = vmatpush1.bf16.msra.mxu1 %v18131_v18  ;;  %8633 = vmatprep.subr.bf16.mxu0 %v17724_v21  ;;  %v18444_v51 = vcombine.high %v1047_v16, %v1059_v55  ;;  %v639_v56 = vld [vmem:[#allocation8 + $0xad0] sm:$0xff]  ;;  %v18443_v37 = vcombine.low %v1047_v16, %v1059_v55 }
 0x53c   :  { %8676 = vmatprep.subr.bf16.mxu1 %v18108_v26  ;;  %v9037_v25 = vmul.f32 0.5, %v8989_v0  ;;  %v651_v49 = vld [vmem:[#allocation8 + $0xb30] sm:$0xff]  ;;  %v18059_v0 = vcombine.low %v663_v20, %v675_v59 }
 0x53d   :  { %v21760_v33 = vpop.eup %21759  ;;  %v1023_v18 = vld [vmem:[#allocation8 + $0x16d0] sm:$0xff]  ;;  %v18036_v10 = vcombine.high %v639_v56, %v651_v49 }
 0x53e   :  { %v9013_v22 = vadd.f32 1.0, %v21760_v33  ;;  %8634 = vmatpush1.bf16.msra.mxu0 %v17723_v50  ;;  %v1035_v21 = vld [vmem:[#allocation8 + $0x1730] sm:$0xff]  ;;  %v9085_v26 = vmul.f32 %v9037_v25, %v22503_v40  ;;  %v18035_v33 = vcombine.low %v639_v56, %v651_v49 }
 0x53f   :  { %8677 = vmatpush1.bf16.msra.mxu1 %v18107_v11  ;;  %8635 = vmatprep.subr.bf16.mxu0 %v17700_v47  ;;  %v18420_v1 = vcombine.high %v1023_v18, %v1035_v21  ;;  %v615_v15 = vld [vmem:[#allocation8 + $0xa10] sm:$0xff]  ;;  %v18419_v40 = vcombine.low %v1023_v18, %v1035_v21 }
 0x540   :  { %v9061_v8 = vmul.f32 0.5, %v9013_v22  ;;  %8678 = vmatprep.subr.bf16.mxu1 %v18084_v14  ;;  %v627_v11 = vld [vmem:[#allocation8 + $0xa70] sm:$0xff] }
 0x541   :  { %v999_v47 = vld [vmem:[#allocation8 + $0x1610] sm:$0xff] }
 0x542   :  { %v9109_v17 = vmul.f32 %v9061_v8, %v22509_v63  ;;  %8636 = vmatpush1.bf16.msra.mxu0 %v17699_v45  ;;  %v1011_v14 = vld [vmem:[#allocation8 + $0x1670] sm:$0xff]  ;;  %v18012_v63 = vcombine.high %v615_v15, %v627_v11 }
 0x543   :  { %8679 = vmatpush1.bf16.msra.mxu1 %v18083_v12  ;;  %8637 = vmatprep.subr.bf16.mxu0 %v18060_v35  ;;  %v18396_v20 = vcombine.high %v999_v47, %v1011_v14  ;;  %v591_v59 = vld [vmem:[#allocation8 + $0x950] sm:$0xff]  ;;  %v18395_v22 = vcombine.low %v999_v47, %v1011_v14 }
 0x544   :  { %v22514_v50 = vpack.c.bf16 %v9109_v17, %v9085_v26  ;;  %8680 = vmatprep.subr.bf16.mxu1 %v18444_v51  ;;  %v603_v25 = vld [vmem:[#allocation8 + $0x9b0] sm:$0xff]  ;;  %v18011_v17 = vcombine.low %v615_v15, %v627_v11 }
 0x545   :  { %v975_v16 = vld [vmem:[#allocation8 + $0x1550] sm:$0xff]  ;;  %v17988_v45 = vcombine.high %v591_v59, %v603_v25  ;;  %v17987_v49 = vcombine.low %v591_v59, %v603_v25 }
 0x546   :  { %23165 = vst [vmem:[#allocation57_spill] sm:$0xff] %v22514_v50  ;;  %8638 = vmatpush2.bf16.msra.mxu0 %v18059_v0  ;;  %v987_v55 = vld [vmem:[#allocation8 + $0x15b0] sm:$0xff]  ;;  %v376_v50 = vld [vmem:[#allocation8 + $0x298] sm:$0xff] }
 0x547   :  { %8681 = vmatpush2.bf16.msra.mxu1 %v18443_v37  ;;  %8639 = vmatprep.subr.bf16.mxu0 %v18036_v10  ;;  %v18372_v12 = vcombine.high %v975_v16, %v987_v55  ;;  %v567_v35 = vld [vmem:[#allocation8 + $0x890] sm:$0xff]  ;;  %v18371_v18 = vcombine.low %v975_v16, %v987_v55 }
 0x548   :  { %8682 = vmatprep.subr.bf16.mxu1 %v18420_v1  ;;  %v579_v8 = vld [vmem:[#allocation8 + $0x8f0] sm:$0xff] }
 0x549   :  { %v951_v51 = vld [vmem:[#allocation8 + $0x1490] sm:$0xff]  ;;  %v17964_v21 = vcombine.high %v567_v35, %v579_v8  ;;  %v17963_v15 = vcombine.low %v567_v35, %v579_v8 }
 0x54a   :  { %8640 = vmatpush2.bf16.msra.mxu0 %v18035_v33  ;;  %v963_v56 = vld [vmem:[#allocation8 + $0x14f0] sm:$0xff] }
 0x54b   :  { %8683 = vmatpush2.bf16.msra.mxu1 %v18419_v40  ;;  %8641 = vmatprep.subr.bf16.mxu0 %v18012_v63  ;;  %v18348_v26 = vcombine.high %v951_v51, %v963_v56  ;;  %v543_v0 = vld [vmem:[#allocation8 + $0x7d0] sm:$0xff]  ;;  %v18347_v11 = vcombine.low %v951_v51, %v963_v56 }
 0x54c   :  { %8684 = vmatprep.subr.bf16.mxu1 %v18396_v20  ;;  %v555_v37 = vld [vmem:[#allocation8 + $0x830] sm:$0xff] }
 0x54d   :  { %v927_v10 = vld [vmem:[#allocation8 + $0x13d0] sm:$0xff]  ;;  %v17940_v47 = vcombine.high %v543_v0, %v555_v37  ;;  %v17939_v59 = vcombine.low %v543_v0, %v555_v37 }
 0x54e   :  { %8642 = vmatpush2.bf16.msra.mxu0 %v18011_v17  ;;  %v939_v1 = vld [vmem:[#allocation8 + $0x1430] sm:$0xff] }
 0x54f   :  { %8685 = vmatpush2.bf16.msra.mxu1 %v18395_v22  ;;  %8643 = vmatprep.subr.bf16.mxu0 %v17988_v45  ;;  %v18324_v14 = vcombine.high %v927_v10, %v939_v1  ;;  %v519_v33 = vld [vmem:[#allocation8 + $0x710] sm:$0xff]  ;;  %v18323_v25 = vcombine.low %v927_v10, %v939_v1 }
 0x550   :  { %8686 = vmatprep.subr.bf16.mxu1 %v18372_v12  ;;  %v531_v40 = vld [vmem:[#allocation8 + $0x770] sm:$0xff] }
 0x551   :  { %v903_v63 = vld [vmem:[#allocation8 + $0x1310] sm:$0xff]  ;;  %v17916_v16 = vcombine.high %v519_v33, %v531_v40  ;;  %v17915_v35 = vcombine.low %v519_v33, %v531_v40  ;;  %v448_v40 = vld [vmem:[#allocation8 + $0x4d8] sm:$0xff] }
 0x552   :  { %8644 = vmatpush2.bf16.msra.mxu0 %v17987_v49  ;;  %v915_v20 = vld [vmem:[#allocation8 + $0x1370] sm:$0xff] }
 0x553   :  { %8687 = vmatpush2.bf16.msra.mxu1 %v18371_v18  ;;  %8645 = vmatprep.subr.bf16.mxu0 %v17964_v21  ;;  %v18300_v55 = vcombine.high %v903_v63, %v915_v20  ;;  %v495_v17 = vld [vmem:[#allocation8 + $0x650] sm:$0xff]  ;;  %v18299_v8 = vcombine.low %v903_v63, %v915_v20  ;;  %v472_v21 = vld [vmem:[#allocation8 + $0x598] sm:$0xff]  ;;  %v22520_v20 = vpop.f32.mrf.mxu0 }
 0x554   :  { %8688 = vmatprep.subr.bf16.mxu1 %v18348_v26  ;;  %v507_v22 = vld [vmem:[#allocation8 + $0x6b0] sm:$0xff]  ;;  %v484_v26 = vld [vmem:[#allocation8 + $0x5f8] sm:$0xff] }
 0x555   :  { %v879_v45 = vld [vmem:[#allocation8 + $0x1250] sm:$0xff]  ;;  %v17892_v51 = vcombine.high %v495_v17, %v507_v22  ;;  %v17891_v0 = vcombine.low %v495_v17, %v507_v22  ;;  %v460_v63 = vld [vmem:[#allocation8 + $0x538] sm:$0xff] }
 0x556   :  { %8646 = vmatpush2.bf16.msra.mxu0 %v17963_v15  ;;  %v891_v12 = vld [vmem:[#allocation8 + $0x12b0] sm:$0xff]  ;;  %v17870_v15 = vcombine.high %v472_v21, %v484_v26 }
 0x557   :  { %8689 = vmatpush2.bf16.msra.mxu1 %v18347_v11  ;;  %8647 = vmatprep.subr.bf16.mxu0 %v17940_v47  ;;  %v18276_v56 = vcombine.high %v879_v45, %v891_v12  ;;  %v1239_v49 = vld [vmem:[#allocation8 + $0x1d90] sm:$0xff]  ;;  %v18275_v37 = vcombine.low %v879_v45, %v891_v12  ;;  %v17846_v45 = vcombine.high %v448_v40, %v460_v63  ;;  %v424_v12 = vld [vmem:[#allocation8 + $0x418] sm:$0xff] }
 0x558   :  { %8690 = vmatprep.subr.bf16.mxu1 %v18324_v14  ;;  %v1251_v18 = vld [vmem:[#allocation8 + $0x1df0] sm:$0xff] }
 0x559   :  { %v22516_v10 = vld [vmem:[#allocation10 + $0x10] sm:$0xff]  ;;  %v18636_v1 = vcombine.high %v1239_v49, %v1251_v18  ;;  %v18635_v33 = vcombine.low %v1239_v49, %v1251_v18  ;;  %v17845_v18 = vcombine.low %v448_v40, %v460_v63 }
 0x55a   :  { %8648 = vmatpush2.bf16.msra.mxu0 %v17939_v59  ;;  %v1215_v11 = vld [vmem:[#allocation8 + $0x1cd0] sm:$0xff]  ;;  %v1518_v14 = vrot.slane %v22516_v10, %v22178_v43  ;;  %v17869_v59 = vcombine.low %v472_v21, %v484_v26 }
 0x55b   :  { %8691 = vmatpush2.bf16.msra.mxu1 %v18323_v25  ;;  %8649 = vmatprep.subr.bf16.mxu0 %v17916_v16  ;;  %v1227_v47 = vld [vmem:[#allocation8 + $0x1d30] sm:$0xff]  ;;  %v22522_v25 = vpop.f32.mrf.mxu1 }
 0x55c   :  { %8692 = vmatprep.subr.bf16.mxu1 %v18300_v55  ;;  %v18612_v16 = vcombine.high %v1215_v11, %v1227_v47  ;;  %v1191_v55 = vld [vmem:[#allocation8 + $0x1c10] sm:$0xff] }
 0x55d   :  { %v1203_v17 = vld [vmem:[#allocation8 + $0x1c70] sm:$0xff] }
 0x55e   :  { %8650 = vmatpush2.bf16.msra.mxu0 %v17915_v35  ;;  %v436_v35 = vld [vmem:[#allocation8 + $0x478] sm:$0xff]  ;;  %v18588_v21 = vcombine.high %v1191_v55, %v1203_v17 }
 0x55f   :  { %8693 = vmatpush2.bf16.msra.mxu1 %v18299_v8  ;;  %8651 = vmatprep.subr.bf16.mxu0 %v17892_v51  ;;  %v17821_v40 = vcombine.low %v424_v12, %v436_v35 }
 0x560   :  { %8694 = vmatprep.subr.bf16.mxu1 %v18276_v56  ;;  %v18611_v56 = vcombine.low %v1215_v11, %v1227_v47  ;;  %v400_v11 = vld [vmem:[#allocation8 + $0x358] sm:$0xff] }
 0x561   :  { %v412_v47 = vld [vmem:[#allocation8 + $0x3b8] sm:$0xff] }
 0x562   :  { %8652 = vmatpush2.bf16.msra.mxu0 %v17891_v0 }
 0x563   :  { %8695 = vmatpush2.bf16.msra.mxu1 %v18275_v37  ;;  %8707 = vmatprep.subr.bf16.mxu0 %v18636_v1  ;;  %v17822_v37 = vcombine.high %v424_v12, %v436_v35  ;;  %v1167_v1 = vld [vmem:[#allocation8 + $0x1b50] sm:$0xff]  ;;  %v352_v12 = vld [vmem:[#allocation8 + $0x1d8] sm:$0xff] }
 0x564   :  { %8750 = vmatprep.subr.bf16.mxu1 %v17870_v15  ;;  %v1179_v15 = vld [vmem:[#allocation8 + $0x1bb0] sm:$0xff]  ;;  %v364_v35 = vld [vmem:[#allocation8 + $0x238] sm:$0xff] }
 0x565   :  { %v8397_v22 = vpop.f32.mrf.mxu0  ;;  %8654 = vmatmul.mubr.bf16.vlgmr.msra.gmra.mxu0 %v22217_v60  ;;  %v18564_v63 = vcombine.high %v1167_v1, %v1179_v15 }
 0x566   :  { %v8398_v8 = vadd.f32 %v8397_v22, %v1518_v14  ;;  %v8440_v51 = vpop.f32.mrf.mxu1  ;;  %8697 = vmatmul.mubr.bf16.vlgmr.msra.gmra.mxu1 %v22219_v61  ;;  %8708 = vmatpush1.bf16.msra.mxu0 %v18635_v33 }
 0x567   :  { %8739 = vmatprep.mubr.bf16.mxu0 %v22225_v4  ;;  %8751 = vmatpush1.bf16.msra.mxu1 %v17869_v59  ;;  %v22527_v49 = vpop.f32.mrf.mxu0  ;;  %v18587_v59 = vcombine.low %v1191_v55, %v1203_v17  ;;  %v1119_v17 = vld [vmem:[#allocation8 + $0x19d0] sm:$0xff] }
 0x568   :  { %23166 = vst [vmem:[#allocation58_spill] sm:$0xff] %v22527_v49  ;;  %v22529_v26 = vadd.f32 %v8440_v51, %v8398_v8  ;;  %8782 = vmatprep.mubr.bf16.mxu1 %v22213_v54  ;;  %v22532_v0 = vpop.f32.mrf.mxu1  ;;  %8709 = vmatprep.subr.bf16.mxu0 %v18612_v16  ;;  %v17798_v54 = vcombine.high %v400_v11, %v412_v47  ;;  %v1143_v16 = vld [vmem:[#allocation8 + $0x1a90] sm:$0xff] }
 0x569   :  { %23167 = vst [vmem:[#allocation59_spill] sm:$0xff] %v22532_v0  ;;  %v8401_v22 = vpop.f32.mrf.mxu0  ;;  %8752 = vmatprep.subr.bf16.mxu1 %v17846_v45  ;;  %v1155_v51 = vld [vmem:[#allocation8 + $0x1af0] sm:$0xff]  ;;  %v388_v0 = vld [vmem:[#allocation8 + $0x2f8] sm:$0xff]  ;;  %v18563_v45 = vcombine.low %v1167_v1, %v1179_v15 }
 0x56a   :  { %v8402_v33 = vadd.f32 %v8401_v22, %v1518_v14  ;;  %8710 = vmatpush1.bf16.msra.mxu0 %v18611_v56  ;;  %v8444_v43 = vpop.f32.mrf.mxu1  ;;  %v17797_v14 = vcombine.low %v400_v11, %v412_v47  ;;  %v18540_v56 = vcombine.high %v1143_v16, %v1155_v51  ;;  %v17774_v55 = vcombine.high %v376_v50, %v388_v0  ;;  %v1107_v1 = vld [vmem:[#allocation8 + $0x1970] sm:$0xff]  ;;  %v328_v15 = vld [vmem:[#allocation8 + $0x118] sm:$0xff] }
 0x56b   :  { %8753 = vmatpush1.bf16.msra.mxu1 %v17845_v18  ;;  %8711 = vmatprep.subr.bf16.mxu0 %v18588_v21  ;;  %v1131_v18 = vld [vmem:[#allocation8 + $0x1a30] sm:$0xff]  ;;  %v17773_v21 = vcombine.low %v376_v50, %v388_v0  ;;  %v17750_v22 = vcombine.high %v352_v12, %v364_v35  ;;  %v17749_v47 = vcombine.low %v352_v12, %v364_v35 }
 0x56c   :  { %v22534_v8 = vadd.f32 %v8444_v43, %v8402_v33  ;;  %8754 = vmatprep.subr.bf16.mxu1 %v17822_v37  ;;  %v18539_v43 = vcombine.low %v1143_v16, %v1155_v51  ;;  %v18516_v37 = vcombine.high %v1119_v17, %v1131_v18  ;;  %v1095_v33 = vld [vmem:[#allocation8 + $0x1910] sm:$0xff]  ;;  %v18515_v11 = vcombine.low %v1119_v17, %v1131_v18  ;;  %v304_v51 = vld [vmem:[#allocation8 + $0x58] sm:$0xff] }
 0x56d   :  { %v1083_v16 = vld [vmem:[#allocation8 + $0x18b0] sm:$0xff]  ;;  %v18491_v50 = vcombine.low %v1095_v33, %v1107_v1  ;;  %v664_v18 = vld [vmem:[#allocation8 + $0xb98] sm:$0xff] }
 0x56e   :  { %8712 = vmatpush1.bf16.msra.mxu0 %v18587_v59  ;;  %v340_v59 = vld [vmem:[#allocation8 + $0x178] sm:$0xff]  ;;  %v1443_v17 = vld [vmem:[#allocation8 + $0x23f0] sm:$0xff] }
 0x56f   :  { %8755 = vmatpush1.bf16.msra.mxu1 %v17821_v40  ;;  %8713 = vmatprep.subr.bf16.mxu0 %v18564_v63  ;;  %v18492_v40 = vcombine.high %v1095_v33, %v1107_v1  ;;  %v17726_v63 = vcombine.high %v328_v15, %v340_v59  ;;  %v17725_v0 = vcombine.low %v328_v15, %v340_v59  ;;  %v1419_v33 = vld [vmem:[#allocation8 + $0x2330] sm:$0xff]  ;;  %v640_v1 = vld [vmem:[#allocation8 + $0xad8] sm:$0xff] }
 0x570   :  { %8756 = vmatprep.subr.bf16.mxu1 %v17798_v54  ;;  %v1071_v54 = vld [vmem:[#allocation8 + $0x1850] sm:$0xff] }
 0x571   :  { %v18467_v12 = vcombine.low %v1071_v54, %v1083_v16 }
 0x572   :  { %8714 = vmatpush1.bf16.msra.mxu0 %v18563_v45  ;;  %v316_v45 = vld [vmem:[#allocation8 + $0xb8] sm:$0xff] }
 0x573   :  { %8757 = vmatpush1.bf16.msra.mxu1 %v17797_v14  ;;  %8715 = vmatprep.subr.bf16.mxu0 %v18540_v56  ;;  %v18468_v14 = vcombine.high %v1071_v54, %v1083_v16  ;;  %v17702_v56 = vcombine.high %v304_v51, %v316_v45  ;;  %v17701_v35 = vcombine.low %v304_v51, %v316_v45  ;;  %v1395_v54 = vld [vmem:[#allocation8 + $0x2270] sm:$0xff]  ;;  %v616_v16 = vld [vmem:[#allocation8 + $0xa18] sm:$0xff] }
 0x574   :  { %8758 = vmatprep.subr.bf16.mxu1 %v17774_v55  ;;  %v1431_v55 = vld [vmem:[#allocation8 + $0x2390] sm:$0xff] }
 0x575   :  { %v18827_v15 = vcombine.low %v1431_v55, %v1443_v17 }
 0x576   :  { %8716 = vmatpush1.bf16.msra.mxu0 %v18539_v43  ;;  %v676_v43 = vld [vmem:[#allocation8 + $0xbf8] sm:$0xff] }
 0x577   :  { %8759 = vmatpush1.bf16.msra.mxu1 %v17773_v21  ;;  %8717 = vmatprep.subr.bf16.mxu0 %v18516_v37  ;;  %v18828_v21 = vcombine.high %v1431_v55, %v1443_v17  ;;  %v18062_v37 = vcombine.high %v664_v18, %v676_v43  ;;  %v18061_v59 = vcombine.low %v664_v18, %v676_v43  ;;  %v1371_v55 = vld [vmem:[#allocation8 + $0x21b0] sm:$0xff]  ;;  %v592_v17 = vld [vmem:[#allocation8 + $0x958] sm:$0xff] }
 0x578   :  { %8760 = vmatprep.subr.bf16.mxu1 %v17750_v22  ;;  %v1407_v22 = vld [vmem:[#allocation8 + $0x22d0] sm:$0xff] }
 0x579   :  { %v18803_v51 = vcombine.low %v1407_v22, %v1419_v33 }
 0x57a   :  { %8718 = vmatpush1.bf16.msra.mxu0 %v18515_v11  ;;  %v652_v11 = vld [vmem:[#allocation8 + $0xb38] sm:$0xff] }
 0x57b   :  { %8761 = vmatpush1.bf16.msra.mxu1 %v17749_v47  ;;  %8719 = vmatprep.subr.bf16.mxu0 %v18492_v40  ;;  %v18804_v47 = vcombine.high %v1407_v22, %v1419_v33  ;;  %v18038_v40 = vcombine.high %v640_v1, %v652_v11  ;;  %v18037_v45 = vcombine.low %v640_v1, %v652_v11  ;;  %v1347_v22 = vld [vmem:[#allocation8 + $0x20f0] sm:$0xff]  ;;  %v568_v33 = vld [vmem:[#allocation8 + $0x898] sm:$0xff] }
 0x57c   :  { %8762 = vmatprep.subr.bf16.mxu1 %v17726_v63  ;;  %v1383_v63 = vld [vmem:[#allocation8 + $0x2210] sm:$0xff] }
 0x57d   :  { %v18779_v18 = vcombine.low %v1383_v63, %v1395_v54 }
 0x57e   :  { %8720 = vmatpush1.bf16.msra.mxu0 %v18491_v50  ;;  %v628_v50 = vld [vmem:[#allocation8 + $0xa78] sm:$0xff] }
 0x57f   :  { %8763 = vmatpush1.bf16.msra.mxu1 %v17725_v0  ;;  %8721 = vmatprep.subr.bf16.mxu0 %v18468_v14  ;;  %v18780_v0 = vcombine.high %v1383_v63, %v1395_v54  ;;  %v18014_v14 = vcombine.high %v616_v16, %v628_v50  ;;  %v18013_v43 = vcombine.low %v616_v16, %v628_v50  ;;  %v1323_v63 = vld [vmem:[#allocation8 + $0x2030] sm:$0xff]  ;;  %v544_v54 = vld [vmem:[#allocation8 + $0x7d8] sm:$0xff] }
 0x580   :  { %8764 = vmatprep.subr.bf16.mxu1 %v17702_v56  ;;  %v1359_v56 = vld [vmem:[#allocation8 + $0x2150] sm:$0xff] }
 0x581   :  { %v18755_v1 = vcombine.low %v1359_v56, %v1371_v55 }
 0x582   :  { %8722 = vmatpush1.bf16.msra.mxu0 %v18467_v12  ;;  %v604_v12 = vld [vmem:[#allocation8 + $0x9b8] sm:$0xff] }
 0x583   :  { %8765 = vmatpush1.bf16.msra.mxu1 %v17701_v35  ;;  %8723 = vmatprep.subr.bf16.mxu0 %v18828_v21  ;;  %v18756_v35 = vcombine.high %v1359_v56, %v1371_v55  ;;  %v17990_v21 = vcombine.high %v592_v17, %v604_v12  ;;  %v17989_v11 = vcombine.low %v592_v17, %v604_v12  ;;  %v1299_v56 = vld [vmem:[#allocation8 + $0x1f70] sm:$0xff]  ;;  %v520_v55 = vld [vmem:[#allocation8 + $0x718] sm:$0xff] }
 0x584   :  { %8766 = vmatprep.subr.bf16.mxu1 %v18062_v37  ;;  %v1335_v37 = vld [vmem:[#allocation8 + $0x2090] sm:$0xff] }
 0x585   :  { %v18731_v16 = vcombine.low %v1335_v37, %v1347_v22 }
 0x586   :  { %8724 = vmatpush2.bf16.msra.mxu0 %v18827_v15  ;;  %v580_v15 = vld [vmem:[#allocation8 + $0x8f8] sm:$0xff] }
 0x587   :  { %8767 = vmatpush2.bf16.msra.mxu1 %v18061_v59  ;;  %8725 = vmatprep.subr.bf16.mxu0 %v18804_v47  ;;  %v18732_v59 = vcombine.high %v1335_v37, %v1347_v22  ;;  %v17966_v47 = vcombine.high %v568_v33, %v580_v15  ;;  %v17965_v50 = vcombine.low %v568_v33, %v580_v15  ;;  %v1275_v37 = vld [vmem:[#allocation8 + $0x1eb0] sm:$0xff]  ;;  %v496_v22 = vld [vmem:[#allocation8 + $0x658] sm:$0xff] }
 0x588   :  { %8768 = vmatprep.subr.bf16.mxu1 %v18038_v40  ;;  %v1311_v40 = vld [vmem:[#allocation8 + $0x1fd0] sm:$0xff] }
 0x589   :  { %v18707_v17 = vcombine.low %v1311_v40, %v1323_v63 }
 0x58a   :  { %8726 = vmatpush2.bf16.msra.mxu0 %v18803_v51  ;;  %v556_v51 = vld [vmem:[#allocation8 + $0x838] sm:$0xff] }
 0x58b   :  { %8769 = vmatpush2.bf16.msra.mxu1 %v18037_v45  ;;  %8727 = vmatprep.subr.bf16.mxu0 %v18780_v0  ;;  %v18708_v45 = vcombine.high %v1311_v40, %v1323_v63  ;;  %v17942_v0 = vcombine.high %v544_v54, %v556_v51  ;;  %v17941_v12 = vcombine.low %v544_v54, %v556_v51  ;;  %v868_v40 = vld [vmem:[#allocation8 + $0x11f8] sm:$0xff] }
 0x58c   :  { %8770 = vmatprep.subr.bf16.mxu1 %v18014_v14  ;;  %v1287_v14 = vld [vmem:[#allocation8 + $0x1f10] sm:$0xff]  ;;  %v1240_v63 = vld [vmem:[#allocation8 + $0x1d98] sm:$0xff] }
 0x58d   :  { %v18683_v33 = vcombine.low %v1287_v14, %v1299_v56 }
 0x58e   :  { %8728 = vmatpush2.bf16.msra.mxu0 %v18779_v18  ;;  %v532_v18 = vld [vmem:[#allocation8 + $0x778] sm:$0xff] }
 0x58f   :  { %8771 = vmatpush2.bf16.msra.mxu1 %v18013_v43  ;;  %8729 = vmatprep.subr.bf16.mxu0 %v18756_v35  ;;  %v18684_v43 = vcombine.high %v1287_v14, %v1299_v56  ;;  %v17918_v35 = vcombine.high %v520_v55, %v532_v18  ;;  %v17917_v15 = vcombine.low %v520_v55, %v532_v18  ;;  %v844_v14 = vld [vmem:[#allocation8 + $0x1138] sm:$0xff] }
 0x590   :  { %8772 = vmatprep.subr.bf16.mxu1 %v17990_v21  ;;  %v1263_v21 = vld [vmem:[#allocation8 + $0x1e50] sm:$0xff]  ;;  %v1216_v55 = vld [vmem:[#allocation8 + $0x1cd8] sm:$0xff] }
 0x591   :  { %v18659_v54 = vcombine.low %v1263_v21, %v1275_v37  ;;  %v1228_v18 = vld [vmem:[#allocation8 + $0x1d38] sm:$0xff] }
 0x592   :  { %8730 = vmatpush2.bf16.msra.mxu0 %v18755_v1  ;;  %v508_v1 = vld [vmem:[#allocation8 + $0x6b8] sm:$0xff] }
 0x593   :  { %8773 = vmatpush2.bf16.msra.mxu1 %v17989_v11  ;;  %8731 = vmatprep.subr.bf16.mxu0 %v18732_v59  ;;  %v18660_v11 = vcombine.high %v1263_v21, %v1275_v37  ;;  %v17894_v59 = vcombine.high %v496_v22, %v508_v1  ;;  %v17893_v51 = vcombine.low %v496_v22, %v508_v1  ;;  %v820_v21 = vld [vmem:[#allocation8 + $0x1078] sm:$0xff] }
 0x594   :  { %8774 = vmatprep.subr.bf16.mxu1 %v17966_v47  ;;  %v856_v47 = vld [vmem:[#allocation8 + $0x1198] sm:$0xff]  ;;  %v18614_v22 = vcombine.high %v1216_v55, %v1228_v18 }
 0x595   :  { %v18253_v56 = vcombine.low %v856_v47, %v868_v40  ;;  %v1192_v1 = vld [vmem:[#allocation8 + $0x1c18] sm:$0xff] }
 0x596   :  { %8732 = vmatpush2.bf16.msra.mxu0 %v18731_v16  ;;  %v1252_v16 = vld [vmem:[#allocation8 + $0x1df8] sm:$0xff] }
 0x597   :  { %8775 = vmatpush2.bf16.msra.mxu1 %v17965_v50  ;;  %8733 = vmatprep.subr.bf16.mxu0 %v18708_v45  ;;  %v18254_v50 = vcombine.high %v856_v47, %v868_v40  ;;  %v18638_v45 = vcombine.high %v1240_v63, %v1252_v16  ;;  %v18613_v47 = vcombine.low %v1216_v55, %v1228_v18  ;;  %v760_v55 = vld [vmem:[#allocation8 + $0xe98] sm:$0xff] }
 0x598   :  { %8776 = vmatprep.subr.bf16.mxu1 %v17942_v0  ;;  %v832_v0 = vld [vmem:[#allocation8 + $0x10d8] sm:$0xff] }
 0x599   :  { %v772_v18 = vld [vmem:[#allocation8 + $0xef8] sm:$0xff] }
 0x59a   :  { %8734 = vmatpush2.bf16.msra.mxu0 %v18707_v17  ;;  %v22536_v17 = vpop.f32.mrf.mxu0 }
 0x59b   :  { %8777 = vmatpush2.bf16.msra.mxu1 %v17941_v12  ;;  %8735 = vmatprep.subr.bf16.mxu0 %v18684_v43  ;;  %23168 = vst [vmem:[#allocation60_spill] sm:$0xff] %v22536_v17  ;;  %v18637_v12 = vcombine.low %v1240_v63, %v1252_v16  ;;  %v18230_v43 = vcombine.high %v832_v0, %v844_v14  ;;  %v1432_v17 = vld [vmem:[#allocation8 + $0x2398] sm:$0xff] }
 0x59c   :  { %8778 = vmatprep.subr.bf16.mxu1 %v17918_v35  ;;  %v808_v35 = vld [vmem:[#allocation8 + $0x1018] sm:$0xff] }
 0x59d   :  { %v18206_v40 = vcombine.high %v808_v35, %v820_v21 }
 0x59e   :  { %8736 = vmatpush2.bf16.msra.mxu0 %v18683_v33  ;;  %v1204_v33 = vld [vmem:[#allocation8 + $0x1c78] sm:$0xff] }
 0x59f   :  { %8779 = vmatpush2.bf16.msra.mxu1 %v17917_v15  ;;  %8737 = vmatprep.subr.bf16.mxu0 %v18660_v11  ;;  %v18229_v11 = vcombine.low %v832_v0, %v844_v14  ;;  %v18590_v16 = vcombine.high %v1192_v1, %v1204_v33  ;;  %v18589_v0 = vcombine.low %v1192_v1, %v1204_v33  ;;  %v748_v1 = vld [vmem:[#allocation8 + $0xe38] sm:$0xff] }
 0x5a0   :  { %8780 = vmatprep.subr.bf16.mxu1 %v17894_v59  ;;  %v1120_v33 = vld [vmem:[#allocation8 + $0x19d8] sm:$0xff] }
 0x5a2   :  { %8738 = vmatpush2.bf16.msra.mxu0 %v18659_v54  ;;  %v784_v54 = vld [vmem:[#allocation8 + $0xf58] sm:$0xff] }
 0x5a3   :  { %8781 = vmatpush2.bf16.msra.mxu1 %v17893_v51  ;;  %8793 = vmatprep.subr.bf16.mxu0 %v18254_v50  ;;  %v1180_v50 = vld [vmem:[#allocation8 + $0x1bb8] sm:$0xff] }
 0x5a4   :  { %8836 = vmatprep.subr.bf16.mxu1 %v18638_v45  ;;  %v18205_v45 = vcombine.low %v808_v35, %v820_v21  ;;  %v736_v21 = vld [vmem:[#allocation8 + $0xdd8] sm:$0xff] }
 0x5a5   :  { %v8483_v37 = vpop.f32.mrf.mxu0  ;;  %8740 = vmatmul.mubr.bf16.vlgmr.msra.gmra.mxu0 %v22227_v5 }
 0x5a6   :  { %v22540_v15 = vadd.f32 %v8483_v37, %v22529_v26  ;;  %8783 = vmatmul.mubr.bf16.vlgmr.msra.gmra.mxu1 %v22217_v60  ;;  %8794 = vmatpush1.bf16.msra.mxu0 %v18253_v56  ;;  %v796_v26 = vld [vmem:[#allocation8 + $0xfb8] sm:$0xff] }
 0x5a7   :  { %8825 = vmatprep.mubr.bf16.mxu0 %v22215_v7  ;;  %8837 = vmatpush1.bf16.msra.mxu1 %v18637_v12  ;;  %v22544_v59 = vpop.f32.mrf.mxu0  ;;  %v1168_v60 = vld [vmem:[#allocation8 + $0x1b58] sm:$0xff]  ;;  %v18182_v14 = vcombine.high %v784_v54, %v796_v26  ;;  %v18181_v37 = vcombine.low %v784_v54, %v796_v26 }
 0x5a8   :  { %23169 = vst [vmem:[#allocation61_spill] sm:$0xff] %v22544_v59  ;;  %v8895_v63 = vmul.f32 0.851, %v22540_v15  ;;  %8868 = vmatprep.mubr.bf16.mxu1 %v22225_v4  ;;  %8795 = vmatprep.subr.bf16.mxu0 %v18230_v43  ;;  %v18566_v56 = vcombine.high %v1168_v60, %v1180_v50  ;;  %v1144_v12 = vld [vmem:[#allocation8 + $0x1a98] sm:$0xff] }
 0x5a9   :  { %v8487_v51 = vpop.f32.mrf.mxu0  ;;  %8838 = vmatprep.subr.bf16.mxu1 %v18614_v22  ;;  %v1156_v43 = vld [vmem:[#allocation8 + $0x1af8] sm:$0xff]  ;;  %v18158_v22 = vcombine.high %v760_v55, %v772_v18 }
 0x5aa   :  { %21761 = vtanh.f32 %v8895_v63  ;;  %v22549_v7 = vadd.f32 %v8487_v51, %v22534_v8  ;;  %8796 = vmatpush1.bf16.msra.mxu0 %v18229_v11  ;;  %v18565_v8 = vcombine.low %v1168_v60, %v1180_v50  ;;  %v18542_v35 = vcombine.high %v1144_v12, %v1156_v43  ;;  %v1132_v11 = vld [vmem:[#allocation8 + $0x1a38] sm:$0xff] }
 0x5ab   :  { %8839 = vmatpush1.bf16.msra.mxu1 %v18613_v47  ;;  %8797 = vmatprep.subr.bf16.mxu0 %v18206_v40  ;;  %v18157_v47 = vcombine.low %v760_v55, %v772_v18  ;;  %v18541_v40 = vcombine.low %v1144_v12, %v1156_v43  ;;  %v18134_v63 = vcombine.high %v736_v21, %v748_v1  ;;  %v712_v51 = vld [vmem:[#allocation8 + $0xd18] sm:$0xff]  ;;  %v22552_v12 = vld [vmem:[#allocation10] sm:$0xff] }
 0x5ac   :  { %v8919_v4 = vmul.f32 0.851, %v22549_v7  ;;  %8840 = vmatprep.subr.bf16.mxu1 %v18590_v16  ;;  %v18518_v16 = vcombine.high %v1120_v33, %v1132_v11  ;;  %v724_v54 = vld [vmem:[#allocation8 + $0xd78] sm:$0xff]  ;;  %v18133_v60 = vcombine.low %v736_v21, %v748_v1  ;;  %v1458_v43 = vrot.slane %v22552_v12, %v22172_v39 }
 0x5ad   :  { %v1096_v26 = vld [vmem:[#allocation8 + $0x1918] sm:$0xff] }
 0x5ae   :  { %21763 = vtanh.f32 %v8919_v4  ;;  %8798 = vmatpush1.bf16.msra.mxu0 %v18205_v45  ;;  %v1108_v45 = vld [vmem:[#allocation8 + $0x1978] sm:$0xff]  ;;  %v7372_v1 = vadd.f32 %v22261_v13, %v1458_v43  ;;  %v7368_v49 = vadd.f32 %v22252_v32, %v1458_v43 }
 0x5af   :  { %8841 = vmatpush1.bf16.msra.mxu1 %v18589_v0  ;;  %8799 = vmatprep.subr.bf16.mxu0 %v18182_v14  ;;  %v18517_v0 = vcombine.low %v1120_v33, %v1132_v11  ;;  %v18110_v14 = vcombine.high %v712_v51, %v724_v54  ;;  %v688_v55 = vld [vmem:[#allocation8 + $0xc58] sm:$0xff]  ;;  %v18493_v33 = vcombine.low %v1096_v26, %v1108_v45 }
 0x5b0   :  { %8842 = vmatprep.subr.bf16.mxu1 %v18566_v56  ;;  %v18494_v56 = vcombine.high %v1096_v26, %v1108_v45  ;;  %v700_v18 = vld [vmem:[#allocation8 + $0xcb8] sm:$0xff]  ;;  %v7415_v45 = vadd.f32 %v22281_v6, %v7372_v1 }
 0x5b1   :  { %v18086_v11 = vcombine.high %v688_v55, %v700_v18  ;;  %v1060_v59 = vld [vmem:[#allocation8 + $0x17f8] sm:$0xff]  ;;  %v18085_v26 = vcombine.low %v688_v55, %v700_v18 }
 0x5b2   :  { %8800 = vmatpush1.bf16.msra.mxu0 %v18181_v37  ;;  %v1072_v37 = vld [vmem:[#allocation8 + $0x1858] sm:$0xff]  ;;  %v22569_v55 = vadd.f32 %v22287_v31, %v7415_v45 }
 0x5b3   :  { %8843 = vmatpush1.bf16.msra.mxu1 %v18565_v8  ;;  %8801 = vmatprep.subr.bf16.mxu0 %v18158_v22  ;;  %v1084_v8 = vld [vmem:[#allocation8 + $0x18b8] sm:$0xff]  ;;  %v1466_v22 = vrot.slane %v22552_v12, %v22175_v41 }
 0x5b4   :  { %8844 = vmatprep.subr.bf16.mxu1 %v18542_v35  ;;  %v18109_v35 = vcombine.low %v712_v51, %v724_v54  ;;  %v1036_v43 = vld [vmem:[#allocation8 + $0x1738] sm:$0xff] }
 0x5b5   :  { %v7497_v51 = vadd.f32 %v22283_v24, %v1466_v22  ;;  %v1024_v24 = vld [vmem:[#allocation8 + $0x16d8] sm:$0xff] }
 0x5b6   :  { %8802 = vmatpush1.bf16.msra.mxu0 %v18157_v47  ;;  %v7501_v47 = vadd.f32 %v22289_v42, %v1466_v22  ;;  %v18469_v42 = vcombine.low %v1072_v37, %v1084_v8  ;;  %v1408_v6 = vld [vmem:[#allocation8 + $0x22d8] sm:$0xff]  ;;  %v18422_v22 = vcombine.high %v1024_v24, %v1036_v43 }
 0x5b7   :  { %v21762_v50 = vpop.eup %21761  ;;  %8845 = vmatpush1.bf16.msra.mxu1 %v18541_v40  ;;  %8803 = vmatprep.subr.bf16.mxu0 %v18134_v63  ;;  %v1420_v18 = vld [vmem:[#allocation8 + $0x2338] sm:$0xff] }
 0x5b8   :  { %v8991_v4 = vadd.f32 1.0, %v21762_v50  ;;  %8846 = vmatprep.subr.bf16.mxu1 %v18518_v16  ;;  %v18470_v16 = vcombine.high %v1072_v37, %v1084_v8  ;;  %v1048_v50 = vld [vmem:[#allocation8 + $0x1798] sm:$0xff]  ;;  %v7544_v13 = vadd.f32 %v22313_v19, %v7501_v47  ;;  %v7411_v19 = vadd.f32 %v22254_v34, %v7368_v49 }
 0x5b9   :  { %v18806_v31 = vcombine.high %v1408_v6, %v1420_v18  ;;  %v1000_v49 = vld [vmem:[#allocation8 + $0x1618] sm:$0xff] }
 0x5ba   :  { %8804 = vmatpush1.bf16.msra.mxu0 %v18133_v60  ;;  %v9039_v40 = vmul.f32 0.5, %v8991_v4  ;;  %v1444_v60 = vld [vmem:[#allocation8 + $0x23f8] sm:$0xff]  ;;  %v22572_v37 = vadd.f32 %v22315_v27, %v7544_v13  ;;  %v8904_v27 = vmul.f32 0.851, %v22569_v55 }
 0x5bb   :  { %v21764_v21 = vpop.eup %21763  ;;  %8847 = vmatpush1.bf16.msra.mxu1 %v18517_v0  ;;  %8805 = vmatprep.subr.bf16.mxu0 %v18110_v14  ;;  %v18446_v0 = vcombine.high %v1048_v50, %v1060_v59  ;;  %v7540_v14 = vadd.f32 %v22294_v2, %v7497_v51  ;;  %v18445_v2 = vcombine.low %v1048_v50, %v1060_v59  ;;  %v1396_v1 = vld [vmem:[#allocation8 + $0x2278] sm:$0xff] }
 0x5bc   :  { %v9015_v63 = vadd.f32 1.0, %v21764_v21  ;;  %8848 = vmatprep.subr.bf16.mxu1 %v18494_v56  ;;  %v9087_v4 = vmul.f32 %v9039_v40, %v22540_v15  ;;  %v18830_v56 = vcombine.high %v1432_v17, %v1444_v60  ;;  %v22577_v15 = vadd.f32 %v22269_v30, %v7411_v19  ;;  %v1384_v21 = vld [vmem:[#allocation8 + $0x2218] sm:$0xff] }
 0x5bd   :  { %v22580_v34 = vadd.f32 %v22299_v9, %v7540_v14  ;;  %v8906_v59 = vmul.f32 0.851, %v22572_v37  ;;  %v18421_v30 = vcombine.low %v1024_v24, %v1036_v43  ;;  %v18782_v47 = vcombine.high %v1384_v21, %v1396_v1  ;;  %v976_v40 = vld [vmem:[#allocation8 + $0x1558] sm:$0xff] }
 0x5be   :  { %v9063_v54 = vmul.f32 0.5, %v9015_v63  ;;  %8806 = vmatpush1.bf16.msra.mxu0 %v18109_v35  ;;  %v1012_v35 = vld [vmem:[#allocation8 + $0x1678] sm:$0xff]  ;;  %21765 = vtanh.f32 %v8904_v27  ;;  %v18781_v51 = vcombine.low %v1384_v21, %v1396_v1  ;;  %v22586_v1 = vpop.f32.mrf.mxu1 }
 0x5bf   :  { %8849 = vmatpush1.bf16.msra.mxu1 %v18493_v33  ;;  %8807 = vmatprep.subr.bf16.mxu0 %v18086_v11  ;;  %v8880_v33 = vmul.f32 0.851, %v22577_v15  ;;  %v18398_v11 = vcombine.high %v1000_v49, %v1012_v35  ;;  %v8882_v9 = vmul.f32 0.851, %v22580_v34  ;;  %v988_v63 = vld [vmem:[#allocation8 + $0x15b8] sm:$0xff]  ;;  %21767 = vtanh.f32 %v8906_v59 }
 0x5c0   :  { %v9111_v32 = vmul.f32 %v9063_v54, %v22549_v7  ;;  %8850 = vmatprep.subr.bf16.mxu1 %v18470_v16  ;;  %v18829_v7 = vcombine.low %v1432_v17, %v1444_v60  ;;  %v18805_v17 = vcombine.low %v1408_v6, %v1420_v18  ;;  %v1360_v16 = vld [vmem:[#allocation8 + $0x2158] sm:$0xff]  ;;  %v18397_v60 = vcombine.low %v1000_v49, %v1012_v35 }
 0x5c1   :  { %v1372_v50 = vld [vmem:[#allocation8 + $0x21b8] sm:$0xff]  ;;  %21769 = vtanh.f32 %v8880_v33  ;;  %v18374_v13 = vcombine.high %v976_v40, %v988_v63  ;;  %v18373_v14 = vcombine.low %v976_v40, %v988_v63 }
 0x5c2   :  { %v22574_v8 = vpack.c.bf16 %v9111_v32, %v9087_v4  ;;  %8808 = vmatpush1.bf16.msra.mxu0 %v18085_v26  ;;  %21771 = vtanh.f32 %v8882_v9  ;;  %v18758_v54 = vcombine.high %v1360_v16, %v1372_v50  ;;  %v952_v26 = vld [vmem:[#allocation8 + $0x1498] sm:$0xff]  ;;  %v18757_v4 = vcombine.low %v1360_v16, %v1372_v50  ;;  %v8526_v9 = vpop.f32.mrf.mxu1 }
 0x5c3   :  { %8851 = vmatpush1.bf16.msra.mxu1 %v18469_v42  ;;  %8809 = vmatprep.subr.bf16.mxu0 %v18446_v0  ;;  %v964_v45 = vld [vmem:[#allocation8 + $0x14f8] sm:$0xff] }
 0x5c4   :  { %8852 = vmatprep.subr.bf16.mxu1 %v18830_v56  ;;  %v1336_v42 = vld [vmem:[#allocation8 + $0x2098] sm:$0xff]  ;;  %v18350_v32 = vcombine.high %v952_v26, %v964_v45  ;;  %v18349_v18 = vcombine.low %v952_v26, %v964_v45 }
 0x5c5   :  { %v1348_v0 = vld [vmem:[#allocation8 + $0x20f8] sm:$0xff] }
 0x5c6   :  { %8810 = vmatpush2.bf16.msra.mxu0 %v18445_v2  ;;  %v18734_v56 = vcombine.high %v1336_v42, %v1348_v0  ;;  %v928_v24 = vld [vmem:[#allocation8 + $0x13d8] sm:$0xff]  ;;  %v18733_v2 = vcombine.low %v1336_v42, %v1348_v0 }
 0x5c7   :  { %8853 = vmatpush2.bf16.msra.mxu1 %v18829_v7  ;;  %8811 = vmatprep.subr.bf16.mxu0 %v18422_v22  ;;  %v940_v43 = vld [vmem:[#allocation8 + $0x1438] sm:$0xff] }
 0x5c8   :  { %8854 = vmatprep.subr.bf16.mxu1 %v18806_v31  ;;  %v1312_v19 = vld [vmem:[#allocation8 + $0x1fd8] sm:$0xff]  ;;  %v18326_v7 = vcombine.high %v928_v24, %v940_v43  ;;  %v18325_v59 = vcombine.low %v928_v24, %v940_v43 }
 0x5c9   :  { %v1324_v6 = vld [vmem:[#allocation8 + $0x2038] sm:$0xff] }
 0x5ca   :  { %8812 = vmatpush2.bf16.msra.mxu0 %v18421_v30  ;;  %v18710_v22 = vcombine.high %v1312_v19, %v1324_v6  ;;  %v904_v31 = vld [vmem:[#allocation8 + $0x1318] sm:$0xff]  ;;  %v18709_v33 = vcombine.low %v1312_v19, %v1324_v6  ;;  %v19999_v6 = vld [vmem:[#allocation11 + $0x154] ss:$24 sps:$4 sm:$0xff]  }
 0x5cb   :  { %8855 = vmatpush2.bf16.msra.mxu1 %v18805_v17  ;;  %8813 = vmatprep.subr.bf16.mxu0 %v18398_v11  ;;  %v916_v49 = vld [vmem:[#allocation8 + $0x1378] sm:$0xff]  ;;  %v21766_v21 = vpop.eup %21765 }
 0x5cc   :  { %8856 = vmatprep.subr.bf16.mxu1 %v18782_v47  ;;  %v1288_v35 = vld [vmem:[#allocation8 + $0x1f18] sm:$0xff]  ;;  %v21768_v30 = vpop.eup %21767  ;;  %v18302_v17 = vcombine.high %v904_v31, %v916_v49  ;;  %v9000_v50 = vadd.f32 1.0, %v21766_v21  ;;  %v22595_v21 = vpop.f32.mrf.mxu0 }
 0x5cd   :  { %v1300_v27 = vld [vmem:[#allocation8 + $0x1f78] sm:$0xff] }
 0x5ce   :  { %8814 = vmatpush2.bf16.msra.mxu0 %v18397_v60  ;;  %v21770_v11 = vpop.eup %21769  ;;  %v18686_v47 = vcombine.high %v1288_v35, %v1300_v27  ;;  %v880_v40 = vld [vmem:[#allocation8 + $0x1258] sm:$0xff]  ;;  %v18685_v45 = vcombine.low %v1288_v35, %v1300_v27  ;;  %v19997_v35 = vld [vmem:[#allocation11 + $0x150] ss:$24 sps:$4 sm:$0xff]  }
 0x5cf   :  { %8857 = vmatpush2.bf16.msra.mxu1 %v18781_v51  ;;  %8815 = vmatprep.subr.bf16.mxu0 %v18374_v13  ;;  %v892_v63 = vld [vmem:[#allocation8 + $0x12b8] sm:$0xff]  ;;  %v21772_v16 = vpop.eup %21771  ;;  %v9002_v13 = vadd.f32 1.0, %v21768_v30  ;;  %v8976_v26 = vadd.f32 1.0, %v21770_v11 }
 0x5d0   :  { %8858 = vmatprep.subr.bf16.mxu1 %v18758_v54  ;;  %v1264_v60 = vld [vmem:[#allocation8 + $0x1e58] sm:$0xff]  ;;  %v18301_v54 = vcombine.low %v904_v31, %v916_v49  ;;  %v18278_v42 = vcombine.high %v880_v40, %v892_v63  ;;  %v8978_v0 = vadd.f32 1.0, %v21772_v16  ;;  %v18277_v24 = vcombine.low %v880_v40, %v892_v63  ;;  %v20011_v16 = vld [vmem:[#allocation11 + $0xf4] ss:$24 sps:$4 sm:$0xff]  }
 0x5d1   :  { %v1276_v51 = vld [vmem:[#allocation8 + $0x1eb8] sm:$0xff]  ;;  %v9024_v43 = vmul.f32 0.5, %v8976_v26  ;;  %v20009_v26 = vld [vmem:[#allocation11 + $0xf0] ss:$24 sps:$4 sm:$0xff]  }
 0x5d2   :  { %8816 = vmatpush2.bf16.msra.mxu0 %v18373_v14  ;;  %v22588_v14 = vpop.f32.mrf.mxu1  ;;  %v18661_v19 = vcombine.low %v1264_v60, %v1276_v51  ;;  %v20003_v63 = vld [vmem:[#allocation11 + $0x120] ss:$24 sps:$4 sm:$0xff]  }
 0x5d3   :  { %8859 = vmatpush2.bf16.msra.mxu1 %v18757_v4  ;;  %8817 = vmatprep.subr.bf16.mxu0 %v18350_v32  ;;  %v18662_v4 = vcombine.high %v1264_v60, %v1276_v51  ;;  %v9048_v32 = vmul.f32 0.5, %v9000_v50  ;;  %v9072_v27 = vmul.f32 %v9024_v43, %v22577_v15  ;;  %v20018_v43 = vld [vmem:[#allocation11 + $0x3c0] ss:$24 sps:$4 sm:$0xff]  }
 0x5d4   :  { %8860 = vmatprep.subr.bf16.mxu1 %v18734_v56  ;;  %v9050_v56 = vmul.f32 0.5, %v9002_v13 }
 0x5d5   :  { %v9096_v31 = vmul.f32 %v9048_v32, %v22569_v55  ;;  %v20020_v32 = vld [vmem:[#allocation11 + $0x3c4] ss:$24 sps:$4 sm:$0xff]  }
 0x5d6   :  { %8818 = vmatpush2.bf16.msra.mxu0 %v18349_v18  ;;  %v9026_v18 = vmul.f32 0.5, %v8978_v0  ;;  %v9098_v49 = vmul.f32 %v9050_v56, %v22572_v37  ;;  %v20008_v37 = vld [vmem:[#allocation11 + $0x424] ss:$24 sps:$4 sm:$0xff]  }
 0x5d7   :  { %8861 = vmatpush2.bf16.msra.mxu1 %v18733_v2  ;;  %8819 = vmatprep.subr.bf16.mxu0 %v18326_v7  ;;  %v1526_v2 = vrot.slane %v22516_v10, %v22181_v44  ;;  %v8530_v7 = vpop.f32.mrf.mxu1  ;;  %v22601_v55 = vpack.c.bf16 %v9096_v31, %v9072_v27  ;;  %v20017_v0 = vld [vmem:[#allocation11 + $0xc4] ss:$24 sps:$4 sm:$0xff]   ;;  %v22619_v31 = vsub.s32 7, %v22169_v38  ;;  %v20035_v27 = vld [vmem:[#allocation11 + $0x34] ss:$24 sps:$4 sm:$0xff]  }
 0x5d8   :  { %8862 = vmatprep.subr.bf16.mxu1 %v18710_v22  ;;  %v20002_v22 = vld [vmem:[#allocation11 + $0x454] ss:$24 sps:$4 sm:$0xff]   ;;  %v9074_v30 = vmul.f32 %v9026_v18, %v22580_v34  ;;  %v20021_v18 = vld [vmem:[#allocation11 + $0x90] ss:$24 sps:$4 sm:$0xff]  }
 0x5d9   :  { %v22598_v10 = vpop.f32.mrf.mxu1  ;;  %v8531_v50 = vadd.f32 %v8530_v7, %v1526_v2  ;;  %v20029_v7 = vld [vmem:[#allocation11 + $0x64] ss:$24 sps:$4 sm:$0xff]  }
 0x5da   :  { %8820 = vmatpush2.bf16.msra.mxu0 %v18325_v59  ;;  %v20000_v59 = vld [vmem:[#allocation11 + $0x450] ss:$24 sps:$4 sm:$0xff]   ;;  %v22604_v40 = vpack.c.bf16 %v9098_v49, %v9074_v30  ;;  %v20027_v49 = vld [vmem:[#allocation11 + $0x60] ss:$24 sps:$4 sm:$0xff]  }
 0x5db   :  { %8863 = vmatpush2.bf16.msra.mxu1 %v18709_v33  ;;  %8821 = vmatprep.subr.bf16.mxu0 %v18302_v17  ;;  %v8527_v33 = vadd.f32 %v8526_v9, %v1526_v2  ;;  %v20005_v17 = vld [vmem:[#allocation11 + $0x124] ss:$24 sps:$4 sm:$0xff]   ;;  %v20006_v9 = vld [vmem:[#allocation11 + $0x420] ss:$24 sps:$4 sm:$0xff]   ;;  %v20024_v2 = vld [vmem:[#allocation11 + $0x390] ss:$24 sps:$4 sm:$0xff]  }
 0x5dc   :  { %8864 = vmatprep.subr.bf16.mxu1 %v18686_v47 }
 0x5de   :  { %8822 = vmatpush2.bf16.msra.mxu0 %v18301_v54 }
 0x5df   :  { %8865 = vmatpush2.bf16.msra.mxu1 %v18685_v45  ;;  %8823 = vmatprep.subr.bf16.mxu0 %v18278_v42  ;;  %v20012_v42 = vld [vmem:[#allocation11 + $0x3f0] ss:$24 sps:$4 sm:$0xff]  }
 0x5e0   :  { %8866 = vmatprep.subr.bf16.mxu1 %v18662_v4 }
 0x5e2   :  { %8824 = vmatpush2.bf16.msra.mxu0 %v18277_v24  ;;  %v20015_v24 = vld [vmem:[#allocation11 + $0xc0] ss:$24 sps:$4 sm:$0xff]  }
 0x5e3   :  { %8867 = vmatpush2.bf16.msra.mxu1 %v18661_v19  ;;  %16087 = vmatprep.subr.bf16.mxu0 %v19999_v6  ;;  %v20023_v19 = vld [vmem:[#allocation11 + $0x94] ss:$24 sps:$4 sm:$0xff]  }
 0x5e4   :  { %16130 = vmatprep.subr.bf16.mxu1 %v20002_v22  ;;  %v20026_v6 = vld [vmem:[#allocation11 + $0x394] ss:$24 sps:$4 sm:$0xff]   ;;  %v20032_v22 = vld [vmem:[#allocation11 + $0x364] ss:$24 sps:$4 sm:$0xff]  }
 0x5e5   :  { %v8569_v11 = vpop.f32.mrf.mxu0  ;;  %8826 = vmatmul.mubr.bf16.vlgmr.msra.gmra.mxu0 %v22219_v61 }
 0x5e6   :  { %v8570_v47 = vadd.f32 %v8569_v11, %v8527_v33  ;;  %v8612_v15 = vpop.f32.mrf.mxu1  ;;  %8869 = vmatmul.mubr.bf16.vlgmr.msra.gmra.mxu1 %v22227_v5  ;;  %16088 = vmatpush1.bf16.msra.mxu0 %v19997_v35  ;;  %v20014_v5 = vld [vmem:[#allocation11 + $0x3f4] ss:$24 sps:$4 sm:$0xff]   ;;  %v20030_v35 = vld [vmem:[#allocation11 + $0x360] ss:$24 sps:$4 sm:$0xff]   ;;  %v1474_v33 = vrot.slane %v22552_v12, %v22187_v48 }
 0x5e7   :  { %16119 = vmatprep.mubr.bf16.mxu0 %v22601_v55  ;;  %16131 = vmatpush1.bf16.msra.mxu1 %v20000_v59  ;;  %v22607_v34 = vpop.f32.mrf.mxu0  ;;  %v20038_v59 = vld [vmem:[#allocation11 + $0x334] ss:$24 sps:$4 sm:$0xff]  }
 0x5e8   :  { %v22609_v61 = vadd.f32 %v8612_v15, %v8570_v47  ;;  %16162 = vmatprep.mubr.bf16.mxu1 %v22604_v40  ;;  %v22612_v60 = vpop.f32.mrf.mxu1  ;;  %16089 = vmatprep.subr.bf16.mxu0 %v20005_v17  ;;  %v1482_v17 = vrot.slane %v22552_v12, %v22619_v31  ;;  %v7630_v38 = vadd.f32 %v22329_v53, %v1474_v33  ;;  %v20036_v47 = vld [vmem:[#allocation11 + $0x330] ss:$24 sps:$4 sm:$0xff]   ;;  %v20041_v15 = vld [vmem:[#allocation11 + $0x4] ss:$24 sps:$4 sm:$0xff]  }
 0x5e9   :  { %v8573_v51 = vpop.f32.mrf.mxu0  ;;  %16132 = vmatprep.subr.bf16.mxu1 %v20008_v37  ;;  %v20033_v37 = vld [vmem:[#allocation11 + $0x30] ss:$24 sps:$4 sm:$0xff]  }
 0x5ea   :  { %v8897_v13 = vmul.f32 0.851, %v22609_v61  ;;  %v8574_v54 = vadd.f32 %v8573_v51, %v8531_v50  ;;  %16090 = vmatpush1.bf16.msra.mxu0 %v20003_v63  ;;  %v8616_v45 = vpop.f32.mrf.mxu1  ;;  %v7759_v63 = vadd.f32 %v22360_v52, %v1482_v17  ;;  %v7626_v50 = vadd.f32 %v22320_v57, %v1474_v33  ;;  %v20060_v33 = vld [vmem:[#allocation11 + $0x570] ss:$24 sps:$4 sm:$0xff]  }
 0x5eb   :  { %16133 = vmatpush1.bf16.msra.mxu1 %v20006_v9  ;;  %16091 = vmatprep.subr.bf16.mxu0 %v20011_v16  ;;  %v20044_v9 = vld [vmem:[#allocation11 + $0x304] ss:$24 sps:$4 sm:$0xff]   ;;  %v7673_v53 = vadd.f32 %v22349_v23, %v7630_v38  ;;  %v20066_v38 = vld [vmem:[#allocation11 + $0x540] ss:$24 sps:$4 sm:$0xff]  }
 0x5ec   :  { %21773 = vtanh.f32 %v8897_v13  ;;  %v22615_v4 = vadd.f32 %v8616_v45, %v8574_v54  ;;  %16134 = vmatprep.subr.bf16.mxu1 %v20014_v5  ;;  %v7755_v5 = vadd.f32 %v22354_v58, %v1482_v17  ;;  %v7802_v12 = vadd.f32 %v22384_v62, %v7759_v63  ;;  %v20039_v54 = vld [vmem:[#allocation11] ss:$24 sps:$4 sm:$0xff]   ;;  %v20047_v45 = vld [vmem:[#allocation11 + $0x2d4] ss:$24 sps:$4 sm:$0xff]   ;;  %v20065_v17 = vld [vmem:[#allocation11 + $0x244] ss:$24 sps:$4 sm:$0xff]  }
 0x5ed   :  { %v7669_v57 = vadd.f32 %v22325_v3, %v7626_v50  ;;  %v22634_v58 = vadd.f32 %v22358_v29, %v7673_v53  ;;  %v23170_v62 = vld [vmem:[#allocation32_spill] sm:$0xff]  ;;  %v23172_v3 = vld [vmem:[#allocation30_spill] sm:$0xff] }
 0x5ee   :  { %v8921_v56 = vmul.f32 0.851, %v22615_v4  ;;  %16092 = vmatpush1.bf16.msra.mxu0 %v20009_v26  ;;  %v20042_v26 = vld [vmem:[#allocation11 + $0x300] ss:$24 sps:$4 sm:$0xff]   ;;  %v7798_v52 = vadd.f32 %v22365_v36, %v7755_v5  ;;  %v20048_v36 = vld [vmem:[#allocation11 + $0x5d0] ss:$24 sps:$4 sm:$0xff]  }
 0x5ef   :  { %16135 = vmatpush1.bf16.msra.mxu1 %v20012_v42  ;;  %16093 = vmatprep.subr.bf16.mxu0 %v20017_v0  ;;  %v20050_v0 = vld [vmem:[#allocation11 + $0x5d4] ss:$24 sps:$4 sm:$0xff]   ;;  %v20069_v63 = vld [vmem:[#allocation11 + $0x210] ss:$24 sps:$4 sm:$0xff]   ;;  %v20080_v50 = vld [vmem:[#allocation11 + $0x4e4] ss:$24 sps:$4 sm:$0xff]  }
 0x5f0   :  { %21775 = vtanh.f32 %v8921_v56  ;;  %16136 = vmatprep.subr.bf16.mxu1 %v20020_v32  ;;  %v22637_v32 = vadd.f32 %v23170_v62, %v7802_v12  ;;  %v20075_v12 = vld [vmem:[#allocation11 + $0x1e0] ss:$24 sps:$4 sm:$0xff]   ;;  %v20084_v62 = vld [vmem:[#allocation11 + $0x4b0] ss:$24 sps:$4 sm:$0xff]  }
 0x5f2   :  { %16094 = vmatpush1.bf16.msra.mxu0 %v20015_v24  ;;  %v20045_v24 = vld [vmem:[#allocation11 + $0x2d0] ss:$24 sps:$4 sm:$0xff]  }
 0x5f3   :  { %16137 = vmatpush1.bf16.msra.mxu1 %v20018_v43  ;;  %16095 = vmatprep.subr.bf16.mxu0 %v20023_v19  ;;  %v23171_v43 = vld [vmem:[#allocation27_spill] sm:$0xff] }
 0x5f4   :  { %16138 = vmatprep.subr.bf16.mxu1 %v20026_v6  ;;  %v22642_v19 = vadd.f32 %v23171_v43, %v7669_v57  ;;  %v20053_v6 = vld [vmem:[#allocation11 + $0x2a4] ss:$24 sps:$4 sm:$0xff]  }
 0x5f6   :  { %16096 = vmatpush1.bf16.msra.mxu0 %v20021_v18  ;;  %v22645_v18 = vadd.f32 %v23172_v3, %v7798_v52 }
 0x5f7   :  { %16139 = vmatpush1.bf16.msra.mxu1 %v20024_v2  ;;  %16097 = vmatprep.subr.bf16.mxu0 %v20029_v7  ;;  %v20056_v2 = vld [vmem:[#allocation11 + $0x5a4] ss:$24 sps:$4 sm:$0xff]   ;;  %v20051_v7 = vld [vmem:[#allocation11 + $0x2a0] ss:$24 sps:$4 sm:$0xff]  }
 0x5f8   :  { %16140 = vmatprep.subr.bf16.mxu1 %v20032_v22  ;;  %v8884_v22 = vmul.f32 0.851, %v22642_v19 }
 0x5f9   :  { %v21774_v30 = vpop.eup %21773 }
 0x5fa   :  { %v8993_v11 = vadd.f32 1.0, %v21774_v30  ;;  %16098 = vmatpush1.bf16.msra.mxu0 %v20027_v49  ;;  %v20054_v49 = vld [vmem:[#allocation11 + $0x5a0] ss:$24 sps:$4 sm:$0xff]   ;;  %v20057_v30 = vld [vmem:[#allocation11 + $0x270] ss:$24 sps:$4 sm:$0xff]  }
 0x5fb   :  { %16141 = vmatpush1.bf16.msra.mxu1 %v20030_v35  ;;  %16099 = vmatprep.subr.bf16.mxu0 %v20035_v27  ;;  %v20059_v35 = vld [vmem:[#allocation11 + $0x274] ss:$24 sps:$4 sm:$0xff]   ;;  %v8886_v27 = vmul.f32 0.851, %v22645_v18 }
 0x5fc   :  { %16142 = vmatprep.subr.bf16.mxu1 %v20038_v59  ;;  %v9041_v51 = vmul.f32 0.5, %v8993_v11  ;;  %v20062_v59 = vld [vmem:[#allocation11 + $0x574] ss:$24 sps:$4 sm:$0xff]   ;;  %v20068_v11 = vld [vmem:[#allocation11 + $0x544] ss:$24 sps:$4 sm:$0xff]  }
 0x5fd   :  { %v21776_v16 = vpop.eup %21775 }
 0x5fe   :  { %v9017_v13 = vadd.f32 1.0, %v21776_v16  ;;  %16100 = vmatpush1.bf16.msra.mxu0 %v20033_v37  ;;  %v9089_v56 = vmul.f32 %v9041_v51, %v22609_v61  ;;  %v8908_v61 = vmul.f32 0.851, %v22634_v58  ;;  %v20063_v37 = vld [vmem:[#allocation11 + $0x240] ss:$24 sps:$4 sm:$0xff]  }
 0x5ff   :  { %16143 = vmatpush1.bf16.msra.mxu1 %v20036_v47  ;;  %16101 = vmatprep.subr.bf16.mxu0 %v20041_v15  ;;  %v20071_v47 = vld [vmem:[#allocation11 + $0x214] ss:$24 sps:$4 sm:$0xff]   ;;  %v20077_v16 = vld [vmem:[#allocation11 + $0x1e4] ss:$24 sps:$4 sm:$0xff]  }
 0x600   :  { %v9065_v42 = vmul.f32 0.5, %v9017_v13  ;;  %16144 = vmatprep.subr.bf16.mxu1 %v20044_v9  ;;  %21777 = vtanh.f32 %v8908_v61  ;;  %v20074_v15 = vld [vmem:[#allocation11 + $0x514] ss:$24 sps:$4 sm:$0xff]   ;;  %v20072_v9 = vld [vmem:[#allocation11 + $0x510] ss:$24 sps:$4 sm:$0xff]  }
 0x601   :  { %v20078_v13 = vld [vmem:[#allocation11 + $0x4e0] ss:$24 sps:$4 sm:$0xff]   ;;  %v20095_v61 = vld [vmem:[#allocation11 + $0x754] ss:$24 sps:$4 sm:$0xff]  }
 0x602   :  { %v9113_v23 = vmul.f32 %v9065_v42, %v22615_v4  ;;  %16102 = vmatpush1.bf16.msra.mxu0 %v20039_v54  ;;  %v8910_v4 = vmul.f32 0.851, %v22637_v32  ;;  %v20083_v54 = vld [vmem:[#allocation11 + $0x1b4] ss:$24 sps:$4 sm:$0xff]  }
 0x603   :  { %16145 = vmatpush1.bf16.msra.mxu1 %v20042_v26  ;;  %16103 = vmatprep.subr.bf16.mxu0 %v20047_v45  ;;  %v20086_v26 = vld [vmem:[#allocation11 + $0x4b4] ss:$24 sps:$4 sm:$0xff]  }
 0x604   :  { %v22647_v29 = vpack.c.bf16 %v9113_v23, %v9089_v56  ;;  %16146 = vmatprep.subr.bf16.mxu1 %v20050_v0  ;;  %21779 = vtanh.f32 %v8910_v4  ;;  %v20081_v0 = vld [vmem:[#allocation11 + $0x1b0] ss:$24 sps:$4 sm:$0xff]   ;;  %v20089_v56 = vld [vmem:[#allocation11 + $0x184] ss:$24 sps:$4 sm:$0xff]  }
 0x605   :  { %21781 = vtanh.f32 %v8884_v22 }
 0x606   :  { %16104 = vmatpush2.bf16.msra.mxu0 %v20045_v24  ;;  %21783 = vtanh.f32 %v8886_v27  ;;  %v20092_v24 = vld [vmem:[#allocation11 + $0x484] ss:$24 sps:$4 sm:$0xff]  }
 0x607   :  { %16147 = vmatpush2.bf16.msra.mxu1 %v20048_v36  ;;  %16105 = vmatprep.subr.bf16.mxu0 %v20053_v6  ;;  %v20087_v6 = vld [vmem:[#allocation11 + $0x180] ss:$24 sps:$4 sm:$0xff]  }
 0x608   :  { %16148 = vmatprep.subr.bf16.mxu1 %v20056_v2  ;;  %v20090_v2 = vld [vmem:[#allocation11 + $0x480] ss:$24 sps:$4 sm:$0xff]  }
 0x60a   :  { %16106 = vmatpush2.bf16.msra.mxu0 %v20051_v7  ;;  %v20098_v7 = vld [vmem:[#allocation11 + $0xa54] ss:$24 sps:$4 sm:$0xff]  }
 0x60b   :  { %16149 = vmatpush2.bf16.msra.mxu1 %v20054_v49  ;;  %16107 = vmatprep.subr.bf16.mxu0 %v20059_v35  ;;  %v22655_v35 = vld [vmem:[#allocation10 + $0x10] sm:$0xff] }
 0x60c   :  { %16150 = vmatprep.subr.bf16.mxu1 %v20062_v59  ;;  %v1534_v27 = vrot.slane %v22655_v35, %v22184_v46  ;;  %v20093_v59 = vld [vmem:[#allocation11 + $0x750] ss:$24 sps:$4 sm:$0xff]   ;;  %v20338_v46 = vld [vmem:[#allocation11 + $0x17d4] ss:$24 sps:$4 sm:$0xff]  }
 0x60d   :  { %v21778_v5 = vpop.eup %21777 }
 0x60e   :  { %16108 = vmatpush2.bf16.msra.mxu0 %v20057_v30  ;;  %v9004_v52 = vadd.f32 1.0, %v21778_v5  ;;  %v20102_v5 = vld [vmem:[#allocation11 + $0xa20] ss:$24 sps:$4 sm:$0xff]  }
 0x60f   :  { %16151 = vmatpush2.bf16.msra.mxu1 %v20060_v33  ;;  %16109 = vmatprep.subr.bf16.mxu0 %v20065_v17  ;;  %v22660_v33 = vpop.f32.mrf.mxu0  ;;  %v20096_v17 = vld [vmem:[#allocation11 + $0xa50] ss:$24 sps:$4 sm:$0xff]  }
 0x610   :  { %16152 = vmatprep.subr.bf16.mxu1 %v20068_v11  ;;  %v9052_v43 = vmul.f32 0.5, %v9004_v52 }
 0x611   :  { %v21780_v51 = vpop.eup %21779 }
 0x612   :  { %16110 = vmatpush2.bf16.msra.mxu0 %v20063_v37  ;;  %v21782_v53 = vpop.eup %21781  ;;  %v9006_v42 = vadd.f32 1.0, %v21780_v51  ;;  %v9100_v22 = vmul.f32 %v9052_v43, %v22634_v58  ;;  %v22663_v37 = vpop.f32.mrf.mxu1  ;;  %v20101_v58 = vld [vmem:[#allocation11 + $0x724] ss:$24 sps:$4 sm:$0xff]   ;;  %v20122_v43 = vld [vmem:[#allocation11 + $0x994] ss:$24 sps:$4 sm:$0xff]  }
 0x613   :  { %16153 = vmatpush2.bf16.msra.mxu1 %v20066_v38  ;;  %16111 = vmatprep.subr.bf16.mxu0 %v20071_v47  ;;  %v21784_v45 = vpop.eup %21783  ;;  %v8980_v57 = vadd.f32 1.0, %v21782_v53  ;;  %v23173_v38 = vld [vmem:[#allocation25_spill] sm:$0xff] }
 0x614   :  { %16154 = vmatprep.subr.bf16.mxu1 %v20074_v15  ;;  %v8982_v23 = vadd.f32 1.0, %v21784_v45  ;;  %v9054_v36 = vmul.f32 0.5, %v9006_v42  ;;  %v20104_v15 = vld [vmem:[#allocation11 + $0xa24] ss:$24 sps:$4 sm:$0xff]   ;;  %v20105_v45 = vld [vmem:[#allocation11 + $0x6f0] ss:$24 sps:$4 sm:$0xff]  }
 0x615   :  { %v9028_v3 = vmul.f32 0.5, %v8980_v57  ;;  %v20108_v42 = vld [vmem:[#allocation11 + $0x9f0] ss:$24 sps:$4 sm:$0xff]  }
 0x616   :  { %16112 = vmatpush2.bf16.msra.mxu0 %v20069_v63  ;;  %v9030_v4 = vmul.f32 0.5, %v8982_v23  ;;  %v9102_v49 = vmul.f32 %v9054_v36, %v22637_v32  ;;  %v20114_v23 = vld [vmem:[#allocation11 + $0x9c0] ss:$24 sps:$4 sm:$0xff]   ;;  %v20117_v36 = vld [vmem:[#allocation11 + $0x690] ss:$24 sps:$4 sm:$0xff]  }
 0x617   :  { %16155 = vmatpush2.bf16.msra.mxu1 %v20072_v9  ;;  %16113 = vmatprep.subr.bf16.mxu0 %v20077_v16  ;;  %v9076_v30 = vmul.f32 %v9028_v3, %v22642_v19  ;;  %v23174_v19 = vld [vmem:[#allocation26_spill] sm:$0xff] }
 0x618   :  { %16156 = vmatprep.subr.bf16.mxu1 %v20080_v50  ;;  %v9078_v11 = vmul.f32 %v9030_v4, %v22645_v18  ;;  %v20099_v50 = vld [vmem:[#allocation11 + $0x720] ss:$24 sps:$4 sm:$0xff]   ;;  %v20125_v3 = vld [vmem:[#allocation11 + $0x664] ss:$24 sps:$4 sm:$0xff]  }
 0x619   :  { %v22666_v47 = vpack.c.bf16 %v9100_v22, %v9076_v30  ;;  %v20126_v4 = vld [vmem:[#allocation11 + $0x960] ss:$24 sps:$4 sm:$0xff]   ;;  %v20134_v22 = vld [vmem:[#allocation11 + $0x934] ss:$24 sps:$4 sm:$0xff]   ;;  %v20129_v30 = vld [vmem:[#allocation11 + $0x630] ss:$24 sps:$4 sm:$0xff]  }
 0x61a   :  { %16114 = vmatpush2.bf16.msra.mxu0 %v20075_v12  ;;  %v22669_v16 = vpack.c.bf16 %v9102_v49, %v9078_v11  ;;  %v20107_v12 = vld [vmem:[#allocation11 + $0x6f4] ss:$24 sps:$4 sm:$0xff]  }
 0x61b   :  { %16157 = vmatpush2.bf16.msra.mxu1 %v20078_v13  ;;  %16115 = vmatprep.subr.bf16.mxu0 %v20083_v54  ;;  %v20110_v54 = vld [vmem:[#allocation11 + $0x9f4] ss:$24 sps:$4 sm:$0xff]  }
 0x61c   :  { %16158 = vmatprep.subr.bf16.mxu1 %v20086_v26  ;;  %v22681_v49 = vld [vmem:[#allocation10 + $0x8] sm:$0xff] }
 0x61e   :  { %16116 = vmatpush2.bf16.msra.mxu0 %v20081_v0  ;;  %v20113_v0 = vld [vmem:[#allocation11 + $0x6c4] ss:$24 sps:$4 sm:$0xff]  }
 0x61f   :  { %16159 = vmatpush2.bf16.msra.mxu1 %v20084_v62  ;;  %16117 = vmatprep.subr.bf16.mxu0 %v20089_v56  ;;  %v20116_v62 = vld [vmem:[#allocation11 + $0x9c4] ss:$24 sps:$4 sm:$0xff]   ;;  %v20111_v56 = vld [vmem:[#allocation11 + $0x6c0] ss:$24 sps:$4 sm:$0xff]  }
 0x620   :  { %16160 = vmatprep.subr.bf16.mxu1 %v20092_v24  ;;  %v20119_v24 = vld [vmem:[#allocation11 + $0x694] ss:$24 sps:$4 sm:$0xff]  }
 0x622   :  { %16118 = vmatpush2.bf16.msra.mxu0 %v20087_v6  ;;  %v20120_v6 = vld [vmem:[#allocation11 + $0x990] ss:$24 sps:$4 sm:$0xff]  }
 0x623   :  { %16161 = vmatpush2.bf16.msra.mxu1 %v20090_v2  ;;  %16173 = vmatprep.subr.bf16.mxu0 %v20095_v61  ;;  %v20128_v2 = vld [vmem:[#allocation11 + $0x964] ss:$24 sps:$4 sm:$0xff]   ;;  %v20123_v61 = vld [vmem:[#allocation11 + $0x660] ss:$24 sps:$4 sm:$0xff]  }
 0x624   :  { %16216 = vmatprep.subr.bf16.mxu1 %v20098_v7  ;;  %v20131_v7 = vld [vmem:[#allocation11 + $0x634] ss:$24 sps:$4 sm:$0xff]  }
 0x625   :  { %v8655_v32 = vpop.f32.mrf.mxu0  ;;  %16120 = vmatmul.mubr.bf16.vlgmr.msra.gmra.mxu0 %v23173_v38 }
 0x626   :  { %v8656_v63 = vadd.f32 %v8655_v32, %v1534_v27  ;;  %v8698_v9 = vpop.f32.mrf.mxu1  ;;  %16163 = vmatmul.mubr.bf16.vlgmr.msra.gmra.mxu1 %v23174_v19  ;;  %16174 = vmatpush1.bf16.msra.mxu0 %v20093_v59  ;;  %v1498_v59 = vrot.slane %v22681_v49, %v22175_v41  ;;  %v20137_v32 = vld [vmem:[#allocation11 + $0x604] ss:$24 sps:$4 sm:$0xff]  }
 0x627   :  { %16205 = vmatprep.mubr.bf16.mxu0 %v22666_v47  ;;  %16217 = vmatpush1.bf16.msra.mxu1 %v20096_v17  ;;  %v22672_v18 = vpop.f32.mrf.mxu0  ;;  %v23175_v17 = vld [vmem:[#allocation35_spill] sm:$0xff] }
 0x628   :  { %v22674_v51 = vadd.f32 %v8698_v9, %v8656_v63  ;;  %16248 = vmatprep.mubr.bf16.mxu1 %v22669_v16  ;;  %v22677_v13 = vpop.f32.mrf.mxu1  ;;  %16175 = vmatprep.subr.bf16.mxu0 %v20101_v58  ;;  %v20132_v58 = vld [vmem:[#allocation11 + $0x930] ss:$24 sps:$4 sm:$0xff]   ;;  %v20140_v9 = vld [vmem:[#allocation11 + $0x904] ss:$24 sps:$4 sm:$0xff]  }
 0x629   :  { %v8659_v53 = vpop.f32.mrf.mxu0  ;;  %16218 = vmatprep.subr.bf16.mxu1 %v20104_v15  ;;  %v23176_v15 = vld [vmem:[#allocation41_spill] sm:$0xff] }
 0x62a   :  { %v8660_v26 = vadd.f32 %v8659_v53, %v1534_v27  ;;  %16176 = vmatpush1.bf16.msra.mxu0 %v20099_v50  ;;  %v8702_v52 = vpop.f32.mrf.mxu1  ;;  %v1490_v27 = vrot.slane %v22681_v49, %v22172_v39  ;;  %v8017_v63 = vadd.f32 %v23176_v15, %v1498_v59  ;;  %v23177_v50 = vld [vmem:[#allocation33_spill] sm:$0xff]  ;;  %v20147_v15 = vld [vmem:[#allocation11 + $0x8a0] ss:$24 sps:$4 sm:$0xff]  }
 0x62b   :  { %16219 = vmatpush1.bf16.msra.mxu1 %v20102_v5  ;;  %16177 = vmatprep.subr.bf16.mxu0 %v20107_v12  ;;  %v23178_v12 = vld [vmem:[#allocation39_spill] sm:$0xff]  ;;  %v23179_v53 = vld [vmem:[#allocation45_spill] sm:$0xff] }
 0x62c   :  { %v22679_v57 = vadd.f32 %v8702_v52, %v8660_v26  ;;  %16220 = vmatprep.subr.bf16.mxu1 %v20110_v54  ;;  %v7888_v11 = vadd.f32 %v23175_v17, %v1490_v27  ;;  %v7884_v5 = vadd.f32 %v23177_v50, %v1490_v27  ;;  %v8013_v54 = vadd.f32 %v23178_v12, %v1498_v59  ;;  %v23180_v52 = vld [vmem:[#allocation38_spill] sm:$0xff]  ;;  %v20144_v27 = vld [vmem:[#allocation11 + $0xbd0] ss:$24 sps:$4 sm:$0xff]  }
 0x62d   :  { %v8060_v26 = vadd.f32 %v23179_v53, %v8017_v63  ;;  %v20149_v59 = vld [vmem:[#allocation11 + $0x8a4] ss:$24 sps:$4 sm:$0xff]   ;;  %v20155_v50 = vld [vmem:[#allocation11 + $0x874] ss:$24 sps:$4 sm:$0xff]   ;;  %v20156_v53 = vld [vmem:[#allocation11 + $0xb70] ss:$24 sps:$4 sm:$0xff]  }
 0x62e   :  { %16178 = vmatpush1.bf16.msra.mxu0 %v20105_v45  ;;  %v20135_v45 = vld [vmem:[#allocation11 + $0x600] ss:$24 sps:$4 sm:$0xff]   ;;  %v20158_v12 = vld [vmem:[#allocation11 + $0xb74] ss:$24 sps:$4 sm:$0xff]  }
 0x62f   :  { %16221 = vmatpush1.bf16.msra.mxu1 %v20108_v42  ;;  %16179 = vmatprep.subr.bf16.mxu0 %v20113_v0  ;;  %v7931_v42 = vadd.f32 %v23180_v52, %v7888_v11  ;;  %v20138_v0 = vld [vmem:[#allocation11 + $0x900] ss:$24 sps:$4 sm:$0xff]   ;;  %v20152_v11 = vld [vmem:[#allocation11 + $0xba4] ss:$24 sps:$4 sm:$0xff]  }
 0x630   :  { %16222 = vmatprep.subr.bf16.mxu1 %v20116_v62  ;;  %v20143_v62 = vld [vmem:[#allocation11 + $0x8d4] ss:$24 sps:$4 sm:$0xff]   ;;  %v20159_v52 = vld [vmem:[#allocation11 + $0x840] ss:$24 sps:$4 sm:$0xff]  }
 0x632   :  { %16180 = vmatpush1.bf16.msra.mxu0 %v20111_v56  ;;  %v23181_v56 = vld [vmem:[#allocation42_spill] sm:$0xff] }
 0x633   :  { %16223 = vmatpush1.bf16.msra.mxu1 %v20114_v23  ;;  %16181 = vmatprep.subr.bf16.mxu0 %v20119_v24  ;;  %v8056_v23 = vadd.f32 %v23181_v56, %v8013_v54  ;;  %v20146_v24 = vld [vmem:[#allocation11 + $0xbd4] ss:$24 sps:$4 sm:$0xff]   ;;  %v20153_v54 = vld [vmem:[#allocation11 + $0x870] ss:$24 sps:$4 sm:$0xff]  }
 0x634   :  { %16224 = vmatprep.subr.bf16.mxu1 %v20122_v43  ;;  %v23182_v43 = vld [vmem:[#allocation34_spill] sm:$0xff]  ;;  %v20165_v56 = vld [vmem:[#allocation11 + $0x810] ss:$24 sps:$4 sm:$0xff]  }
 0x636   :  { %16182 = vmatpush1.bf16.msra.mxu0 %v20117_v36  ;;  %v7927_v36 = vadd.f32 %v23182_v43, %v7884_v5  ;;  %v20176_v43 = vld [vmem:[#allocation11 + $0xae4] ss:$24 sps:$4 sm:$0xff]  }
 0x637   :  { %16225 = vmatpush1.bf16.msra.mxu1 %v20120_v6  ;;  %16183 = vmatprep.subr.bf16.mxu0 %v20125_v3  ;;  %v23183_v6 = vld [vmem:[#allocation40_spill] sm:$0xff] }
 0x638   :  { %16226 = vmatprep.subr.bf16.mxu1 %v20128_v2  ;;  %v22696_v3 = vadd.f32 %v23183_v6, %v7931_v42  ;;  %v23184_v2 = vld [vmem:[#allocation46_spill] sm:$0xff] }
 0x639   :  { %v20162_v42 = vld [vmem:[#allocation11 + $0xb40] ss:$24 sps:$4 sm:$0xff]  }
 0x63a   :  { %16184 = vmatpush1.bf16.msra.mxu0 %v20123_v61  ;;  %v22699_v61 = vadd.f32 %v23184_v2, %v8060_v26  ;;  %v20161_v26 = vld [vmem:[#allocation11 + $0x844] ss:$24 sps:$4 sm:$0xff]   ;;  %v20171_v6 = vld [vmem:[#allocation11 + $0x7e0] ss:$24 sps:$4 sm:$0xff]  }
 0x63b   :  { %16227 = vmatpush1.bf16.msra.mxu1 %v20126_v4  ;;  %16185 = vmatprep.subr.bf16.mxu0 %v20131_v7  ;;  %v20141_v4 = vld [vmem:[#allocation11 + $0x8d0] ss:$24 sps:$4 sm:$0xff]  }
 0x63c   :  { %16228 = vmatprep.subr.bf16.mxu1 %v20134_v22  ;;  %v23185_v7 = vld [vmem:[#allocation36_spill] sm:$0xff] }
 0x63d   :  { %v22702_v22 = vadd.f32 %v23185_v7, %v7927_v36  ;;  %v20179_v7 = vld [vmem:[#allocation11 + $0x7b4] ss:$24 sps:$4 sm:$0xff]  }
 0x63e   :  { %16186 = vmatpush1.bf16.msra.mxu0 %v20129_v30  ;;  %v23186_v30 = vld [vmem:[#allocation43_spill] sm:$0xff] }
 0x63f   :  { %16229 = vmatpush1.bf16.msra.mxu1 %v20132_v58  ;;  %16187 = vmatprep.subr.bf16.mxu0 %v20137_v32  ;;  %v22705_v17 = vadd.f32 %v23186_v30, %v8056_v23  ;;  %v8912_v58 = vmul.f32 0.851, %v22696_v3  ;;  %v8914_v32 = vmul.f32 0.851, %v22699_v61  ;;  %v8888_v63 = vmul.f32 0.851, %v22702_v22 }
 0x640   :  { %16230 = vmatprep.subr.bf16.mxu1 %v20140_v9  ;;  %v20150_v9 = vld [vmem:[#allocation11 + $0xba0] ss:$24 sps:$4 sm:$0xff]   ;;  %v20168_v23 = vld [vmem:[#allocation11 + $0xb10] ss:$24 sps:$4 sm:$0xff]  }
 0x641   :  { %v8890_v5 = vmul.f32 0.851, %v22705_v17  ;;  %21785 = vtanh.f32 %v8912_v58 }
 0x642   :  { %16188 = vmatpush1.bf16.msra.mxu0 %v20135_v45  ;;  %21787 = vtanh.f32 %v8914_v32  ;;  %v20164_v45 = vld [vmem:[#allocation11 + $0xb44] ss:$24 sps:$4 sm:$0xff]   ;;  %v20177_v32 = vld [vmem:[#allocation11 + $0x7b0] ss:$24 sps:$4 sm:$0xff]  }
 0x643   :  { %16231 = vmatpush1.bf16.msra.mxu1 %v20138_v0  ;;  %16189 = vmatprep.subr.bf16.mxu0 %v20143_v62  ;;  %21789 = vtanh.f32 %v8888_v63  ;;  %v20167_v0 = vld [vmem:[#allocation11 + $0x814] ss:$24 sps:$4 sm:$0xff]   ;;  %v20180_v63 = vld [vmem:[#allocation11 + $0xab0] ss:$24 sps:$4 sm:$0xff]  }
 0x644   :  { %16232 = vmatprep.subr.bf16.mxu1 %v20146_v24  ;;  %21791 = vtanh.f32 %v8890_v5  ;;  %v20170_v62 = vld [vmem:[#allocation11 + $0xb14] ss:$24 sps:$4 sm:$0xff]   ;;  %v20173_v24 = vld [vmem:[#allocation11 + $0x7e4] ss:$24 sps:$4 sm:$0xff]  }
 0x645   :  { %v20188_v5 = vld [vmem:[#allocation11 + $0xa84] ss:$24 sps:$4 sm:$0xff]  }
 0x646   :  { %16190 = vmatpush2.bf16.msra.mxu0 %v20141_v4  ;;  %v20174_v4 = vld [vmem:[#allocation11 + $0xae0] ss:$24 sps:$4 sm:$0xff]  }
 0x647   :  { %16233 = vmatpush2.bf16.msra.mxu1 %v20144_v27  ;;  %16191 = vmatprep.subr.bf16.mxu0 %v20149_v59  ;;  %v20182_v59 = vld [vmem:[#allocation11 + $0xab4] ss:$24 sps:$4 sm:$0xff]  }
 0x648   :  { %16234 = vmatprep.subr.bf16.mxu1 %v20152_v11 }
 0x64a   :  { %16192 = vmatpush2.bf16.msra.mxu0 %v20147_v15 }
 0x64b   :  { %16235 = vmatpush2.bf16.msra.mxu1 %v20150_v9  ;;  %16193 = vmatprep.subr.bf16.mxu0 %v20155_v50  ;;  %v20185_v9 = vld [vmem:[#allocation11 + $0x784] ss:$24 sps:$4 sm:$0xff]  }
 0x64c   :  { %16236 = vmatprep.subr.bf16.mxu1 %v20158_v12 }
 0x64e   :  { %16194 = vmatpush2.bf16.msra.mxu0 %v20153_v54  ;;  %v21786_v36 = vpop.eup %21785 }
 0x64f   :  { %16237 = vmatpush2.bf16.msra.mxu1 %v20156_v53  ;;  %16195 = vmatprep.subr.bf16.mxu0 %v20161_v26  ;;  %v21788_v2 = vpop.eup %21787  ;;  %v9008_v11 = vadd.f32 1.0, %v21786_v36  ;;  %v20183_v53 = vld [vmem:[#allocation11 + $0x780] ss:$24 sps:$4 sm:$0xff]   ;;  %v20192_v36 = vld [vmem:[#allocation11 + $0x1050] ss:$24 sps:$4 sm:$0xff]  }
 0x650   :  { %16238 = vmatprep.subr.bf16.mxu1 %v20164_v45  ;;  %v21790_v27 = vpop.eup %21789  ;;  %v9010_v58 = vadd.f32 1.0, %v21788_v2  ;;  %v20186_v45 = vld [vmem:[#allocation11 + $0xa80] ss:$24 sps:$4 sm:$0xff]   ;;  %v20197_v2 = vld [vmem:[#allocation11 + $0xd24] ss:$24 sps:$4 sm:$0xff]  }
 0x651   :  { %v21792_v30 = vpop.eup %21791  ;;  %v8984_v15 = vadd.f32 1.0, %v21790_v27  ;;  %v9056_v12 = vmul.f32 0.5, %v9008_v11  ;;  %v20198_v11 = vld [vmem:[#allocation11 + $0x1020] ss:$24 sps:$4 sm:$0xff]  }
 0x652   :  { %16196 = vmatpush2.bf16.msra.mxu0 %v20159_v52  ;;  %v8986_v50 = vadd.f32 1.0, %v21792_v30  ;;  %v9058_v54 = vmul.f32 0.5, %v9010_v58  ;;  %v20191_v52 = vld [vmem:[#allocation11 + $0xd54] ss:$24 sps:$4 sm:$0xff]   ;;  %v20195_v30 = vld [vmem:[#allocation11 + $0xd20] ss:$24 sps:$4 sm:$0xff]  }
 0x653   :  { %16239 = vmatpush2.bf16.msra.mxu1 %v20162_v42  ;;  %16197 = vmatprep.subr.bf16.mxu0 %v20167_v0  ;;  %v9032_v26 = vmul.f32 0.5, %v8984_v15  ;;  %v20194_v0 = vld [vmem:[#allocation11 + $0x1054] ss:$24 sps:$4 sm:$0xff]  }
 0x654   :  { %16240 = vmatprep.subr.bf16.mxu1 %v20170_v62  ;;  %v9034_v42 = vmul.f32 0.5, %v8986_v50  ;;  %v9104_v62 = vmul.f32 %v9056_v12, %v22696_v3  ;;  %v20200_v3 = vld [vmem:[#allocation11 + $0x1024] ss:$24 sps:$4 sm:$0xff]   ;;  %v20203_v58 = vld [vmem:[#allocation11 + $0xcf4] ss:$24 sps:$4 sm:$0xff]  }
 0x655   :  { %v20204_v50 = vld [vmem:[#allocation11 + $0xff0] ss:$24 sps:$4 sm:$0xff]  }
 0x656   :  { %16198 = vmatpush2.bf16.msra.mxu0 %v20165_v56  ;;  %v9106_v56 = vmul.f32 %v9058_v54, %v22699_v61  ;;  %v20212_v54 = vld [vmem:[#allocation11 + $0xfc4] ss:$24 sps:$4 sm:$0xff]  }
 0x657   :  { %16241 = vmatpush2.bf16.msra.mxu1 %v20168_v23  ;;  %16199 = vmatprep.subr.bf16.mxu0 %v20173_v24  ;;  %v20189_v23 = vld [vmem:[#allocation11 + $0xd50] ss:$24 sps:$4 sm:$0xff]   ;;  %v9080_v24 = vmul.f32 %v9032_v26, %v22702_v22  ;;  %v20210_v26 = vld [vmem:[#allocation11 + $0xfc0] ss:$24 sps:$4 sm:$0xff]  }
 0x658   :  { %16242 = vmatprep.subr.bf16.mxu1 %v20176_v43  ;;  %v22714_v43 = vpop.f32.mrf.mxu0 }
 0x659   :  { %v22718_v27 = vpack.c.bf16 %v9104_v62, %v9080_v24  ;;  %v20224_v62 = vld [vmem:[#allocation11 + $0xf64] ss:$24 sps:$4 sm:$0xff]   ;;  %v20222_v24 = vld [vmem:[#allocation11 + $0xf60] ss:$24 sps:$4 sm:$0xff]  }
 0x65a   :  { %16200 = vmatpush2.bf16.msra.mxu0 %v20171_v6  ;;  %v9082_v6 = vmul.f32 %v9034_v42, %v22705_v17  ;;  %v20216_v42 = vld [vmem:[#allocation11 + $0xf90] ss:$24 sps:$4 sm:$0xff]  }
 0x65b   :  { %16243 = vmatpush2.bf16.msra.mxu1 %v20174_v4  ;;  %16201 = vmatprep.subr.bf16.mxu0 %v20179_v7  ;;  %v23187_v7 = vld [vmem:[#allocation28_spill] sm:$0xff]  ;;  %23188 = vst [vmem:[#allocation32_spill] sm:$0xff] %v22718_v27 }
 0x65c   :  { %16244 = vmatprep.subr.bf16.mxu1 %v20182_v59  ;;  %v23189_v59 = vld [vmem:[#allocation31_spill] sm:$0xff]  ;;  %v22724_v22 = vpack.c.bf16 %v9106_v56, %v9082_v6 }
 0x65d   :  { %v20219_v56 = vld [vmem:[#allocation11 + $0xc60] ss:$24 sps:$4 sm:$0xff]  }
 0x65e   :  { %16202 = vmatpush2.bf16.msra.mxu0 %v20177_v32  ;;  %23190 = vst [vmem:[#allocation27_spill] sm:$0xff] %v22724_v22 }
 0x65f   :  { %16245 = vmatpush2.bf16.msra.mxu1 %v20180_v63  ;;  %16203 = vmatprep.subr.bf16.mxu0 %v20185_v9  ;;  %v20201_v9 = vld [vmem:[#allocation11 + $0xcf0] ss:$24 sps:$4 sm:$0xff]  }
 0x660   :  { %16246 = vmatprep.subr.bf16.mxu1 %v20188_v5  ;;  %v20209_v5 = vld [vmem:[#allocation11 + $0xcc4] ss:$24 sps:$4 sm:$0xff]  }
 0x662   :  { %16204 = vmatpush2.bf16.msra.mxu0 %v20183_v53  ;;  %v20207_v53 = vld [vmem:[#allocation11 + $0xcc0] ss:$24 sps:$4 sm:$0xff]  }
 0x663   :  { %16247 = vmatpush2.bf16.msra.mxu1 %v20186_v45  ;;  %16259 = vmatprep.subr.bf16.mxu0 %v20191_v52  ;;  %v20215_v45 = vld [vmem:[#allocation11 + $0xc94] ss:$24 sps:$4 sm:$0xff]   ;;  %v20213_v52 = vld [vmem:[#allocation11 + $0xc90] ss:$24 sps:$4 sm:$0xff]  }
 0x664   :  { %16302 = vmatprep.subr.bf16.mxu1 %v20194_v0  ;;  %v20221_v0 = vld [vmem:[#allocation11 + $0xc64] ss:$24 sps:$4 sm:$0xff]  }
 0x665   :  { %v8741_v4 = vpop.f32.mrf.mxu0  ;;  %16206 = vmatmul.mubr.bf16.vlgmr.msra.gmra.mxu0 %v23187_v7 }
 0x666   :  { %v22721_v61 = vadd.f32 %v8741_v4, %v22674_v51  ;;  %16249 = vmatmul.mubr.bf16.vlgmr.msra.gmra.mxu1 %v23189_v59  ;;  %16260 = vmatpush1.bf16.msra.mxu0 %v20189_v23  ;;  %v20206_v51 = vld [vmem:[#allocation11 + $0xff4] ss:$24 sps:$4 sm:$0xff]   ;;  %v1506_v4 = vrot.slane %v22681_v49, %v22187_v48 }
 0x667   :  { %16291 = vmatprep.mubr.bf16.mxu0 %v22718_v27  ;;  %16303 = vmatpush1.bf16.msra.mxu1 %v20192_v36  ;;  %v22727_v17 = vpop.f32.mrf.mxu0  ;;  %v20227_v36 = vld [vmem:[#allocation11 + $0xc34] ss:$24 sps:$4 sm:$0xff]  }
 0x668   :  { %v8899_v32 = vmul.f32 0.851, %v22721_v61  ;;  %16334 = vmatprep.mubr.bf16.mxu1 %v22724_v22  ;;  %16261 = vmatprep.subr.bf16.mxu0 %v20197_v2  ;;  %v20230_v2 = vld [vmem:[#allocation11 + $0xf34] ss:$24 sps:$4 sm:$0xff]  }
 0x669   :  { %v8745_v15 = vpop.f32.mrf.mxu0  ;;  %16304 = vmatprep.subr.bf16.mxu1 %v20200_v3  ;;  %v1514_v3 = vrot.slane %v22681_v49, %v22619_v31 }
 0x66a   :  { %21793 = vtanh.f32 %v8899_v32  ;;  %v22732_v63 = vadd.f32 %v8745_v15, %v22679_v57  ;;  %16262 = vmatpush1.bf16.msra.mxu0 %v20195_v30  ;;  %v20218_v57 = vld [vmem:[#allocation11 + $0xf94] ss:$24 sps:$4 sm:$0xff]   ;;  %v20225_v30 = vld [vmem:[#allocation11 + $0xc30] ss:$24 sps:$4 sm:$0xff]   ;;  %v20233_v15 = vld [vmem:[#allocation11 + $0xc04] ss:$24 sps:$4 sm:$0xff]  }
 0x66b   :  { %16305 = vmatpush1.bf16.msra.mxu1 %v20198_v11  ;;  %16263 = vmatprep.subr.bf16.mxu0 %v20203_v58  ;;  %v23191_v58 = vld [vmem:[#allocation49_spill] sm:$0xff] }
 0x66c   :  { %v8923_v12 = vmul.f32 0.851, %v22732_v63  ;;  %16306 = vmatprep.subr.bf16.mxu1 %v20206_v51  ;;  %v8146_v32 = vadd.f32 %v23191_v58, %v1506_v4  ;;  %v20228_v51 = vld [vmem:[#allocation11 + $0xf30] ss:$24 sps:$4 sm:$0xff]  }
 0x66d   :  { %v20237_v58 = vld [vmem:[#allocation11 + $0xed0] ss:$24 sps:$4 sm:$0xff]  }
 0x66e   :  { %21795 = vtanh.f32 %v8923_v12  ;;  %16264 = vmatpush1.bf16.msra.mxu0 %v20201_v9  ;;  %v8275_v9 = vadd.f32 %v22496_v28, %v1514_v3  ;;  %v20236_v12 = vld [vmem:[#allocation11 + $0xf04] ss:$24 sps:$4 sm:$0xff]  }
 0x66f   :  { %16307 = vmatpush1.bf16.msra.mxu1 %v20204_v50  ;;  %16265 = vmatprep.subr.bf16.mxu0 %v20209_v5  ;;  %v23195_v28 = vld [vmem:[#allocation55_spill] sm:$0xff] }
 0x670   :  { %16308 = vmatprep.subr.bf16.mxu1 %v20212_v54  ;;  %v23192_v54 = vld [vmem:[#allocation47_spill] sm:$0xff]  ;;  %v8318_v49 = vadd.f32 %v22520_v20, %v8275_v9  ;;  %v23197_v20 = vld [vmem:[#allocation54_spill] sm:$0xff] }
 0x672   :  { %16266 = vmatpush1.bf16.msra.mxu0 %v20207_v53  ;;  %v8142_v53 = vadd.f32 %v23192_v54, %v1506_v4 }
 0x673   :  { %16309 = vmatpush1.bf16.msra.mxu1 %v20210_v26  ;;  %16267 = vmatprep.subr.bf16.mxu0 %v20215_v45  ;;  %v23193_v26 = vld [vmem:[#allocation53_spill] sm:$0xff] }
 0x674   :  { %16310 = vmatprep.subr.bf16.mxu1 %v20218_v57  ;;  %v8271_v45 = vadd.f32 %v23193_v26, %v1514_v3  ;;  %v20251_v26 = vld [vmem:[#allocation11 + $0xe74] ss:$24 sps:$4 sm:$0xff]  }
 0x676   :  { %16268 = vmatpush1.bf16.msra.mxu0 %v20213_v52  ;;  %v20231_v52 = vld [vmem:[#allocation11 + $0xc00] ss:$24 sps:$4 sm:$0xff]  }
 0x677   :  { %v21794_v23 = vpop.eup %21793  ;;  %16311 = vmatpush1.bf16.msra.mxu1 %v20216_v42  ;;  %16269 = vmatprep.subr.bf16.mxu0 %v20221_v0  ;;  %v23194_v42 = vld [vmem:[#allocation52_spill] sm:$0xff] }
 0x678   :  { %v8995_v6 = vadd.f32 1.0, %v21794_v23  ;;  %16312 = vmatprep.subr.bf16.mxu1 %v20224_v62  ;;  %v8189_v0 = vadd.f32 %v23194_v42, %v8146_v32  ;;  %v20234_v62 = vld [vmem:[#allocation11 + $0xf00] ss:$24 sps:$4 sm:$0xff]   ;;  %v8314_v23 = vadd.f32 %v23195_v28, %v8271_v45  ;;  %v20257_v42 = vld [vmem:[#allocation11 + $0xe44] ss:$24 sps:$4 sm:$0xff]  }
 0x679   :  { %v23198_v32 = vld [vmem:[#allocation50_spill] sm:$0xff] }
 0x67a   :  { %16270 = vmatpush1.bf16.msra.mxu0 %v20219_v56  ;;  %v9043_v50 = vmul.f32 0.5, %v8995_v6  ;;  %v20239_v56 = vld [vmem:[#allocation11 + $0xed4] ss:$24 sps:$4 sm:$0xff]   ;;  %v22750_v3 = vadd.f32 %v23197_v20, %v8189_v0  ;;  %v20260_v0 = vld [vmem:[#allocation11 + $0x1144] ss:$24 sps:$4 sm:$0xff]   ;;  %v22767_v20 = vpop.f32.mrf.mxu1 }
 0x67b   :  { %v21796_v11 = vpop.eup %21795  ;;  %16313 = vmatpush1.bf16.msra.mxu1 %v20222_v24  ;;  %16271 = vmatprep.subr.bf16.mxu0 %v20227_v36  ;;  %v20242_v6 = vld [vmem:[#allocation11 + $0x11d4] ss:$24 sps:$4 sm:$0xff]  }
 0x67c   :  { %v9019_v5 = vadd.f32 1.0, %v21796_v11  ;;  %16314 = vmatprep.subr.bf16.mxu1 %v20230_v2  ;;  %v9091_v24 = vmul.f32 %v9043_v50, %v22721_v61  ;;  %v23196_v2 = vld [vmem:[#allocation48_spill] sm:$0xff] }
 0x67d   :  { %v8185_v4 = vadd.f32 %v23196_v2, %v8142_v53  ;;  %v20240_v61 = vld [vmem:[#allocation11 + $0x11d0] ss:$24 sps:$4 sm:$0xff]   ;;  %v20248_v50 = vld [vmem:[#allocation11 + $0x11a4] ss:$24 sps:$4 sm:$0xff]   ;;  %v20246_v53 = vld [vmem:[#allocation11 + $0x11a0] ss:$24 sps:$4 sm:$0xff]  }
 0x67e   :  { %v9067_v57 = vmul.f32 0.5, %v9019_v5  ;;  %16272 = vmatpush1.bf16.msra.mxu0 %v20225_v30  ;;  %v22753_v30 = vadd.f32 %v22522_v25, %v8318_v49  ;;  %v8916_v5 = vmul.f32 0.851, %v22750_v3  ;;  %v20254_v49 = vld [vmem:[#allocation11 + $0x1174] ss:$24 sps:$4 sm:$0xff]  }
 0x67f   :  { %16315 = vmatpush1.bf16.msra.mxu1 %v20228_v51  ;;  %16273 = vmatprep.subr.bf16.mxu0 %v20233_v15  ;;  %v22758_v51 = vadd.f32 %v23198_v32, %v8185_v4  ;;  %v23199_v15 = vld [vmem:[#allocation56_spill] sm:$0xff] }
 0x680   :  { %v9115_v36 = vmul.f32 %v9067_v57, %v22732_v63  ;;  %16316 = vmatprep.subr.bf16.mxu1 %v20236_v12  ;;  %v20245_v63 = vld [vmem:[#allocation11 + $0xea4] ss:$24 sps:$4 sm:$0xff]   ;;  %v22761_v9 = vadd.f32 %v23199_v15, %v8314_v23  ;;  %v8918_v25 = vmul.f32 0.851, %v22753_v30  ;;  %v20243_v12 = vld [vmem:[#allocation11 + $0xea0] ss:$24 sps:$4 sm:$0xff]   ;;  %21797 = vtanh.f32 %v8916_v5 }
 0x681   :  { %v8892_v54 = vmul.f32 0.851, %v22758_v51  ;;  %v20249_v57 = vld [vmem:[#allocation11 + $0xe70] ss:$24 sps:$4 sm:$0xff]   ;;  %v20263_v28 = vld [vmem:[#allocation11 + $0xe14] ss:$24 sps:$4 sm:$0xff]  }
 0x682   :  { %v22755_v11 = vpack.c.bf16 %v9115_v36, %v9091_v24  ;;  %16274 = vmatpush1.bf16.msra.mxu0 %v20231_v52  ;;  %v8894_v45 = vmul.f32 0.851, %v22761_v9  ;;  %21799 = vtanh.f32 %v8918_v25  ;;  %v20252_v52 = vld [vmem:[#allocation11 + $0x1170] ss:$24 sps:$4 sm:$0xff]   ;;  %v20266_v23 = vld [vmem:[#allocation11 + $0x1114] ss:$24 sps:$4 sm:$0xff]  }
 0x683   :  { %16317 = vmatpush1.bf16.msra.mxu1 %v20234_v62  ;;  %16275 = vmatprep.subr.bf16.mxu0 %v20239_v56  ;;  %21801 = vtanh.f32 %v8892_v54  ;;  %v20255_v62 = vld [vmem:[#allocation11 + $0xe40] ss:$24 sps:$4 sm:$0xff]   ;;  %v20261_v24 = vld [vmem:[#allocation11 + $0xe10] ss:$24 sps:$4 sm:$0xff]   ;;  %v20272_v2 = vld [vmem:[#allocation11 + $0x10e4] ss:$24 sps:$4 sm:$0xff]  }
 0x684   :  { %16318 = vmatprep.subr.bf16.mxu1 %v20242_v6  ;;  %21803 = vtanh.f32 %v8894_v45  ;;  %v20258_v56 = vld [vmem:[#allocation11 + $0x1140] ss:$24 sps:$4 sm:$0xff]   ;;  %v20264_v36 = vld [vmem:[#allocation11 + $0x1110] ss:$24 sps:$4 sm:$0xff]   ;;  %v20269_v6 = vld [vmem:[#allocation11 + $0xde4] ss:$24 sps:$4 sm:$0xff]  }
 0x685   :  { %v20278_v5 = vld [vmem:[#allocation11 + $0x10b4] ss:$24 sps:$4 sm:$0xff]   ;;  %v20276_v45 = vld [vmem:[#allocation11 + $0x10b0] ss:$24 sps:$4 sm:$0xff]  }
 0x686   :  { %16276 = vmatpush2.bf16.msra.mxu0 %v20237_v58  ;;  %v20267_v58 = vld [vmem:[#allocation11 + $0xde0] ss:$24 sps:$4 sm:$0xff]  }
 0x687   :  { %16319 = vmatpush2.bf16.msra.mxu1 %v20240_v61  ;;  %16277 = vmatprep.subr.bf16.mxu0 %v20245_v63  ;;  %v20270_v61 = vld [vmem:[#allocation11 + $0x10e0] ss:$24 sps:$4 sm:$0xff]   ;;  %v20275_v63 = vld [vmem:[#allocation11 + $0xdb4] ss:$24 sps:$4 sm:$0xff]  }
 0x688   :  { %16320 = vmatprep.subr.bf16.mxu1 %v20248_v50  ;;  %v8784_v50 = vpop.f32.mrf.mxu1 }
 0x68a   :  { %16278 = vmatpush2.bf16.msra.mxu0 %v20243_v12 }
 0x68b   :  { %16321 = vmatpush2.bf16.msra.mxu1 %v20246_v53  ;;  %16279 = vmatprep.subr.bf16.mxu0 %v20251_v26  ;;  %v20273_v53 = vld [vmem:[#allocation11 + $0xdb0] ss:$24 sps:$4 sm:$0xff]  }
 0x68c   :  { %16322 = vmatprep.subr.bf16.mxu1 %v20254_v49  ;;  %v20281_v49 = vld [vmem:[#allocation11 + $0xd84] ss:$24 sps:$4 sm:$0xff]  }
 0x68d   :  { %v21798_v4 = vpop.eup %21797 }
 0x68e   :  { %16280 = vmatpush2.bf16.msra.mxu0 %v20249_v57  ;;  %v9012_v12 = vadd.f32 1.0, %v21798_v4 }
 0x68f   :  { %16323 = vmatpush2.bf16.msra.mxu1 %v20252_v52  ;;  %16281 = vmatprep.subr.bf16.mxu0 %v20257_v42  ;;  %v21800_v32 = vpop.eup %21799  ;;  %v22769_v52 = vpop.f32.mrf.mxu1  ;;  %v20284_v42 = vld [vmem:[#allocation11 + $0x1084] ss:$24 sps:$4 sm:$0xff]  }
 0x690   :  { %16324 = vmatprep.subr.bf16.mxu1 %v20260_v0  ;;  %v21802_v15 = vpop.eup %21801  ;;  %v9014_v54 = vadd.f32 1.0, %v21800_v32  ;;  %v9060_v0 = vmul.f32 0.5, %v9012_v12 }
 0x691   :  { %v21804_v25 = vpop.eup %21803  ;;  %v8988_v26 = vadd.f32 1.0, %v21802_v15  ;;  %v8788_v4 = vpop.f32.mrf.mxu1 }
 0x692   :  { %16282 = vmatpush2.bf16.msra.mxu0 %v20255_v62  ;;  %v8990_v57 = vadd.f32 1.0, %v21804_v25  ;;  %v9062_v62 = vmul.f32 0.5, %v9014_v54  ;;  %v9108_v32 = vmul.f32 %v9060_v0, %v22750_v3  ;;  %v20288_v25 = vld [vmem:[#allocation11 + $0x1650] ss:$24 sps:$4 sm:$0xff]  }
 0x693   :  { %16325 = vmatpush2.bf16.msra.mxu1 %v20258_v56  ;;  %16283 = vmatprep.subr.bf16.mxu0 %v20263_v28  ;;  %v20279_v56 = vld [vmem:[#allocation11 + $0xd80] ss:$24 sps:$4 sm:$0xff]   ;;  %v9036_v28 = vmul.f32 0.5, %v8988_v26  ;;  %v20293_v26 = vld [vmem:[#allocation11 + $0x1324] ss:$24 sps:$4 sm:$0xff]   ;;  %v23201_v3 = vld [vmem:[#allocation37_spill] sm:$0xff] }
 0x694   :  { %16326 = vmatprep.subr.bf16.mxu1 %v20266_v23  ;;  %v20282_v23 = vld [vmem:[#allocation11 + $0x1080] ss:$24 sps:$4 sm:$0xff]  }
 0x695   :  { %v9084_v15 = vmul.f32 %v9036_v28, %v22758_v51 }
 0x696   :  { %16284 = vmatpush2.bf16.msra.mxu0 %v20261_v24  ;;  %v20287_v24 = vld [vmem:[#allocation11 + $0x1354] ss:$24 sps:$4 sm:$0xff]  }
 0x697   :  { %16327 = vmatpush2.bf16.msra.mxu1 %v20264_v36  ;;  %16285 = vmatprep.subr.bf16.mxu0 %v20269_v6  ;;  %v9038_v36 = vmul.f32 0.5, %v8990_v57  ;;  %v23200_v6 = vld [vmem:[#allocation29_spill] sm:$0xff] }
 0x698   :  { %16328 = vmatprep.subr.bf16.mxu1 %v20272_v2  ;;  %v1542_v2 = vrot.slane %v22655_v35, %v23200_v6 }
 0x699   :  { %v9086_v12 = vmul.f32 %v9038_v36, %v22761_v9  ;;  %v20302_v36 = vld [vmem:[#allocation11 + $0x15f4] ss:$24 sps:$4 sm:$0xff]  }
 0x69a   :  { %16286 = vmatpush2.bf16.msra.mxu0 %v20267_v58  ;;  %v20290_v58 = vld [vmem:[#allocation11 + $0x1654] ss:$24 sps:$4 sm:$0xff]   ;;  %v8785_v54 = vadd.f32 %v8784_v50, %v1542_v2  ;;  %v20294_v50 = vld [vmem:[#allocation11 + $0x1620] ss:$24 sps:$4 sm:$0xff]   ;;  %v8789_v28 = vadd.f32 %v8788_v4, %v1542_v2  ;;  %v20305_v2 = vld [vmem:[#allocation11 + $0x12c4] ss:$24 sps:$4 sm:$0xff]  }
 0x69b   :  { %16329 = vmatpush2.bf16.msra.mxu1 %v20270_v61  ;;  %16287 = vmatprep.subr.bf16.mxu0 %v20275_v63  ;;  %v9110_v61 = vmul.f32 %v9062_v62, %v22753_v30  ;;  %v20285_v63 = vld [vmem:[#allocation11 + $0x1350] ss:$24 sps:$4 sm:$0xff]   ;;  %v22782_v30 = vpack.c.bf16 %v9108_v32, %v9084_v15  ;;  %v20291_v62 = vld [vmem:[#allocation11 + $0x1320] ss:$24 sps:$4 sm:$0xff]  }
 0x69c   :  { %16330 = vmatprep.subr.bf16.mxu1 %v20278_v5  ;;  %v22776_v5 = vpop.f32.mrf.mxu0  ;;  %v20300_v15 = vld [vmem:[#allocation11 + $0x15f0] ss:$24 sps:$4 sm:$0xff]  }
 0x69d   :  { %v22785_v0 = vpack.c.bf16 %v9110_v61, %v9086_v12  ;;  %v20297_v61 = vld [vmem:[#allocation11 + $0x12f0] ss:$24 sps:$4 sm:$0xff]  }
 0x69e   :  { %16288 = vmatpush2.bf16.msra.mxu0 %v20273_v53  ;;  %v22779_v53 = vpop.f32.mrf.mxu1 }
 0x69f   :  { %16331 = vmatpush2.bf16.msra.mxu1 %v20276_v45  ;;  %16289 = vmatprep.subr.bf16.mxu0 %v20281_v49  ;;  %v20296_v49 = vld [vmem:[#allocation11 + $0x1624] ss:$24 sps:$4 sm:$0xff]  }
 0x6a0   :  { %16332 = vmatprep.subr.bf16.mxu1 %v20284_v42  ;;  %v23202_v42 = vld [vmem:[#allocation44_spill] sm:$0xff] }
 0x6a2   :  { %16290 = vmatpush2.bf16.msra.mxu0 %v20279_v56  ;;  %v20299_v56 = vld [vmem:[#allocation11 + $0x12f4] ss:$24 sps:$4 sm:$0xff]  }
 0x6a3   :  { %16333 = vmatpush2.bf16.msra.mxu1 %v20282_v23  ;;  %16345 = vmatprep.subr.bf16.mxu0 %v20287_v24 }
 0x6a4   :  { %16388 = vmatprep.subr.bf16.mxu1 %v20290_v58 }
 0x6a5   :  { %v8827_v45 = vpop.f32.mrf.mxu0  ;;  %16292 = vmatmul.mubr.bf16.vlgmr.msra.gmra.mxu0 %v23201_v3 }
 0x6a6   :  { %v8828_v57 = vadd.f32 %v8827_v45, %v8785_v54  ;;  %v8870_v51 = vpop.f32.mrf.mxu1  ;;  %16335 = vmatmul.mubr.bf16.vlgmr.msra.gmra.mxu1 %v23202_v42  ;;  %16346 = vmatpush1.bf16.msra.mxu0 %v20285_v63  ;;  %v20303_v54 = vld [vmem:[#allocation11 + $0x12c0] ss:$24 sps:$4 sm:$0xff]   ;;  %v20311_v45 = vld [vmem:[#allocation11 + $0x1294] ss:$24 sps:$4 sm:$0xff]  }
 0x6a7   :  { %16377 = vmatprep.mubr.bf16.mxu0 %v22782_v30  ;;  %16389 = vmatpush1.bf16.msra.mxu1 %v20288_v25  ;;  %v22788_v9 = vpop.f32.mrf.mxu0  ;;  %v20308_v25 = vld [vmem:[#allocation11 + $0x15c4] ss:$24 sps:$4 sm:$0xff]  }
 0x6a8   :  { %v22790_v23 = vadd.f32 %v8870_v51, %v8828_v57  ;;  %16420 = vmatprep.mubr.bf16.mxu1 %v22785_v0  ;;  %v22793_v24 = vpop.f32.mrf.mxu1  ;;  %16347 = vmatprep.subr.bf16.mxu0 %v20293_v26  ;;  %v20306_v26 = vld [vmem:[#allocation11 + $0x15c0] ss:$24 sps:$4 sm:$0xff]   ;;  %v20309_v57 = vld [vmem:[#allocation11 + $0x1290] ss:$24 sps:$4 sm:$0xff]  }
 0x6a9   :  { %v8831_v6 = vpop.f32.mrf.mxu0  ;;  %16390 = vmatprep.subr.bf16.mxu1 %v20296_v49  ;;  %v20314_v49 = vld [vmem:[#allocation11 + $0x1594] ss:$24 sps:$4 sm:$0xff]   ;;  %v20312_v51 = vld [vmem:[#allocation11 + $0x1590] ss:$24 sps:$4 sm:$0xff]  }
 0x6aa   :  { %v8901_v58 = vmul.f32 0.851, %v22790_v23  ;;  %v8832_v32 = vadd.f32 %v8831_v6, %v8789_v28  ;;  %16348 = vmatpush1.bf16.msra.mxu0 %v20291_v62  ;;  %v8874_v63 = vpop.f32.mrf.mxu1  ;;  %v20317_v62 = vld [vmem:[#allocation11 + $0x1264] ss:$24 sps:$4 sm:$0xff]   ;;  %v20318_v28 = vld [vmem:[#allocation11 + $0x1560] ss:$24 sps:$4 sm:$0xff]  }
 0x6ab   :  { %16391 = vmatpush1.bf16.msra.mxu1 %v20294_v50  ;;  %16349 = vmatprep.subr.bf16.mxu0 %v20299_v56  ;;  %v20320_v50 = vld [vmem:[#allocation11 + $0x1564] ss:$24 sps:$4 sm:$0xff]   ;;  %v20315_v56 = vld [vmem:[#allocation11 + $0x1260] ss:$24 sps:$4 sm:$0xff]   ;;  %v20326_v6 = vld [vmem:[#allocation11 + $0x1534] ss:$24 sps:$4 sm:$0xff]  }
 0x6ac   :  { %21805 = vtanh.f32 %v8901_v58  ;;  %v22796_v4 = vadd.f32 %v8874_v63, %v8832_v32  ;;  %16392 = vmatprep.subr.bf16.mxu1 %v20302_v36  ;;  %v20323_v36 = vld [vmem:[#allocation11 + $0x1234] ss:$24 sps:$4 sm:$0xff]   ;;  %v1522_v32 = vrot.slane %v22655_v35, %v22172_v39 }
 0x6ae   :  { %v8925_v12 = vmul.f32 0.851, %v22796_v4  ;;  %16350 = vmatpush1.bf16.msra.mxu0 %v20297_v61  ;;  %v1530_v61 = vrot.slane %v22655_v35, %v22175_v41 }
 0x6af   :  { %16393 = vmatpush1.bf16.msra.mxu1 %v20300_v15  ;;  %16351 = vmatprep.subr.bf16.mxu0 %v20305_v2  ;;  %v20321_v15 = vld [vmem:[#allocation11 + $0x1230] ss:$24 sps:$4 sm:$0xff]  }
 0x6b0   :  { %21807 = vtanh.f32 %v8925_v12  ;;  %16394 = vmatprep.subr.bf16.mxu1 %v20308_v25  ;;  %v23203_v2 = vld [vmem:[#allocation60_spill] sm:$0xff] }
 0x6b1   :  { %v8404_v25 = vadd.f32 %v23203_v2, %v1522_v32  ;;  %v20324_v12 = vld [vmem:[#allocation11 + $0x1530] ss:$24 sps:$4 sm:$0xff]   ;;  %v20335_v2 = vld [vmem:[#allocation11 + $0x14d4] ss:$24 sps:$4 sm:$0xff]  }
 0x6b2   :  { %16352 = vmatpush1.bf16.msra.mxu0 %v20303_v54  ;;  %v20329_v54 = vld [vmem:[#allocation11 + $0x1204] ss:$24 sps:$4 sm:$0xff]  }
 0x6b3   :  { %16395 = vmatpush1.bf16.msra.mxu1 %v20306_v26  ;;  %16353 = vmatprep.subr.bf16.mxu0 %v20311_v45  ;;  %v8533_v26 = vadd.f32 %v22598_v10, %v1530_v61  ;;  %v20332_v45 = vld [vmem:[#allocation11 + $0x1504] ss:$24 sps:$4 sm:$0xff]  }
 0x6b4   :  { %16396 = vmatprep.subr.bf16.mxu1 %v20314_v49 }
 0x6b5   :  { %v8576_v35 = vadd.f32 %v22660_v33, %v8533_v26  ;;  %v20339_v26 = vld [vmem:[#allocation11 + $0x14a0] ss:$24 sps:$4 sm:$0xff]  }
 0x6b6   :  { %16354 = vmatpush1.bf16.msra.mxu0 %v20309_v57  ;;  %v23204_v57 = vld [vmem:[#allocation58_spill] sm:$0xff] }
 0x6b7   :  { %16397 = vmatpush1.bf16.msra.mxu1 %v20312_v51  ;;  %16355 = vmatprep.subr.bf16.mxu0 %v20317_v62  ;;  %v8400_v51 = vadd.f32 %v23204_v57, %v1522_v32  ;;  %v8529_v62 = vadd.f32 %v22588_v14, %v1530_v61  ;;  %v23205_v32 = vld [vmem:[#allocation59_spill] sm:$0xff]  ;;  %v22815_v33 = vadd.f32 %v22663_v37, %v8576_v35  ;;  %v20348_v35 = vld [vmem:[#allocation11 + $0x1770] ss:$24 sps:$4 sm:$0xff]  }
 0x6b8   :  { %16398 = vmatprep.subr.bf16.mxu1 %v20320_v50  ;;  %v20344_v37 = vld [vmem:[#allocation11 + $0x17a4] ss:$24 sps:$4 sm:$0xff]  }
 0x6b9   :  { %v21806_v58 = vpop.eup %21805  ;;  %v8572_v10 = vadd.f32 %v22607_v34, %v8529_v62  ;;  %v8443_v57 = vadd.f32 %v23205_v32, %v8400_v51  ;;  %v20336_v34 = vld [vmem:[#allocation11 + $0x17d0] ss:$24 sps:$4 sm:$0xff]   ;;  %v20347_v51 = vld [vmem:[#allocation11 + $0x1474] ss:$24 sps:$4 sm:$0xff]   ;;  %v20365_v32 = vld [vmem:[#allocation11 + $0x13e4] ss:$24 sps:$4 sm:$0xff]  }
 0x6ba   :  { %v8997_v63 = vadd.f32 1.0, %v21806_v58  ;;  %16356 = vmatpush1.bf16.msra.mxu0 %v20315_v56  ;;  %v20327_v58 = vld [vmem:[#allocation11 + $0x1200] ss:$24 sps:$4 sm:$0xff]  }
 0x6bb   :  { %16399 = vmatpush1.bf16.msra.mxu1 %v20318_v28  ;;  %16357 = vmatprep.subr.bf16.mxu0 %v20323_v36  ;;  %v8447_v28 = vadd.f32 %v22586_v1, %v8404_v25  ;;  %v20330_v36 = vld [vmem:[#allocation11 + $0x1500] ss:$24 sps:$4 sm:$0xff]  }
 0x6bc   :  { %16400 = vmatprep.subr.bf16.mxu1 %v20326_v6  ;;  %v9045_v50 = vmul.f32 0.5, %v8997_v63  ;;  %v20333_v63 = vld [vmem:[#allocation11 + $0x14d0] ss:$24 sps:$4 sm:$0xff]  }
 0x6bd   :  { %v21808_v49 = vpop.eup %21807  ;;  %v22812_v14 = vadd.f32 %v22595_v21, %v8447_v28  ;;  %v20354_v28 = vld [vmem:[#allocation11 + $0x1740] ss:$24 sps:$4 sm:$0xff]  }
 0x6be   :  { %v9021_v56 = vadd.f32 1.0, %v21808_v49  ;;  %16358 = vmatpush1.bf16.msra.mxu0 %v20321_v15  ;;  %v9093_v61 = vmul.f32 %v9045_v50, %v22790_v23  ;;  %v23206_v15 = vld [vmem:[#allocation61_spill] sm:$0xff]  ;;  %v20342_v49 = vld [vmem:[#allocation11 + $0x17a0] ss:$24 sps:$4 sm:$0xff]   ;;  %v20353_v50 = vld [vmem:[#allocation11 + $0x1444] ss:$24 sps:$4 sm:$0xff]  }
 0x6bf   :  { %16401 = vmatpush1.bf16.msra.mxu1 %v20324_v12  ;;  %16359 = vmatprep.subr.bf16.mxu0 %v20329_v54  ;;  %v22820_v25 = vadd.f32 %v23206_v15, %v8443_v57  ;;  %v20341_v12 = vld [vmem:[#allocation11 + $0x14a4] ss:$24 sps:$4 sm:$0xff]   ;;  %v22823_v54 = vadd.f32 %v22612_v60, %v8572_v10  ;;  %v8920_v23 = vmul.f32 0.851, %v22812_v14  ;;  %v20350_v60 = vld [vmem:[#allocation11 + $0x1774] ss:$24 sps:$4 sm:$0xff]  }
 0x6c0   :  { %v9069_v6 = vmul.f32 0.5, %v9021_v56  ;;  %16402 = vmatprep.subr.bf16.mxu1 %v20332_v45  ;;  %v20356_v56 = vld [vmem:[#allocation11 + $0x1744] ss:$24 sps:$4 sm:$0xff]   ;;  %v20357_v10 = vld [vmem:[#allocation11 + $0x1410] ss:$24 sps:$4 sm:$0xff]  }
 0x6c1   :  { %v8896_v45 = vmul.f32 0.851, %v22820_v25  ;;  %v8898_v62 = vmul.f32 0.851, %v22823_v54  ;;  %21809 = vtanh.f32 %v8920_v23  ;;  %v20368_v57 = vld [vmem:[#allocation11 + $0x16e4] ss:$24 sps:$4 sm:$0xff]  }
 0x6c2   :  { %v9117_v1 = vmul.f32 %v9069_v6, %v22796_v4  ;;  %16360 = vmatpush1.bf16.msra.mxu0 %v20327_v58  ;;  %v8922_v4 = vmul.f32 0.851, %v22815_v33  ;;  %v20351_v58 = vld [vmem:[#allocation11 + $0x1440] ss:$24 sps:$4 sm:$0xff]   ;;  %v20360_v6 = vld [vmem:[#allocation11 + $0x1710] ss:$24 sps:$4 sm:$0xff]  }
 0x6c3   :  { %16403 = vmatpush1.bf16.msra.mxu1 %v20330_v36  ;;  %16361 = vmatprep.subr.bf16.mxu0 %v20335_v2  ;;  %v20359_v36 = vld [vmem:[#allocation11 + $0x1414] ss:$24 sps:$4 sm:$0xff]   ;;  %v20366_v15 = vld [vmem:[#allocation11 + $0x16e0] ss:$24 sps:$4 sm:$0xff]  }
 0x6c4   :  { %v22825_v21 = vpack.c.bf16 %v9117_v1, %v9093_v61  ;;  %16404 = vmatprep.subr.bf16.mxu1 %v20338_v46  ;;  %21811 = vtanh.f32 %v8922_v4  ;;  %v20345_v46 = vld [vmem:[#allocation11 + $0x1470] ss:$24 sps:$4 sm:$0xff]   ;;  %v20362_v2 = vld [vmem:[#allocation11 + $0x1714] ss:$24 sps:$4 sm:$0xff]   ;;  %v20363_v1 = vld [vmem:[#allocation11 + $0x13e0] ss:$24 sps:$4 sm:$0xff]  }
 0x6c5   :  { %21813 = vtanh.f32 %v8896_v45  ;;  %v20369_v45 = vld [vmem:[#allocation11 + $0x13b0] ss:$24 sps:$4 sm:$0xff]  }
 0x6c6   :  { %16362 = vmatpush2.bf16.msra.mxu0 %v20333_v63  ;;  %21815 = vtanh.f32 %v8898_v62  ;;  %v20377_v62 = vld [vmem:[#allocation11 + $0x1384] ss:$24 sps:$4 sm:$0xff]  }
 0x6c7   :  { %16405 = vmatpush2.bf16.msra.mxu1 %v20336_v34  ;;  %16363 = vmatprep.subr.bf16.mxu0 %v20341_v12  ;;  %v20371_v34 = vld [vmem:[#allocation11 + $0x13b4] ss:$24 sps:$4 sm:$0xff]  }
 0x6c8   :  { %16406 = vmatprep.subr.bf16.mxu1 %v20344_v37  ;;  %v20374_v37 = vld [vmem:[#allocation11 + $0x16b4] ss:$24 sps:$4 sm:$0xff]  }
 0x6ca   :  { %16364 = vmatpush2.bf16.msra.mxu0 %v20339_v26 }
 0x6cb   :  { %16407 = vmatpush2.bf16.msra.mxu1 %v20342_v49  ;;  %16365 = vmatprep.subr.bf16.mxu0 %v20347_v51  ;;  %v20372_v51 = vld [vmem:[#allocation11 + $0x16b0] ss:$24 sps:$4 sm:$0xff]  }
 0x6cc   :  { %16408 = vmatprep.subr.bf16.mxu1 %v20350_v60 }
 0x6ce   :  { %16366 = vmatpush2.bf16.msra.mxu0 %v20345_v46  ;;  %v21810_v61 = vpop.eup %21809  ;;  %v20380_v46 = vld [vmem:[#allocation11 + $0x1684] ss:$24 sps:$4 sm:$0xff]  }
 0x6cf   :  { %16409 = vmatpush2.bf16.msra.mxu1 %v20348_v35  ;;  %16367 = vmatprep.subr.bf16.mxu0 %v20353_v50  ;;  %v9016_v4 = vadd.f32 1.0, %v21810_v61 }
 0x6d0   :  { %16410 = vmatprep.subr.bf16.mxu1 %v20356_v56  ;;  %v20375_v56 = vld [vmem:[#allocation11 + $0x1380] ss:$24 sps:$4 sm:$0xff]  }
 0x6d1   :  { %v21812_v63 = vpop.eup %21811  ;;  %v9064_v35 = vmul.f32 0.5, %v9016_v4  ;;  %v20395_v4 = vld [vmem:[#allocation11 + $0x18f4] ss:$24 sps:$4 sm:$0xff]  }
 0x6d2   :  { %16368 = vmatpush2.bf16.msra.mxu0 %v20351_v58  ;;  %v21814_v12 = vpop.eup %21813  ;;  %v9018_v26 = vadd.f32 1.0, %v21812_v63 }
 0x6d3   :  { %16411 = vmatpush2.bf16.msra.mxu1 %v20354_v28  ;;  %16369 = vmatprep.subr.bf16.mxu0 %v20359_v36  ;;  %v21816_v23 = vpop.eup %21815  ;;  %v8992_v49 = vadd.f32 1.0, %v21814_v12  ;;  %v20378_v28 = vld [vmem:[#allocation11 + $0x1680] ss:$24 sps:$4 sm:$0xff]   ;;  %v20383_v36 = vld [vmem:[#allocation11 + $0x1954] ss:$24 sps:$4 sm:$0xff]  }
 0x6d4   :  { %16412 = vmatprep.subr.bf16.mxu1 %v20362_v2  ;;  %v8994_v60 = vadd.f32 1.0, %v21816_v23  ;;  %v9066_v50 = vmul.f32 0.5, %v9018_v26  ;;  %v23208_v23 = vld [vmem:[#allocation57_spill] sm:$0xff] }
 0x6d5   :  { %v9040_v58 = vmul.f32 0.5, %v8992_v49  ;;  %v20393_v26 = vld [vmem:[#allocation11 + $0x18f0] ss:$24 sps:$4 sm:$0xff]   ;;  %v20401_v49 = vld [vmem:[#allocation11 + $0x18c4] ss:$24 sps:$4 sm:$0xff]  }
 0x6d6   :  { %16370 = vmatpush2.bf16.msra.mxu0 %v20357_v10  ;;  %v9042_v2 = vmul.f32 0.5, %v8994_v60  ;;  %v20386_v10 = vld [vmem:[#allocation11 + $0x1c54] ss:$24 sps:$4 sm:$0xff]   ;;  %v20402_v60 = vld [vmem:[#allocation11 + $0x1bc0] ss:$24 sps:$4 sm:$0xff]  }
 0x6d7   :  { %16413 = vmatpush2.bf16.msra.mxu1 %v20360_v6  ;;  %16371 = vmatprep.subr.bf16.mxu0 %v20365_v32  ;;  %v9112_v6 = vmul.f32 %v9064_v35, %v22812_v14  ;;  %v9114_v32 = vmul.f32 %v9066_v50, %v22815_v33  ;;  %v9088_v61 = vmul.f32 %v9040_v58, %v22820_v25  ;;  %v20387_v33 = vld [vmem:[#allocation11 + $0x1920] ss:$24 sps:$4 sm:$0xff]   ;;  %v20410_v35 = vld [vmem:[#allocation11 + $0x1b94] ss:$24 sps:$4 sm:$0xff]   ;;  %v20405_v50 = vld [vmem:[#allocation11 + $0x1890] ss:$24 sps:$4 sm:$0xff]  }
 0x6d8   :  { %16414 = vmatprep.subr.bf16.mxu1 %v20368_v57  ;;  %v20381_v57 = vld [vmem:[#allocation11 + $0x1950] ss:$24 sps:$4 sm:$0xff]   ;;  %v9090_v63 = vmul.f32 %v9042_v2, %v22823_v54  ;;  %v20390_v25 = vld [vmem:[#allocation11 + $0x1c20] ss:$24 sps:$4 sm:$0xff]   ;;  %v20398_v54 = vld [vmem:[#allocation11 + $0x1bf4] ss:$24 sps:$4 sm:$0xff]  }
 0x6d9   :  { %v22836_v12 = vpack.c.bf16 %v9112_v6, %v9088_v61  ;;  %v20413_v58 = vld [vmem:[#allocation11 + $0x1864] ss:$24 sps:$4 sm:$0xff]   ;;  %v20414_v2 = vld [vmem:[#allocation11 + $0x1b60] ss:$24 sps:$4 sm:$0xff]   ;;  %v20422_v6 = vld [vmem:[#allocation11 + $0x1b34] ss:$24 sps:$4 sm:$0xff]  }
 0x6da   :  { %16372 = vmatpush2.bf16.msra.mxu0 %v20363_v1  ;;  %v20384_v1 = vld [vmem:[#allocation11 + $0x1c50] ss:$24 sps:$4 sm:$0xff]   ;;  %v22839_v14 = vpack.c.bf16 %v9114_v32, %v9090_v63  ;;  %v21842_v32 = vld [vmem:[#allocation10 + $0x10] sm:$0xff] }
 0x6db   :  { %16415 = vmatpush2.bf16.msra.mxu1 %v20366_v15  ;;  %16373 = vmatprep.subr.bf16.mxu0 %v20371_v34  ;;  %v20389_v15 = vld [vmem:[#allocation11 + $0x1924] ss:$24 sps:$4 sm:$0xff]   ;;  %v1546_v61 = vrot.slane %v21842_v32, %v22619_v31  ;;  %v20423_v31 = vld [vmem:[#allocation11 + $0x1800] ss:$24 sps:$4 sm:$0xff]  }
 0x6dc   :  { %16416 = vmatprep.subr.bf16.mxu1 %v20374_v37  ;;  %v23207_v34 = vld [vmem:[#allocation51_spill] sm:$0xff] }
 0x6dd   :  { %v20392_v37 = vld [vmem:[#allocation11 + $0x1c24] ss:$24 sps:$4 sm:$0xff]  }
 0x6de   :  { %16374 = vmatpush2.bf16.msra.mxu0 %v20369_v45  ;;  %v20396_v45 = vld [vmem:[#allocation11 + $0x1bf0] ss:$24 sps:$4 sm:$0xff]  }
 0x6df   :  { %16417 = vmatpush2.bf16.msra.mxu1 %v20372_v51  ;;  %16375 = vmatprep.subr.bf16.mxu0 %v20377_v62  ;;  %v20404_v51 = vld [vmem:[#allocation11 + $0x1bc4] ss:$24 sps:$4 sm:$0xff]   ;;  %v20399_v62 = vld [vmem:[#allocation11 + $0x18c0] ss:$24 sps:$4 sm:$0xff]  }
 0x6e0   :  { %16418 = vmatprep.subr.bf16.mxu1 %v20380_v46  ;;  %v20407_v46 = vld [vmem:[#allocation11 + $0x1894] ss:$24 sps:$4 sm:$0xff]  }
 0x6e2   :  { %16376 = vmatpush2.bf16.msra.mxu0 %v20375_v56  ;;  %v20408_v56 = vld [vmem:[#allocation11 + $0x1b90] ss:$24 sps:$4 sm:$0xff]  }
 0x6e3   :  { %16419 = vmatpush2.bf16.msra.mxu1 %v20378_v28  ;;  %16431 = vmatprep.subr.bf16.mxu0 %v20383_v36  ;;  %v20416_v28 = vld [vmem:[#allocation11 + $0x1b64] ss:$24 sps:$4 sm:$0xff]   ;;  %v20411_v36 = vld [vmem:[#allocation11 + $0x1860] ss:$24 sps:$4 sm:$0xff]  }
 0x6e4   :  { %16474 = vmatprep.subr.bf16.mxu1 %v20386_v10  ;;  %v20419_v10 = vld [vmem:[#allocation11 + $0x1834] ss:$24 sps:$4 sm:$0xff]  }
 0x6e5   :  { %16378 = vmatmul.mubr.bf16.vlgmr.msra.gmra.mxu0 %v23207_v34 }
 0x6e6   :  { %16421 = vmatmul.mubr.bf16.vlgmr.msra.gmra.mxu1 %v23208_v23  ;;  %16432 = vmatpush1.bf16.msra.mxu0 %v20381_v57  ;;  %v1538_v57 = vrot.slane %v21842_v32, %v22187_v48  ;;  %v20444_v32 = vld [vmem:[#allocation11 + $0x1d70] ss:$24 sps:$4 sm:$0xff]   ;;  %v20827_v48 = vld [vmem:[#allocation11 + $0xe7c] ss:$24 sps:$4 sm:$0xff]  }
 0x6e7   :  { %16463 = vmatprep.mubr.bf16.mxu0 %v22836_v12  ;;  %16475 = vmatpush1.bf16.msra.mxu1 %v20384_v1  ;;  %v20417_v1 = vld [vmem:[#allocation11 + $0x1830] ss:$24 sps:$4 sm:$0xff]  }
 0x6e8   :  { %16506 = vmatprep.mubr.bf16.mxu1 %v22839_v14  ;;  %16433 = vmatprep.subr.bf16.mxu0 %v20389_v15  ;;  %v8662_v63 = vadd.f32 %v22714_v43, %v1538_v57  ;;  %v8833_v15 = vpop.f32.mrf.mxu0  ;;  %v20426_v43 = vld [vmem:[#allocation11 + $0x1b00] ss:$24 sps:$4 sm:$0xff]  }
 0x6e9   :  { %16476 = vmatprep.subr.bf16.mxu1 %v20392_v37  ;;  %v20420_v37 = vld [vmem:[#allocation11 + $0x1b30] ss:$24 sps:$4 sm:$0xff]  }
 0x6ea   :  { %16434 = vmatpush1.bf16.msra.mxu0 %v20387_v33  ;;  %v20425_v33 = vld [vmem:[#allocation11 + $0x1804] ss:$24 sps:$4 sm:$0xff]  }
 0x6eb   :  { %16477 = vmatpush1.bf16.msra.mxu1 %v20390_v25  ;;  %16435 = vmatprep.subr.bf16.mxu0 %v20395_v4  ;;  %v8791_v25 = vadd.f32 %v22779_v53, %v1546_v61  ;;  %v20428_v4 = vld [vmem:[#allocation11 + $0x1b04] ss:$24 sps:$4 sm:$0xff]  }
 0x6ec   :  { %16478 = vmatprep.subr.bf16.mxu1 %v20398_v54  ;;  %v8658_v54 = vadd.f32 %v22672_v18, %v1538_v57  ;;  %v8876_v18 = vpop.f32.mrf.mxu1  ;;  %v20449_v57 = vld [vmem:[#allocation11 + $0x1a44] ss:$24 sps:$4 sm:$0xff]  }
 0x6ee   :  { %16436 = vmatpush1.bf16.msra.mxu0 %v20393_v26  ;;  %v8787_v26 = vadd.f32 %v22769_v52, %v1546_v61  ;;  %v8701_v53 = vadd.f32 %v22677_v13, %v8658_v54  ;;  %v20440_v13 = vld [vmem:[#allocation11 + $0x1da4] ss:$24 sps:$4 sm:$0xff]  }
 0x6ef   :  { %16479 = vmatpush1.bf16.msra.mxu1 %v20396_v45  ;;  %16437 = vmatprep.subr.bf16.mxu0 %v20401_v49  ;;  %v8834_v45 = vadd.f32 %v8833_v15, %v8791_v25  ;;  %v8705_v49 = vadd.f32 %v22767_v20, %v8662_v63  ;;  %v20452_v61 = vld [vmem:[#allocation11 + $0x1d44] ss:$24 sps:$4 sm:$0xff]   ;;  %v20450_v63 = vld [vmem:[#allocation11 + $0x1d40] ss:$24 sps:$4 sm:$0xff]   ;;  %v20455_v15 = vld [vmem:[#allocation11 + $0x1a14] ss:$24 sps:$4 sm:$0xff]  }
 0x6f0   :  { %16480 = vmatprep.subr.bf16.mxu1 %v20404_v51  ;;  %v20431_v51 = vld [vmem:[#allocation11 + $0x1ad4] ss:$24 sps:$4 sm:$0xff]   ;;  %v22858_v20 = vadd.f32 %v22727_v17, %v8701_v53  ;;  %v20438_v17 = vld [vmem:[#allocation11 + $0x1da0] ss:$24 sps:$4 sm:$0xff]   ;;  %v20456_v25 = vld [vmem:[#allocation11 + $0x1d10] ss:$24 sps:$4 sm:$0xff]  }
 0x6f1   :  { %v22855_v52 = vadd.f32 %v8876_v18, %v8834_v45  ;;  %v20464_v54 = vld [vmem:[#allocation11 + $0x1ce4] ss:$24 sps:$4 sm:$0xff]   ;;  %v20459_v45 = vld [vmem:[#allocation11 + $0x19e0] ss:$24 sps:$4 sm:$0xff]  }
 0x6f2   :  { %16438 = vmatpush1.bf16.msra.mxu0 %v20399_v62  ;;  %v8830_v62 = vadd.f32 %v22788_v9, %v8787_v26 }
 0x6f3   :  { %16481 = vmatpush1.bf16.msra.mxu1 %v20402_v60  ;;  %16439 = vmatprep.subr.bf16.mxu0 %v20407_v46  ;;  %v20434_v60 = vld [vmem:[#allocation11 + $0x1dd4] ss:$24 sps:$4 sm:$0xff]   ;;  %v22853_v46 = vadd.f32 %v22776_v5, %v8705_v49  ;;  %v20462_v49 = vld [vmem:[#allocation11 + $0x1ce0] ss:$24 sps:$4 sm:$0xff]  }
 0x6f4   :  { %16482 = vmatprep.subr.bf16.mxu1 %v20410_v35  ;;  %v20429_v35 = vld [vmem:[#allocation11 + $0x1ad0] ss:$24 sps:$4 sm:$0xff]   ;;  %v22861_v9 = vadd.f32 %v22793_v24, %v8830_v62  ;;  %v20470_v62 = vld [vmem:[#allocation11 + $0x1cb4] ss:$24 sps:$4 sm:$0xff]  }
 0x6f5   :  { %v8924_v5 = vmul.f32 0.851, %v22853_v46  ;;  %v20441_v24 = vld [vmem:[#allocation11 + $0x1a70] ss:$24 sps:$4 sm:$0xff]  }
 0x6f6   :  { %16440 = vmatpush1.bf16.msra.mxu0 %v20405_v50  ;;  %v20432_v50 = vld [vmem:[#allocation11 + $0x1dd0] ss:$24 sps:$4 sm:$0xff]  }
 0x6f7   :  { %16483 = vmatpush1.bf16.msra.mxu1 %v20408_v56  ;;  %16441 = vmatprep.subr.bf16.mxu0 %v20413_v58  ;;  %v20437_v56 = vld [vmem:[#allocation11 + $0x1aa4] ss:$24 sps:$4 sm:$0xff]   ;;  %v8926_v58 = vmul.f32 0.851, %v22855_v52  ;;  %21817 = vtanh.f32 %v8924_v5 }
 0x6f8   :  { %16484 = vmatprep.subr.bf16.mxu1 %v20416_v28  ;;  %v20435_v28 = vld [vmem:[#allocation11 + $0x1aa0] ss:$24 sps:$4 sm:$0xff]  }
 0x6f9   :  { %21819 = vtanh.f32 %v8926_v58  ;;  %v20476_v58 = vld [vmem:[#allocation11 + $0x1c84] ss:$24 sps:$4 sm:$0xff]  }
 0x6fa   :  { %16442 = vmatpush1.bf16.msra.mxu0 %v20411_v36  ;;  %v8900_v36 = vmul.f32 0.851, %v22858_v20 }
 0x6fb   :  { %16485 = vmatpush1.bf16.msra.mxu1 %v20414_v2  ;;  %16443 = vmatprep.subr.bf16.mxu0 %v20419_v10  ;;  %v20443_v2 = vld [vmem:[#allocation11 + $0x1a74] ss:$24 sps:$4 sm:$0xff]   ;;  %v8902_v10 = vmul.f32 0.851, %v22861_v9 }
 0x6fc   :  { %16486 = vmatprep.subr.bf16.mxu1 %v20422_v6  ;;  %v20446_v6 = vld [vmem:[#allocation11 + $0x1d74] ss:$24 sps:$4 sm:$0xff]   ;;  %21821 = vtanh.f32 %v8900_v36 }
 0x6fd   :  { %21823 = vtanh.f32 %v8902_v10  ;;  %v20474_v10 = vld [vmem:[#allocation11 + $0x1c80] ss:$24 sps:$4 sm:$0xff]  }
 0x6fe   :  { %16444 = vmatpush1.bf16.msra.mxu0 %v20417_v1  ;;  %v20447_v1 = vld [vmem:[#allocation11 + $0x1a40] ss:$24 sps:$4 sm:$0xff]  }
 0x6ff   :  { %16487 = vmatpush1.bf16.msra.mxu1 %v20420_v37  ;;  %16445 = vmatprep.subr.bf16.mxu0 %v20425_v33  ;;  %v20458_v37 = vld [vmem:[#allocation11 + $0x1d14] ss:$24 sps:$4 sm:$0xff]   ;;  %v20453_v33 = vld [vmem:[#allocation11 + $0x1a10] ss:$24 sps:$4 sm:$0xff]  }
 0x700   :  { %16488 = vmatprep.subr.bf16.mxu1 %v20428_v4  ;;  %v20461_v4 = vld [vmem:[#allocation11 + $0x19e4] ss:$24 sps:$4 sm:$0xff]  }
 0x702   :  { %16446 = vmatpush1.bf16.msra.mxu0 %v20423_v31 }
 0x703   :  { %16489 = vmatpush1.bf16.msra.mxu1 %v20426_v43  ;;  %16447 = vmatprep.subr.bf16.mxu0 %v20431_v51  ;;  %v20467_v43 = vld [vmem:[#allocation11 + $0x19b4] ss:$24 sps:$4 sm:$0xff]  }
 0x704   :  { %16490 = vmatprep.subr.bf16.mxu1 %v20434_v60  ;;  %v21818_v26 = vpop.eup %21817 }
 0x705   :  { %v9020_v53 = vadd.f32 1.0, %v21818_v26  ;;  %v20489_v26 = vld [vmem:[#allocation11 + $0x1ef0] ss:$24 sps:$4 sm:$0xff]  }
 0x706   :  { %16448 = vmatpush2.bf16.msra.mxu0 %v20429_v35  ;;  %v21820_v31 = vpop.eup %21819  ;;  %v20465_v35 = vld [vmem:[#allocation11 + $0x19b0] ss:$24 sps:$4 sm:$0xff]  }
 0x707   :  { %16491 = vmatpush2.bf16.msra.mxu1 %v20432_v50  ;;  %16449 = vmatprep.subr.bf16.mxu0 %v20437_v56  ;;  %v9022_v18 = vadd.f32 1.0, %v21820_v31  ;;  %v20468_v56 = vld [vmem:[#allocation11 + $0x1cb0] ss:$24 sps:$4 sm:$0xff]   ;;  %v20497_v31 = vld [vmem:[#allocation11 + $0x1ec4] ss:$24 sps:$4 sm:$0xff]  }
 0x708   :  { %16492 = vmatprep.subr.bf16.mxu1 %v20440_v13  ;;  %v20473_v13 = vld [vmem:[#allocation11 + $0x1984] ss:$24 sps:$4 sm:$0xff]  }
 0x709   :  { %v21822_v51 = vpop.eup %21821  ;;  %v9070_v36 = vmul.f32 0.5, %v9022_v18  ;;  %v20504_v18 = vld [vmem:[#allocation11 + $0x2190] ss:$24 sps:$4 sm:$0xff]  }
 0x70a   :  { %16450 = vmatpush2.bf16.msra.mxu0 %v20435_v28  ;;  %v21824_v60 = vpop.eup %21823  ;;  %v8996_v50 = vadd.f32 1.0, %v21822_v51  ;;  %v9068_v28 = vmul.f32 0.5, %v9020_v53  ;;  %v20498_v51 = vld [vmem:[#allocation11 + $0x21c0] ss:$24 sps:$4 sm:$0xff]   ;;  %v20501_v53 = vld [vmem:[#allocation11 + $0x1e90] ss:$24 sps:$4 sm:$0xff]  }
 0x70b   :  { %16493 = vmatpush2.bf16.msra.mxu1 %v20438_v17  ;;  %16451 = vmatprep.subr.bf16.mxu0 %v20443_v2  ;;  %v8998_v5 = vadd.f32 1.0, %v21824_v60  ;;  %v20471_v17 = vld [vmem:[#allocation11 + $0x1980] ss:$24 sps:$4 sm:$0xff]   ;;  %v20506_v60 = vld [vmem:[#allocation11 + $0x2194] ss:$24 sps:$4 sm:$0xff]  }
 0x70c   :  { %16494 = vmatprep.subr.bf16.mxu1 %v20446_v6  ;;  %v9044_v2 = vmul.f32 0.5, %v8996_v50  ;;  %v20479_v6 = vld [vmem:[#allocation11 + $0x1f54] ss:$24 sps:$4 sm:$0xff]   ;;  %v20512_v50 = vld [vmem:[#allocation11 + $0x2164] ss:$24 sps:$4 sm:$0xff]  }
 0x70e   :  { %16452 = vmatpush2.bf16.msra.mxu0 %v20441_v24  ;;  %v9046_v24 = vmul.f32 0.5, %v8998_v5  ;;  %v20515_v5 = vld [vmem:[#allocation11 + $0x1e34] ss:$24 sps:$4 sm:$0xff]  }
 0x70f   :  { %16495 = vmatpush2.bf16.msra.mxu1 %v20444_v32  ;;  %16453 = vmatprep.subr.bf16.mxu0 %v20449_v57  ;;  %v20482_v32 = vld [vmem:[#allocation11 + $0x2254] ss:$24 sps:$4 sm:$0xff]   ;;  %v9116_v57 = vmul.f32 %v9068_v28, %v22853_v46  ;;  %v20513_v28 = vld [vmem:[#allocation11 + $0x1e30] ss:$24 sps:$4 sm:$0xff]  }
 0x710   :  { %16496 = vmatprep.subr.bf16.mxu1 %v20452_v61  ;;  %v9118_v61 = vmul.f32 %v9070_v36, %v22855_v52  ;;  %v20483_v52 = vld [vmem:[#allocation11 + $0x1f20] ss:$24 sps:$4 sm:$0xff]   ;;  %v20516_v36 = vld [vmem:[#allocation11 + $0x2130] ss:$24 sps:$4 sm:$0xff]  }
 0x712   :  { %16454 = vmatpush2.bf16.msra.mxu0 %v20447_v1  ;;  %v20477_v1 = vld [vmem:[#allocation11 + $0x1f50] ss:$24 sps:$4 sm:$0xff]  }
 0x713   :  { %16497 = vmatpush2.bf16.msra.mxu1 %v20450_v63  ;;  %16455 = vmatprep.subr.bf16.mxu0 %v20455_v15  ;;  %v9092_v63 = vmul.f32 %v9044_v2, %v22858_v20  ;;  %v20480_v15 = vld [vmem:[#allocation11 + $0x2250] ss:$24 sps:$4 sm:$0xff]   ;;  %v20486_v20 = vld [vmem:[#allocation11 + $0x2220] ss:$24 sps:$4 sm:$0xff]   ;;  %v20524_v2 = vld [vmem:[#allocation11 + $0x2104] ss:$24 sps:$4 sm:$0xff]  }
 0x714   :  { %16498 = vmatprep.subr.bf16.mxu1 %v20458_v37  ;;  %v9094_v37 = vmul.f32 %v9046_v24, %v22861_v9  ;;  %v20494_v9 = vld [vmem:[#allocation11 + $0x21f4] ss:$24 sps:$4 sm:$0xff]  }
 0x715   :  { %v20527_v24 = vld [vmem:[#allocation11 + $0x20d4] ss:$24 sps:$4 sm:$0xff]  }
 0x716   :  { %16456 = vmatpush2.bf16.msra.mxu0 %v20453_v33  ;;  %v20485_v33 = vld [vmem:[#allocation11 + $0x1f24] ss:$24 sps:$4 sm:$0xff]   ;;  %v22875_v46 = vpack.c.bf16 %v9118_v61, %v9094_v37  ;;  %v20528_v61 = vld [vmem:[#allocation11 + $0x23d0] ss:$24 sps:$4 sm:$0xff]   ;;  %v20534_v37 = vld [vmem:[#allocation11 + $0x23a0] ss:$24 sps:$4 sm:$0xff]  }
 0x717   :  { %16499 = vmatpush2.bf16.msra.mxu1 %v20456_v25  ;;  %16457 = vmatprep.subr.bf16.mxu0 %v20461_v4  ;;  %v22872_v25 = vpack.c.bf16 %v9116_v57, %v9092_v63  ;;  %v20488_v4 = vld [vmem:[#allocation11 + $0x2224] ss:$24 sps:$4 sm:$0xff]   ;;  %v20525_v57 = vld [vmem:[#allocation11 + $0x20d0] ss:$24 sps:$4 sm:$0xff]  }
 0x718   :  { %16500 = vmatprep.subr.bf16.mxu1 %v20464_v54  ;;  %v20491_v54 = vld [vmem:[#allocation11 + $0x1ef4] ss:$24 sps:$4 sm:$0xff]   ;;  %v20536_v63 = vld [vmem:[#allocation11 + $0x23a4] ss:$24 sps:$4 sm:$0xff]  }
 0x71a   :  { %16458 = vmatpush2.bf16.msra.mxu0 %v20459_v45  ;;  %v20492_v45 = vld [vmem:[#allocation11 + $0x21f0] ss:$24 sps:$4 sm:$0xff]  }
 0x71b   :  { %16501 = vmatpush2.bf16.msra.mxu1 %v20462_v49  ;;  %16459 = vmatprep.subr.bf16.mxu0 %v20467_v43  ;;  %v20500_v49 = vld [vmem:[#allocation11 + $0x21c4] ss:$24 sps:$4 sm:$0xff]   ;;  %v20495_v43 = vld [vmem:[#allocation11 + $0x1ec0] ss:$24 sps:$4 sm:$0xff]  }
 0x71c   :  { %16502 = vmatprep.subr.bf16.mxu1 %v20470_v62  ;;  %v20503_v62 = vld [vmem:[#allocation11 + $0x1e94] ss:$24 sps:$4 sm:$0xff]  }
 0x71e   :  { %16460 = vmatpush2.bf16.msra.mxu0 %v20465_v35  ;;  %v20509_v35 = vld [vmem:[#allocation11 + $0x1e64] ss:$24 sps:$4 sm:$0xff]  }
 0x71f   :  { %16503 = vmatpush2.bf16.msra.mxu1 %v20468_v56  ;;  %16461 = vmatprep.subr.bf16.mxu0 %v20473_v13  ;;  %v20507_v56 = vld [vmem:[#allocation11 + $0x1e60] ss:$24 sps:$4 sm:$0xff]  }
 0x720   :  { %16504 = vmatprep.subr.bf16.mxu1 %v20476_v58  ;;  %v20510_v13 = vld [vmem:[#allocation11 + $0x2160] ss:$24 sps:$4 sm:$0xff]   ;;  %v20518_v58 = vld [vmem:[#allocation11 + $0x2134] ss:$24 sps:$4 sm:$0xff]  }
 0x722   :  { %16462 = vmatpush2.bf16.msra.mxu0 %v20471_v17  ;;  %v20521_v17 = vld [vmem:[#allocation11 + $0x1e04] ss:$24 sps:$4 sm:$0xff]  }
 0x723   :  { %16505 = vmatpush2.bf16.msra.mxu1 %v20474_v10  ;;  %16517 = vmatprep.subr.bf16.mxu0 %v20479_v6  ;;  %v20519_v10 = vld [vmem:[#allocation11 + $0x1e00] ss:$24 sps:$4 sm:$0xff]  }
 0x724   :  { %16560 = vmatprep.subr.bf16.mxu1 %v20482_v32  ;;  %v20522_v6 = vld [vmem:[#allocation11 + $0x2100] ss:$24 sps:$4 sm:$0xff]   ;;  %v20530_v32 = vld [vmem:[#allocation11 + $0x23d4] ss:$24 sps:$4 sm:$0xff]  }
 0x725   :  { %16464 = vmatmul.mubr.bf16.vlgmr.msra.gmra.mxu0 %v22574_v8 }
 0x726   :  { %16507 = vmatmul.mubr.bf16.vlgmr.msra.gmra.mxu1 %v22647_v29  ;;  %16518 = vmatpush1.bf16.msra.mxu0 %v20477_v1  ;;  %v20533_v1 = vld [vmem:[#allocation11 + $0x20a4] ss:$24 sps:$4 sm:$0xff]  }
 0x727   :  { %16549 = vmatprep.mubr.bf16.mxu0 %v22872_v25  ;;  %16561 = vmatpush1.bf16.msra.mxu1 %v20480_v15  ;;  %v20531_v15 = vld [vmem:[#allocation11 + $0x20a0] ss:$24 sps:$4 sm:$0xff]  }
 0x728   :  { %16592 = vmatprep.mubr.bf16.mxu1 %v22875_v46  ;;  %16519 = vmatprep.subr.bf16.mxu0 %v20485_v33  ;;  %v20539_v33 = vld [vmem:[#allocation11 + $0x2074] ss:$24 sps:$4 sm:$0xff]  }
 0x729   :  { %16562 = vmatprep.subr.bf16.mxu1 %v20488_v4  ;;  %v20542_v4 = vld [vmem:[#allocation11 + $0x2374] ss:$24 sps:$4 sm:$0xff]  }
 0x72a   :  { %16520 = vmatpush1.bf16.msra.mxu0 %v20483_v52  ;;  %v20537_v52 = vld [vmem:[#allocation11 + $0x2070] ss:$24 sps:$4 sm:$0xff]  }
 0x72b   :  { %16563 = vmatpush1.bf16.msra.mxu1 %v20486_v20  ;;  %16521 = vmatprep.subr.bf16.mxu0 %v20491_v54  ;;  %v20540_v20 = vld [vmem:[#allocation11 + $0x2370] ss:$24 sps:$4 sm:$0xff]   ;;  %v20545_v54 = vld [vmem:[#allocation11 + $0x2044] ss:$24 sps:$4 sm:$0xff]  }
 0x72c   :  { %16564 = vmatprep.subr.bf16.mxu1 %v20494_v9  ;;  %v20548_v9 = vld [vmem:[#allocation11 + $0x2344] ss:$24 sps:$4 sm:$0xff]  }
 0x72e   :  { %16522 = vmatpush1.bf16.msra.mxu0 %v20489_v26  ;;  %v20543_v26 = vld [vmem:[#allocation11 + $0x2040] ss:$24 sps:$4 sm:$0xff]  }
 0x72f   :  { %16565 = vmatpush1.bf16.msra.mxu1 %v20492_v45  ;;  %16523 = vmatprep.subr.bf16.mxu0 %v20497_v31  ;;  %v20546_v45 = vld [vmem:[#allocation11 + $0x2340] ss:$24 sps:$4 sm:$0xff]   ;;  %v20551_v31 = vld [vmem:[#allocation11 + $0x2014] ss:$24 sps:$4 sm:$0xff]  }
 0x730   :  { %16566 = vmatprep.subr.bf16.mxu1 %v20500_v49  ;;  %v20554_v49 = vld [vmem:[#allocation11 + $0x2314] ss:$24 sps:$4 sm:$0xff]  }
 0x732   :  { %16524 = vmatpush1.bf16.msra.mxu0 %v20495_v43  ;;  %v20549_v43 = vld [vmem:[#allocation11 + $0x2010] ss:$24 sps:$4 sm:$0xff]  }
 0x733   :  { %16567 = vmatpush1.bf16.msra.mxu1 %v20498_v51  ;;  %16525 = vmatprep.subr.bf16.mxu0 %v20503_v62  ;;  %v20552_v51 = vld [vmem:[#allocation11 + $0x2310] ss:$24 sps:$4 sm:$0xff]   ;;  %v20557_v62 = vld [vmem:[#allocation11 + $0x1fe4] ss:$24 sps:$4 sm:$0xff]  }
 0x734   :  { %16568 = vmatprep.subr.bf16.mxu1 %v20506_v60  ;;  %v20560_v60 = vld [vmem:[#allocation11 + $0x22e4] ss:$24 sps:$4 sm:$0xff]  }
 0x736   :  { %16526 = vmatpush1.bf16.msra.mxu0 %v20501_v53  ;;  %v20555_v53 = vld [vmem:[#allocation11 + $0x1fe0] ss:$24 sps:$4 sm:$0xff]  }
 0x737   :  { %16569 = vmatpush1.bf16.msra.mxu1 %v20504_v18  ;;  %16527 = vmatprep.subr.bf16.mxu0 %v20509_v35  ;;  %v20558_v18 = vld [vmem:[#allocation11 + $0x22e0] ss:$24 sps:$4 sm:$0xff]   ;;  %v20563_v35 = vld [vmem:[#allocation11 + $0x1fb4] ss:$24 sps:$4 sm:$0xff]  }
 0x738   :  { %16570 = vmatprep.subr.bf16.mxu1 %v20512_v50  ;;  %v20566_v50 = vld [vmem:[#allocation11 + $0x22b4] ss:$24 sps:$4 sm:$0xff]  }
 0x73a   :  { %16528 = vmatpush1.bf16.msra.mxu0 %v20507_v56  ;;  %v20561_v56 = vld [vmem:[#allocation11 + $0x1fb0] ss:$24 sps:$4 sm:$0xff]  }
 0x73b   :  { %16571 = vmatpush1.bf16.msra.mxu1 %v20510_v13  ;;  %16529 = vmatprep.subr.bf16.mxu0 %v20515_v5  ;;  %v20564_v13 = vld [vmem:[#allocation11 + $0x22b0] ss:$24 sps:$4 sm:$0xff]   ;;  %v20569_v5 = vld [vmem:[#allocation11 + $0x1f84] ss:$24 sps:$4 sm:$0xff]  }
 0x73c   :  { %16572 = vmatprep.subr.bf16.mxu1 %v20518_v58  ;;  %v20572_v58 = vld [vmem:[#allocation11 + $0x2284] ss:$24 sps:$4 sm:$0xff]  }
 0x73e   :  { %16530 = vmatpush1.bf16.msra.mxu0 %v20513_v28  ;;  %v20567_v28 = vld [vmem:[#allocation11 + $0x1f80] ss:$24 sps:$4 sm:$0xff]  }
 0x73f   :  { %16573 = vmatpush1.bf16.msra.mxu1 %v20516_v36  ;;  %16531 = vmatprep.subr.bf16.mxu0 %v20521_v17  ;;  %v20570_v36 = vld [vmem:[#allocation11 + $0x2280] ss:$24 sps:$4 sm:$0xff]   ;;  %v20575_v17 = vld [vmem:[#allocation11 + $0x15c] ss:$24 sps:$4 sm:$0xff]  }
 0x740   :  { %16574 = vmatprep.subr.bf16.mxu1 %v20524_v2  ;;  %v20578_v2 = vld [vmem:[#allocation11 + $0x45c] ss:$24 sps:$4 sm:$0xff]  }
 0x742   :  { %16532 = vmatpush1.bf16.msra.mxu0 %v20519_v10  ;;  %v20573_v10 = vld [vmem:[#allocation11 + $0x158] ss:$24 sps:$4 sm:$0xff]  }
 0x743   :  { %16575 = vmatpush1.bf16.msra.mxu1 %v20522_v6  ;;  %16533 = vmatprep.subr.bf16.mxu0 %v20527_v24  ;;  %v20576_v6 = vld [vmem:[#allocation11 + $0x458] ss:$24 sps:$4 sm:$0xff]   ;;  %v20581_v24 = vld [vmem:[#allocation11 + $0x12c] ss:$24 sps:$4 sm:$0xff]  }
 0x744   :  { %16576 = vmatprep.subr.bf16.mxu1 %v20530_v32  ;;  %v20584_v32 = vld [vmem:[#allocation11 + $0x42c] ss:$24 sps:$4 sm:$0xff]  }
 0x746   :  { %16534 = vmatpush2.bf16.msra.mxu0 %v20525_v57  ;;  %v20579_v57 = vld [vmem:[#allocation11 + $0x128] ss:$24 sps:$4 sm:$0xff]  }
 0x747   :  { %16577 = vmatpush2.bf16.msra.mxu1 %v20528_v61  ;;  %16535 = vmatprep.subr.bf16.mxu0 %v20533_v1  ;;  %v20582_v61 = vld [vmem:[#allocation11 + $0x428] ss:$24 sps:$4 sm:$0xff]   ;;  %v20587_v1 = vld [vmem:[#allocation11 + $0xfc] ss:$24 sps:$4 sm:$0xff]  }
 0x748   :  { %16578 = vmatprep.subr.bf16.mxu1 %v20536_v63  ;;  %v20590_v63 = vld [vmem:[#allocation11 + $0x3fc] ss:$24 sps:$4 sm:$0xff]  }
 0x74a   :  { %16536 = vmatpush2.bf16.msra.mxu0 %v20531_v15  ;;  %v20585_v15 = vld [vmem:[#allocation11 + $0xf8] ss:$24 sps:$4 sm:$0xff]  }
 0x74b   :  { %16579 = vmatpush2.bf16.msra.mxu1 %v20534_v37  ;;  %16537 = vmatprep.subr.bf16.mxu0 %v20539_v33  ;;  %v20588_v37 = vld [vmem:[#allocation11 + $0x3f8] ss:$24 sps:$4 sm:$0xff]   ;;  %v20593_v33 = vld [vmem:[#allocation11 + $0xcc] ss:$24 sps:$4 sm:$0xff]  }
 0x74c   :  { %16580 = vmatprep.subr.bf16.mxu1 %v20542_v4  ;;  %v20596_v4 = vld [vmem:[#allocation11 + $0x3cc] ss:$24 sps:$4 sm:$0xff]  }
 0x74e   :  { %16538 = vmatpush2.bf16.msra.mxu0 %v20537_v52  ;;  %v20591_v52 = vld [vmem:[#allocation11 + $0xc8] ss:$24 sps:$4 sm:$0xff]  }
 0x74f   :  { %16581 = vmatpush2.bf16.msra.mxu1 %v20540_v20  ;;  %16539 = vmatprep.subr.bf16.mxu0 %v20545_v54  ;;  %v20594_v20 = vld [vmem:[#allocation11 + $0x3c8] ss:$24 sps:$4 sm:$0xff]   ;;  %v20599_v54 = vld [vmem:[#allocation11 + $0x9c] ss:$24 sps:$4 sm:$0xff]  }
 0x750   :  { %16582 = vmatprep.subr.bf16.mxu1 %v20548_v9  ;;  %v20602_v9 = vld [vmem:[#allocation11 + $0x39c] ss:$24 sps:$4 sm:$0xff]  }
 0x752   :  { %16540 = vmatpush2.bf16.msra.mxu0 %v20543_v26  ;;  %v20597_v26 = vld [vmem:[#allocation11 + $0x98] ss:$24 sps:$4 sm:$0xff]  }
 0x753   :  { %16583 = vmatpush2.bf16.msra.mxu1 %v20546_v45  ;;  %16541 = vmatprep.subr.bf16.mxu0 %v20551_v31  ;;  %v20600_v45 = vld [vmem:[#allocation11 + $0x398] ss:$24 sps:$4 sm:$0xff]   ;;  %v20605_v31 = vld [vmem:[#allocation11 + $0x6c] ss:$24 sps:$4 sm:$0xff]  }
 0x754   :  { %16584 = vmatprep.subr.bf16.mxu1 %v20554_v49  ;;  %v20608_v49 = vld [vmem:[#allocation11 + $0x36c] ss:$24 sps:$4 sm:$0xff]  }
 0x756   :  { %16542 = vmatpush2.bf16.msra.mxu0 %v20549_v43  ;;  %v20603_v43 = vld [vmem:[#allocation11 + $0x68] ss:$24 sps:$4 sm:$0xff]  }
 0x757   :  { %16585 = vmatpush2.bf16.msra.mxu1 %v20552_v51  ;;  %16543 = vmatprep.subr.bf16.mxu0 %v20557_v62  ;;  %v20606_v51 = vld [vmem:[#allocation11 + $0x368] ss:$24 sps:$4 sm:$0xff]   ;;  %v20611_v62 = vld [vmem:[#allocation11 + $0x3c] ss:$24 sps:$4 sm:$0xff]  }
 0x758   :  { %16586 = vmatprep.subr.bf16.mxu1 %v20560_v60  ;;  %v20614_v60 = vld [vmem:[#allocation11 + $0x33c] ss:$24 sps:$4 sm:$0xff]  }
 0x75a   :  { %16544 = vmatpush2.bf16.msra.mxu0 %v20555_v53  ;;  %v20609_v53 = vld [vmem:[#allocation11 + $0x38] ss:$24 sps:$4 sm:$0xff]  }
 0x75b   :  { %16587 = vmatpush2.bf16.msra.mxu1 %v20558_v18  ;;  %16545 = vmatprep.subr.bf16.mxu0 %v20563_v35  ;;  %v20612_v18 = vld [vmem:[#allocation11 + $0x338] ss:$24 sps:$4 sm:$0xff]   ;;  %v20617_v35 = vld [vmem:[#allocation11 + $0xc] ss:$24 sps:$4 sm:$0xff]  }
 0x75c   :  { %16588 = vmatprep.subr.bf16.mxu1 %v20566_v50  ;;  %v20620_v50 = vld [vmem:[#allocation11 + $0x30c] ss:$24 sps:$4 sm:$0xff]  }
 0x75e   :  { %16546 = vmatpush2.bf16.msra.mxu0 %v20561_v56  ;;  %v20615_v56 = vld [vmem:[#allocation11 + $0x8] ss:$24 sps:$4 sm:$0xff]  }
 0x75f   :  { %16589 = vmatpush2.bf16.msra.mxu1 %v20564_v13  ;;  %16547 = vmatprep.subr.bf16.mxu0 %v20569_v5  ;;  %v20618_v13 = vld [vmem:[#allocation11 + $0x308] ss:$24 sps:$4 sm:$0xff]   ;;  %v20623_v5 = vld [vmem:[#allocation11 + $0x2dc] ss:$24 sps:$4 sm:$0xff]  }
 0x760   :  { %16590 = vmatprep.subr.bf16.mxu1 %v20572_v58  ;;  %v20626_v58 = vld [vmem:[#allocation11 + $0x5dc] ss:$24 sps:$4 sm:$0xff]  }
 0x762   :  { %16548 = vmatpush2.bf16.msra.mxu0 %v20567_v28  ;;  %v20621_v28 = vld [vmem:[#allocation11 + $0x2d8] ss:$24 sps:$4 sm:$0xff]  }
 0x763   :  { %16591 = vmatpush2.bf16.msra.mxu1 %v20570_v36  ;;  %16603 = vmatprep.subr.bf16.mxu0 %v20575_v17  ;;  %v20624_v36 = vld [vmem:[#allocation11 + $0x5d8] ss:$24 sps:$4 sm:$0xff]   ;;  %v20629_v17 = vld [vmem:[#allocation11 + $0x2ac] ss:$24 sps:$4 sm:$0xff]  }
 0x764   :  { %16646 = vmatprep.subr.bf16.mxu1 %v20578_v2  ;;  %v20632_v2 = vld [vmem:[#allocation11 + $0x5ac] ss:$24 sps:$4 sm:$0xff]  }
 0x765   :  { %16550 = vmatmul.mubr.bf16.vlgmr.msra.gmra.mxu0 %v22755_v11 }
 0x766   :  { %16593 = vmatmul.mubr.bf16.vlgmr.msra.gmra.mxu1 %v22825_v21  ;;  %16604 = vmatpush1.bf16.msra.mxu0 %v20573_v10  ;;  %v20627_v10 = vld [vmem:[#allocation11 + $0x2a8] ss:$24 sps:$4 sm:$0xff]  }
 0x767   :  { %16635 = vmatprep.mubr.bf16.mxu0 %v22601_v55  ;;  %16647 = vmatpush1.bf16.msra.mxu1 %v20576_v6  ;;  %v20630_v6 = vld [vmem:[#allocation11 + $0x5a8] ss:$24 sps:$4 sm:$0xff]  }
 0x768   :  { %16678 = vmatprep.mubr.bf16.mxu1 %v22604_v40  ;;  %16605 = vmatprep.subr.bf16.mxu0 %v20581_v24  ;;  %v20635_v24 = vld [vmem:[#allocation11 + $0x27c] ss:$24 sps:$4 sm:$0xff]  }
 0x769   :  { %16648 = vmatprep.subr.bf16.mxu1 %v20584_v32  ;;  %v20638_v32 = vld [vmem:[#allocation11 + $0x57c] ss:$24 sps:$4 sm:$0xff]  }
 0x76a   :  { %16606 = vmatpush1.bf16.msra.mxu0 %v20579_v57  ;;  %v20633_v57 = vld [vmem:[#allocation11 + $0x278] ss:$24 sps:$4 sm:$0xff]  }
 0x76b   :  { %16649 = vmatpush1.bf16.msra.mxu1 %v20582_v61  ;;  %16607 = vmatprep.subr.bf16.mxu0 %v20587_v1  ;;  %v20636_v61 = vld [vmem:[#allocation11 + $0x578] ss:$24 sps:$4 sm:$0xff]   ;;  %v20641_v1 = vld [vmem:[#allocation11 + $0x24c] ss:$24 sps:$4 sm:$0xff]  }
 0x76c   :  { %16650 = vmatprep.subr.bf16.mxu1 %v20590_v63  ;;  %v20644_v63 = vld [vmem:[#allocation11 + $0x54c] ss:$24 sps:$4 sm:$0xff]  }
 0x76e   :  { %16608 = vmatpush1.bf16.msra.mxu0 %v20585_v15  ;;  %v20639_v15 = vld [vmem:[#allocation11 + $0x248] ss:$24 sps:$4 sm:$0xff]  }
 0x76f   :  { %16651 = vmatpush1.bf16.msra.mxu1 %v20588_v37  ;;  %16609 = vmatprep.subr.bf16.mxu0 %v20593_v33  ;;  %v20642_v37 = vld [vmem:[#allocation11 + $0x548] ss:$24 sps:$4 sm:$0xff]   ;;  %v20647_v33 = vld [vmem:[#allocation11 + $0x21c] ss:$24 sps:$4 sm:$0xff]  }
 0x770   :  { %16652 = vmatprep.subr.bf16.mxu1 %v20596_v4  ;;  %v20650_v4 = vld [vmem:[#allocation11 + $0x51c] ss:$24 sps:$4 sm:$0xff]  }
 0x772   :  { %16610 = vmatpush1.bf16.msra.mxu0 %v20591_v52  ;;  %v20645_v52 = vld [vmem:[#allocation11 + $0x218] ss:$24 sps:$4 sm:$0xff]  }
 0x773   :  { %16653 = vmatpush1.bf16.msra.mxu1 %v20594_v20  ;;  %16611 = vmatprep.subr.bf16.mxu0 %v20599_v54  ;;  %v20648_v20 = vld [vmem:[#allocation11 + $0x518] ss:$24 sps:$4 sm:$0xff]   ;;  %v20653_v54 = vld [vmem:[#allocation11 + $0x1ec] ss:$24 sps:$4 sm:$0xff]  }
 0x774   :  { %16654 = vmatprep.subr.bf16.mxu1 %v20602_v9  ;;  %v20656_v9 = vld [vmem:[#allocation11 + $0x4ec] ss:$24 sps:$4 sm:$0xff]  }
 0x776   :  { %16612 = vmatpush1.bf16.msra.mxu0 %v20597_v26  ;;  %v20651_v26 = vld [vmem:[#allocation11 + $0x1e8] ss:$24 sps:$4 sm:$0xff]  }
 0x777   :  { %16655 = vmatpush1.bf16.msra.mxu1 %v20600_v45  ;;  %16613 = vmatprep.subr.bf16.mxu0 %v20605_v31  ;;  %v20654_v45 = vld [vmem:[#allocation11 + $0x4e8] ss:$24 sps:$4 sm:$0xff]   ;;  %v20659_v31 = vld [vmem:[#allocation11 + $0x1bc] ss:$24 sps:$4 sm:$0xff]  }
 0x778   :  { %16656 = vmatprep.subr.bf16.mxu1 %v20608_v49  ;;  %v20662_v49 = vld [vmem:[#allocation11 + $0x4bc] ss:$24 sps:$4 sm:$0xff]  }
 0x77a   :  { %16614 = vmatpush1.bf16.msra.mxu0 %v20603_v43  ;;  %v20657_v43 = vld [vmem:[#allocation11 + $0x1b8] ss:$24 sps:$4 sm:$0xff]  }
 0x77b   :  { %16657 = vmatpush1.bf16.msra.mxu1 %v20606_v51  ;;  %16615 = vmatprep.subr.bf16.mxu0 %v20611_v62  ;;  %v20660_v51 = vld [vmem:[#allocation11 + $0x4b8] ss:$24 sps:$4 sm:$0xff]   ;;  %v20665_v62 = vld [vmem:[#allocation11 + $0x18c] ss:$24 sps:$4 sm:$0xff]  }
 0x77c   :  { %16658 = vmatprep.subr.bf16.mxu1 %v20614_v60  ;;  %v20668_v60 = vld [vmem:[#allocation11 + $0x48c] ss:$24 sps:$4 sm:$0xff]  }
 0x77e   :  { %16616 = vmatpush1.bf16.msra.mxu0 %v20609_v53  ;;  %v20663_v53 = vld [vmem:[#allocation11 + $0x188] ss:$24 sps:$4 sm:$0xff]  }
 0x77f   :  { %16659 = vmatpush1.bf16.msra.mxu1 %v20612_v18  ;;  %16617 = vmatprep.subr.bf16.mxu0 %v20617_v35  ;;  %v20666_v18 = vld [vmem:[#allocation11 + $0x488] ss:$24 sps:$4 sm:$0xff]   ;;  %v20671_v35 = vld [vmem:[#allocation11 + $0x75c] ss:$24 sps:$4 sm:$0xff]  }
 0x780   :  { %16660 = vmatprep.subr.bf16.mxu1 %v20620_v50  ;;  %v20674_v50 = vld [vmem:[#allocation11 + $0xa5c] ss:$24 sps:$4 sm:$0xff]  }
 0x782   :  { %16618 = vmatpush1.bf16.msra.mxu0 %v20615_v56  ;;  %v20669_v56 = vld [vmem:[#allocation11 + $0x758] ss:$24 sps:$4 sm:$0xff]  }
 0x783   :  { %16661 = vmatpush1.bf16.msra.mxu1 %v20618_v13  ;;  %16619 = vmatprep.subr.bf16.mxu0 %v20623_v5  ;;  %v20672_v13 = vld [vmem:[#allocation11 + $0xa58] ss:$24 sps:$4 sm:$0xff]   ;;  %v20677_v5 = vld [vmem:[#allocation11 + $0x72c] ss:$24 sps:$4 sm:$0xff]  }
 0x784   :  { %16662 = vmatprep.subr.bf16.mxu1 %v20626_v58  ;;  %v20680_v58 = vld [vmem:[#allocation11 + $0xa2c] ss:$24 sps:$4 sm:$0xff]  }
 0x786   :  { %16620 = vmatpush2.bf16.msra.mxu0 %v20621_v28  ;;  %v20675_v28 = vld [vmem:[#allocation11 + $0x728] ss:$24 sps:$4 sm:$0xff]  }
 0x787   :  { %16663 = vmatpush2.bf16.msra.mxu1 %v20624_v36  ;;  %16621 = vmatprep.subr.bf16.mxu0 %v20629_v17  ;;  %v20678_v36 = vld [vmem:[#allocation11 + $0xa28] ss:$24 sps:$4 sm:$0xff]   ;;  %v20683_v17 = vld [vmem:[#allocation11 + $0x6fc] ss:$24 sps:$4 sm:$0xff]  }
 0x788   :  { %16664 = vmatprep.subr.bf16.mxu1 %v20632_v2  ;;  %v20686_v2 = vld [vmem:[#allocation11 + $0x9fc] ss:$24 sps:$4 sm:$0xff]  }
 0x78a   :  { %16622 = vmatpush2.bf16.msra.mxu0 %v20627_v10  ;;  %v20681_v10 = vld [vmem:[#allocation11 + $0x6f8] ss:$24 sps:$4 sm:$0xff]  }
 0x78b   :  { %16665 = vmatpush2.bf16.msra.mxu1 %v20630_v6  ;;  %16623 = vmatprep.subr.bf16.mxu0 %v20635_v24  ;;  %v20684_v6 = vld [vmem:[#allocation11 + $0x9f8] ss:$24 sps:$4 sm:$0xff]   ;;  %v20689_v24 = vld [vmem:[#allocation11 + $0x6cc] ss:$24 sps:$4 sm:$0xff]  }
 0x78c   :  { %16666 = vmatprep.subr.bf16.mxu1 %v20638_v32  ;;  %v20692_v32 = vld [vmem:[#allocation11 + $0x9cc] ss:$24 sps:$4 sm:$0xff]  }
 0x78e   :  { %16624 = vmatpush2.bf16.msra.mxu0 %v20633_v57  ;;  %v20687_v57 = vld [vmem:[#allocation11 + $0x6c8] ss:$24 sps:$4 sm:$0xff]  }
 0x78f   :  { %16667 = vmatpush2.bf16.msra.mxu1 %v20636_v61  ;;  %16625 = vmatprep.subr.bf16.mxu0 %v20641_v1  ;;  %v20690_v61 = vld [vmem:[#allocation11 + $0x9c8] ss:$24 sps:$4 sm:$0xff]   ;;  %v20695_v1 = vld [vmem:[#allocation11 + $0x69c] ss:$24 sps:$4 sm:$0xff]  }
 0x790   :  { %16668 = vmatprep.subr.bf16.mxu1 %v20644_v63  ;;  %v20698_v63 = vld [vmem:[#allocation11 + $0x99c] ss:$24 sps:$4 sm:$0xff]  }
 0x792   :  { %16626 = vmatpush2.bf16.msra.mxu0 %v20639_v15  ;;  %v20693_v15 = vld [vmem:[#allocation11 + $0x698] ss:$24 sps:$4 sm:$0xff]  }
 0x793   :  { %16669 = vmatpush2.bf16.msra.mxu1 %v20642_v37  ;;  %16627 = vmatprep.subr.bf16.mxu0 %v20647_v33  ;;  %v20696_v37 = vld [vmem:[#allocation11 + $0x998] ss:$24 sps:$4 sm:$0xff]   ;;  %v20701_v33 = vld [vmem:[#allocation11 + $0x66c] ss:$24 sps:$4 sm:$0xff]  }
 0x794   :  { %16670 = vmatprep.subr.bf16.mxu1 %v20650_v4  ;;  %v20704_v4 = vld [vmem:[#allocation11 + $0x96c] ss:$24 sps:$4 sm:$0xff]  }
 0x796   :  { %16628 = vmatpush2.bf16.msra.mxu0 %v20645_v52  ;;  %v20699_v52 = vld [vmem:[#allocation11 + $0x668] ss:$24 sps:$4 sm:$0xff]  }
 0x797   :  { %16671 = vmatpush2.bf16.msra.mxu1 %v20648_v20  ;;  %16629 = vmatprep.subr.bf16.mxu0 %v20653_v54  ;;  %v20702_v20 = vld [vmem:[#allocation11 + $0x968] ss:$24 sps:$4 sm:$0xff]   ;;  %v20707_v54 = vld [vmem:[#allocation11 + $0x63c] ss:$24 sps:$4 sm:$0xff]  }
 0x798   :  { %16672 = vmatprep.subr.bf16.mxu1 %v20656_v9  ;;  %v20710_v9 = vld [vmem:[#allocation11 + $0x93c] ss:$24 sps:$4 sm:$0xff]  }
 0x79a   :  { %16630 = vmatpush2.bf16.msra.mxu0 %v20651_v26  ;;  %v20705_v26 = vld [vmem:[#allocation11 + $0x638] ss:$24 sps:$4 sm:$0xff]  }
 0x79b   :  { %16673 = vmatpush2.bf16.msra.mxu1 %v20654_v45  ;;  %16631 = vmatprep.subr.bf16.mxu0 %v20659_v31  ;;  %v20708_v45 = vld [vmem:[#allocation11 + $0x938] ss:$24 sps:$4 sm:$0xff]   ;;  %v20713_v31 = vld [vmem:[#allocation11 + $0x60c] ss:$24 sps:$4 sm:$0xff]  }
 0x79c   :  { %16674 = vmatprep.subr.bf16.mxu1 %v20662_v49  ;;  %v20716_v49 = vld [vmem:[#allocation11 + $0x90c] ss:$24 sps:$4 sm:$0xff]  }
 0x79e   :  { %16632 = vmatpush2.bf16.msra.mxu0 %v20657_v43  ;;  %v20711_v43 = vld [vmem:[#allocation11 + $0x608] ss:$24 sps:$4 sm:$0xff]  }
 0x79f   :  { %16675 = vmatpush2.bf16.msra.mxu1 %v20660_v51  ;;  %16633 = vmatprep.subr.bf16.mxu0 %v20665_v62  ;;  %v20714_v51 = vld [vmem:[#allocation11 + $0x908] ss:$24 sps:$4 sm:$0xff]   ;;  %v20719_v62 = vld [vmem:[#allocation11 + $0x8dc] ss:$24 sps:$4 sm:$0xff]  }
 0x7a0   :  { %16676 = vmatprep.subr.bf16.mxu1 %v20668_v60  ;;  %v20722_v60 = vld [vmem:[#allocation11 + $0xbdc] ss:$24 sps:$4 sm:$0xff]  }
 0x7a2   :  { %16634 = vmatpush2.bf16.msra.mxu0 %v20663_v53  ;;  %v20717_v53 = vld [vmem:[#allocation11 + $0x8d8] ss:$24 sps:$4 sm:$0xff]  }
 0x7a3   :  { %16677 = vmatpush2.bf16.msra.mxu1 %v20666_v18  ;;  %16689 = vmatprep.subr.bf16.mxu0 %v20671_v35  ;;  %v20720_v18 = vld [vmem:[#allocation11 + $0xbd8] ss:$24 sps:$4 sm:$0xff]   ;;  %v20725_v35 = vld [vmem:[#allocation11 + $0x8ac] ss:$24 sps:$4 sm:$0xff]  }
 0x7a4   :  { %16732 = vmatprep.subr.bf16.mxu1 %v20674_v50  ;;  %v20728_v50 = vld [vmem:[#allocation11 + $0xbac] ss:$24 sps:$4 sm:$0xff]  }
 0x7a5   :  { %16636 = vmatmul.mubr.bf16.vlgmr.msra.gmra.mxu0 %v23173_v38 }
 0x7a6   :  { %16679 = vmatmul.mubr.bf16.vlgmr.msra.gmra.mxu1 %v23174_v19  ;;  %16690 = vmatpush1.bf16.msra.mxu0 %v20669_v56  ;;  %v20723_v56 = vld [vmem:[#allocation11 + $0x8a8] ss:$24 sps:$4 sm:$0xff]  }
 0x7a7   :  { %16721 = vmatprep.mubr.bf16.mxu0 %v22666_v47  ;;  %16733 = vmatpush1.bf16.msra.mxu1 %v20672_v13  ;;  %v20726_v13 = vld [vmem:[#allocation11 + $0xba8] ss:$24 sps:$4 sm:$0xff]  }
 0x7a8   :  { %16764 = vmatprep.mubr.bf16.mxu1 %v22669_v16  ;;  %16691 = vmatprep.subr.bf16.mxu0 %v20677_v5  ;;  %v20731_v5 = vld [vmem:[#allocation11 + $0x87c] ss:$24 sps:$4 sm:$0xff]  }
 0x7a9   :  { %16734 = vmatprep.subr.bf16.mxu1 %v20680_v58  ;;  %v20734_v58 = vld [vmem:[#allocation11 + $0xb7c] ss:$24 sps:$4 sm:$0xff]  }
 0x7aa   :  { %16692 = vmatpush1.bf16.msra.mxu0 %v20675_v28  ;;  %v20729_v28 = vld [vmem:[#allocation11 + $0x878] ss:$24 sps:$4 sm:$0xff]  }
 0x7ab   :  { %16735 = vmatpush1.bf16.msra.mxu1 %v20678_v36  ;;  %16693 = vmatprep.subr.bf16.mxu0 %v20683_v17  ;;  %v20732_v36 = vld [vmem:[#allocation11 + $0xb78] ss:$24 sps:$4 sm:$0xff]   ;;  %v20737_v17 = vld [vmem:[#allocation11 + $0x84c] ss:$24 sps:$4 sm:$0xff]  }
 0x7ac   :  { %16736 = vmatprep.subr.bf16.mxu1 %v20686_v2  ;;  %v20740_v2 = vld [vmem:[#allocation11 + $0xb4c] ss:$24 sps:$4 sm:$0xff]  }
 0x7ae   :  { %16694 = vmatpush1.bf16.msra.mxu0 %v20681_v10  ;;  %v20735_v10 = vld [vmem:[#allocation11 + $0x848] ss:$24 sps:$4 sm:$0xff]  }
 0x7af   :  { %16737 = vmatpush1.bf16.msra.mxu1 %v20684_v6  ;;  %16695 = vmatprep.subr.bf16.mxu0 %v20689_v24  ;;  %v20738_v6 = vld [vmem:[#allocation11 + $0xb48] ss:$24 sps:$4 sm:$0xff]   ;;  %v20743_v24 = vld [vmem:[#allocation11 + $0x81c] ss:$24 sps:$4 sm:$0xff]  }
 0x7b0   :  { %16738 = vmatprep.subr.bf16.mxu1 %v20692_v32  ;;  %v20746_v32 = vld [vmem:[#allocation11 + $0xb1c] ss:$24 sps:$4 sm:$0xff]  }
 0x7b2   :  { %16696 = vmatpush1.bf16.msra.mxu0 %v20687_v57  ;;  %v20741_v57 = vld [vmem:[#allocation11 + $0x818] ss:$24 sps:$4 sm:$0xff]  }
 0x7b3   :  { %16739 = vmatpush1.bf16.msra.mxu1 %v20690_v61  ;;  %16697 = vmatprep.subr.bf16.mxu0 %v20695_v1  ;;  %v20744_v61 = vld [vmem:[#allocation11 + $0xb18] ss:$24 sps:$4 sm:$0xff]   ;;  %v20749_v1 = vld [vmem:[#allocation11 + $0x7ec] ss:$24 sps:$4 sm:$0xff]  }
 0x7b4   :  { %16740 = vmatprep.subr.bf16.mxu1 %v20698_v63  ;;  %v20752_v63 = vld [vmem:[#allocation11 + $0xaec] ss:$24 sps:$4 sm:$0xff]  }
 0x7b6   :  { %16698 = vmatpush1.bf16.msra.mxu0 %v20693_v15  ;;  %v20747_v15 = vld [vmem:[#allocation11 + $0x7e8] ss:$24 sps:$4 sm:$0xff]  }
 0x7b7   :  { %16741 = vmatpush1.bf16.msra.mxu1 %v20696_v37  ;;  %16699 = vmatprep.subr.bf16.mxu0 %v20701_v33  ;;  %v20750_v37 = vld [vmem:[#allocation11 + $0xae8] ss:$24 sps:$4 sm:$0xff]   ;;  %v20755_v33 = vld [vmem:[#allocation11 + $0x7bc] ss:$24 sps:$4 sm:$0xff]  }
 0x7b8   :  { %16742 = vmatprep.subr.bf16.mxu1 %v20704_v4  ;;  %v20758_v4 = vld [vmem:[#allocation11 + $0xabc] ss:$24 sps:$4 sm:$0xff]  }
 0x7ba   :  { %16700 = vmatpush1.bf16.msra.mxu0 %v20699_v52  ;;  %v20753_v52 = vld [vmem:[#allocation11 + $0x7b8] ss:$24 sps:$4 sm:$0xff]  }
 0x7bb   :  { %16743 = vmatpush1.bf16.msra.mxu1 %v20702_v20  ;;  %16701 = vmatprep.subr.bf16.mxu0 %v20707_v54  ;;  %v20756_v20 = vld [vmem:[#allocation11 + $0xab8] ss:$24 sps:$4 sm:$0xff]   ;;  %v20761_v54 = vld [vmem:[#allocation11 + $0x78c] ss:$24 sps:$4 sm:$0xff]  }
 0x7bc   :  { %16744 = vmatprep.subr.bf16.mxu1 %v20710_v9  ;;  %v20764_v9 = vld [vmem:[#allocation11 + $0xa8c] ss:$24 sps:$4 sm:$0xff]  }
 0x7be   :  { %16702 = vmatpush1.bf16.msra.mxu0 %v20705_v26  ;;  %v20759_v26 = vld [vmem:[#allocation11 + $0x788] ss:$24 sps:$4 sm:$0xff]  }
 0x7bf   :  { %16745 = vmatpush1.bf16.msra.mxu1 %v20708_v45  ;;  %16703 = vmatprep.subr.bf16.mxu0 %v20713_v31  ;;  %v22887_v45 = vpop.f32.mrf.mxu0  ;;  %v20762_v31 = vld [vmem:[#allocation11 + $0xa88] ss:$24 sps:$4 sm:$0xff]  }
 0x7c0   :  { %16746 = vmatprep.subr.bf16.mxu1 %v20716_v49  ;;  %v20767_v49 = vld [vmem:[#allocation11 + $0xd5c] ss:$24 sps:$4 sm:$0xff]  }
 0x7c2   :  { %16704 = vmatpush1.bf16.msra.mxu0 %v20711_v43  ;;  %v22889_v43 = vpop.f32.mrf.mxu1 }
 0x7c3   :  { %16747 = vmatpush1.bf16.msra.mxu1 %v20714_v51  ;;  %16705 = vmatprep.subr.bf16.mxu0 %v20719_v62  ;;  %v20770_v51 = vld [vmem:[#allocation11 + $0x105c] ss:$24 sps:$4 sm:$0xff]   ;;  %v20765_v62 = vld [vmem:[#allocation11 + $0xd58] ss:$24 sps:$4 sm:$0xff]  }
 0x7c4   :  { %16748 = vmatprep.subr.bf16.mxu1 %v20722_v60  ;;  %v22891_v60 = vpop.f32.mrf.mxu0 }
 0x7c6   :  { %16706 = vmatpush2.bf16.msra.mxu0 %v20717_v53  ;;  %v20768_v53 = vld [vmem:[#allocation11 + $0x1058] ss:$24 sps:$4 sm:$0xff]  }
 0x7c7   :  { %16749 = vmatpush2.bf16.msra.mxu1 %v20720_v18  ;;  %16707 = vmatprep.subr.bf16.mxu0 %v20725_v35  ;;  %v22893_v18 = vpop.f32.mrf.mxu1  ;;  %v20773_v35 = vld [vmem:[#allocation11 + $0xd2c] ss:$24 sps:$4 sm:$0xff]  }
 0x7c8   :  { %16750 = vmatprep.subr.bf16.mxu1 %v20728_v50  ;;  %v20776_v50 = vld [vmem:[#allocation11 + $0x102c] ss:$24 sps:$4 sm:$0xff]  }
 0x7ca   :  { %16708 = vmatpush2.bf16.msra.mxu0 %v20723_v56  ;;  %v20771_v56 = vld [vmem:[#allocation11 + $0xd28] ss:$24 sps:$4 sm:$0xff]  }
 0x7cb   :  { %16751 = vmatpush2.bf16.msra.mxu1 %v20726_v13  ;;  %16709 = vmatprep.subr.bf16.mxu0 %v20731_v5  ;;  %v22897_v13 = vpop.f32.mrf.mxu0  ;;  %v20774_v5 = vld [vmem:[#allocation11 + $0x1028] ss:$24 sps:$4 sm:$0xff]  }
 0x7cc   :  { %16752 = vmatprep.subr.bf16.mxu1 %v20734_v58  ;;  %v20779_v58 = vld [vmem:[#allocation11 + $0xcfc] ss:$24 sps:$4 sm:$0xff]  }
 0x7ce   :  { %16710 = vmatpush2.bf16.msra.mxu0 %v20729_v28  ;;  %v22900_v28 = vpop.f32.mrf.mxu1 }
 0x7cf   :  { %16753 = vmatpush2.bf16.msra.mxu1 %v20732_v36  ;;  %16711 = vmatprep.subr.bf16.mxu0 %v20737_v17  ;;  %v20782_v36 = vld [vmem:[#allocation11 + $0xffc] ss:$24 sps:$4 sm:$0xff]   ;;  %v20777_v17 = vld [vmem:[#allocation11 + $0xcf8] ss:$24 sps:$4 sm:$0xff]  }
 0x7d0   :  { %16754 = vmatprep.subr.bf16.mxu1 %v20740_v2  ;;  %v22903_v2 = vpop.f32.mrf.mxu0 }
 0x7d2   :  { %16712 = vmatpush2.bf16.msra.mxu0 %v20735_v10  ;;  %v20780_v10 = vld [vmem:[#allocation11 + $0xff8] ss:$24 sps:$4 sm:$0xff]  }
 0x7d3   :  { %16755 = vmatpush2.bf16.msra.mxu1 %v20738_v6  ;;  %16713 = vmatprep.subr.bf16.mxu0 %v20743_v24  ;;  %v20785_v6 = vld [vmem:[#allocation11 + $0xccc] ss:$24 sps:$4 sm:$0xff]   ;;  %v22905_v24 = vpop.f32.mrf.mxu1 }
 0x7d4   :  { %16756 = vmatprep.subr.bf16.mxu1 %v20746_v32  ;;  %v20788_v32 = vld [vmem:[#allocation11 + $0xfcc] ss:$24 sps:$4 sm:$0xff]  }
 0x7d6   :  { %16714 = vmatpush2.bf16.msra.mxu0 %v20741_v57  ;;  %v22907_v57 = vpop.f32.mrf.mxu0 }
 0x7d7   :  { %16757 = vmatpush2.bf16.msra.mxu1 %v20744_v61  ;;  %16715 = vmatprep.subr.bf16.mxu0 %v20749_v1  ;;  %v22909_v61 = vpop.f32.mrf.mxu1  ;;  %v20783_v1 = vld [vmem:[#allocation11 + $0xcc8] ss:$24 sps:$4 sm:$0xff]  }
 0x7d8   :  { %16758 = vmatprep.subr.bf16.mxu1 %v20752_v63  ;;  %v20786_v63 = vld [vmem:[#allocation11 + $0xfc8] ss:$24 sps:$4 sm:$0xff]  }
 0x7da   :  { %16716 = vmatpush2.bf16.msra.mxu0 %v20747_v15  ;;  %v20791_v15 = vld [vmem:[#allocation11 + $0xc9c] ss:$24 sps:$4 sm:$0xff]  }
 0x7db   :  { %16759 = vmatpush2.bf16.msra.mxu1 %v20750_v37  ;;  %16717 = vmatprep.subr.bf16.mxu0 %v20755_v33  ;;  %v20794_v37 = vld [vmem:[#allocation11 + $0xf9c] ss:$24 sps:$4 sm:$0xff]   ;;  %v22911_v33 = vpop.f32.mrf.mxu0 }
 0x7dc   :  { %16760 = vmatprep.subr.bf16.mxu1 %v20758_v4  ;;  %v22913_v4 = vpop.f32.mrf.mxu1 }
 0x7de   :  { %16718 = vmatpush2.bf16.msra.mxu0 %v20753_v52  ;;  %v20789_v52 = vld [vmem:[#allocation11 + $0xc98] ss:$24 sps:$4 sm:$0xff]  }
 0x7df   :  { %16761 = vmatpush2.bf16.msra.mxu1 %v20756_v20  ;;  %16719 = vmatprep.subr.bf16.mxu0 %v20761_v54  ;;  %v20792_v20 = vld [vmem:[#allocation11 + $0xf98] ss:$24 sps:$4 sm:$0xff]   ;;  %v20797_v54 = vld [vmem:[#allocation11 + $0xc6c] ss:$24 sps:$4 sm:$0xff]  }
 0x7e0   :  { %16762 = vmatprep.subr.bf16.mxu1 %v20764_v9  ;;  %v20800_v9 = vld [vmem:[#allocation11 + $0xf6c] ss:$24 sps:$4 sm:$0xff]  }
 0x7e2   :  { %16720 = vmatpush2.bf16.msra.mxu0 %v20759_v26  ;;  %v22915_v26 = vpop.f32.mrf.mxu0 }
 0x7e3   :  { %16763 = vmatpush2.bf16.msra.mxu1 %v20762_v31  ;;  %16775 = vmatprep.subr.bf16.mxu0 %v20767_v49  ;;  %v22917_v31 = vpop.f32.mrf.mxu1  ;;  %v20795_v49 = vld [vmem:[#allocation11 + $0xc68] ss:$24 sps:$4 sm:$0xff]  }
 0x7e4   :  { %16818 = vmatprep.subr.bf16.mxu1 %v20770_v51  ;;  %v20798_v51 = vld [vmem:[#allocation11 + $0xf68] ss:$24 sps:$4 sm:$0xff]  }
 0x7e5   :  { %16722 = vmatmul.mubr.bf16.vlgmr.msra.gmra.mxu0 %v23187_v7 }
 0x7e6   :  { %16765 = vmatmul.mubr.bf16.vlgmr.msra.gmra.mxu1 %v23189_v59  ;;  %16776 = vmatpush1.bf16.msra.mxu0 %v20765_v62  ;;  %v20803_v62 = vld [vmem:[#allocation11 + $0xc3c] ss:$24 sps:$4 sm:$0xff]  }
 0x7e7   :  { %16807 = vmatprep.mubr.bf16.mxu0 %v22718_v27  ;;  %16819 = vmatpush1.bf16.msra.mxu1 %v20768_v53  ;;  %v20806_v53 = vld [vmem:[#allocation11 + $0xf3c] ss:$24 sps:$4 sm:$0xff]  }
 0x7e8   :  { %16850 = vmatprep.mubr.bf16.mxu1 %v22724_v22  ;;  %16777 = vmatprep.subr.bf16.mxu0 %v20773_v35  ;;  %v22919_v35 = vpop.f32.mrf.mxu0 }
 0x7e9   :  { %16820 = vmatprep.subr.bf16.mxu1 %v20776_v50  ;;  %v22921_v50 = vpop.f32.mrf.mxu1 }
 0x7ea   :  { %16778 = vmatpush1.bf16.msra.mxu0 %v20771_v56  ;;  %v20801_v56 = vld [vmem:[#allocation11 + $0xc38] ss:$24 sps:$4 sm:$0xff]  }
 0x7eb   :  { %16821 = vmatpush1.bf16.msra.mxu1 %v20774_v5  ;;  %16779 = vmatprep.subr.bf16.mxu0 %v20779_v58  ;;  %v22923_v5 = vpop.f32.mrf.mxu0  ;;  %v20804_v58 = vld [vmem:[#allocation11 + $0xf38] ss:$24 sps:$4 sm:$0xff]  }
 0x7ec   :  { %16822 = vmatprep.subr.bf16.mxu1 %v20782_v36  ;;  %v20809_v36 = vld [vmem:[#allocation11 + $0xc0c] ss:$24 sps:$4 sm:$0xff]  }
 0x7ee   :  { %16780 = vmatpush1.bf16.msra.mxu0 %v20777_v17  ;;  %v22925_v17 = vpop.f32.mrf.mxu1 }
 0x7ef   :  { %16823 = vmatpush1.bf16.msra.mxu1 %v20780_v10  ;;  %16781 = vmatprep.subr.bf16.mxu0 %v20785_v6  ;;  %v20812_v10 = vld [vmem:[#allocation11 + $0xf0c] ss:$24 sps:$4 sm:$0xff]   ;;  %v20807_v6 = vld [vmem:[#allocation11 + $0xc08] ss:$24 sps:$4 sm:$0xff]  }
 0x7f0   :  { %16824 = vmatprep.subr.bf16.mxu1 %v20788_v32  ;;  %v22927_v32 = vpop.f32.mrf.mxu0 }
 0x7f2   :  { %16782 = vmatpush1.bf16.msra.mxu0 %v20783_v1  ;;  %v20810_v1 = vld [vmem:[#allocation11 + $0xf08] ss:$24 sps:$4 sm:$0xff]  }
 0x7f3   :  { %16825 = vmatpush1.bf16.msra.mxu1 %v20786_v63  ;;  %16783 = vmatprep.subr.bf16.mxu0 %v20791_v15  ;;  %v20815_v63 = vld [vmem:[#allocation11 + $0xedc] ss:$24 sps:$4 sm:$0xff]   ;;  %v22929_v15 = vpop.f32.mrf.mxu1 }
 0x7f4   :  { %16826 = vmatprep.subr.bf16.mxu1 %v20794_v37  ;;  %v20818_v37 = vld [vmem:[#allocation11 + $0x11dc] ss:$24 sps:$4 sm:$0xff]  }
 0x7f6   :  { %16784 = vmatpush1.bf16.msra.mxu0 %v20789_v52  ;;  %v10295_v52 = vld [vmem:[#allocation13] sm:$0x3f] }
 0x7f7   :  { %16827 = vmatpush1.bf16.msra.mxu1 %v20792_v20  ;;  %16785 = vmatprep.subr.bf16.mxu0 %v20797_v54  ;;  %v20813_v20 = vld [vmem:[#allocation11 + $0xed8] ss:$24 sps:$4 sm:$0xff]   ;;  %v22931_v54 = vpop.f32.mrf.mxu0 }
 0x7f8   :  { %16828 = vmatprep.subr.bf16.mxu1 %v20800_v9  ;;  %v20816_v9 = vld [vmem:[#allocation11 + $0x11d8] ss:$24 sps:$4 sm:$0xff]  }
 0x7fa   :  { %16786 = vmatpush1.bf16.msra.mxu0 %v20795_v49  ;;  %v20821_v49 = vld [vmem:[#allocation11 + $0xeac] ss:$24 sps:$4 sm:$0xff]  }
 0x7fb   :  { %16829 = vmatpush1.bf16.msra.mxu1 %v20798_v51  ;;  %16787 = vmatprep.subr.bf16.mxu0 %v20803_v62  ;;  %v23209_v51 = vld [vmem:[#allocation21_spill] sm:$0xff] }
 0x7fc   :  { %16830 = vmatprep.subr.bf16.mxu1 %v20806_v53  ;;  %v10300_v62 = vrot.slane %v10295_v52, %v23209_v51  ;;  %v22934_v53 = vpop.f32.mrf.mxu1  ;;  %v20830_v51 = vld [vmem:[#allocation11 + $0x117c] ss:$24 sps:$4 sm:$0xff]  }
 0x7fe   :  { %16788 = vmatpush1.bf16.msra.mxu0 %v20801_v56  ;;  %v20824_v56 = vld [vmem:[#allocation11 + $0x11ac] ss:$24 sps:$4 sm:$0xff]  }
 0x7ff   :  { %16831 = vmatpush1.bf16.msra.mxu1 %v20804_v58  ;;  %16789 = vmatprep.subr.bf16.mxu0 %v20809_v36  ;;  %v10304_v58 = vrot.slane %v10295_v52, %v22172_v39  ;;  %v20819_v36 = vld [vmem:[#allocation11 + $0xea8] ss:$24 sps:$4 sm:$0xff]   ;;  %v20825_v39 = vld [vmem:[#allocation11 + $0xe78] ss:$24 sps:$4 sm:$0xff]  }
 0x800   :  { %16832 = vmatprep.subr.bf16.mxu1 %v20812_v10  ;;  %v22937_v10 = vpop.f32.mrf.mxu0  ;;  %v20828_v52 = vld [vmem:[#allocation11 + $0x1178] ss:$24 sps:$4 sm:$0xff]  }
 0x801   :  { %v16128_v27 = vadd.f32 %v22903_v2, %v10304_v58 }
 0x802   :  { %16790 = vmatpush1.bf16.msra.mxu0 %v20807_v6  ;;  %v20822_v6 = vld [vmem:[#allocation11 + $0x11a8] ss:$24 sps:$4 sm:$0xff]   ;;  %v22942_v41 = vpop.f32.mrf.mxu0 }
 0x803   :  { %16833 = vmatpush1.bf16.msra.mxu1 %v20810_v1  ;;  %16791 = vmatprep.subr.bf16.mxu0 %v20815_v63  ;;  %v16122_v1 = vadd.f32 %v22887_v45, %v10300_v62  ;;  %v22940_v63 = vpop.f32.mrf.mxu1  ;;  %v16126_v45 = vadd.f32 %v22897_v13, %v10300_v62  ;;  %v20842_v62 = vld [vmem:[#allocation11 + $0x111c] ss:$24 sps:$4 sm:$0xff]  }
 0x804   :  { %16834 = vmatprep.subr.bf16.mxu1 %v20818_v37  ;;  %v16124_v37 = vadd.f32 %v22891_v60, %v10304_v58 }
 0x805   :  { %v22945_v44 = vpop.f32.mrf.mxu1 }
 0x806   :  { %16792 = vmatpush2.bf16.msra.mxu0 %v20813_v20  ;;  %v20833_v20 = vld [vmem:[#allocation11 + $0xe4c] ss:$24 sps:$4 sm:$0xff]   ;;  %v16167_v22 = vadd.f32 %v22893_v18, %v16124_v37  ;;  %v16171_v18 = vadd.f32 %v22905_v24, %v16128_v27  ;;  %v20840_v37 = vld [vmem:[#allocation11 + $0x1118] ss:$24 sps:$4 sm:$0xff]  }
 0x807   :  { %16835 = vmatpush2.bf16.msra.mxu1 %v20816_v9  ;;  %16793 = vmatprep.subr.bf16.mxu0 %v20821_v49  ;;  %v16165_v9 = vadd.f32 %v22889_v43, %v16122_v1  ;;  %v20836_v49 = vld [vmem:[#allocation11 + $0x114c] ss:$24 sps:$4 sm:$0xff]   ;;  %v22952_v59 = vpop.f32.mrf.mxu1  ;;  %v16169_v43 = vadd.f32 %v22900_v28, %v16126_v45  ;;  %v20846_v45 = vld [vmem:[#allocation11 + $0x10e8] ss:$24 sps:$4 sm:$0xff]  }
 0x808   :  { %16836 = vmatprep.subr.bf16.mxu1 %v20824_v56  ;;  %v16381_v56 = vpop.f32.mrf.mxu0  ;;  %v16210_v13 = vadd.f32 %v22911_v33, %v16167_v22  ;;  %v16214_v22 = vadd.f32 %v22919_v35, %v16171_v18  ;;  %v20860_v18 = vld [vmem:[#allocation11 + $0x108c] ss:$24 sps:$4 sm:$0xff]  }
 0x809   :  { %v16208_v60 = vadd.f32 %v22907_v57, %v16165_v9  ;;  %v16212_v57 = vadd.f32 %v22915_v26, %v16169_v43  ;;  %v16426_v58 = vpop.f32.mrf.mxu1 }
 0x80a   :  { %16794 = vmatpush2.bf16.msra.mxu0 %v20819_v36  ;;  %v20831_v36 = vld [vmem:[#allocation11 + $0xe48] ss:$24 sps:$4 sm:$0xff]   ;;  %v16383_v1 = vpop.f32.mrf.mxu0  ;;  %v16253_v28 = vadd.f32 %v22913_v4, %v16210_v13  ;;  %v16257_v4 = vadd.f32 %v22921_v50, %v16214_v22  ;;  %v20852_v13 = vld [vmem:[#allocation11 + $0x10b8] ss:$24 sps:$4 sm:$0xff]   ;;  %v20857_v50 = vld [vmem:[#allocation11 + $0xd8c] ss:$24 sps:$4 sm:$0xff]  }
 0x80b   :  { %16837 = vmatpush2.bf16.msra.mxu1 %v20822_v6  ;;  %16795 = vmatprep.subr.bf16.mxu0 %v20827_v48  ;;  %v20834_v48 = vld [vmem:[#allocation11 + $0x1148] ss:$24 sps:$4 sm:$0xff]   ;;  %v20839_v6 = vld [vmem:[#allocation11 + $0xe1c] ss:$24 sps:$4 sm:$0xff]   ;;  %v16251_v2 = vadd.f32 %v22909_v61, %v16208_v60  ;;  %v16255_v24 = vadd.f32 %v22917_v31, %v16212_v57  ;;  %v16428_v26 = vpop.f32.mrf.mxu1 }
 0x80c   :  { %16838 = vmatprep.subr.bf16.mxu1 %v20830_v51  ;;  %v20837_v51 = vld [vmem:[#allocation11 + $0xe18] ss:$24 sps:$4 sm:$0xff]   ;;  %v16385_v27 = vpop.f32.mrf.mxu0  ;;  %v16296_v61 = vadd.f32 %v22927_v32, %v16253_v28  ;;  %v16300_v32 = vadd.f32 %v22937_v10, %v16257_v4  ;;  %v20866_v22 = vld [vmem:[#allocation11 + $0x165c] ss:$24 sps:$4 sm:$0xff]  }
 0x80d   :  { %v16294_v33 = vadd.f32 %v22923_v5, %v16251_v2  ;;  %v16298_v5 = vadd.f32 %v22931_v54, %v16255_v24  ;;  %v16508_v60 = vpop.f32.mrf.mxu1 }
 0x80e   :  { %16796 = vmatpush2.bf16.msra.mxu0 %v20825_v39  ;;  %v20845_v39 = vld [vmem:[#allocation11 + $0xdec] ss:$24 sps:$4 sm:$0xff]   ;;  %v16465_v9 = vpop.f32.mrf.mxu0  ;;  %v16339_v31 = vadd.f32 %v22929_v15, %v16296_v61  ;;  %v16343_v2 = vadd.f32 %v22940_v63, %v16300_v32  ;;  %v20861_v63 = vld [vmem:[#allocation11 + $0x1358] ss:$24 sps:$4 sm:$0xff]  }
 0x80f   :  { %16839 = vmatpush2.bf16.msra.mxu1 %v20828_v52  ;;  %16797 = vmatprep.subr.bf16.mxu0 %v20833_v20  ;;  %v20848_v52 = vld [vmem:[#allocation11 + $0x10ec] ss:$24 sps:$4 sm:$0xff]   ;;  %v20843_v20 = vld [vmem:[#allocation11 + $0xde8] ss:$24 sps:$4 sm:$0xff]   ;;  %v16337_v35 = vadd.f32 %v22925_v17, %v16294_v33  ;;  %v16341_v17 = vadd.f32 %v22934_v53, %v16298_v5  ;;  %v16510_v54 = vpop.f32.mrf.mxu1 }
 0x810   :  { %16840 = vmatprep.subr.bf16.mxu1 %v20836_v49  ;;  %v20851_v49 = vld [vmem:[#allocation11 + $0xdbc] ss:$24 sps:$4 sm:$0xff]   ;;  %v16467_v43 = vpop.f32.mrf.mxu0  ;;  %v16386_v28 = vadd.f32 %v16385_v27, %v16343_v2  ;;  %v20872_v27 = vld [vmem:[#allocation11 + $0x162c] ss:$24 sps:$4 sm:$0xff]   ;;  %v20867_v5 = vld [vmem:[#allocation11 + $0x1328] ss:$24 sps:$4 sm:$0xff]  }
 0x811   :  { %v16384_v10 = vadd.f32 %v16383_v1, %v16341_v17  ;;  %v20864_v1 = vld [vmem:[#allocation11 + $0x1658] ss:$24 sps:$4 sm:$0xff]   ;;  %v21843_v17 = vld [vmem:[#allocation2] sm:$0xff] }
 0x812   :  { %16798 = vmatpush2.bf16.msra.mxu0 %v20831_v36  ;;  %v20854_v36 = vld [vmem:[#allocation11 + $0x10bc] ss:$24 sps:$4 sm:$0xff]   ;;  %v16469_v57 = vpop.f32.mrf.mxu0  ;;  %v16429_v24 = vadd.f32 %v16428_v26, %v16386_v28 }
 0x813   :  { %16841 = vmatpush2.bf16.msra.mxu1 %v20834_v48  ;;  %16799 = vmatprep.subr.bf16.mxu0 %v20839_v6  ;;  %v16380_v48 = vadd.f32 %v22942_v41, %v16337_v35  ;;  %v20849_v6 = vld [vmem:[#allocation11 + $0xdb8] ss:$24 sps:$4 sm:$0xff]   ;;  %v20855_v41 = vld [vmem:[#allocation11 + $0xd88] ss:$24 sps:$4 sm:$0xff]   ;;  %v16427_v33 = vadd.f32 %v16426_v58, %v16384_v10 }
 0x814   :  { %16842 = vmatprep.subr.bf16.mxu1 %v20842_v62  ;;  %v16382_v62 = vadd.f32 %v16381_v56, %v16339_v31  ;;  %v16512_v56 = vpop.f32.mrf.mxu1 }
 0x815   :  { %v16423_v15 = vadd.f32 %v22945_v44, %v16380_v48  ;;  %v16471_v44 = vpop.f32.mrf.mxu0 }
 0x816   :  { %16800 = vmatpush2.bf16.msra.mxu0 %v20837_v51  ;;  %v20858_v51 = vld [vmem:[#allocation11 + $0x1088] ss:$24 sps:$4 sm:$0xff]   ;;  %v16472_v4 = vadd.f32 %v16471_v44, %v16429_v24  ;;  %v21846_v24 = vld [vmem:[#allocation2 + $0x38] sm:$0xff] }
 0x817   :  { %16843 = vmatpush2.bf16.msra.mxu1 %v20840_v37  ;;  %16801 = vmatprep.subr.bf16.mxu0 %v20845_v39  ;;  %v20863_v37 = vld [vmem:[#allocation11 + $0x135c] ss:$24 sps:$4 sm:$0xff]   ;;  %v16425_v39 = vadd.f32 %v22952_v59, %v16382_v62  ;;  %v16466_v53 = vadd.f32 %v16465_v9, %v16423_v15  ;;  %v20873_v15 = vld [vmem:[#allocation11 + $0x12f8] ss:$24 sps:$4 sm:$0xff]   ;;  %v20882_v44 = vld [vmem:[#allocation11 + $0x15c8] ss:$24 sps:$4 sm:$0xff]  }
 0x818   :  { %16844 = vmatprep.subr.bf16.mxu1 %v20848_v52 }
 0x819   :  { %v16468_v52 = vadd.f32 %v16467_v43, %v16425_v39  ;;  %v16509_v61 = vadd.f32 %v16508_v60, %v16466_v53  ;;  %v20870_v60 = vld [vmem:[#allocation11 + $0x1628] ss:$24 sps:$4 sm:$0xff]   ;;  %v20878_v43 = vld [vmem:[#allocation11 + $0x15fc] ss:$24 sps:$4 sm:$0xff]   ;;  %v20884_v53 = vld [vmem:[#allocation11 + $0x15cc] ss:$24 sps:$4 sm:$0xff]  }
 0x81a   :  { %16802 = vmatpush2.bf16.msra.mxu0 %v20843_v20  ;;  %v16470_v20 = vadd.f32 %v16469_v57, %v16427_v33  ;;  %v20881_v57 = vld [vmem:[#allocation11 + $0x12cc] ss:$24 sps:$4 sm:$0xff]  }
 0x81b   :  { %16845 = vmatpush2.bf16.msra.mxu1 %v20846_v45  ;;  %16803 = vmatprep.subr.bf16.mxu0 %v20851_v49  ;;  %v16514_v45 = vpop.f32.mrf.mxu1  ;;  %v20869_v49 = vld [vmem:[#allocation11 + $0x132c] ss:$24 sps:$4 sm:$0xff]   ;;  %v16511_v9 = vadd.f32 %v16510_v54, %v16468_v52 }
 0x81c   :  { %16846 = vmatprep.subr.bf16.mxu1 %v20854_v36  ;;  %v20875_v36 = vld [vmem:[#allocation11 + $0x12fc] ss:$24 sps:$4 sm:$0xff]   ;;  %v16513_v31 = vadd.f32 %v16512_v56, %v16470_v20 }
 0x81d   :  { %v20890_v20 = vld [vmem:[#allocation11 + $0x159c] ss:$24 sps:$4 sm:$0xff]  }
 0x81e   :  { %16804 = vmatpush2.bf16.msra.mxu0 %v20849_v6 }
 0x81f   :  { %16847 = vmatpush2.bf16.msra.mxu1 %v20852_v13  ;;  %16805 = vmatprep.subr.bf16.mxu0 %v20857_v50  ;;  %v16515_v50 = vadd.f32 %v16514_v45, %v16472_v4  ;;  %v20885_v45 = vld [vmem:[#allocation11 + $0x1298] ss:$24 sps:$4 sm:$0xff]   ;;  %v20894_v4 = vld [vmem:[#allocation11 + $0x1568] ss:$24 sps:$4 sm:$0xff]  }
 0x820   :  { %16848 = vmatprep.subr.bf16.mxu1 %v20860_v18 }
 0x822   :  { %16806 = vmatpush2.bf16.msra.mxu0 %v20855_v41  ;;  %v20876_v41 = vld [vmem:[#allocation11 + $0x15f8] ss:$24 sps:$4 sm:$0xff]  }
 0x823   :  { %16849 = vmatpush2.bf16.msra.mxu1 %v20858_v51  ;;  %16861 = vmatprep.subr.bf16.mxu0 %v20863_v37  ;;  %v21844_v51 = vld [vmem:[#allocation2 + $0x8] sm:$0xff] }
 0x824   :  { %16904 = vmatprep.subr.bf16.mxu1 %v20866_v22  ;;  %v21845_v22 = vld [vmem:[#allocation2 + $0x30] sm:$0xff] }
 0x825   :  { %v16551_v59 = vpop.f32.mrf.mxu0  ;;  %16808 = vmatmul.mubr.bf16.vlgmr.msra.gmra.mxu0 %v23201_v3 }
 0x826   :  { %v16552_v58 = vadd.f32 %v16551_v59, %v16509_v61  ;;  %v16594_v35 = vpop.f32.mrf.mxu1  ;;  %16851 = vmatmul.mubr.bf16.vlgmr.msra.gmra.mxu1 %v23202_v42  ;;  %16862 = vmatpush1.bf16.msra.mxu0 %v20861_v63  ;;  %v20879_v63 = vld [vmem:[#allocation11 + $0x12c8] ss:$24 sps:$4 sm:$0xff]   ;;  %v20893_v59 = vld [vmem:[#allocation11 + $0x126c] ss:$24 sps:$4 sm:$0xff]  }
 0x827   :  { %16893 = vmatprep.mubr.bf16.mxu0 %v22782_v30  ;;  %16905 = vmatpush1.bf16.msra.mxu1 %v20864_v1  ;;  %v16553_v26 = vpop.f32.mrf.mxu0  ;;  %v20887_v1 = vld [vmem:[#allocation11 + $0x129c] ss:$24 sps:$4 sm:$0xff]  }
 0x828   :  { %v16595_v32 = vadd.f32 %v16594_v35, %v16552_v58  ;;  %16936 = vmatprep.mubr.bf16.mxu1 %v22785_v0  ;;  %v16554_v48 = vadd.f32 %v16553_v26, %v16511_v9  ;;  %v16596_v6 = vpop.f32.mrf.mxu1  ;;  %16863 = vmatprep.subr.bf16.mxu0 %v20869_v49  ;;  %v20888_v49 = vld [vmem:[#allocation11 + $0x1598] ss:$24 sps:$4 sm:$0xff]   ;;  %v20891_v9 = vld [vmem:[#allocation11 + $0x1268] ss:$24 sps:$4 sm:$0xff]   ;;  %v20899_v58 = vld [vmem:[#allocation11 + $0x123c] ss:$24 sps:$4 sm:$0xff]  }
 0x829   :  { %v16555_v13 = vpop.f32.mrf.mxu0  ;;  %16906 = vmatprep.subr.bf16.mxu1 %v20872_v27  ;;  %v20896_v27 = vld [vmem:[#allocation11 + $0x156c] ss:$24 sps:$4 sm:$0xff]   ;;  %v20902_v35 = vld [vmem:[#allocation11 + $0x153c] ss:$24 sps:$4 sm:$0xff]   ;;  %v20900_v26 = vld [vmem:[#allocation11 + $0x1538] ss:$24 sps:$4 sm:$0xff]  }
 0x82a   :  { %v17635_v62 = vadd.f32 %v21843_v17, %v16595_v32  ;;  %v16597_v54 = vadd.f32 %v16596_v6, %v16554_v48  ;;  %v16556_v18 = vadd.f32 %v16555_v13, %v16513_v31  ;;  %v16598_v2 = vpop.f32.mrf.mxu1  ;;  %16864 = vmatpush1.bf16.msra.mxu0 %v20867_v5  ;;  %v20897_v5 = vld [vmem:[#allocation11 + $0x1238] ss:$24 sps:$4 sm:$0xff]   ;;  %v20903_v31 = vld [vmem:[#allocation11 + $0x1208] ss:$24 sps:$4 sm:$0xff]   ;;  %v20911_v48 = vld [vmem:[#allocation11 + $0x14dc] ss:$24 sps:$4 sm:$0xff]  }
 0x82b   :  { %16907 = vmatpush1.bf16.msra.mxu1 %v20870_v60  ;;  %v16557_v10 = vpop.f32.mrf.mxu0  ;;  %16865 = vmatprep.subr.bf16.mxu0 %v20875_v36  ;;  %v20905_v60 = vld [vmem:[#allocation11 + $0x120c] ss:$24 sps:$4 sm:$0xff]   ;;  %v20906_v32 = vld [vmem:[#allocation11 + $0x1508] ss:$24 sps:$4 sm:$0xff]   ;;  %v20914_v6 = vld [vmem:[#allocation11 + $0x17dc] ss:$24 sps:$4 sm:$0xff]  }
 0x82c   :  { %17647 = vst [vmem:[#allocation14] sm:$0xff] %v17635_v62  ;;  %v17636_v37 = vadd.f32 %v21844_v51, %v16597_v54  ;;  %v16599_v39 = vadd.f32 %v16598_v2, %v16556_v18  ;;  %v16558_v28 = vadd.f32 %v16557_v10, %v16515_v50  ;;  %16908 = vmatprep.subr.bf16.mxu1 %v20878_v43  ;;  %v16600_v56 = vpop.f32.mrf.mxu1  ;;  %v20908_v36 = vld [vmem:[#allocation11 + $0x150c] ss:$24 sps:$4 sm:$0xff]   ;;  %v20909_v43 = vld [vmem:[#allocation11 + $0x14d8] ss:$24 sps:$4 sm:$0xff]  }
 0x82d   :  { %v20912_v13 = vld [vmem:[#allocation11 + $0x17d8] ss:$24 sps:$4 sm:$0xff]   ;;  %v20917_v50 = vld [vmem:[#allocation11 + $0x14ac] ss:$24 sps:$4 sm:$0xff]   ;;  %v20915_v62 = vld [vmem:[#allocation11 + $0x14a8] ss:$24 sps:$4 sm:$0xff]  }
 0x82e   :  { %17648 = vst [vmem:[#allocation14 + $0x8] sm:$0xff] %v17636_v37  ;;  %v17641_v33 = vadd.f32 %v21845_v22, %v16599_v39  ;;  %v16601_v52 = vadd.f32 %v16600_v56, %v16558_v28  ;;  %16866 = vmatpush1.bf16.msra.mxu0 %v20873_v15  ;;  %v20920_v17 = vld [vmem:[#allocation11 + $0x17ac] ss:$24 sps:$4 sm:$0xff]   ;;  %v20918_v54 = vld [vmem:[#allocation11 + $0x17a8] ss:$24 sps:$4 sm:$0xff]  }
 0x82f   :  { %16909 = vmatpush1.bf16.msra.mxu1 %v20876_v41  ;;  %16867 = vmatprep.subr.bf16.mxu0 %v20881_v57  ;;  %v20923_v18 = vld [vmem:[#allocation11 + $0x147c] ss:$24 sps:$4 sm:$0xff]   ;;  %v20921_v15 = vld [vmem:[#allocation11 + $0x1478] ss:$24 sps:$4 sm:$0xff]   ;;  %v20929_v41 = vld [vmem:[#allocation11 + $0x144c] ss:$24 sps:$4 sm:$0xff]  }
 0x830   :  { %17653 = vst [vmem:[#allocation14 + $0x30] sm:$0xff] %v17641_v33  ;;  %v17642_v61 = vadd.f32 %v21846_v24, %v16601_v52  ;;  %16910 = vmatprep.subr.bf16.mxu1 %v20884_v53  ;;  %v20926_v2 = vld [vmem:[#allocation11 + $0x177c] ss:$24 sps:$4 sm:$0xff]   ;;  %v20924_v10 = vld [vmem:[#allocation11 + $0x1778] ss:$24 sps:$4 sm:$0xff]  }
 0x831   :  { %v20932_v57 = vld [vmem:[#allocation11 + $0x174c] ss:$24 sps:$4 sm:$0xff]   ;;  %v20927_v51 = vld [vmem:[#allocation11 + $0x1448] ss:$24 sps:$4 sm:$0xff]   ;;  %v20935_v39 = vld [vmem:[#allocation11 + $0x141c] ss:$24 sps:$4 sm:$0xff]  }
 0x832   :  { %17654 = vst [vmem:[#allocation14 + $0x38] sm:$0xff] %v17642_v61  ;;  %16868 = vmatpush1.bf16.msra.mxu0 %v20879_v63  ;;  %v20930_v37 = vld [vmem:[#allocation11 + $0x1748] ss:$24 sps:$4 sm:$0xff]   ;;  %v20938_v28 = vld [vmem:[#allocation11 + $0x171c] ss:$24 sps:$4 sm:$0xff]  }
 0x833   :  { %16911 = vmatpush1.bf16.msra.mxu1 %v20882_v44  ;;  %16869 = vmatprep.subr.bf16.mxu0 %v20887_v1  ;;  %v20933_v53 = vld [vmem:[#allocation11 + $0x1418] ss:$24 sps:$4 sm:$0xff]   ;;  %v20941_v22 = vld [vmem:[#allocation11 + $0x13ec] ss:$24 sps:$4 sm:$0xff]   ;;  %v20939_v52 = vld [vmem:[#allocation11 + $0x13e8] ss:$24 sps:$4 sm:$0xff]  }
 0x834   :  { %16912 = vmatprep.subr.bf16.mxu1 %v20890_v20  ;;  %v20936_v56 = vld [vmem:[#allocation11 + $0x1718] ss:$24 sps:$4 sm:$0xff]   ;;  %v20944_v33 = vld [vmem:[#allocation11 + $0x16ec] ss:$24 sps:$4 sm:$0xff]   ;;  %v20942_v63 = vld [vmem:[#allocation11 + $0x16e8] ss:$24 sps:$4 sm:$0xff]  }
 0x835   :  { %v20947_v44 = vld [vmem:[#allocation11 + $0x13bc] ss:$24 sps:$4 sm:$0xff]   ;;  %v20945_v24 = vld [vmem:[#allocation11 + $0x13b8] ss:$24 sps:$4 sm:$0xff]   ;;  %v20953_v20 = vld [vmem:[#allocation11 + $0x138c] ss:$24 sps:$4 sm:$0xff]  }
 0x836   :  { %16870 = vmatpush1.bf16.msra.mxu0 %v20885_v45  ;;  %v20950_v1 = vld [vmem:[#allocation11 + $0x16bc] ss:$24 sps:$4 sm:$0xff]   ;;  %v20948_v61 = vld [vmem:[#allocation11 + $0x16b8] ss:$24 sps:$4 sm:$0xff]   ;;  %v20956_v45 = vld [vmem:[#allocation11 + $0x168c] ss:$24 sps:$4 sm:$0xff]  }
 0x837   :  { %16913 = vmatpush1.bf16.msra.mxu1 %v20888_v49  ;;  %16871 = vmatprep.subr.bf16.mxu0 %v20893_v59  ;;  %v20951_v49 = vld [vmem:[#allocation11 + $0x1388] ss:$24 sps:$4 sm:$0xff]  }
 0x838   :  { %16914 = vmatprep.subr.bf16.mxu1 %v20896_v27  ;;  %v20954_v59 = vld [vmem:[#allocation11 + $0x1688] ss:$24 sps:$4 sm:$0xff]   ;;  %v20959_v27 = vld [vmem:[#allocation11 + $0x195c] ss:$24 sps:$4 sm:$0xff]  }
 0x83a   :  { %16872 = vmatpush1.bf16.msra.mxu0 %v20891_v9  ;;  %v20962_v9 = vld [vmem:[#allocation11 + $0x1c5c] ss:$24 sps:$4 sm:$0xff]  }
 0x83b   :  { %16915 = vmatpush1.bf16.msra.mxu1 %v20894_v4  ;;  %16873 = vmatprep.subr.bf16.mxu0 %v20899_v58  ;;  %v20957_v4 = vld [vmem:[#allocation11 + $0x1958] ss:$24 sps:$4 sm:$0xff]  }
 0x83c   :  { %16916 = vmatprep.subr.bf16.mxu1 %v20902_v35  ;;  %v20960_v58 = vld [vmem:[#allocation11 + $0x1c58] ss:$24 sps:$4 sm:$0xff]   ;;  %v20965_v35 = vld [vmem:[#allocation11 + $0x192c] ss:$24 sps:$4 sm:$0xff]  }
 0x83e   :  { %16874 = vmatpush1.bf16.msra.mxu0 %v20897_v5  ;;  %v20968_v5 = vld [vmem:[#allocation11 + $0x1c2c] ss:$24 sps:$4 sm:$0xff]  }
 0x83f   :  { %16917 = vmatpush1.bf16.msra.mxu1 %v20900_v26  ;;  %16875 = vmatprep.subr.bf16.mxu0 %v20905_v60  ;;  %v20963_v26 = vld [vmem:[#allocation11 + $0x1928] ss:$24 sps:$4 sm:$0xff]  }
 0x840   :  { %16918 = vmatprep.subr.bf16.mxu1 %v20908_v36  ;;  %v20966_v60 = vld [vmem:[#allocation11 + $0x1c28] ss:$24 sps:$4 sm:$0xff]   ;;  %v20971_v36 = vld [vmem:[#allocation11 + $0x18fc] ss:$24 sps:$4 sm:$0xff]  }
 0x842   :  { %16876 = vmatpush1.bf16.msra.mxu0 %v20903_v31  ;;  %v20974_v31 = vld [vmem:[#allocation11 + $0x1bfc] ss:$24 sps:$4 sm:$0xff]  }
 0x843   :  { %16919 = vmatpush1.bf16.msra.mxu1 %v20906_v32  ;;  %16877 = vmatprep.subr.bf16.mxu0 %v20911_v48  ;;  %v20969_v32 = vld [vmem:[#allocation11 + $0x18f8] ss:$24 sps:$4 sm:$0xff]  }
 0x844   :  { %16920 = vmatprep.subr.bf16.mxu1 %v20914_v6  ;;  %v20972_v48 = vld [vmem:[#allocation11 + $0x1bf8] ss:$24 sps:$4 sm:$0xff]   ;;  %v20977_v6 = vld [vmem:[#allocation11 + $0x18cc] ss:$24 sps:$4 sm:$0xff]  }
 0x846   :  { %16878 = vmatpush2.bf16.msra.mxu0 %v20909_v43  ;;  %v20980_v43 = vld [vmem:[#allocation11 + $0x1bcc] ss:$24 sps:$4 sm:$0xff]  }
 0x847   :  { %16921 = vmatpush2.bf16.msra.mxu1 %v20912_v13  ;;  %16879 = vmatprep.subr.bf16.mxu0 %v20917_v50  ;;  %v20975_v13 = vld [vmem:[#allocation11 + $0x18c8] ss:$24 sps:$4 sm:$0xff]  }
 0x848   :  { %16922 = vmatprep.subr.bf16.mxu1 %v20920_v17  ;;  %v20978_v50 = vld [vmem:[#allocation11 + $0x1bc8] ss:$24 sps:$4 sm:$0xff]   ;;  %v20983_v17 = vld [vmem:[#allocation11 + $0x189c] ss:$24 sps:$4 sm:$0xff]  }
 0x84a   :  { %16880 = vmatpush2.bf16.msra.mxu0 %v20915_v62  ;;  %v20986_v62 = vld [vmem:[#allocation11 + $0x1b9c] ss:$24 sps:$4 sm:$0xff]  }
 0x84b   :  { %16923 = vmatpush2.bf16.msra.mxu1 %v20918_v54  ;;  %16881 = vmatprep.subr.bf16.mxu0 %v20923_v18  ;;  %v20981_v54 = vld [vmem:[#allocation11 + $0x1898] ss:$24 sps:$4 sm:$0xff]  }
 0x84c   :  { %16924 = vmatprep.subr.bf16.mxu1 %v20926_v2  ;;  %v20984_v18 = vld [vmem:[#allocation11 + $0x1b98] ss:$24 sps:$4 sm:$0xff]   ;;  %v20989_v2 = vld [vmem:[#allocation11 + $0x186c] ss:$24 sps:$4 sm:$0xff]  }
 0x84e   :  { %16882 = vmatpush2.bf16.msra.mxu0 %v20921_v15  ;;  %v20992_v15 = vld [vmem:[#allocation11 + $0x1b6c] ss:$24 sps:$4 sm:$0xff]  }
 0x84f   :  { %16925 = vmatpush2.bf16.msra.mxu1 %v20924_v10  ;;  %16883 = vmatprep.subr.bf16.mxu0 %v20929_v41  ;;  %v20987_v10 = vld [vmem:[#allocation11 + $0x1868] ss:$24 sps:$4 sm:$0xff]  }
 0x850   :  { %16926 = vmatprep.subr.bf16.mxu1 %v20932_v57  ;;  %v20990_v41 = vld [vmem:[#allocation11 + $0x1b68] ss:$24 sps:$4 sm:$0xff]   ;;  %v20995_v57 = vld [vmem:[#allocation11 + $0x183c] ss:$24 sps:$4 sm:$0xff]  }
 0x852   :  { %16884 = vmatpush2.bf16.msra.mxu0 %v20927_v51  ;;  %v20998_v51 = vld [vmem:[#allocation11 + $0x1b3c] ss:$24 sps:$4 sm:$0xff]  }
 0x853   :  { %16927 = vmatpush2.bf16.msra.mxu1 %v20930_v37  ;;  %16885 = vmatprep.subr.bf16.mxu0 %v20935_v39  ;;  %v20993_v37 = vld [vmem:[#allocation11 + $0x1838] ss:$24 sps:$4 sm:$0xff]  }
 0x854   :  { %16928 = vmatprep.subr.bf16.mxu1 %v20938_v28  ;;  %v20996_v39 = vld [vmem:[#allocation11 + $0x1b38] ss:$24 sps:$4 sm:$0xff]   ;;  %v21001_v28 = vld [vmem:[#allocation11 + $0x180c] ss:$24 sps:$4 sm:$0xff]  }
 0x856   :  { %16886 = vmatpush2.bf16.msra.mxu0 %v20933_v53  ;;  %v21004_v53 = vld [vmem:[#allocation11 + $0x1b0c] ss:$24 sps:$4 sm:$0xff]  }
 0x857   :  { %16929 = vmatpush2.bf16.msra.mxu1 %v20936_v56  ;;  %16887 = vmatprep.subr.bf16.mxu0 %v20941_v22  ;;  %v20999_v56 = vld [vmem:[#allocation11 + $0x1808] ss:$24 sps:$4 sm:$0xff]  }
 0x858   :  { %16930 = vmatprep.subr.bf16.mxu1 %v20944_v33  ;;  %v21002_v22 = vld [vmem:[#allocation11 + $0x1b08] ss:$24 sps:$4 sm:$0xff]   ;;  %v21007_v33 = vld [vmem:[#allocation11 + $0x1adc] ss:$24 sps:$4 sm:$0xff]  }
 0x85a   :  { %16888 = vmatpush2.bf16.msra.mxu0 %v20939_v52  ;;  %v21010_v52 = vld [vmem:[#allocation11 + $0x1ddc] ss:$24 sps:$4 sm:$0xff]  }
 0x85b   :  { %16931 = vmatpush2.bf16.msra.mxu1 %v20942_v63  ;;  %16889 = vmatprep.subr.bf16.mxu0 %v20947_v44  ;;  %v21005_v63 = vld [vmem:[#allocation11 + $0x1ad8] ss:$24 sps:$4 sm:$0xff]  }
 0x85c   :  { %16932 = vmatprep.subr.bf16.mxu1 %v20950_v1  ;;  %v21008_v44 = vld [vmem:[#allocation11 + $0x1dd8] ss:$24 sps:$4 sm:$0xff]   ;;  %v21013_v1 = vld [vmem:[#allocation11 + $0x1aac] ss:$24 sps:$4 sm:$0xff]  }
 0x85e   :  { %16890 = vmatpush2.bf16.msra.mxu0 %v20945_v24  ;;  %v21016_v24 = vld [vmem:[#allocation11 + $0x1dac] ss:$24 sps:$4 sm:$0xff]  }
 0x85f   :  { %16933 = vmatpush2.bf16.msra.mxu1 %v20948_v61  ;;  %16891 = vmatprep.subr.bf16.mxu0 %v20953_v20  ;;  %v21011_v61 = vld [vmem:[#allocation11 + $0x1aa8] ss:$24 sps:$4 sm:$0xff]  }
 0x860   :  { %16934 = vmatprep.subr.bf16.mxu1 %v20956_v45  ;;  %v21014_v20 = vld [vmem:[#allocation11 + $0x1da8] ss:$24 sps:$4 sm:$0xff]   ;;  %v21019_v45 = vld [vmem:[#allocation11 + $0x1a7c] ss:$24 sps:$4 sm:$0xff]  }
 0x862   :  { %16892 = vmatpush2.bf16.msra.mxu0 %v20951_v49  ;;  %v21022_v49 = vld [vmem:[#allocation11 + $0x1d7c] ss:$24 sps:$4 sm:$0xff]  }
 0x863   :  { %16935 = vmatpush2.bf16.msra.mxu1 %v20954_v59  ;;  %16947 = vmatprep.subr.bf16.mxu0 %v20959_v27  ;;  %v21017_v59 = vld [vmem:[#allocation11 + $0x1a78] ss:$24 sps:$4 sm:$0xff]  }
 0x864   :  { %16990 = vmatprep.subr.bf16.mxu1 %v20962_v9  ;;  %v21020_v27 = vld [vmem:[#allocation11 + $0x1d78] ss:$24 sps:$4 sm:$0xff]   ;;  %v21025_v9 = vld [vmem:[#allocation11 + $0x1a4c] ss:$24 sps:$4 sm:$0xff]  }
 0x865   :  { %16894 = vmatmul.mubr.bf16.vlgmr.msra.gmra.mxu0 %v23207_v34 }
 0x866   :  { %16937 = vmatmul.mubr.bf16.vlgmr.msra.gmra.mxu1 %v23208_v23  ;;  %16948 = vmatpush1.bf16.msra.mxu0 %v20957_v4  ;;  %v21028_v4 = vld [vmem:[#allocation11 + $0x1d4c] ss:$24 sps:$4 sm:$0xff]  }
 0x867   :  { %16979 = vmatprep.mubr.bf16.mxu0 %v22836_v12  ;;  %16991 = vmatpush1.bf16.msra.mxu1 %v20960_v58  ;;  %v21023_v58 = vld [vmem:[#allocation11 + $0x1a48] ss:$24 sps:$4 sm:$0xff]  }
 0x868   :  { %17022 = vmatprep.mubr.bf16.mxu1 %v22839_v14  ;;  %16949 = vmatprep.subr.bf16.mxu0 %v20965_v35  ;;  %v21026_v35 = vld [vmem:[#allocation11 + $0x1d48] ss:$24 sps:$4 sm:$0xff]  }
 0x869   :  { %16992 = vmatprep.subr.bf16.mxu1 %v20968_v5  ;;  %v21031_v5 = vld [vmem:[#allocation11 + $0x1a1c] ss:$24 sps:$4 sm:$0xff]  }
 0x86a   :  { %16950 = vmatpush1.bf16.msra.mxu0 %v20963_v26  ;;  %v21034_v26 = vld [vmem:[#allocation11 + $0x1d1c] ss:$24 sps:$4 sm:$0xff]  }
 0x86b   :  { %16993 = vmatpush1.bf16.msra.mxu1 %v20966_v60  ;;  %16951 = vmatprep.subr.bf16.mxu0 %v20971_v36  ;;  %v21029_v60 = vld [vmem:[#allocation11 + $0x1a18] ss:$24 sps:$4 sm:$0xff]  }
 0x86c   :  { %16994 = vmatprep.subr.bf16.mxu1 %v20974_v31  ;;  %v21032_v36 = vld [vmem:[#allocation11 + $0x1d18] ss:$24 sps:$4 sm:$0xff]   ;;  %v21037_v31 = vld [vmem:[#allocation11 + $0x19ec] ss:$24 sps:$4 sm:$0xff]  }
 0x86e   :  { %16952 = vmatpush1.bf16.msra.mxu0 %v20969_v32  ;;  %v21040_v32 = vld [vmem:[#allocation11 + $0x1cec] ss:$24 sps:$4 sm:$0xff]  }
 0x86f   :  { %16995 = vmatpush1.bf16.msra.mxu1 %v20972_v48  ;;  %16953 = vmatprep.subr.bf16.mxu0 %v20977_v6  ;;  %v21035_v48 = vld [vmem:[#allocation11 + $0x19e8] ss:$24 sps:$4 sm:$0xff]  }
 0x870   :  { %16996 = vmatprep.subr.bf16.mxu1 %v20980_v43  ;;  %v21038_v6 = vld [vmem:[#allocation11 + $0x1ce8] ss:$24 sps:$4 sm:$0xff]   ;;  %v21043_v43 = vld [vmem:[#allocation11 + $0x19bc] ss:$24 sps:$4 sm:$0xff]  }
 0x872   :  { %16954 = vmatpush1.bf16.msra.mxu0 %v20975_v13  ;;  %v21046_v13 = vld [vmem:[#allocation11 + $0x1cbc] ss:$24 sps:$4 sm:$0xff]  }
 0x873   :  { %16997 = vmatpush1.bf16.msra.mxu1 %v20978_v50  ;;  %16955 = vmatprep.subr.bf16.mxu0 %v20983_v17  ;;  %v21041_v50 = vld [vmem:[#allocation11 + $0x19b8] ss:$24 sps:$4 sm:$0xff]  }
 0x874   :  { %16998 = vmatprep.subr.bf16.mxu1 %v20986_v62  ;;  %v21044_v17 = vld [vmem:[#allocation11 + $0x1cb8] ss:$24 sps:$4 sm:$0xff]   ;;  %v21049_v62 = vld [vmem:[#allocation11 + $0x198c] ss:$24 sps:$4 sm:$0xff]  }
 0x876   :  { %16956 = vmatpush1.bf16.msra.mxu0 %v20981_v54  ;;  %v21052_v54 = vld [vmem:[#allocation11 + $0x1c8c] ss:$24 sps:$4 sm:$0xff]  }
 0x877   :  { %16999 = vmatpush1.bf16.msra.mxu1 %v20984_v18  ;;  %16957 = vmatprep.subr.bf16.mxu0 %v20989_v2  ;;  %v21047_v18 = vld [vmem:[#allocation11 + $0x1988] ss:$24 sps:$4 sm:$0xff]  }
 0x878   :  { %17000 = vmatprep.subr.bf16.mxu1 %v20992_v15  ;;  %v21050_v2 = vld [vmem:[#allocation11 + $0x1c88] ss:$24 sps:$4 sm:$0xff]   ;;  %v21055_v15 = vld [vmem:[#allocation11 + $0x1f5c] ss:$24 sps:$4 sm:$0xff]  }
 0x87a   :  { %16958 = vmatpush1.bf16.msra.mxu0 %v20987_v10  ;;  %v21058_v10 = vld [vmem:[#allocation11 + $0x225c] ss:$24 sps:$4 sm:$0xff]  }
 0x87b   :  { %17001 = vmatpush1.bf16.msra.mxu1 %v20990_v41  ;;  %16959 = vmatprep.subr.bf16.mxu0 %v20995_v57  ;;  %v21053_v41 = vld [vmem:[#allocation11 + $0x1f58] ss:$24 sps:$4 sm:$0xff]  }
 0x87c   :  { %17002 = vmatprep.subr.bf16.mxu1 %v20998_v51  ;;  %v21056_v57 = vld [vmem:[#allocation11 + $0x2258] ss:$24 sps:$4 sm:$0xff]   ;;  %v21061_v51 = vld [vmem:[#allocation11 + $0x1f2c] ss:$24 sps:$4 sm:$0xff]  }
 0x87e   :  { %16960 = vmatpush1.bf16.msra.mxu0 %v20993_v37  ;;  %v21064_v37 = vld [vmem:[#allocation11 + $0x222c] ss:$24 sps:$4 sm:$0xff]  }
 0x87f   :  { %17003 = vmatpush1.bf16.msra.mxu1 %v20996_v39  ;;  %16961 = vmatprep.subr.bf16.mxu0 %v21001_v28  ;;  %v21059_v39 = vld [vmem:[#allocation11 + $0x1f28] ss:$24 sps:$4 sm:$0xff]  }
 0x880   :  { %17004 = vmatprep.subr.bf16.mxu1 %v21004_v53  ;;  %v21062_v28 = vld [vmem:[#allocation11 + $0x2228] ss:$24 sps:$4 sm:$0xff]   ;;  %v21067_v53 = vld [vmem:[#allocation11 + $0x1efc] ss:$24 sps:$4 sm:$0xff]  }
 0x882   :  { %16962 = vmatpush1.bf16.msra.mxu0 %v20999_v56  ;;  %v21070_v56 = vld [vmem:[#allocation11 + $0x21fc] ss:$24 sps:$4 sm:$0xff]  }
 0x883   :  { %17005 = vmatpush1.bf16.msra.mxu1 %v21002_v22  ;;  %16963 = vmatprep.subr.bf16.mxu0 %v21007_v33  ;;  %v21065_v22 = vld [vmem:[#allocation11 + $0x1ef8] ss:$24 sps:$4 sm:$0xff]  }
 0x884   :  { %17006 = vmatprep.subr.bf16.mxu1 %v21010_v52  ;;  %v21068_v33 = vld [vmem:[#allocation11 + $0x21f8] ss:$24 sps:$4 sm:$0xff]   ;;  %v21073_v52 = vld [vmem:[#allocation11 + $0x1ecc] ss:$24 sps:$4 sm:$0xff]  }
 0x886   :  { %16964 = vmatpush2.bf16.msra.mxu0 %v21005_v63  ;;  %v21076_v63 = vld [vmem:[#allocation11 + $0x21cc] ss:$24 sps:$4 sm:$0xff]  }
 0x887   :  { %17007 = vmatpush2.bf16.msra.mxu1 %v21008_v44  ;;  %16965 = vmatprep.subr.bf16.mxu0 %v21013_v1  ;;  %v21071_v44 = vld [vmem:[#allocation11 + $0x1ec8] ss:$24 sps:$4 sm:$0xff]  }
 0x888   :  { %17008 = vmatprep.subr.bf16.mxu1 %v21016_v24  ;;  %v21074_v1 = vld [vmem:[#allocation11 + $0x21c8] ss:$24 sps:$4 sm:$0xff]   ;;  %v21079_v24 = vld [vmem:[#allocation11 + $0x1e9c] ss:$24 sps:$4 sm:$0xff]  }
 0x88a   :  { %16966 = vmatpush2.bf16.msra.mxu0 %v21011_v61  ;;  %v21082_v61 = vld [vmem:[#allocation11 + $0x219c] ss:$24 sps:$4 sm:$0xff]  }
 0x88b   :  { %17009 = vmatpush2.bf16.msra.mxu1 %v21014_v20  ;;  %16967 = vmatprep.subr.bf16.mxu0 %v21019_v45  ;;  %v21077_v20 = vld [vmem:[#allocation11 + $0x1e98] ss:$24 sps:$4 sm:$0xff]  }
 0x88c   :  { %17010 = vmatprep.subr.bf16.mxu1 %v21022_v49  ;;  %v21080_v45 = vld [vmem:[#allocation11 + $0x2198] ss:$24 sps:$4 sm:$0xff]   ;;  %v21085_v49 = vld [vmem:[#allocation11 + $0x1e6c] ss:$24 sps:$4 sm:$0xff]  }
 0x88e   :  { %16968 = vmatpush2.bf16.msra.mxu0 %v21017_v59  ;;  %v21088_v59 = vld [vmem:[#allocation11 + $0x216c] ss:$24 sps:$4 sm:$0xff]  }
 0x88f   :  { %17011 = vmatpush2.bf16.msra.mxu1 %v21020_v27  ;;  %16969 = vmatprep.subr.bf16.mxu0 %v21025_v9  ;;  %v21083_v27 = vld [vmem:[#allocation11 + $0x1e68] ss:$24 sps:$4 sm:$0xff]  }
 0x890   :  { %17012 = vmatprep.subr.bf16.mxu1 %v21028_v4  ;;  %v21086_v9 = vld [vmem:[#allocation11 + $0x2168] ss:$24 sps:$4 sm:$0xff]   ;;  %v21091_v4 = vld [vmem:[#allocation11 + $0x1e3c] ss:$24 sps:$4 sm:$0xff]  }
 0x892   :  { %16970 = vmatpush2.bf16.msra.mxu0 %v21023_v58  ;;  %v21094_v58 = vld [vmem:[#allocation11 + $0x213c] ss:$24 sps:$4 sm:$0xff]  }
 0x893   :  { %17013 = vmatpush2.bf16.msra.mxu1 %v21026_v35  ;;  %16971 = vmatprep.subr.bf16.mxu0 %v21031_v5  ;;  %v21089_v35 = vld [vmem:[#allocation11 + $0x1e38] ss:$24 sps:$4 sm:$0xff]  }
 0x894   :  { %17014 = vmatprep.subr.bf16.mxu1 %v21034_v26  ;;  %v21092_v5 = vld [vmem:[#allocation11 + $0x2138] ss:$24 sps:$4 sm:$0xff]   ;;  %v21097_v26 = vld [vmem:[#allocation11 + $0x1e0c] ss:$24 sps:$4 sm:$0xff]  }
 0x896   :  { %16972 = vmatpush2.bf16.msra.mxu0 %v21029_v60  ;;  %v21100_v60 = vld [vmem:[#allocation11 + $0x210c] ss:$24 sps:$4 sm:$0xff]  }
 0x897   :  { %17015 = vmatpush2.bf16.msra.mxu1 %v21032_v36  ;;  %16973 = vmatprep.subr.bf16.mxu0 %v21037_v31  ;;  %v21095_v36 = vld [vmem:[#allocation11 + $0x1e08] ss:$24 sps:$4 sm:$0xff]  }
 0x898   :  { %17016 = vmatprep.subr.bf16.mxu1 %v21040_v32  ;;  %v21098_v31 = vld [vmem:[#allocation11 + $0x2108] ss:$24 sps:$4 sm:$0xff]   ;;  %v21103_v32 = vld [vmem:[#allocation11 + $0x20dc] ss:$24 sps:$4 sm:$0xff]  }
 0x89a   :  { %16974 = vmatpush2.bf16.msra.mxu0 %v21035_v48  ;;  %v21106_v48 = vld [vmem:[#allocation11 + $0x23dc] ss:$24 sps:$4 sm:$0xff]  }
 0x89b   :  { %17017 = vmatpush2.bf16.msra.mxu1 %v21038_v6  ;;  %16975 = vmatprep.subr.bf16.mxu0 %v21043_v43  ;;  %v21101_v6 = vld [vmem:[#allocation11 + $0x20d8] ss:$24 sps:$4 sm:$0xff]  }
 0x89c   :  { %17018 = vmatprep.subr.bf16.mxu1 %v21046_v13  ;;  %v21104_v43 = vld [vmem:[#allocation11 + $0x23d8] ss:$24 sps:$4 sm:$0xff]   ;;  %v21109_v13 = vld [vmem:[#allocation11 + $0x20ac] ss:$24 sps:$4 sm:$0xff]  }
 0x89e   :  { %16976 = vmatpush2.bf16.msra.mxu0 %v21041_v50  ;;  %v21112_v50 = vld [vmem:[#allocation11 + $0x23ac] ss:$24 sps:$4 sm:$0xff]  }
 0x89f   :  { %17019 = vmatpush2.bf16.msra.mxu1 %v21044_v17  ;;  %16977 = vmatprep.subr.bf16.mxu0 %v21049_v62  ;;  %v21107_v17 = vld [vmem:[#allocation11 + $0x20a8] ss:$24 sps:$4 sm:$0xff]  }
 0x8a0   :  { %17020 = vmatprep.subr.bf16.mxu1 %v21052_v54  ;;  %v21110_v62 = vld [vmem:[#allocation11 + $0x23a8] ss:$24 sps:$4 sm:$0xff]   ;;  %v21115_v54 = vld [vmem:[#allocation11 + $0x207c] ss:$24 sps:$4 sm:$0xff]  }
 0x8a2   :  { %16978 = vmatpush2.bf16.msra.mxu0 %v21047_v18  ;;  %v21118_v18 = vld [vmem:[#allocation11 + $0x237c] ss:$24 sps:$4 sm:$0xff]  }
 0x8a3   :  { %17021 = vmatpush2.bf16.msra.mxu1 %v21050_v2  ;;  %17033 = vmatprep.subr.bf16.mxu0 %v21055_v15  ;;  %v21113_v2 = vld [vmem:[#allocation11 + $0x2078] ss:$24 sps:$4 sm:$0xff]  }
 0x8a4   :  { %17076 = vmatprep.subr.bf16.mxu1 %v21058_v10  ;;  %v21116_v15 = vld [vmem:[#allocation11 + $0x2378] ss:$24 sps:$4 sm:$0xff]   ;;  %v21121_v10 = vld [vmem:[#allocation11 + $0x204c] ss:$24 sps:$4 sm:$0xff]  }
 0x8a5   :  { %16980 = vmatmul.mubr.bf16.vlgmr.msra.gmra.mxu0 %v22574_v8 }
 0x8a6   :  { %17023 = vmatmul.mubr.bf16.vlgmr.msra.gmra.mxu1 %v22647_v29  ;;  %17034 = vmatpush1.bf16.msra.mxu0 %v21053_v41  ;;  %v21124_v41 = vld [vmem:[#allocation11 + $0x234c] ss:$24 sps:$4 sm:$0xff]  }
 0x8a7   :  { %17065 = vmatprep.mubr.bf16.mxu0 %v22872_v25  ;;  %17077 = vmatpush1.bf16.msra.mxu1 %v21056_v57  ;;  %v21119_v57 = vld [vmem:[#allocation11 + $0x2048] ss:$24 sps:$4 sm:$0xff]  }
 0x8a8   :  { %17108 = vmatprep.mubr.bf16.mxu1 %v22875_v46  ;;  %17035 = vmatprep.subr.bf16.mxu0 %v21061_v51  ;;  %v21122_v51 = vld [vmem:[#allocation11 + $0x2348] ss:$24 sps:$4 sm:$0xff]  }
 0x8a9   :  { %17078 = vmatprep.subr.bf16.mxu1 %v21064_v37  ;;  %v21127_v37 = vld [vmem:[#allocation11 + $0x201c] ss:$24 sps:$4 sm:$0xff]  }
 0x8aa   :  { %17036 = vmatpush1.bf16.msra.mxu0 %v21059_v39  ;;  %v21130_v39 = vld [vmem:[#allocation11 + $0x231c] ss:$24 sps:$4 sm:$0xff]  }
 0x8ab   :  { %17079 = vmatpush1.bf16.msra.mxu1 %v21062_v28  ;;  %17037 = vmatprep.subr.bf16.mxu0 %v21067_v53  ;;  %v21125_v28 = vld [vmem:[#allocation11 + $0x2018] ss:$24 sps:$4 sm:$0xff]  }
 0x8ac   :  { %17080 = vmatprep.subr.bf16.mxu1 %v21070_v56  ;;  %v21128_v53 = vld [vmem:[#allocation11 + $0x2318] ss:$24 sps:$4 sm:$0xff]   ;;  %v21133_v56 = vld [vmem:[#allocation11 + $0x1fec] ss:$24 sps:$4 sm:$0xff]  }
 0x8ae   :  { %17038 = vmatpush1.bf16.msra.mxu0 %v21065_v22  ;;  %v21136_v22 = vld [vmem:[#allocation11 + $0x22ec] ss:$24 sps:$4 sm:$0xff]  }
 0x8af   :  { %17081 = vmatpush1.bf16.msra.mxu1 %v21068_v33  ;;  %17039 = vmatprep.subr.bf16.mxu0 %v21073_v52  ;;  %v21131_v33 = vld [vmem:[#allocation11 + $0x1fe8] ss:$24 sps:$4 sm:$0xff]  }
 0x8b0   :  { %17082 = vmatprep.subr.bf16.mxu1 %v21076_v63  ;;  %v21134_v52 = vld [vmem:[#allocation11 + $0x22e8] ss:$24 sps:$4 sm:$0xff]   ;;  %v21139_v63 = vld [vmem:[#allocation11 + $0x1fbc] ss:$24 sps:$4 sm:$0xff]  }
 0x8b2   :  { %17040 = vmatpush1.bf16.msra.mxu0 %v21071_v44  ;;  %v21142_v44 = vld [vmem:[#allocation11 + $0x22bc] ss:$24 sps:$4 sm:$0xff]  }
 0x8b3   :  { %17083 = vmatpush1.bf16.msra.mxu1 %v21074_v1  ;;  %17041 = vmatprep.subr.bf16.mxu0 %v21079_v24  ;;  %v21137_v1 = vld [vmem:[#allocation11 + $0x1fb8] ss:$24 sps:$4 sm:$0xff]  }
 0x8b4   :  { %17084 = vmatprep.subr.bf16.mxu1 %v21082_v61  ;;  %v21140_v24 = vld [vmem:[#allocation11 + $0x22b8] ss:$24 sps:$4 sm:$0xff]   ;;  %v21145_v61 = vld [vmem:[#allocation11 + $0x1f8c] ss:$24 sps:$4 sm:$0xff]  }
 0x8b6   :  { %17042 = vmatpush1.bf16.msra.mxu0 %v21077_v20  ;;  %v21148_v20 = vld [vmem:[#allocation11 + $0x228c] ss:$24 sps:$4 sm:$0xff]  }
 0x8b7   :  { %17085 = vmatpush1.bf16.msra.mxu1 %v21080_v45  ;;  %17043 = vmatprep.subr.bf16.mxu0 %v21085_v49  ;;  %v21143_v45 = vld [vmem:[#allocation11 + $0x1f88] ss:$24 sps:$4 sm:$0xff]  }
 0x8b8   :  { %17086 = vmatprep.subr.bf16.mxu1 %v21088_v59  ;;  %v21146_v49 = vld [vmem:[#allocation11 + $0x2288] ss:$24 sps:$4 sm:$0xff]   ;;  %v21151_v59 = vld [vmem:[#allocation11 + $0x164] ss:$24 sps:$4 sm:$0xff]  }
 0x8ba   :  { %17044 = vmatpush1.bf16.msra.mxu0 %v21083_v27  ;;  %v21154_v27 = vld [vmem:[#allocation11 + $0x464] ss:$24 sps:$4 sm:$0xff]  }
 0x8bb   :  { %17087 = vmatpush1.bf16.msra.mxu1 %v21086_v9  ;;  %17045 = vmatprep.subr.bf16.mxu0 %v21091_v4  ;;  %v21149_v9 = vld [vmem:[#allocation11 + $0x160] ss:$24 sps:$4 sm:$0xff]  }
 0x8bc   :  { %17088 = vmatprep.subr.bf16.mxu1 %v21094_v58  ;;  %v21152_v4 = vld [vmem:[#allocation11 + $0x460] ss:$24 sps:$4 sm:$0xff]   ;;  %v21157_v58 = vld [vmem:[#allocation11 + $0x134] ss:$24 sps:$4 sm:$0xff]  }
 0x8be   :  { %17046 = vmatpush1.bf16.msra.mxu0 %v21089_v35  ;;  %v21160_v35 = vld [vmem:[#allocation11 + $0x434] ss:$24 sps:$4 sm:$0xff]  }
 0x8bf   :  { %17089 = vmatpush1.bf16.msra.mxu1 %v21092_v5  ;;  %17047 = vmatprep.subr.bf16.mxu0 %v21097_v26  ;;  %v21155_v5 = vld [vmem:[#allocation11 + $0x130] ss:$24 sps:$4 sm:$0xff]  }
 0x8c0   :  { %17090 = vmatprep.subr.bf16.mxu1 %v21100_v60  ;;  %v21158_v26 = vld [vmem:[#allocation11 + $0x430] ss:$24 sps:$4 sm:$0xff]   ;;  %v21163_v60 = vld [vmem:[#allocation11 + $0x104] ss:$24 sps:$4 sm:$0xff]  }
 0x8c2   :  { %17048 = vmatpush1.bf16.msra.mxu0 %v21095_v36  ;;  %v21166_v36 = vld [vmem:[#allocation11 + $0x404] ss:$24 sps:$4 sm:$0xff]  }
 0x8c3   :  { %17091 = vmatpush1.bf16.msra.mxu1 %v21098_v31  ;;  %17049 = vmatprep.subr.bf16.mxu0 %v21103_v32  ;;  %v21161_v31 = vld [vmem:[#allocation11 + $0x100] ss:$24 sps:$4 sm:$0xff]  }
 0x8c4   :  { %17092 = vmatprep.subr.bf16.mxu1 %v21106_v48  ;;  %v21164_v32 = vld [vmem:[#allocation11 + $0x400] ss:$24 sps:$4 sm:$0xff]   ;;  %v21169_v48 = vld [vmem:[#allocation11 + $0xd4] ss:$24 sps:$4 sm:$0xff]  }
 0x8c6   :  { %17050 = vmatpush2.bf16.msra.mxu0 %v21101_v6  ;;  %v21172_v6 = vld [vmem:[#allocation11 + $0x3d4] ss:$24 sps:$4 sm:$0xff]  }
 0x8c7   :  { %17093 = vmatpush2.bf16.msra.mxu1 %v21104_v43  ;;  %17051 = vmatprep.subr.bf16.mxu0 %v21109_v13  ;;  %v21167_v43 = vld [vmem:[#allocation11 + $0xd0] ss:$24 sps:$4 sm:$0xff]   ;;  %v21175_v13 = vld [vmem:[#allocation11 + $0xa4] ss:$24 sps:$4 sm:$0xff]  }
 0x8c8   :  { %17094 = vmatprep.subr.bf16.mxu1 %v21112_v50  ;;  %v21178_v50 = vld [vmem:[#allocation11 + $0x3a4] ss:$24 sps:$4 sm:$0xff]  }
 0x8ca   :  { %17052 = vmatpush2.bf16.msra.mxu0 %v21107_v17  ;;  %v21176_v17 = vld [vmem:[#allocation11 + $0x3a0] ss:$24 sps:$4 sm:$0xff]  }
 0x8cb   :  { %17095 = vmatpush2.bf16.msra.mxu1 %v21110_v62  ;;  %17053 = vmatprep.subr.bf16.mxu0 %v21115_v54  ;;  %v21181_v62 = vld [vmem:[#allocation11 + $0x74] ss:$24 sps:$4 sm:$0xff]  }
 0x8cc   :  { %17096 = vmatprep.subr.bf16.mxu1 %v21118_v18  ;;  %v21184_v54 = vld [vmem:[#allocation11 + $0x374] ss:$24 sps:$4 sm:$0xff]   ;;  %v21179_v18 = vld [vmem:[#allocation11 + $0x70] ss:$24 sps:$4 sm:$0xff]  }
 0x8ce   :  { %17054 = vmatpush2.bf16.msra.mxu0 %v21113_v2  ;;  %v21182_v2 = vld [vmem:[#allocation11 + $0x370] ss:$24 sps:$4 sm:$0xff]  }
 0x8cf   :  { %17097 = vmatpush2.bf16.msra.mxu1 %v21116_v15  ;;  %17055 = vmatprep.subr.bf16.mxu0 %v21121_v10  ;;  %v21187_v15 = vld [vmem:[#allocation11 + $0x44] ss:$24 sps:$4 sm:$0xff]  }
 0x8d0   :  { %17098 = vmatprep.subr.bf16.mxu1 %v21124_v41  ;;  %v21190_v10 = vld [vmem:[#allocation11 + $0x344] ss:$24 sps:$4 sm:$0xff]   ;;  %v21185_v41 = vld [vmem:[#allocation11 + $0x40] ss:$24 sps:$4 sm:$0xff]  }
 0x8d2   :  { %17056 = vmatpush2.bf16.msra.mxu0 %v21119_v57  ;;  %v21188_v57 = vld [vmem:[#allocation11 + $0x340] ss:$24 sps:$4 sm:$0xff]  }
 0x8d3   :  { %17099 = vmatpush2.bf16.msra.mxu1 %v21122_v51  ;;  %17057 = vmatprep.subr.bf16.mxu0 %v21127_v37  ;;  %v21193_v51 = vld [vmem:[#allocation11 + $0x14] ss:$24 sps:$4 sm:$0xff]  }
 0x8d4   :  { %17100 = vmatprep.subr.bf16.mxu1 %v21130_v39  ;;  %v21196_v37 = vld [vmem:[#allocation11 + $0x314] ss:$24 sps:$4 sm:$0xff]   ;;  %v21191_v39 = vld [vmem:[#allocation11 + $0x10] ss:$24 sps:$4 sm:$0xff]  }
 0x8d6   :  { %17058 = vmatpush2.bf16.msra.mxu0 %v21125_v28  ;;  %v21194_v28 = vld [vmem:[#allocation11 + $0x310] ss:$24 sps:$4 sm:$0xff]  }
 0x8d7   :  { %17101 = vmatpush2.bf16.msra.mxu1 %v21128_v53  ;;  %17059 = vmatprep.subr.bf16.mxu0 %v21133_v56  ;;  %v21199_v53 = vld [vmem:[#allocation11 + $0x2e4] ss:$24 sps:$4 sm:$0xff]  }
 0x8d8   :  { %17102 = vmatprep.subr.bf16.mxu1 %v21136_v22  ;;  %v21202_v56 = vld [vmem:[#allocation11 + $0x5e4] ss:$24 sps:$4 sm:$0xff]   ;;  %v21197_v22 = vld [vmem:[#allocation11 + $0x2e0] ss:$24 sps:$4 sm:$0xff]  }
 0x8da   :  { %17060 = vmatpush2.bf16.msra.mxu0 %v21131_v33  ;;  %v21200_v33 = vld [vmem:[#allocation11 + $0x5e0] ss:$24 sps:$4 sm:$0xff]  }
 0x8db   :  { %17103 = vmatpush2.bf16.msra.mxu1 %v21134_v52  ;;  %17061 = vmatprep.subr.bf16.mxu0 %v21139_v63  ;;  %v21205_v52 = vld [vmem:[#allocation11 + $0x2b4] ss:$24 sps:$4 sm:$0xff]  }
 0x8dc   :  { %17104 = vmatprep.subr.bf16.mxu1 %v21142_v44  ;;  %v21208_v63 = vld [vmem:[#allocation11 + $0x5b4] ss:$24 sps:$4 sm:$0xff]   ;;  %v21203_v44 = vld [vmem:[#allocation11 + $0x2b0] ss:$24 sps:$4 sm:$0xff]  }
 0x8de   :  { %17062 = vmatpush2.bf16.msra.mxu0 %v21137_v1  ;;  %v21206_v1 = vld [vmem:[#allocation11 + $0x5b0] ss:$24 sps:$4 sm:$0xff]  }
 0x8df   :  { %17105 = vmatpush2.bf16.msra.mxu1 %v21140_v24  ;;  %17063 = vmatprep.subr.bf16.mxu0 %v21145_v61  ;;  %v21211_v24 = vld [vmem:[#allocation11 + $0x284] ss:$24 sps:$4 sm:$0xff]  }
 0x8e0   :  { %17106 = vmatprep.subr.bf16.mxu1 %v21148_v20  ;;  %v21214_v61 = vld [vmem:[#allocation11 + $0x584] ss:$24 sps:$4 sm:$0xff]   ;;  %v21209_v20 = vld [vmem:[#allocation11 + $0x280] ss:$24 sps:$4 sm:$0xff]  }
 0x8e2   :  { %17064 = vmatpush2.bf16.msra.mxu0 %v21143_v45  ;;  %v21212_v45 = vld [vmem:[#allocation11 + $0x580] ss:$24 sps:$4 sm:$0xff]  }
 0x8e3   :  { %17107 = vmatpush2.bf16.msra.mxu1 %v21146_v49  ;;  %17119 = vmatprep.subr.bf16.mxu0 %v21151_v59  ;;  %v21217_v49 = vld [vmem:[#allocation11 + $0x254] ss:$24 sps:$4 sm:$0xff]  }
 0x8e4   :  { %17162 = vmatprep.subr.bf16.mxu1 %v21154_v27  ;;  %v21220_v59 = vld [vmem:[#allocation11 + $0x554] ss:$24 sps:$4 sm:$0xff]   ;;  %v21215_v27 = vld [vmem:[#allocation11 + $0x250] ss:$24 sps:$4 sm:$0xff]  }
 0x8e5   :  { %17066 = vmatmul.mubr.bf16.vlgmr.msra.gmra.mxu0 %v22755_v11 }
 0x8e6   :  { %17109 = vmatmul.mubr.bf16.vlgmr.msra.gmra.mxu1 %v22825_v21  ;;  %17120 = vmatpush1.bf16.msra.mxu0 %v21149_v9  ;;  %v21218_v9 = vld [vmem:[#allocation11 + $0x550] ss:$24 sps:$4 sm:$0xff]  }
 0x8e7   :  { %17151 = vmatprep.mubr.bf16.mxu0 %v22601_v55  ;;  %17163 = vmatpush1.bf16.msra.mxu1 %v21152_v4  ;;  %v21170_v55 = vld [vmem:[#allocation11 + $0x3d0] ss:$24 sps:$4 sm:$0xff]   ;;  %v21223_v4 = vld [vmem:[#allocation11 + $0x224] ss:$24 sps:$4 sm:$0xff]  }
 0x8e8   :  { %17194 = vmatprep.mubr.bf16.mxu1 %v22604_v40  ;;  %17121 = vmatprep.subr.bf16.mxu0 %v21157_v58  ;;  %v21173_v40 = vld [vmem:[#allocation11 + $0xa0] ss:$24 sps:$4 sm:$0xff]   ;;  %v21226_v58 = vld [vmem:[#allocation11 + $0x524] ss:$24 sps:$4 sm:$0xff]  }
 0x8e9   :  { %17164 = vmatprep.subr.bf16.mxu1 %v21160_v35  ;;  %v21221_v35 = vld [vmem:[#allocation11 + $0x220] ss:$24 sps:$4 sm:$0xff]  }
 0x8ea   :  { %17122 = vmatpush1.bf16.msra.mxu0 %v21155_v5  ;;  %v21224_v5 = vld [vmem:[#allocation11 + $0x520] ss:$24 sps:$4 sm:$0xff]  }
 0x8eb   :  { %17165 = vmatpush1.bf16.msra.mxu1 %v21158_v26  ;;  %17123 = vmatprep.subr.bf16.mxu0 %v21163_v60  ;;  %v21229_v26 = vld [vmem:[#allocation11 + $0x1f4] ss:$24 sps:$4 sm:$0xff]  }
 0x8ec   :  { %17166 = vmatprep.subr.bf16.mxu1 %v21166_v36  ;;  %v21232_v60 = vld [vmem:[#allocation11 + $0x4f4] ss:$24 sps:$4 sm:$0xff]   ;;  %v21227_v36 = vld [vmem:[#allocation11 + $0x1f0] ss:$24 sps:$4 sm:$0xff]  }
 0x8ee   :  { %17124 = vmatpush1.bf16.msra.mxu0 %v21161_v31  ;;  %v21230_v31 = vld [vmem:[#allocation11 + $0x4f0] ss:$24 sps:$4 sm:$0xff]  }
 0x8ef   :  { %17167 = vmatpush1.bf16.msra.mxu1 %v21164_v32  ;;  %17125 = vmatprep.subr.bf16.mxu0 %v21169_v48  ;;  %v21235_v32 = vld [vmem:[#allocation11 + $0x1c4] ss:$24 sps:$4 sm:$0xff]  }
 0x8f0   :  { %17168 = vmatprep.subr.bf16.mxu1 %v21172_v6  ;;  %v21238_v48 = vld [vmem:[#allocation11 + $0x4c4] ss:$24 sps:$4 sm:$0xff]   ;;  %v21233_v6 = vld [vmem:[#allocation11 + $0x1c0] ss:$24 sps:$4 sm:$0xff]  }
 0x8f2   :  { %17126 = vmatpush1.bf16.msra.mxu0 %v21167_v43  ;;  %v21236_v43 = vld [vmem:[#allocation11 + $0x4c0] ss:$24 sps:$4 sm:$0xff]  }
 0x8f3   :  { %17169 = vmatpush1.bf16.msra.mxu1 %v21170_v55  ;;  %17127 = vmatprep.subr.bf16.mxu0 %v21175_v13  ;;  %v21241_v55 = vld [vmem:[#allocation11 + $0x194] ss:$24 sps:$4 sm:$0xff]  }
 0x8f4   :  { %17170 = vmatprep.subr.bf16.mxu1 %v21178_v50  ;;  %v21244_v13 = vld [vmem:[#allocation11 + $0x494] ss:$24 sps:$4 sm:$0xff]   ;;  %v21239_v50 = vld [vmem:[#allocation11 + $0x190] ss:$24 sps:$4 sm:$0xff]  }
 0x8f6   :  { %17128 = vmatpush1.bf16.msra.mxu0 %v21173_v40  ;;  %v21242_v40 = vld [vmem:[#allocation11 + $0x490] ss:$24 sps:$4 sm:$0xff]  }
 0x8f7   :  { %17171 = vmatpush1.bf16.msra.mxu1 %v21176_v17  ;;  %17129 = vmatprep.subr.bf16.mxu0 %v21181_v62  ;;  %v21247_v17 = vld [vmem:[#allocation11 + $0x764] ss:$24 sps:$4 sm:$0xff]  }
 0x8f8   :  { %17172 = vmatprep.subr.bf16.mxu1 %v21184_v54  ;;  %v21250_v62 = vld [vmem:[#allocation11 + $0xa64] ss:$24 sps:$4 sm:$0xff]   ;;  %v21245_v54 = vld [vmem:[#allocation11 + $0x760] ss:$24 sps:$4 sm:$0xff]  }
 0x8fa   :  { %17130 = vmatpush1.bf16.msra.mxu0 %v21179_v18  ;;  %v21248_v18 = vld [vmem:[#allocation11 + $0xa60] ss:$24 sps:$4 sm:$0xff]  }
 0x8fb   :  { %17173 = vmatpush1.bf16.msra.mxu1 %v21182_v2  ;;  %17131 = vmatprep.subr.bf16.mxu0 %v21187_v15  ;;  %v21253_v2 = vld [vmem:[#allocation11 + $0x734] ss:$24 sps:$4 sm:$0xff]  }
 0x8fc   :  { %17174 = vmatprep.subr.bf16.mxu1 %v21190_v10  ;;  %v21256_v15 = vld [vmem:[#allocation11 + $0xa34] ss:$24 sps:$4 sm:$0xff]   ;;  %v21251_v10 = vld [vmem:[#allocation11 + $0x730] ss:$24 sps:$4 sm:$0xff]  }
 0x8fe   :  { %17132 = vmatpush1.bf16.msra.mxu0 %v21185_v41  ;;  %v21254_v41 = vld [vmem:[#allocation11 + $0xa30] ss:$24 sps:$4 sm:$0xff]  }
 0x8ff   :  { %17175 = vmatpush1.bf16.msra.mxu1 %v21188_v57  ;;  %17133 = vmatprep.subr.bf16.mxu0 %v21193_v51  ;;  %v21259_v57 = vld [vmem:[#allocation11 + $0x704] ss:$24 sps:$4 sm:$0xff]  }
 0x900   :  { %17176 = vmatprep.subr.bf16.mxu1 %v21196_v37  ;;  %v21262_v51 = vld [vmem:[#allocation11 + $0xa04] ss:$24 sps:$4 sm:$0xff]   ;;  %v21257_v37 = vld [vmem:[#allocation11 + $0x700] ss:$24 sps:$4 sm:$0xff]  }
 0x902   :  { %17134 = vmatpush1.bf16.msra.mxu0 %v21191_v39  ;;  %v21265_v39 = vld [vmem:[#allocation11 + $0x6d4] ss:$24 sps:$4 sm:$0xff]  }
 0x903   :  { %17177 = vmatpush1.bf16.msra.mxu1 %v21194_v28  ;;  %17135 = vmatprep.subr.bf16.mxu0 %v21199_v53  ;;  %v21263_v28 = vld [vmem:[#allocation11 + $0x6d0] ss:$24 sps:$4 sm:$0xff]   ;;  %v21271_v53 = vld [vmem:[#allocation11 + $0x6a4] ss:$24 sps:$4 sm:$0xff]  }
 0x904   :  { %17178 = vmatprep.subr.bf16.mxu1 %v21202_v56  ;;  %v21274_v56 = vld [vmem:[#allocation11 + $0x9a4] ss:$24 sps:$4 sm:$0xff]  }
 0x906   :  { %17136 = vmatpush2.bf16.msra.mxu0 %v21197_v22  ;;  %v21272_v22 = vld [vmem:[#allocation11 + $0x9a0] ss:$24 sps:$4 sm:$0xff]  }
 0x907   :  { %17179 = vmatpush2.bf16.msra.mxu1 %v21200_v33  ;;  %17137 = vmatprep.subr.bf16.mxu0 %v21205_v52  ;;  %v21277_v33 = vld [vmem:[#allocation11 + $0x674] ss:$24 sps:$4 sm:$0xff]  }
 0x908   :  { %17180 = vmatprep.subr.bf16.mxu1 %v21208_v63  ;;  %v21280_v52 = vld [vmem:[#allocation11 + $0x974] ss:$24 sps:$4 sm:$0xff]   ;;  %v21275_v63 = vld [vmem:[#allocation11 + $0x670] ss:$24 sps:$4 sm:$0xff]  }
 0x90a   :  { %17138 = vmatpush2.bf16.msra.mxu0 %v21203_v44  ;;  %v21278_v44 = vld [vmem:[#allocation11 + $0x970] ss:$24 sps:$4 sm:$0xff]  }
 0x90b   :  { %17181 = vmatpush2.bf16.msra.mxu1 %v21206_v1  ;;  %17139 = vmatprep.subr.bf16.mxu0 %v21211_v24  ;;  %v21283_v1 = vld [vmem:[#allocation11 + $0x644] ss:$24 sps:$4 sm:$0xff]  }
 0x90c   :  { %17182 = vmatprep.subr.bf16.mxu1 %v21214_v61  ;;  %v21286_v24 = vld [vmem:[#allocation11 + $0x944] ss:$24 sps:$4 sm:$0xff]   ;;  %v21281_v61 = vld [vmem:[#allocation11 + $0x640] ss:$24 sps:$4 sm:$0xff]  }
 0x90e   :  { %17140 = vmatpush2.bf16.msra.mxu0 %v21209_v20  ;;  %v21284_v20 = vld [vmem:[#allocation11 + $0x940] ss:$24 sps:$4 sm:$0xff]  }
 0x90f   :  { %17183 = vmatpush2.bf16.msra.mxu1 %v21212_v45  ;;  %17141 = vmatprep.subr.bf16.mxu0 %v21217_v49  ;;  %v21289_v45 = vld [vmem:[#allocation11 + $0x614] ss:$24 sps:$4 sm:$0xff]  }
 0x910   :  { %17184 = vmatprep.subr.bf16.mxu1 %v21220_v59  ;;  %v21292_v49 = vld [vmem:[#allocation11 + $0x914] ss:$24 sps:$4 sm:$0xff]   ;;  %v21287_v59 = vld [vmem:[#allocation11 + $0x610] ss:$24 sps:$4 sm:$0xff]  }
 0x912   :  { %17142 = vmatpush2.bf16.msra.mxu0 %v21215_v27  ;;  %v21290_v27 = vld [vmem:[#allocation11 + $0x910] ss:$24 sps:$4 sm:$0xff]  }
 0x913   :  { %17185 = vmatpush2.bf16.msra.mxu1 %v21218_v9  ;;  %17143 = vmatprep.subr.bf16.mxu0 %v21223_v4  ;;  %v21295_v9 = vld [vmem:[#allocation11 + $0x8e4] ss:$24 sps:$4 sm:$0xff]  }
 0x914   :  { %17186 = vmatprep.subr.bf16.mxu1 %v21226_v58  ;;  %v21298_v4 = vld [vmem:[#allocation11 + $0xbe4] ss:$24 sps:$4 sm:$0xff]   ;;  %v21293_v58 = vld [vmem:[#allocation11 + $0x8e0] ss:$24 sps:$4 sm:$0xff]  }
 0x916   :  { %17144 = vmatpush2.bf16.msra.mxu0 %v21221_v35  ;;  %v21296_v35 = vld [vmem:[#allocation11 + $0xbe0] ss:$24 sps:$4 sm:$0xff]  }
 0x917   :  { %17187 = vmatpush2.bf16.msra.mxu1 %v21224_v5  ;;  %17145 = vmatprep.subr.bf16.mxu0 %v21229_v26  ;;  %v21301_v5 = vld [vmem:[#allocation11 + $0x8b4] ss:$24 sps:$4 sm:$0xff]  }
 0x918   :  { %17188 = vmatprep.subr.bf16.mxu1 %v21232_v60  ;;  %v21304_v26 = vld [vmem:[#allocation11 + $0xbb4] ss:$24 sps:$4 sm:$0xff]   ;;  %v21299_v60 = vld [vmem:[#allocation11 + $0x8b0] ss:$24 sps:$4 sm:$0xff]  }
 0x91a   :  { %17146 = vmatpush2.bf16.msra.mxu0 %v21227_v36  ;;  %v21302_v36 = vld [vmem:[#allocation11 + $0xbb0] ss:$24 sps:$4 sm:$0xff]  }
 0x91b   :  { %17189 = vmatpush2.bf16.msra.mxu1 %v21230_v31  ;;  %17147 = vmatprep.subr.bf16.mxu0 %v21235_v32  ;;  %v21307_v31 = vld [vmem:[#allocation11 + $0x884] ss:$24 sps:$4 sm:$0xff]  }
 0x91c   :  { %17190 = vmatprep.subr.bf16.mxu1 %v21238_v48  ;;  %v21310_v32 = vld [vmem:[#allocation11 + $0xb84] ss:$24 sps:$4 sm:$0xff]   ;;  %v21305_v48 = vld [vmem:[#allocation11 + $0x880] ss:$24 sps:$4 sm:$0xff]  }
 0x91e   :  { %17148 = vmatpush2.bf16.msra.mxu0 %v21233_v6  ;;  %v21308_v6 = vld [vmem:[#allocation11 + $0xb80] ss:$24 sps:$4 sm:$0xff]  }
 0x91f   :  { %17191 = vmatpush2.bf16.msra.mxu1 %v21236_v43  ;;  %17149 = vmatprep.subr.bf16.mxu0 %v21241_v55  ;;  %v21313_v43 = vld [vmem:[#allocation11 + $0x854] ss:$24 sps:$4 sm:$0xff]  }
 0x920   :  { %17192 = vmatprep.subr.bf16.mxu1 %v21244_v13  ;;  %v21316_v55 = vld [vmem:[#allocation11 + $0xb54] ss:$24 sps:$4 sm:$0xff]   ;;  %v21311_v13 = vld [vmem:[#allocation11 + $0x850] ss:$24 sps:$4 sm:$0xff]  }
 0x922   :  { %17150 = vmatpush2.bf16.msra.mxu0 %v21239_v50  ;;  %v21314_v50 = vld [vmem:[#allocation11 + $0xb50] ss:$24 sps:$4 sm:$0xff]  }
 0x923   :  { %17193 = vmatpush2.bf16.msra.mxu1 %v21242_v40  ;;  %17205 = vmatprep.subr.bf16.mxu0 %v21247_v17  ;;  %v21319_v40 = vld [vmem:[#allocation11 + $0x824] ss:$24 sps:$4 sm:$0xff]  }
 0x924   :  { %17248 = vmatprep.subr.bf16.mxu1 %v21250_v62  ;;  %v21322_v17 = vld [vmem:[#allocation11 + $0xb24] ss:$24 sps:$4 sm:$0xff]   ;;  %v21317_v62 = vld [vmem:[#allocation11 + $0x820] ss:$24 sps:$4 sm:$0xff]  }
 0x925   :  { %17152 = vmatmul.mubr.bf16.vlgmr.msra.gmra.mxu0 %v23173_v38  ;;  %v21260_v38 = vld [vmem:[#allocation11 + $0xa00] ss:$24 sps:$4 sm:$0xff]  }
 0x926   :  { %17195 = vmatmul.mubr.bf16.vlgmr.msra.gmra.mxu1 %v23174_v19  ;;  %17206 = vmatpush1.bf16.msra.mxu0 %v21245_v54  ;;  %v21268_v19 = vld [vmem:[#allocation11 + $0x9d4] ss:$24 sps:$4 sm:$0xff]   ;;  %v21320_v54 = vld [vmem:[#allocation11 + $0xb20] ss:$24 sps:$4 sm:$0xff]  }
 0x927   :  { %17237 = vmatprep.mubr.bf16.mxu0 %v22666_v47  ;;  %17249 = vmatpush1.bf16.msra.mxu1 %v21248_v18  ;;  %v21266_v47 = vld [vmem:[#allocation11 + $0x9d0] ss:$24 sps:$4 sm:$0xff]   ;;  %v21325_v18 = vld [vmem:[#allocation11 + $0x7f4] ss:$24 sps:$4 sm:$0xff]  }
 0x928   :  { %17280 = vmatprep.mubr.bf16.mxu1 %v22669_v16  ;;  %17207 = vmatprep.subr.bf16.mxu0 %v21253_v2  ;;  %v21269_v16 = vld [vmem:[#allocation11 + $0x6a0] ss:$24 sps:$4 sm:$0xff]   ;;  %v21328_v2 = vld [vmem:[#allocation11 + $0xaf4] ss:$24 sps:$4 sm:$0xff]  }
 0x929   :  { %17250 = vmatprep.subr.bf16.mxu1 %v21256_v15  ;;  %v21323_v15 = vld [vmem:[#allocation11 + $0x7f0] ss:$24 sps:$4 sm:$0xff]  }
 0x92a   :  { %17208 = vmatpush1.bf16.msra.mxu0 %v21251_v10  ;;  %v21326_v10 = vld [vmem:[#allocation11 + $0xaf0] ss:$24 sps:$4 sm:$0xff]  }
 0x92b   :  { %17251 = vmatpush1.bf16.msra.mxu1 %v21254_v41  ;;  %17209 = vmatprep.subr.bf16.mxu0 %v21259_v57  ;;  %v21331_v41 = vld [vmem:[#allocation11 + $0x7c4] ss:$24 sps:$4 sm:$0xff]  }
 0x92c   :  { %17252 = vmatprep.subr.bf16.mxu1 %v21262_v51  ;;  %v21334_v57 = vld [vmem:[#allocation11 + $0xac4] ss:$24 sps:$4 sm:$0xff]   ;;  %v21329_v51 = vld [vmem:[#allocation11 + $0x7c0] ss:$24 sps:$4 sm:$0xff]  }
 0x92e   :  { %17210 = vmatpush1.bf16.msra.mxu0 %v21257_v37  ;;  %v21332_v37 = vld [vmem:[#allocation11 + $0xac0] ss:$24 sps:$4 sm:$0xff]  }
 0x92f   :  { %17253 = vmatpush1.bf16.msra.mxu1 %v21260_v38  ;;  %17211 = vmatprep.subr.bf16.mxu0 %v21265_v39  ;;  %v21337_v38 = vld [vmem:[#allocation11 + $0x794] ss:$24 sps:$4 sm:$0xff]  }
 0x930   :  { %17254 = vmatprep.subr.bf16.mxu1 %v21268_v19  ;;  %v21340_v39 = vld [vmem:[#allocation11 + $0xa94] ss:$24 sps:$4 sm:$0xff]   ;;  %v21335_v19 = vld [vmem:[#allocation11 + $0x790] ss:$24 sps:$4 sm:$0xff]  }
 0x932   :  { %17212 = vmatpush1.bf16.msra.mxu0 %v21263_v28  ;;  %v22994_v28 = vpop.f32.mrf.mxu0 }
 0x933   :  { %17255 = vmatpush1.bf16.msra.mxu1 %v21266_v47  ;;  %17213 = vmatprep.subr.bf16.mxu0 %v21271_v53  ;;  %v21338_v47 = vld [vmem:[#allocation11 + $0xa90] ss:$24 sps:$4 sm:$0xff]   ;;  %v21343_v53 = vld [vmem:[#allocation11 + $0xd64] ss:$24 sps:$4 sm:$0xff]  }
 0x934   :  { %17256 = vmatprep.subr.bf16.mxu1 %v21274_v56  ;;  %v22996_v56 = vpop.f32.mrf.mxu1 }
 0x936   :  { %17214 = vmatpush1.bf16.msra.mxu0 %v21269_v16  ;;  %v21346_v16 = vld [vmem:[#allocation11 + $0x1064] ss:$24 sps:$4 sm:$0xff]  }
 0x937   :  { %17257 = vmatpush1.bf16.msra.mxu1 %v21272_v22  ;;  %17215 = vmatprep.subr.bf16.mxu0 %v21277_v33  ;;  %v21341_v22 = vld [vmem:[#allocation11 + $0xd60] ss:$24 sps:$4 sm:$0xff]   ;;  %v22998_v33 = vpop.f32.mrf.mxu0 }
 0x938   :  { %17258 = vmatprep.subr.bf16.mxu1 %v21280_v52  ;;  %v21344_v52 = vld [vmem:[#allocation11 + $0x1060] ss:$24 sps:$4 sm:$0xff]  }
 0x93a   :  { %17216 = vmatpush1.bf16.msra.mxu0 %v21275_v63  ;;  %v23000_v63 = vpop.f32.mrf.mxu1 }
 0x93b   :  { %17259 = vmatpush1.bf16.msra.mxu1 %v21278_v44  ;;  %17217 = vmatprep.subr.bf16.mxu0 %v21283_v1  ;;  %v21349_v44 = vld [vmem:[#allocation11 + $0xd34] ss:$24 sps:$4 sm:$0xff]  }
 0x93c   :  { %17260 = vmatprep.subr.bf16.mxu1 %v21286_v24  ;;  %v21352_v1 = vld [vmem:[#allocation11 + $0x1034] ss:$24 sps:$4 sm:$0xff]   ;;  %v23210_v24 = vld [vmem:[#allocation31_spill] sm:$0xff] }
 0x93e   :  { %17218 = vmatpush1.bf16.msra.mxu0 %v21281_v61  ;;  %v21347_v61 = vld [vmem:[#allocation11 + $0xd30] ss:$24 sps:$4 sm:$0xff]  }
 0x93f   :  { %17261 = vmatpush1.bf16.msra.mxu1 %v21284_v20  ;;  %17219 = vmatprep.subr.bf16.mxu0 %v21289_v45  ;;  %v23004_v20 = vpop.f32.mrf.mxu0  ;;  %v23211_v45 = vld [vmem:[#allocation32_spill] sm:$0xff] }
 0x940   :  { %17262 = vmatprep.subr.bf16.mxu1 %v21292_v49  ;;  %v21350_v49 = vld [vmem:[#allocation11 + $0x1030] ss:$24 sps:$4 sm:$0xff]  }
 0x942   :  { %17220 = vmatpush1.bf16.msra.mxu0 %v21287_v59  ;;  %v21355_v59 = vld [vmem:[#allocation11 + $0xd04] ss:$24 sps:$4 sm:$0xff]  }
 0x943   :  { %17263 = vmatpush1.bf16.msra.mxu1 %v21290_v27  ;;  %17221 = vmatprep.subr.bf16.mxu0 %v21295_v9  ;;  %v23007_v27 = vpop.f32.mrf.mxu1  ;;  %v23212_v9 = vld [vmem:[#allocation27_spill] sm:$0xff] }
 0x944   :  { %17264 = vmatprep.subr.bf16.mxu1 %v21298_v4  ;;  %v21358_v4 = vld [vmem:[#allocation11 + $0x1004] ss:$24 sps:$4 sm:$0xff]  }
 0x946   :  { %17222 = vmatpush2.bf16.msra.mxu0 %v21293_v58  ;;  %v23010_v58 = vpop.f32.mrf.mxu0 }
 0x947   :  { %17265 = vmatpush2.bf16.msra.mxu1 %v21296_v35  ;;  %17223 = vmatprep.subr.bf16.mxu0 %v21301_v5  ;;  %v21356_v35 = vld [vmem:[#allocation11 + $0x1000] ss:$24 sps:$4 sm:$0xff]   ;;  %v21361_v5 = vld [vmem:[#allocation11 + $0xcd4] ss:$24 sps:$4 sm:$0xff]  }
 0x948   :  { %17266 = vmatprep.subr.bf16.mxu1 %v21304_v26  ;;  %v23012_v26 = vpop.f32.mrf.mxu1 }
 0x94a   :  { %17224 = vmatpush2.bf16.msra.mxu0 %v21299_v60  ;;  %v21364_v60 = vld [vmem:[#allocation11 + $0xfd4] ss:$24 sps:$4 sm:$0xff]  }
 0x94b   :  { %17267 = vmatpush2.bf16.msra.mxu1 %v21302_v36  ;;  %17225 = vmatprep.subr.bf16.mxu0 %v21307_v31  ;;  %v23014_v36 = vpop.f32.mrf.mxu0  ;;  %v23016_v31 = vpop.f32.mrf.mxu1 }
 0x94c   :  { %17268 = vmatprep.subr.bf16.mxu1 %v21310_v32  ;;  %v21359_v32 = vld [vmem:[#allocation11 + $0xcd0] ss:$24 sps:$4 sm:$0xff]  }
 0x94e   :  { %17226 = vmatpush2.bf16.msra.mxu0 %v21305_v48  ;;  %v21362_v48 = vld [vmem:[#allocation11 + $0xfd0] ss:$24 sps:$4 sm:$0xff]  }
 0x94f   :  { %17269 = vmatpush2.bf16.msra.mxu1 %v21308_v6  ;;  %17227 = vmatprep.subr.bf16.mxu0 %v21313_v43  ;;  %v21367_v6 = vld [vmem:[#allocation11 + $0xca4] ss:$24 sps:$4 sm:$0xff]  }
 0x950   :  { %17270 = vmatprep.subr.bf16.mxu1 %v21316_v55  ;;  %v21370_v43 = vld [vmem:[#allocation11 + $0xfa4] ss:$24 sps:$4 sm:$0xff]   ;;  %v23018_v55 = vpop.f32.mrf.mxu0 }
 0x952   :  { %17228 = vmatpush2.bf16.msra.mxu0 %v21311_v13  ;;  %v23020_v13 = vpop.f32.mrf.mxu1 }
 0x953   :  { %17271 = vmatpush2.bf16.msra.mxu1 %v21314_v50  ;;  %17229 = vmatprep.subr.bf16.mxu0 %v21319_v40  ;;  %v21365_v50 = vld [vmem:[#allocation11 + $0xca0] ss:$24 sps:$4 sm:$0xff]  }
 0x954   :  { %17272 = vmatprep.subr.bf16.mxu1 %v21322_v17  ;;  %v21368_v40 = vld [vmem:[#allocation11 + $0xfa0] ss:$24 sps:$4 sm:$0xff]   ;;  %v21373_v17 = vld [vmem:[#allocation11 + $0xc74] ss:$24 sps:$4 sm:$0xff]  }
 0x956   :  { %17230 = vmatpush2.bf16.msra.mxu0 %v21317_v62  ;;  %v21376_v62 = vld [vmem:[#allocation11 + $0xf74] ss:$24 sps:$4 sm:$0xff]  }
 0x957   :  { %17273 = vmatpush2.bf16.msra.mxu1 %v21320_v54  ;;  %17231 = vmatprep.subr.bf16.mxu0 %v21325_v18  ;;  %v23022_v54 = vpop.f32.mrf.mxu0  ;;  %v23024_v18 = vpop.f32.mrf.mxu1 }
 0x958   :  { %17274 = vmatprep.subr.bf16.mxu1 %v21328_v2  ;;  %v21371_v2 = vld [vmem:[#allocation11 + $0xc70] ss:$24 sps:$4 sm:$0xff]  }
 0x95a   :  { %17232 = vmatpush2.bf16.msra.mxu0 %v21323_v15  ;;  %v21374_v15 = vld [vmem:[#allocation11 + $0xf70] ss:$24 sps:$4 sm:$0xff]  }
 0x95b   :  { %17275 = vmatpush2.bf16.msra.mxu1 %v21326_v10  ;;  %17233 = vmatprep.subr.bf16.mxu0 %v21331_v41  ;;  %v21379_v10 = vld [vmem:[#allocation11 + $0xc44] ss:$24 sps:$4 sm:$0xff]  }
 0x95c   :  { %17276 = vmatprep.subr.bf16.mxu1 %v21334_v57  ;;  %v21382_v41 = vld [vmem:[#allocation11 + $0xf44] ss:$24 sps:$4 sm:$0xff]   ;;  %v23026_v57 = vpop.f32.mrf.mxu0 }
 0x95e   :  { %17234 = vmatpush2.bf16.msra.mxu0 %v21329_v51  ;;  %v23028_v51 = vpop.f32.mrf.mxu1 }
 0x95f   :  { %17277 = vmatpush2.bf16.msra.mxu1 %v21332_v37  ;;  %17235 = vmatprep.subr.bf16.mxu0 %v21337_v38  ;;  %v21377_v37 = vld [vmem:[#allocation11 + $0xc40] ss:$24 sps:$4 sm:$0xff]   ;;  %v23030_v38 = vpop.f32.mrf.mxu0 }
 0x960   :  { %17278 = vmatprep.subr.bf16.mxu1 %v21340_v39  ;;  %v21380_v39 = vld [vmem:[#allocation11 + $0xf40] ss:$24 sps:$4 sm:$0xff]  }
 0x962   :  { %17236 = vmatpush2.bf16.msra.mxu0 %v21335_v19  ;;  %v21385_v19 = vld [vmem:[#allocation11 + $0xc14] ss:$24 sps:$4 sm:$0xff]  }
 0x963   :  { %17279 = vmatpush2.bf16.msra.mxu1 %v21338_v47  ;;  %17291 = vmatprep.subr.bf16.mxu0 %v21343_v53  ;;  %v23032_v47 = vpop.f32.mrf.mxu1  ;;  %v21388_v53 = vld [vmem:[#allocation11 + $0xf14] ss:$24 sps:$4 sm:$0xff]  }
 0x964   :  { %17334 = vmatprep.subr.bf16.mxu1 %v21346_v16  ;;  %v21383_v16 = vld [vmem:[#allocation11 + $0xc10] ss:$24 sps:$4 sm:$0xff]  }
 0x965   :  { %17238 = vmatmul.mubr.bf16.vlgmr.msra.gmra.mxu0 %v23187_v7  ;;  %v21353_v7 = vld [vmem:[#allocation11 + $0xd00] ss:$24 sps:$4 sm:$0xff]  }
 0x966   :  { %17281 = vmatmul.mubr.bf16.vlgmr.msra.gmra.mxu1 %v23210_v24  ;;  %17292 = vmatpush1.bf16.msra.mxu0 %v21341_v22  ;;  %v23034_v22 = vpop.f32.mrf.mxu0  ;;  %v21394_v24 = vld [vmem:[#allocation11 + $0x11e4] ss:$24 sps:$4 sm:$0xff]  }
 0x967   :  { %17323 = vmatprep.mubr.bf16.mxu0 %v23211_v45  ;;  %17335 = vmatpush1.bf16.msra.mxu1 %v21344_v52  ;;  %v21386_v52 = vld [vmem:[#allocation11 + $0xf10] ss:$24 sps:$4 sm:$0xff]  }
 0x968   :  { %17366 = vmatprep.mubr.bf16.mxu1 %v23212_v9  ;;  %17293 = vmatprep.subr.bf16.mxu0 %v21349_v44  ;;  %v21391_v44 = vld [vmem:[#allocation11 + $0xee4] ss:$24 sps:$4 sm:$0xff]   ;;  %v23038_v45 = vpop.f32.mrf.mxu0 }
 0x969   :  { %17336 = vmatprep.subr.bf16.mxu1 %v21352_v1  ;;  %v23036_v1 = vpop.f32.mrf.mxu1  ;;  %v21847_v9 = vld [vmem:[#allocation13] sm:$0x3f] }
 0x96a   :  { %17294 = vmatpush1.bf16.msra.mxu0 %v21347_v61  ;;  %v21389_v61 = vld [vmem:[#allocation11 + $0xee0] ss:$24 sps:$4 sm:$0xff]  }
 0x96b   :  { %17337 = vmatpush1.bf16.msra.mxu1 %v21350_v49  ;;  %17295 = vmatprep.subr.bf16.mxu0 %v21355_v59  ;;  %v21392_v49 = vld [vmem:[#allocation11 + $0x11e0] ss:$24 sps:$4 sm:$0xff]   ;;  %v21397_v59 = vld [vmem:[#allocation11 + $0xeb4] ss:$24 sps:$4 sm:$0xff]  }
 0x96c   :  { %17338 = vmatprep.subr.bf16.mxu1 %v21358_v4  ;;  %v23213_v4 = vld [vmem:[#allocation22_spill] sm:$0xff] }
 0x96e   :  { %17296 = vmatpush1.bf16.msra.mxu0 %v21353_v7  ;;  %v10308_v7 = vrot.slane %v21847_v9, %v23213_v4 }
 0x96f   :  { %17339 = vmatpush1.bf16.msra.mxu1 %v21356_v35  ;;  %17297 = vmatprep.subr.bf16.mxu0 %v21361_v5  ;;  %v23041_v35 = vpop.f32.mrf.mxu1  ;;  %v21400_v5 = vld [vmem:[#allocation11 + $0x11b4] ss:$24 sps:$4 sm:$0xff]  }
 0x970   :  { %17340 = vmatprep.subr.bf16.mxu1 %v21364_v60  ;;  %v23214_v60 = vld [vmem:[#allocation20_spill] sm:$0xff] }
 0x972   :  { %17298 = vmatpush1.bf16.msra.mxu0 %v21359_v32  ;;  %v10312_v32 = vrot.slane %v21847_v9, %v23214_v60  ;;  %v21418_v9 = vld [vmem:[#allocation11 + $0x1124] ss:$24 sps:$4 sm:$0xff]   ;;  %v21416_v60 = vld [vmem:[#allocation11 + $0x1120] ss:$24 sps:$4 sm:$0xff]  }
 0x973   :  { %17341 = vmatpush1.bf16.msra.mxu1 %v21362_v48  ;;  %17299 = vmatprep.subr.bf16.mxu0 %v21367_v6  ;;  %v21395_v48 = vld [vmem:[#allocation11 + $0xeb0] ss:$24 sps:$4 sm:$0xff]   ;;  %v23044_v6 = vpop.f32.mrf.mxu0 }
 0x974   :  { %17342 = vmatprep.subr.bf16.mxu1 %v21370_v43  ;;  %v21398_v43 = vld [vmem:[#allocation11 + $0x11b0] ss:$24 sps:$4 sm:$0xff]  }
 0x976   :  { %17300 = vmatpush1.bf16.msra.mxu0 %v21365_v50  ;;  %v21403_v50 = vld [vmem:[#allocation11 + $0xe84] ss:$24 sps:$4 sm:$0xff]  }
 0x977   :  { %17343 = vmatpush1.bf16.msra.mxu1 %v21368_v40  ;;  %17301 = vmatprep.subr.bf16.mxu0 %v21373_v17  ;;  %v16638_v40 = vadd.f32 %v22994_v28, %v10308_v7  ;;  %v23047_v17 = vpop.f32.mrf.mxu1  ;;  %v16642_v28 = vadd.f32 %v23004_v20, %v10308_v7 }
 0x978   :  { %17344 = vmatprep.subr.bf16.mxu1 %v21376_v62  ;;  %v21406_v62 = vld [vmem:[#allocation11 + $0x1184] ss:$24 sps:$4 sm:$0xff]  }
 0x97a   :  { %17302 = vmatpush1.bf16.msra.mxu0 %v21371_v2  ;;  %v23049_v2 = vpop.f32.mrf.mxu0 }
 0x97b   :  { %17345 = vmatpush1.bf16.msra.mxu1 %v21374_v15  ;;  %17303 = vmatprep.subr.bf16.mxu0 %v21379_v10  ;;  %v16640_v15 = vadd.f32 %v22998_v33, %v10312_v32  ;;  %v23052_v10 = vpop.f32.mrf.mxu1 }
 0x97c   :  { %17346 = vmatprep.subr.bf16.mxu1 %v21382_v41  ;;  %v21401_v41 = vld [vmem:[#allocation11 + $0xe80] ss:$24 sps:$4 sm:$0xff]  }
 0x97e   :  { %17304 = vmatpush1.bf16.msra.mxu0 %v21377_v37  ;;  %v21404_v37 = vld [vmem:[#allocation11 + $0x1180] ss:$24 sps:$4 sm:$0xff]  }
 0x97f   :  { %17347 = vmatpush1.bf16.msra.mxu1 %v21380_v39  ;;  %17305 = vmatprep.subr.bf16.mxu0 %v21385_v19  ;;  %v21409_v39 = vld [vmem:[#allocation11 + $0xe54] ss:$24 sps:$4 sm:$0xff]   ;;  %v16681_v19 = vadd.f32 %v22996_v56, %v16638_v40  ;;  %v16685_v56 = vadd.f32 %v23007_v27, %v16642_v28  ;;  %v21419_v40 = vld [vmem:[#allocation11 + $0xdf0] ss:$24 sps:$4 sm:$0xff]   ;;  %v21425_v28 = vld [vmem:[#allocation11 + $0xdc0] ss:$24 sps:$4 sm:$0xff]  }
 0x980   :  { %17348 = vmatprep.subr.bf16.mxu1 %v21388_v53  ;;  %v21412_v53 = vld [vmem:[#allocation11 + $0x1154] ss:$24 sps:$4 sm:$0xff]  }
 0x981   :  { %v16724_v33 = vadd.f32 %v23014_v36, %v16681_v19  ;;  %v16728_v36 = vadd.f32 %v23022_v54, %v16685_v56  ;;  %v21439_v56 = vld [vmem:[#allocation11 + $0x1364] ss:$24 sps:$4 sm:$0xff]  }
 0x982   :  { %17306 = vmatpush1.bf16.msra.mxu0 %v21383_v16  ;;  %v16897_v16 = vpop.f32.mrf.mxu0 }
 0x983   :  { %17349 = vmatpush1.bf16.msra.mxu1 %v21386_v52  ;;  %17307 = vmatprep.subr.bf16.mxu0 %v21391_v44  ;;  %v16683_v52 = vadd.f32 %v23000_v63, %v16640_v15  ;;  %v16644_v44 = vadd.f32 %v23010_v58, %v10312_v32  ;;  %v16767_v58 = vadd.f32 %v23016_v31, %v16724_v33  ;;  %v21421_v32 = vld [vmem:[#allocation11 + $0xdf4] ss:$24 sps:$4 sm:$0xff]   ;;  %v21422_v15 = vld [vmem:[#allocation11 + $0x10f0] ss:$24 sps:$4 sm:$0xff]  }
 0x984   :  { %17350 = vmatprep.subr.bf16.mxu1 %v21394_v24  ;;  %v23059_v24 = vpop.f32.mrf.mxu1  ;;  %v16899_v4 = vpop.f32.mrf.mxu0  ;;  %v16771_v31 = vadd.f32 %v23024_v18, %v16728_v36  ;;  %v21436_v33 = vld [vmem:[#allocation11 + $0x1094] ss:$24 sps:$4 sm:$0xff]  }
 0x985   :  { %v16726_v20 = vadd.f32 %v23018_v55, %v16683_v52  ;;  %v16687_v63 = vadd.f32 %v23012_v26, %v16644_v44  ;;  %v21428_v52 = vld [vmem:[#allocation11 + $0x10c0] ss:$24 sps:$4 sm:$0xff]  }
 0x986   :  { %17308 = vmatpush2.bf16.msra.mxu0 %v21389_v61  ;;  %v21407_v61 = vld [vmem:[#allocation11 + $0xe50] ss:$24 sps:$4 sm:$0xff]   ;;  %v16942_v7 = vpop.f32.mrf.mxu1  ;;  %v16901_v26 = vpop.f32.mrf.mxu0 }
 0x987   :  { %17351 = vmatpush2.bf16.msra.mxu1 %v21392_v49  ;;  %17309 = vmatprep.subr.bf16.mxu0 %v21397_v59  ;;  %v21410_v49 = vld [vmem:[#allocation11 + $0x1150] ss:$24 sps:$4 sm:$0xff]   ;;  %v21415_v59 = vld [vmem:[#allocation11 + $0xe24] ss:$24 sps:$4 sm:$0xff]   ;;  %v16769_v27 = vadd.f32 %v23020_v13, %v16726_v20  ;;  %v16730_v55 = vadd.f32 %v23026_v57, %v16687_v63 }
 0x988   :  { %17352 = vmatprep.subr.bf16.mxu1 %v21400_v5  ;;  %v21413_v5 = vld [vmem:[#allocation11 + $0xe20] ss:$24 sps:$4 sm:$0xff]   ;;  %v21442_v63 = vld [vmem:[#allocation11 + $0x1664] ss:$24 sps:$4 sm:$0xff]  }
 0x989   :  { %v16812_v54 = vadd.f32 %v23034_v22, %v16769_v27  ;;  %v16773_v13 = vadd.f32 %v23028_v51, %v16730_v55  ;;  %v21433_v51 = vld [vmem:[#allocation11 + $0xd94] ss:$24 sps:$4 sm:$0xff]  }
 0x98a   :  { %17310 = vmatpush2.bf16.msra.mxu0 %v21395_v48  ;;  %v16810_v48 = vadd.f32 %v23030_v38, %v16767_v58  ;;  %v16814_v38 = vadd.f32 %v23038_v45, %v16771_v31  ;;  %v21445_v55 = vld [vmem:[#allocation11 + $0x1334] ss:$24 sps:$4 sm:$0xff]  }
 0x98b   :  { %17353 = vmatpush2.bf16.msra.mxu1 %v21398_v43  ;;  %17311 = vmatprep.subr.bf16.mxu0 %v21403_v50  ;;  %v21424_v43 = vld [vmem:[#allocation11 + $0x10f4] ss:$24 sps:$4 sm:$0xff]   ;;  %v16944_v50 = vpop.f32.mrf.mxu1  ;;  %v16855_v18 = vadd.f32 %v23036_v1, %v16812_v54  ;;  %v16816_v22 = vadd.f32 %v23044_v6, %v16773_v13  ;;  %v21443_v54 = vld [vmem:[#allocation11 + $0x1330] ss:$24 sps:$4 sm:$0xff]  }
 0x98c   :  { %17354 = vmatprep.subr.bf16.mxu1 %v21406_v62  ;;  %v16981_v62 = vpop.f32.mrf.mxu0  ;;  %v16853_v57 = vadd.f32 %v23032_v47, %v16810_v48  ;;  %v16857_v47 = vadd.f32 %v23041_v35, %v16814_v38  ;;  %v21448_v48 = vld [vmem:[#allocation11 + $0x1634] ss:$24 sps:$4 sm:$0xff]  }
 0x98d   :  { %v16898_v44 = vadd.f32 %v16897_v16, %v16855_v18 }
 0x98e   :  { %17312 = vmatpush2.bf16.msra.mxu0 %v21401_v41  ;;  %v21427_v41 = vld [vmem:[#allocation11 + $0xdc4] ss:$24 sps:$4 sm:$0xff]   ;;  %v16896_v19 = vadd.f32 %v23049_v2, %v16853_v57  ;;  %v16900_v6 = vadd.f32 %v16899_v4, %v16857_v47  ;;  %v21431_v2 = vld [vmem:[#allocation11 + $0xd90] ss:$24 sps:$4 sm:$0xff]   ;;  %v21440_v4 = vld [vmem:[#allocation11 + $0x1660] ss:$24 sps:$4 sm:$0xff]  }
 0x98f   :  { %17355 = vmatpush2.bf16.msra.mxu1 %v21404_v37  ;;  %17313 = vmatprep.subr.bf16.mxu0 %v21409_v39  ;;  %v17024_v37 = vpop.f32.mrf.mxu1  ;;  %v21430_v39 = vld [vmem:[#allocation11 + $0x10c4] ss:$24 sps:$4 sm:$0xff]   ;;  %v16941_v20 = vadd.f32 %v23059_v24, %v16898_v44 }
 0x990   :  { %17356 = vmatprep.subr.bf16.mxu1 %v21412_v53  ;;  %v16983_v53 = vpop.f32.mrf.mxu0  ;;  %v16939_v1 = vadd.f32 %v23052_v10, %v16896_v19  ;;  %v16943_v58 = vadd.f32 %v16942_v7, %v16900_v6  ;;  %v21454_v57 = vld [vmem:[#allocation11 + $0x1604] ss:$24 sps:$4 sm:$0xff]   ;;  %v21449_v19 = vld [vmem:[#allocation11 + $0x1300] ss:$24 sps:$4 sm:$0xff]  }
 0x991   :  { %v17026_v45 = vpop.f32.mrf.mxu1  ;;  %v16984_v36 = vadd.f32 %v16983_v53, %v16941_v20  ;;  %v21452_v53 = vld [vmem:[#allocation11 + $0x1600] ss:$24 sps:$4 sm:$0xff]  }
 0x992   :  { %17314 = vmatpush2.bf16.msra.mxu0 %v21407_v61  ;;  %v16859_v61 = vadd.f32 %v23047_v17, %v16816_v22  ;;  %v16982_v35 = vadd.f32 %v16981_v62, %v16939_v1  ;;  %v21437_v17 = vld [vmem:[#allocation11 + $0x1360] ss:$24 sps:$4 sm:$0xff]   ;;  %v21451_v62 = vld [vmem:[#allocation11 + $0x1304] ss:$24 sps:$4 sm:$0xff]  }
 0x993   :  { %17357 = vmatpush2.bf16.msra.mxu1 %v21410_v49  ;;  %17315 = vmatprep.subr.bf16.mxu0 %v21415_v59  ;;  %v16985_v49 = vpop.f32.mrf.mxu0  ;;  %v21434_v59 = vld [vmem:[#allocation11 + $0x1090] ss:$24 sps:$4 sm:$0xff]   ;;  %v17028_v16 = vpop.f32.mrf.mxu1 }
 0x994   :  { %17358 = vmatprep.subr.bf16.mxu1 %v21418_v9  ;;  %v16902_v9 = vadd.f32 %v16901_v26, %v16859_v61  ;;  %v21850_v61 = vld [vmem:[#allocation2 + $0x40] sm:$0xff] }
 0x995   :  { %v16987_v10 = vpop.f32.mrf.mxu0  ;;  %v17030_v27 = vpop.f32.mrf.mxu1 }
 0x996   :  { %17316 = vmatpush2.bf16.msra.mxu0 %v21413_v5  ;;  %v16945_v5 = vadd.f32 %v16944_v50, %v16902_v9  ;;  %v21466_v9 = vld [vmem:[#allocation11 + $0x15a4] ss:$24 sps:$4 sm:$0xff]  }
 0x997   :  { %17359 = vmatpush2.bf16.msra.mxu1 %v21416_v60  ;;  %17317 = vmatprep.subr.bf16.mxu0 %v21421_v32  ;;  %v17025_v60 = vadd.f32 %v17024_v37, %v16982_v35  ;;  %v16986_v32 = vadd.f32 %v16985_v49, %v16943_v58  ;;  %v21458_v49 = vld [vmem:[#allocation11 + $0x15d0] ss:$24 sps:$4 sm:$0xff]   ;;  %v21461_v35 = vld [vmem:[#allocation11 + $0x12a0] ss:$24 sps:$4 sm:$0xff]   ;;  %v21472_v58 = vld [vmem:[#allocation11 + $0x1574] ss:$24 sps:$4 sm:$0xff]  }
 0x998   :  { %17360 = vmatprep.subr.bf16.mxu1 %v21424_v43  ;;  %v17027_v43 = vadd.f32 %v17026_v45, %v16984_v36  ;;  %v16988_v26 = vadd.f32 %v16987_v10, %v16945_v5  ;;  %v21460_v45 = vld [vmem:[#allocation11 + $0x15d4] ss:$24 sps:$4 sm:$0xff]   ;;  %v21467_v36 = vld [vmem:[#allocation11 + $0x1270] ss:$24 sps:$4 sm:$0xff]   ;;  %v21475_v10 = vld [vmem:[#allocation11 + $0x1244] ss:$24 sps:$4 sm:$0xff]  }
 0x999   :  { %v21473_v5 = vld [vmem:[#allocation11 + $0x1240] ss:$24 sps:$4 sm:$0xff]  }
 0x99a   :  { %17318 = vmatpush2.bf16.msra.mxu0 %v21419_v40  ;;  %v21446_v40 = vld [vmem:[#allocation11 + $0x1630] ss:$24 sps:$4 sm:$0xff]   ;;  %v17031_v37 = vadd.f32 %v17030_v27, %v16988_v26  ;;  %v21484_v27 = vld [vmem:[#allocation11 + $0x1514] ss:$24 sps:$4 sm:$0xff]   ;;  %v21485_v26 = vld [vmem:[#allocation11 + $0x14e0] ss:$24 sps:$4 sm:$0xff]  }
 0x99b   :  { %17361 = vmatpush2.bf16.msra.mxu1 %v21422_v15  ;;  %17319 = vmatprep.subr.bf16.mxu0 %v21427_v41  ;;  %v17029_v15 = vadd.f32 %v17028_v16, %v16986_v32  ;;  %v21464_v16 = vld [vmem:[#allocation11 + $0x15a0] ss:$24 sps:$4 sm:$0xff]   ;;  %v21481_v32 = vld [vmem:[#allocation11 + $0x1214] ss:$24 sps:$4 sm:$0xff]  }
 0x99c   :  { %17362 = vmatprep.subr.bf16.mxu1 %v21430_v39 }
 0x99e   :  { %17320 = vmatpush2.bf16.msra.mxu0 %v21425_v28 }
 0x99f   :  { %17363 = vmatpush2.bf16.msra.mxu1 %v21428_v52  ;;  %17321 = vmatprep.subr.bf16.mxu0 %v21433_v51  ;;  %v21457_v52 = vld [vmem:[#allocation11 + $0x12d4] ss:$24 sps:$4 sm:$0xff]  }
 0x9a0   :  { %17364 = vmatprep.subr.bf16.mxu1 %v21436_v33 }
 0x9a2   :  { %17322 = vmatpush2.bf16.msra.mxu0 %v21431_v2  ;;  %v21455_v2 = vld [vmem:[#allocation11 + $0x12d0] ss:$24 sps:$4 sm:$0xff]  }
 0x9a3   :  { %17365 = vmatpush2.bf16.msra.mxu1 %v21434_v59  ;;  %17377 = vmatprep.subr.bf16.mxu0 %v21439_v56  ;;  %v21463_v59 = vld [vmem:[#allocation11 + $0x12a4] ss:$24 sps:$4 sm:$0xff]  }
 0x9a4   :  { %17420 = vmatprep.subr.bf16.mxu1 %v21442_v63  ;;  %v21851_v56 = vld [vmem:[#allocation2 + $0x48] sm:$0xff]  ;;  %v21469_v63 = vld [vmem:[#allocation11 + $0x1274] ss:$24 sps:$4 sm:$0xff]  }
 0x9a5   :  { %v17067_v24 = vpop.f32.mrf.mxu0  ;;  %17324 = vmatmul.mubr.bf16.vlgmr.msra.gmra.mxu0 %v23201_v3 }
 0x9a6   :  { %v17068_v7 = vadd.f32 %v17067_v24, %v17025_v60  ;;  %v17110_v31 = vpop.f32.mrf.mxu1  ;;  %17367 = vmatmul.mubr.bf16.vlgmr.msra.gmra.mxu1 %v23202_v42  ;;  %17378 = vmatpush1.bf16.msra.mxu0 %v21437_v17  ;;  %v21848_v42 = vld [vmem:[#allocation2 + $0x10] sm:$0xff]  ;;  %v21476_v60 = vld [vmem:[#allocation11 + $0x1540] ss:$24 sps:$4 sm:$0xff]  }
 0x9a7   :  { %17409 = vmatprep.mubr.bf16.mxu0 %v22782_v30  ;;  %17421 = vmatpush1.bf16.msra.mxu1 %v21440_v4  ;;  %v17069_v50 = vpop.f32.mrf.mxu0  ;;  %v21470_v17 = vld [vmem:[#allocation11 + $0x1570] ss:$24 sps:$4 sm:$0xff]   ;;  %v21478_v4 = vld [vmem:[#allocation11 + $0x1544] ss:$24 sps:$4 sm:$0xff]  }
 0x9a8   :  { %v17111_v41 = vadd.f32 %v17110_v31, %v17068_v7  ;;  %17452 = vmatprep.mubr.bf16.mxu1 %v22785_v0  ;;  %v17070_v3 = vadd.f32 %v17069_v50, %v17027_v43  ;;  %v17112_v13 = vpop.f32.mrf.mxu1  ;;  %17379 = vmatprep.subr.bf16.mxu0 %v21445_v55  ;;  %v21849_v0 = vld [vmem:[#allocation2 + $0x18] sm:$0xff]  ;;  %v21479_v55 = vld [vmem:[#allocation11 + $0x1210] ss:$24 sps:$4 sm:$0xff]   ;;  %v21490_v43 = vld [vmem:[#allocation11 + $0x17e4] ss:$24 sps:$4 sm:$0xff]  }
 0x9a9   :  { %v17071_v38 = vpop.f32.mrf.mxu0  ;;  %17422 = vmatprep.subr.bf16.mxu1 %v21448_v48  ;;  %v21482_v24 = vld [vmem:[#allocation11 + $0x1510] ss:$24 sps:$4 sm:$0xff]   ;;  %v21487_v48 = vld [vmem:[#allocation11 + $0x14e4] ss:$24 sps:$4 sm:$0xff]   ;;  %v21488_v7 = vld [vmem:[#allocation11 + $0x17e0] ss:$24 sps:$4 sm:$0xff]  }
 0x9aa   :  { %v17637_v39 = vadd.f32 %v21848_v42, %v17111_v41  ;;  %v17113_v18 = vadd.f32 %v17112_v13, %v17070_v3  ;;  %v17072_v22 = vadd.f32 %v17071_v38, %v17029_v15  ;;  %v17114_v30 = vpop.f32.mrf.mxu1  ;;  %17380 = vmatpush1.bf16.msra.mxu0 %v21443_v54  ;;  %v21493_v31 = vld [vmem:[#allocation11 + $0x14b4] ss:$24 sps:$4 sm:$0xff]   ;;  %v21491_v50 = vld [vmem:[#allocation11 + $0x14b0] ss:$24 sps:$4 sm:$0xff]   ;;  %v21502_v15 = vld [vmem:[#allocation11 + $0x1784] ss:$24 sps:$4 sm:$0xff]  }
 0x9ab   :  { %17423 = vmatpush1.bf16.msra.mxu1 %v21446_v40  ;;  %v17073_v28 = vpop.f32.mrf.mxu0  ;;  %17381 = vmatprep.subr.bf16.mxu0 %v21451_v62  ;;  %v21496_v54 = vld [vmem:[#allocation11 + $0x17b4] ss:$24 sps:$4 sm:$0xff]   ;;  %v21494_v40 = vld [vmem:[#allocation11 + $0x17b0] ss:$24 sps:$4 sm:$0xff]   ;;  %v21499_v62 = vld [vmem:[#allocation11 + $0x1484] ss:$24 sps:$4 sm:$0xff]  }
 0x9ac   :  { %17649 = vst [vmem:[#allocation14 + $0x10] sm:$0xff] %v17637_v39  ;;  %v17638_v51 = vadd.f32 %v21849_v0, %v17113_v18  ;;  %v17115_v47 = vadd.f32 %v17114_v30, %v17072_v22  ;;  %v17074_v44 = vadd.f32 %v17073_v28, %v17031_v37  ;;  %17424 = vmatprep.subr.bf16.mxu1 %v21454_v57  ;;  %v17116_v33 = vpop.f32.mrf.mxu1  ;;  %v21497_v41 = vld [vmem:[#allocation11 + $0x1480] ss:$24 sps:$4 sm:$0xff]   ;;  %v21505_v13 = vld [vmem:[#allocation11 + $0x1454] ss:$24 sps:$4 sm:$0xff]  }
 0x9ad   :  { %v21500_v3 = vld [vmem:[#allocation11 + $0x1780] ss:$24 sps:$4 sm:$0xff]   ;;  %v21508_v57 = vld [vmem:[#allocation11 + $0x1754] ss:$24 sps:$4 sm:$0xff]   ;;  %v21503_v38 = vld [vmem:[#allocation11 + $0x1450] ss:$24 sps:$4 sm:$0xff]  }
 0x9ae   :  { %17650 = vst [vmem:[#allocation14 + $0x18] sm:$0xff] %v17638_v51  ;;  %v17643_v1 = vadd.f32 %v21850_v61, %v17115_v47  ;;  %v17117_v6 = vadd.f32 %v17116_v33, %v17074_v44  ;;  %17382 = vmatpush1.bf16.msra.mxu0 %v21449_v19  ;;  %v21506_v37 = vld [vmem:[#allocation11 + $0x1750] ss:$24 sps:$4 sm:$0xff]   ;;  %v21511_v42 = vld [vmem:[#allocation11 + $0x1424] ss:$24 sps:$4 sm:$0xff]  }
 0x9af   :  { %17425 = vmatpush1.bf16.msra.mxu1 %v21452_v53  ;;  %17383 = vmatprep.subr.bf16.mxu0 %v21457_v52  ;;  %v21514_v39 = vld [vmem:[#allocation11 + $0x1724] ss:$24 sps:$4 sm:$0xff]   ;;  %v21509_v18 = vld [vmem:[#allocation11 + $0x1420] ss:$24 sps:$4 sm:$0xff]   ;;  %v21517_v30 = vld [vmem:[#allocation11 + $0x13f4] ss:$24 sps:$4 sm:$0xff]  }
 0x9b0   :  { %17655 = vst [vmem:[#allocation14 + $0x40] sm:$0xff] %v17643_v1  ;;  %v17644_v20 = vadd.f32 %v21851_v56, %v17117_v6  ;;  %17426 = vmatprep.subr.bf16.mxu1 %v21460_v45  ;;  %v21512_v22 = vld [vmem:[#allocation11 + $0x1720] ss:$24 sps:$4 sm:$0xff]   ;;  %v21520_v19 = vld [vmem:[#allocation11 + $0x16f4] ss:$24 sps:$4 sm:$0xff]  }
 0x9b1   :  { %v21515_v28 = vld [vmem:[#allocation11 + $0x13f0] ss:$24 sps:$4 sm:$0xff]   ;;  %v21523_v52 = vld [vmem:[#allocation11 + $0x13c4] ss:$24 sps:$4 sm:$0xff]   ;;  %v21521_v51 = vld [vmem:[#allocation11 + $0x13c0] ss:$24 sps:$4 sm:$0xff]  }
 0x9b2   :  { %17656 = vst [vmem:[#allocation14 + $0x48] sm:$0xff] %v17644_v20  ;;  %17384 = vmatpush1.bf16.msra.mxu0 %v21455_v2  ;;  %v21518_v53 = vld [vmem:[#allocation11 + $0x16f0] ss:$24 sps:$4 sm:$0xff]   ;;  %v21526_v0 = vld [vmem:[#allocation11 + $0x16c4] ss:$24 sps:$4 sm:$0xff]  }
 0x9b3   :  { %17427 = vmatpush1.bf16.msra.mxu1 %v21458_v49  ;;  %17385 = vmatprep.subr.bf16.mxu0 %v21463_v59  ;;  %v21524_v47 = vld [vmem:[#allocation11 + $0x16c0] ss:$24 sps:$4 sm:$0xff]   ;;  %v21529_v44 = vld [vmem:[#allocation11 + $0x1394] ss:$24 sps:$4 sm:$0xff]   ;;  %v21527_v33 = vld [vmem:[#allocation11 + $0x1390] ss:$24 sps:$4 sm:$0xff]  }
 0x9b4   :  { %17428 = vmatprep.subr.bf16.mxu1 %v21466_v9  ;;  %v21532_v45 = vld [vmem:[#allocation11 + $0x1694] ss:$24 sps:$4 sm:$0xff]   ;;  %v21530_v61 = vld [vmem:[#allocation11 + $0x1690] ss:$24 sps:$4 sm:$0xff]   ;;  %v21535_v1 = vld [vmem:[#allocation11 + $0x1964] ss:$24 sps:$4 sm:$0xff]  }
 0x9b5   :  { %v21538_v6 = vld [vmem:[#allocation11 + $0x1c64] ss:$24 sps:$4 sm:$0xff]   ;;  %v21533_v2 = vld [vmem:[#allocation11 + $0x1960] ss:$24 sps:$4 sm:$0xff]   ;;  %v21541_v59 = vld [vmem:[#allocation11 + $0x1934] ss:$24 sps:$4 sm:$0xff]  }
 0x9b6   :  { %17386 = vmatpush1.bf16.msra.mxu0 %v21461_v35  ;;  %v21536_v49 = vld [vmem:[#allocation11 + $0x1c60] ss:$24 sps:$4 sm:$0xff]   ;;  %v21544_v56 = vld [vmem:[#allocation11 + $0x1c34] ss:$24 sps:$4 sm:$0xff]   ;;  %v21539_v20 = vld [vmem:[#allocation11 + $0x1930] ss:$24 sps:$4 sm:$0xff]  }
 0x9b7   :  { %17429 = vmatpush1.bf16.msra.mxu1 %v21464_v16  ;;  %17387 = vmatprep.subr.bf16.mxu0 %v21469_v63  ;;  %v21542_v9 = vld [vmem:[#allocation11 + $0x1c30] ss:$24 sps:$4 sm:$0xff]   ;;  %v21547_v35 = vld [vmem:[#allocation11 + $0x1904] ss:$24 sps:$4 sm:$0xff]   ;;  %v21545_v63 = vld [vmem:[#allocation11 + $0x1900] ss:$24 sps:$4 sm:$0xff]  }
 0x9b8   :  { %17430 = vmatprep.subr.bf16.mxu1 %v21472_v58  ;;  %v21550_v16 = vld [vmem:[#allocation11 + $0x1c04] ss:$24 sps:$4 sm:$0xff]   ;;  %v21553_v58 = vld [vmem:[#allocation11 + $0x18d4] ss:$24 sps:$4 sm:$0xff]  }
 0x9ba   :  { %17388 = vmatpush1.bf16.msra.mxu0 %v21467_v36  ;;  %v21551_v36 = vld [vmem:[#allocation11 + $0x18d0] ss:$24 sps:$4 sm:$0xff]  }
 0x9bb   :  { %17431 = vmatpush1.bf16.msra.mxu1 %v21470_v17  ;;  %17389 = vmatprep.subr.bf16.mxu0 %v21475_v10  ;;  %v21559_v17 = vld [vmem:[#allocation11 + $0x18a4] ss:$24 sps:$4 sm:$0xff]  }
 0x9bc   :  { %17432 = vmatprep.subr.bf16.mxu1 %v21478_v4  ;;  %v21562_v10 = vld [vmem:[#allocation11 + $0x1ba4] ss:$24 sps:$4 sm:$0xff]   ;;  %v21560_v4 = vld [vmem:[#allocation11 + $0x1ba0] ss:$24 sps:$4 sm:$0xff]  }
 0x9be   :  { %17390 = vmatpush1.bf16.msra.mxu0 %v21473_v5  ;;  %v21565_v5 = vld [vmem:[#allocation11 + $0x1874] ss:$24 sps:$4 sm:$0xff]  }
 0x9bf   :  { %17433 = vmatpush1.bf16.msra.mxu1 %v21476_v60  ;;  %17391 = vmatprep.subr.bf16.mxu0 %v21481_v32  ;;  %v21568_v60 = vld [vmem:[#allocation11 + $0x1b74] ss:$24 sps:$4 sm:$0xff]   ;;  %v21563_v32 = vld [vmem:[#allocation11 + $0x1870] ss:$24 sps:$4 sm:$0xff]  }
 0x9c0   :  { %17434 = vmatprep.subr.bf16.mxu1 %v21484_v27  ;;  %v21566_v27 = vld [vmem:[#allocation11 + $0x1b70] ss:$24 sps:$4 sm:$0xff]  }
 0x9c2   :  { %17392 = vmatpush1.bf16.msra.mxu0 %v21479_v55  ;;  %v21571_v55 = vld [vmem:[#allocation11 + $0x1844] ss:$24 sps:$4 sm:$0xff]  }
 0x9c3   :  { %17435 = vmatpush1.bf16.msra.mxu1 %v21482_v24  ;;  %17393 = vmatprep.subr.bf16.mxu0 %v21487_v48  ;;  %v21574_v24 = vld [vmem:[#allocation11 + $0x1b44] ss:$24 sps:$4 sm:$0xff]   ;;  %v21569_v48 = vld [vmem:[#allocation11 + $0x1840] ss:$24 sps:$4 sm:$0xff]  }
 0x9c4   :  { %17436 = vmatprep.subr.bf16.mxu1 %v21490_v43  ;;  %v21572_v43 = vld [vmem:[#allocation11 + $0x1b40] ss:$24 sps:$4 sm:$0xff]  }
 0x9c6   :  { %17394 = vmatpush2.bf16.msra.mxu0 %v21485_v26  ;;  %v21577_v26 = vld [vmem:[#allocation11 + $0x1814] ss:$24 sps:$4 sm:$0xff]  }
 0x9c7   :  { %17437 = vmatpush2.bf16.msra.mxu1 %v21488_v7  ;;  %17395 = vmatprep.subr.bf16.mxu0 %v21493_v31  ;;  %v21580_v7 = vld [vmem:[#allocation11 + $0x1b14] ss:$24 sps:$4 sm:$0xff]   ;;  %v21575_v31 = vld [vmem:[#allocation11 + $0x1810] ss:$24 sps:$4 sm:$0xff]  }
 0x9c8   :  { %17438 = vmatprep.subr.bf16.mxu1 %v21496_v54  ;;  %v21578_v54 = vld [vmem:[#allocation11 + $0x1b10] ss:$24 sps:$4 sm:$0xff]  }
 0x9ca   :  { %17396 = vmatpush2.bf16.msra.mxu0 %v21491_v50  ;;  %v21583_v50 = vld [vmem:[#allocation11 + $0x1ae4] ss:$24 sps:$4 sm:$0xff]  }
 0x9cb   :  { %17439 = vmatpush2.bf16.msra.mxu1 %v21494_v40  ;;  %17397 = vmatprep.subr.bf16.mxu0 %v21499_v62  ;;  %v21586_v40 = vld [vmem:[#allocation11 + $0x1de4] ss:$24 sps:$4 sm:$0xff]   ;;  %v21581_v62 = vld [vmem:[#allocation11 + $0x1ae0] ss:$24 sps:$4 sm:$0xff]  }
 0x9cc   :  { %17440 = vmatprep.subr.bf16.mxu1 %v21502_v15  ;;  %v21584_v15 = vld [vmem:[#allocation11 + $0x1de0] ss:$24 sps:$4 sm:$0xff]  }
 0x9ce   :  { %17398 = vmatpush2.bf16.msra.mxu0 %v21497_v41  ;;  %v21589_v41 = vld [vmem:[#allocation11 + $0x1ab4] ss:$24 sps:$4 sm:$0xff]  }
 0x9cf   :  { %17441 = vmatpush2.bf16.msra.mxu1 %v21500_v3  ;;  %17399 = vmatprep.subr.bf16.mxu0 %v21505_v13  ;;  %v21592_v3 = vld [vmem:[#allocation11 + $0x1db4] ss:$24 sps:$4 sm:$0xff]   ;;  %v21587_v13 = vld [vmem:[#allocation11 + $0x1ab0] ss:$24 sps:$4 sm:$0xff]  }
 0x9d0   :  { %17442 = vmatprep.subr.bf16.mxu1 %v21508_v57  ;;  %v21590_v57 = vld [vmem:[#allocation11 + $0x1db0] ss:$24 sps:$4 sm:$0xff]  }
 0x9d2   :  { %17400 = vmatpush2.bf16.msra.mxu0 %v21503_v38  ;;  %v21595_v38 = vld [vmem:[#allocation11 + $0x1a84] ss:$24 sps:$4 sm:$0xff]  }
 0x9d3   :  { %17443 = vmatpush2.bf16.msra.mxu1 %v21506_v37  ;;  %17401 = vmatprep.subr.bf16.mxu0 %v21511_v42  ;;  %v21598_v37 = vld [vmem:[#allocation11 + $0x1d84] ss:$24 sps:$4 sm:$0xff]   ;;  %v21593_v42 = vld [vmem:[#allocation11 + $0x1a80] ss:$24 sps:$4 sm:$0xff]  }
 0x9d4   :  { %17444 = vmatprep.subr.bf16.mxu1 %v21514_v39  ;;  %v21596_v39 = vld [vmem:[#allocation11 + $0x1d80] ss:$24 sps:$4 sm:$0xff]  }
 0x9d6   :  { %17402 = vmatpush2.bf16.msra.mxu0 %v21509_v18  ;;  %v21601_v18 = vld [vmem:[#allocation11 + $0x1a54] ss:$24 sps:$4 sm:$0xff]  }
 0x9d7   :  { %17445 = vmatpush2.bf16.msra.mxu1 %v21512_v22  ;;  %17403 = vmatprep.subr.bf16.mxu0 %v21517_v30  ;;  %v21604_v22 = vld [vmem:[#allocation11 + $0x1d54] ss:$24 sps:$4 sm:$0xff]   ;;  %v21599_v30 = vld [vmem:[#allocation11 + $0x1a50] ss:$24 sps:$4 sm:$0xff]  }
 0x9d8   :  { %17446 = vmatprep.subr.bf16.mxu1 %v21520_v19  ;;  %v21602_v19 = vld [vmem:[#allocation11 + $0x1d50] ss:$24 sps:$4 sm:$0xff]  }
 0x9da   :  { %17404 = vmatpush2.bf16.msra.mxu0 %v21515_v28  ;;  %v21607_v28 = vld [vmem:[#allocation11 + $0x1a24] ss:$24 sps:$4 sm:$0xff]  }
 0x9db   :  { %17447 = vmatpush2.bf16.msra.mxu1 %v21518_v53  ;;  %17405 = vmatprep.subr.bf16.mxu0 %v21523_v52  ;;  %v21610_v53 = vld [vmem:[#allocation11 + $0x1d24] ss:$24 sps:$4 sm:$0xff]   ;;  %v21605_v52 = vld [vmem:[#allocation11 + $0x1a20] ss:$24 sps:$4 sm:$0xff]  }
 0x9dc   :  { %17448 = vmatprep.subr.bf16.mxu1 %v21526_v0  ;;  %v21608_v0 = vld [vmem:[#allocation11 + $0x1d20] ss:$24 sps:$4 sm:$0xff]  }
 0x9de   :  { %17406 = vmatpush2.bf16.msra.mxu0 %v21521_v51  ;;  %v21613_v51 = vld [vmem:[#allocation11 + $0x19f4] ss:$24 sps:$4 sm:$0xff]  }
 0x9df   :  { %17449 = vmatpush2.bf16.msra.mxu1 %v21524_v47  ;;  %17407 = vmatprep.subr.bf16.mxu0 %v21529_v44  ;;  %v21616_v47 = vld [vmem:[#allocation11 + $0x1cf4] ss:$24 sps:$4 sm:$0xff]   ;;  %v21611_v44 = vld [vmem:[#allocation11 + $0x19f0] ss:$24 sps:$4 sm:$0xff]  }
 0x9e0   :  { %17450 = vmatprep.subr.bf16.mxu1 %v21532_v45  ;;  %v21614_v45 = vld [vmem:[#allocation11 + $0x1cf0] ss:$24 sps:$4 sm:$0xff]  }
 0x9e2   :  { %17408 = vmatpush2.bf16.msra.mxu0 %v21527_v33  ;;  %v21619_v33 = vld [vmem:[#allocation11 + $0x19c4] ss:$24 sps:$4 sm:$0xff]  }
 0x9e3   :  { %17451 = vmatpush2.bf16.msra.mxu1 %v21530_v61  ;;  %17463 = vmatprep.subr.bf16.mxu0 %v21535_v1  ;;  %v21622_v61 = vld [vmem:[#allocation11 + $0x1cc4] ss:$24 sps:$4 sm:$0xff]   ;;  %v21617_v1 = vld [vmem:[#allocation11 + $0x19c0] ss:$24 sps:$4 sm:$0xff]  }
 0x9e4   :  { %17506 = vmatprep.subr.bf16.mxu1 %v21538_v6  ;;  %v21620_v6 = vld [vmem:[#allocation11 + $0x1cc0] ss:$24 sps:$4 sm:$0xff]  }
 0x9e5   :  { %17410 = vmatmul.mubr.bf16.vlgmr.msra.gmra.mxu0 %v23207_v34  ;;  %v21548_v34 = vld [vmem:[#allocation11 + $0x1c00] ss:$24 sps:$4 sm:$0xff]  }
 0x9e6   :  { %17453 = vmatmul.mubr.bf16.vlgmr.msra.gmra.mxu1 %v23208_v23  ;;  %17464 = vmatpush1.bf16.msra.mxu0 %v21533_v2  ;;  %v21556_v23 = vld [vmem:[#allocation11 + $0x1bd4] ss:$24 sps:$4 sm:$0xff]  }
 0x9e7   :  { %17495 = vmatprep.mubr.bf16.mxu0 %v22836_v12  ;;  %17507 = vmatpush1.bf16.msra.mxu1 %v21536_v49  ;;  %v21554_v12 = vld [vmem:[#allocation11 + $0x1bd0] ss:$24 sps:$4 sm:$0xff]   ;;  %v21625_v2 = vld [vmem:[#allocation11 + $0x1994] ss:$24 sps:$4 sm:$0xff]  }
 0x9e8   :  { %17538 = vmatprep.mubr.bf16.mxu1 %v22839_v14  ;;  %17465 = vmatprep.subr.bf16.mxu0 %v21541_v59  ;;  %v21557_v14 = vld [vmem:[#allocation11 + $0x18a0] ss:$24 sps:$4 sm:$0xff]   ;;  %v21628_v49 = vld [vmem:[#allocation11 + $0x1c94] ss:$24 sps:$4 sm:$0xff]   ;;  %v21623_v59 = vld [vmem:[#allocation11 + $0x1990] ss:$24 sps:$4 sm:$0xff]  }
 0x9e9   :  { %17508 = vmatprep.subr.bf16.mxu1 %v21544_v56  ;;  %v21626_v56 = vld [vmem:[#allocation11 + $0x1c90] ss:$24 sps:$4 sm:$0xff]  }
 0x9ea   :  { %17466 = vmatpush1.bf16.msra.mxu0 %v21539_v20  ;;  %v21631_v20 = vld [vmem:[#allocation11 + $0x1f64] ss:$24 sps:$4 sm:$0xff]  }
 0x9eb   :  { %17509 = vmatpush1.bf16.msra.mxu1 %v21542_v9  ;;  %17467 = vmatprep.subr.bf16.mxu0 %v21547_v35  ;;  %v21634_v9 = vld [vmem:[#allocation11 + $0x2264] ss:$24 sps:$4 sm:$0xff]   ;;  %v21629_v35 = vld [vmem:[#allocation11 + $0x1f60] ss:$24 sps:$4 sm:$0xff]  }
 0x9ec   :  { %17510 = vmatprep.subr.bf16.mxu1 %v21550_v16  ;;  %v21632_v16 = vld [vmem:[#allocation11 + $0x2260] ss:$24 sps:$4 sm:$0xff]  }
 0x9ee   :  { %17468 = vmatpush1.bf16.msra.mxu0 %v21545_v63  ;;  %v21637_v63 = vld [vmem:[#allocation11 + $0x1f34] ss:$24 sps:$4 sm:$0xff]  }
 0x9ef   :  { %17511 = vmatpush1.bf16.msra.mxu1 %v21548_v34  ;;  %17469 = vmatprep.subr.bf16.mxu0 %v21553_v58  ;;  %v21640_v34 = vld [vmem:[#allocation11 + $0x2234] ss:$24 sps:$4 sm:$0xff]   ;;  %v21635_v58 = vld [vmem:[#allocation11 + $0x1f30] ss:$24 sps:$4 sm:$0xff]  }
 0x9f0   :  { %17512 = vmatprep.subr.bf16.mxu1 %v21556_v23  ;;  %v21638_v23 = vld [vmem:[#allocation11 + $0x2230] ss:$24 sps:$4 sm:$0xff]  }
 0x9f2   :  { %17470 = vmatpush1.bf16.msra.mxu0 %v21551_v36  ;;  %v21643_v36 = vld [vmem:[#allocation11 + $0x1f04] ss:$24 sps:$4 sm:$0xff]  }
 0x9f3   :  { %17513 = vmatpush1.bf16.msra.mxu1 %v21554_v12  ;;  %17471 = vmatprep.subr.bf16.mxu0 %v21559_v17  ;;  %v21646_v12 = vld [vmem:[#allocation11 + $0x2204] ss:$24 sps:$4 sm:$0xff]   ;;  %v21641_v17 = vld [vmem:[#allocation11 + $0x1f00] ss:$24 sps:$4 sm:$0xff]  }
 0x9f4   :  { %17514 = vmatprep.subr.bf16.mxu1 %v21562_v10  ;;  %v21649_v10 = vld [vmem:[#allocation11 + $0x1ed4] ss:$24 sps:$4 sm:$0xff]  }
 0x9f6   :  { %17472 = vmatpush1.bf16.msra.mxu0 %v21557_v14  ;;  %v21647_v14 = vld [vmem:[#allocation11 + $0x1ed0] ss:$24 sps:$4 sm:$0xff]  }
 0x9f7   :  { %17515 = vmatpush1.bf16.msra.mxu1 %v21560_v4  ;;  %17473 = vmatprep.subr.bf16.mxu0 %v21565_v5  ;;  %v21655_v4 = vld [vmem:[#allocation11 + $0x1ea4] ss:$24 sps:$4 sm:$0xff]  }
 0x9f8   :  { %17516 = vmatprep.subr.bf16.mxu1 %v21568_v60  ;;  %v21658_v5 = vld [vmem:[#allocation11 + $0x21a4] ss:$24 sps:$4 sm:$0xff]   ;;  %v21656_v60 = vld [vmem:[#allocation11 + $0x21a0] ss:$24 sps:$4 sm:$0xff]  }
 0x9fa   :  { %17474 = vmatpush1.bf16.msra.mxu0 %v21563_v32  ;;  %v21661_v32 = vld [vmem:[#allocation11 + $0x1e74] ss:$24 sps:$4 sm:$0xff]  }
 0x9fb   :  { %17517 = vmatpush1.bf16.msra.mxu1 %v21566_v27  ;;  %17475 = vmatprep.subr.bf16.mxu0 %v21571_v55  ;;  %v21664_v27 = vld [vmem:[#allocation11 + $0x2174] ss:$24 sps:$4 sm:$0xff]   ;;  %v21659_v55 = vld [vmem:[#allocation11 + $0x1e70] ss:$24 sps:$4 sm:$0xff]  }
 0x9fc   :  { %17518 = vmatprep.subr.bf16.mxu1 %v21574_v24  ;;  %v21662_v24 = vld [vmem:[#allocation11 + $0x2170] ss:$24 sps:$4 sm:$0xff]  }
 0x9fe   :  { %17476 = vmatpush1.bf16.msra.mxu0 %v21569_v48  ;;  %v21667_v48 = vld [vmem:[#allocation11 + $0x1e44] ss:$24 sps:$4 sm:$0xff]  }
 0x9ff   :  { %17519 = vmatpush1.bf16.msra.mxu1 %v21572_v43  ;;  %17477 = vmatprep.subr.bf16.mxu0 %v21577_v26  ;;  %v21670_v43 = vld [vmem:[#allocation11 + $0x2144] ss:$24 sps:$4 sm:$0xff]   ;;  %v21665_v26 = vld [vmem:[#allocation11 + $0x1e40] ss:$24 sps:$4 sm:$0xff]  }
 0xa00   :  { %17520 = vmatprep.subr.bf16.mxu1 %v21580_v7  ;;  %v21668_v7 = vld [vmem:[#allocation11 + $0x2140] ss:$24 sps:$4 sm:$0xff]  }
 0xa02   :  { %17478 = vmatpush1.bf16.msra.mxu0 %v21575_v31  ;;  %v21673_v31 = vld [vmem:[#allocation11 + $0x1e14] ss:$24 sps:$4 sm:$0xff]  }
 0xa03   :  { %17521 = vmatpush1.bf16.msra.mxu1 %v21578_v54  ;;  %17479 = vmatprep.subr.bf16.mxu0 %v21583_v50  ;;  %v21676_v54 = vld [vmem:[#allocation11 + $0x2114] ss:$24 sps:$4 sm:$0xff]   ;;  %v21671_v50 = vld [vmem:[#allocation11 + $0x1e10] ss:$24 sps:$4 sm:$0xff]  }
 0xa04   :  { %17522 = vmatprep.subr.bf16.mxu1 %v21586_v40  ;;  %v21674_v40 = vld [vmem:[#allocation11 + $0x2110] ss:$24 sps:$4 sm:$0xff]  }
 0xa06   :  { %17480 = vmatpush2.bf16.msra.mxu0 %v21581_v62  ;;  %v21679_v62 = vld [vmem:[#allocation11 + $0x20e4] ss:$24 sps:$4 sm:$0xff]  }
 0xa07   :  { %17523 = vmatpush2.bf16.msra.mxu1 %v21584_v15  ;;  %17481 = vmatprep.subr.bf16.mxu0 %v21589_v41  ;;  %v21682_v15 = vld [vmem:[#allocation11 + $0x23e4] ss:$24 sps:$4 sm:$0xff]   ;;  %v21677_v41 = vld [vmem:[#allocation11 + $0x20e0] ss:$24 sps:$4 sm:$0xff]  }
 0xa08   :  { %17524 = vmatprep.subr.bf16.mxu1 %v21592_v3  ;;  %v21680_v3 = vld [vmem:[#allocation11 + $0x23e0] ss:$24 sps:$4 sm:$0xff]  }
 0xa0a   :  { %17482 = vmatpush2.bf16.msra.mxu0 %v21587_v13  ;;  %v21685_v13 = vld [vmem:[#allocation11 + $0x20b4] ss:$24 sps:$4 sm:$0xff]  }
 0xa0b   :  { %17525 = vmatpush2.bf16.msra.mxu1 %v21590_v57  ;;  %17483 = vmatprep.subr.bf16.mxu0 %v21595_v38  ;;  %v21688_v57 = vld [vmem:[#allocation11 + $0x23b4] ss:$24 sps:$4 sm:$0xff]   ;;  %v21683_v38 = vld [vmem:[#allocation11 + $0x20b0] ss:$24 sps:$4 sm:$0xff]  }
 0xa0c   :  { %17526 = vmatprep.subr.bf16.mxu1 %v21598_v37  ;;  %v21686_v37 = vld [vmem:[#allocation11 + $0x23b0] ss:$24 sps:$4 sm:$0xff]  }
 0xa0e   :  { %17484 = vmatpush2.bf16.msra.mxu0 %v21593_v42  ;;  %v21691_v42 = vld [vmem:[#allocation11 + $0x2084] ss:$24 sps:$4 sm:$0xff]  }
 0xa0f   :  { %17527 = vmatpush2.bf16.msra.mxu1 %v21596_v39  ;;  %17485 = vmatprep.subr.bf16.mxu0 %v21601_v18  ;;  %v21694_v39 = vld [vmem:[#allocation11 + $0x2384] ss:$24 sps:$4 sm:$0xff]   ;;  %v21689_v18 = vld [vmem:[#allocation11 + $0x2080] ss:$24 sps:$4 sm:$0xff]  }
 0xa10   :  { %17528 = vmatprep.subr.bf16.mxu1 %v21604_v22  ;;  %v21692_v22 = vld [vmem:[#allocation11 + $0x2380] ss:$24 sps:$4 sm:$0xff]  }
 0xa12   :  { %17486 = vmatpush2.bf16.msra.mxu0 %v21599_v30  ;;  %v21697_v30 = vld [vmem:[#allocation11 + $0x2054] ss:$24 sps:$4 sm:$0xff]  }
 0xa13   :  { %17529 = vmatpush2.bf16.msra.mxu1 %v21602_v19  ;;  %17487 = vmatprep.subr.bf16.mxu0 %v21607_v28  ;;  %v21700_v19 = vld [vmem:[#allocation11 + $0x2354] ss:$24 sps:$4 sm:$0xff]   ;;  %v21695_v28 = vld [vmem:[#allocation11 + $0x2050] ss:$24 sps:$4 sm:$0xff]  }
 0xa14   :  { %17530 = vmatprep.subr.bf16.mxu1 %v21610_v53  ;;  %v21698_v53 = vld [vmem:[#allocation11 + $0x2350] ss:$24 sps:$4 sm:$0xff]  }
 0xa16   :  { %17488 = vmatpush2.bf16.msra.mxu0 %v21605_v52  ;;  %v21703_v52 = vld [vmem:[#allocation11 + $0x2024] ss:$24 sps:$4 sm:$0xff]  }
 0xa17   :  { %17531 = vmatpush2.bf16.msra.mxu1 %v21608_v0  ;;  %17489 = vmatprep.subr.bf16.mxu0 %v21613_v51  ;;  %v21706_v0 = vld [vmem:[#allocation11 + $0x2324] ss:$24 sps:$4 sm:$0xff]   ;;  %v21701_v51 = vld [vmem:[#allocation11 + $0x2020] ss:$24 sps:$4 sm:$0xff]  }
 0xa18   :  { %17532 = vmatprep.subr.bf16.mxu1 %v21616_v47  ;;  %v21704_v47 = vld [vmem:[#allocation11 + $0x2320] ss:$24 sps:$4 sm:$0xff]  }
 0xa1a   :  { %17490 = vmatpush2.bf16.msra.mxu0 %v21611_v44  ;;  %v21709_v44 = vld [vmem:[#allocation11 + $0x1ff4] ss:$24 sps:$4 sm:$0xff]  }
 0xa1b   :  { %17533 = vmatpush2.bf16.msra.mxu1 %v21614_v45  ;;  %17491 = vmatprep.subr.bf16.mxu0 %v21619_v33  ;;  %v21712_v45 = vld [vmem:[#allocation11 + $0x22f4] ss:$24 sps:$4 sm:$0xff]   ;;  %v21707_v33 = vld [vmem:[#allocation11 + $0x1ff0] ss:$24 sps:$4 sm:$0xff]  }
 0xa1c   :  { %17534 = vmatprep.subr.bf16.mxu1 %v21622_v61  ;;  %v21710_v61 = vld [vmem:[#allocation11 + $0x22f0] ss:$24 sps:$4 sm:$0xff]  }
 0xa1e   :  { %17492 = vmatpush2.bf16.msra.mxu0 %v21617_v1  ;;  %v21715_v1 = vld [vmem:[#allocation11 + $0x1fc4] ss:$24 sps:$4 sm:$0xff]  }
 0xa1f   :  { %17535 = vmatpush2.bf16.msra.mxu1 %v21620_v6  ;;  %17493 = vmatprep.subr.bf16.mxu0 %v21625_v2  ;;  %v21718_v6 = vld [vmem:[#allocation11 + $0x22c4] ss:$24 sps:$4 sm:$0xff]   ;;  %v21713_v2 = vld [vmem:[#allocation11 + $0x1fc0] ss:$24 sps:$4 sm:$0xff]  }
 0xa20   :  { %17536 = vmatprep.subr.bf16.mxu1 %v21628_v49  ;;  %v21716_v49 = vld [vmem:[#allocation11 + $0x22c0] ss:$24 sps:$4 sm:$0xff]  }
 0xa22   :  { %17494 = vmatpush2.bf16.msra.mxu0 %v21623_v59  ;;  %v21721_v59 = vld [vmem:[#allocation11 + $0x1f94] ss:$24 sps:$4 sm:$0xff]  }
 0xa23   :  { %17537 = vmatpush2.bf16.msra.mxu1 %v21626_v56  ;;  %17549 = vmatprep.subr.bf16.mxu0 %v21631_v20  ;;  %v21724_v56 = vld [vmem:[#allocation11 + $0x2294] ss:$24 sps:$4 sm:$0xff]   ;;  %v21719_v20 = vld [vmem:[#allocation11 + $0x1f90] ss:$24 sps:$4 sm:$0xff]  }
 0xa24   :  { %17592 = vmatprep.subr.bf16.mxu1 %v21634_v9  ;;  %v21722_v9 = vld [vmem:[#allocation11 + $0x2290] ss:$24 sps:$4 sm:$0xff]  }
 0xa25   :  { %17496 = vmatmul.mubr.bf16.vlgmr.msra.gmra.mxu0 %v22574_v8  ;;  %v21644_v8 = vld [vmem:[#allocation11 + $0x2200] ss:$24 sps:$4 sm:$0xff]  }
 0xa26   :  { %17539 = vmatmul.mubr.bf16.vlgmr.msra.gmra.mxu1 %v22647_v29  ;;  %17550 = vmatpush1.bf16.msra.mxu0 %v21629_v35  ;;  %v21652_v29 = vld [vmem:[#allocation11 + $0x21d4] ss:$24 sps:$4 sm:$0xff]   ;;  %v17153_v35 = vpop.f32.mrf.mxu0 }
 0xa27   :  { %17581 = vmatprep.mubr.bf16.mxu0 %v22872_v25  ;;  %17593 = vmatpush1.bf16.msra.mxu1 %v21632_v16  ;;  %v21650_v25 = vld [vmem:[#allocation11 + $0x21d0] ss:$24 sps:$4 sm:$0xff]   ;;  %v17196_v16 = vpop.f32.mrf.mxu1 }
 0xa28   :  { %17624 = vmatprep.mubr.bf16.mxu1 %v22875_v46  ;;  %17551 = vmatprep.subr.bf16.mxu0 %v21637_v63  ;;  %v21653_v46 = vld [vmem:[#allocation11 + $0x1ea0] ss:$24 sps:$4 sm:$0xff]   ;;  %v17155_v63 = vpop.f32.mrf.mxu0 }
 0xa29   :  { %17594 = vmatprep.subr.bf16.mxu1 %v21640_v34  ;;  %v17198_v34 = vpop.f32.mrf.mxu1 }
 0xa2a   :  { %17552 = vmatpush1.bf16.msra.mxu0 %v21635_v58  ;;  %v17157_v58 = vpop.f32.mrf.mxu0 }
 0xa2b   :  { %17595 = vmatpush1.bf16.msra.mxu1 %v21638_v23  ;;  %17553 = vmatprep.subr.bf16.mxu0 %v21643_v36  ;;  %v17200_v23 = vpop.f32.mrf.mxu1 }
 0xa2c   :  { %17596 = vmatprep.subr.bf16.mxu1 %v21646_v12  ;;  %v17159_v36 = vpop.f32.mrf.mxu0 }
 0xa2d   :  { %v17202_v12 = vpop.f32.mrf.mxu1 }
 0xa2e   :  { %17554 = vmatpush1.bf16.msra.mxu0 %v21641_v17  ;;  %v17239_v17 = vpop.f32.mrf.mxu0 }
 0xa2f   :  { %17597 = vmatpush1.bf16.msra.mxu1 %v21644_v8  ;;  %17555 = vmatprep.subr.bf16.mxu0 %v21649_v10  ;;  %v17282_v8 = vpop.f32.mrf.mxu1 }
 0xa30   :  { %17598 = vmatprep.subr.bf16.mxu1 %v21652_v29  ;;  %v17241_v10 = vpop.f32.mrf.mxu0 }
 0xa31   :  { %v17284_v29 = vpop.f32.mrf.mxu1 }
 0xa32   :  { %17556 = vmatpush1.bf16.msra.mxu0 %v21647_v14  ;;  %v17243_v14 = vpop.f32.mrf.mxu0 }
 0xa33   :  { %17599 = vmatpush1.bf16.msra.mxu1 %v21650_v25  ;;  %17557 = vmatprep.subr.bf16.mxu0 %v21655_v4  ;;  %v17286_v25 = vpop.f32.mrf.mxu1 }
 0xa34   :  { %17600 = vmatprep.subr.bf16.mxu1 %v21658_v5  ;;  %v17245_v4 = vpop.f32.mrf.mxu0 }
 0xa35   :  { %v17288_v5 = vpop.f32.mrf.mxu1 }
 0xa36   :  { %17558 = vmatpush1.bf16.msra.mxu0 %v21653_v46 }
 0xa37   :  { %17601 = vmatpush1.bf16.msra.mxu1 %v21656_v60  ;;  %17559 = vmatprep.subr.bf16.mxu0 %v21661_v32 }
 0xa38   :  { %17602 = vmatprep.subr.bf16.mxu1 %v21664_v27  ;;  %v21852_v27 = vld [vmem:[#allocation13] sm:$0x3f] }
 0xa3a   :  { %17560 = vmatpush1.bf16.msra.mxu0 %v21659_v55  ;;  %v23215_v55 = vld [vmem:[#allocation23_spill] sm:$0xff] }
 0xa3b   :  { %17603 = vmatpush1.bf16.msra.mxu1 %v21662_v24  ;;  %17561 = vmatprep.subr.bf16.mxu0 %v21667_v48  ;;  %v10316_v24 = vrot.slane %v21852_v27, %v23215_v55 }
 0xa3c   :  { %17604 = vmatprep.subr.bf16.mxu1 %v21670_v43  ;;  %v23216_v43 = vld [vmem:[#allocation24_spill] sm:$0xff] }
 0xa3e   :  { %17562 = vmatpush1.bf16.msra.mxu0 %v21665_v26  ;;  %v10320_v26 = vrot.slane %v21852_v27, %v23216_v43 }
 0xa3f   :  { %17605 = vmatpush1.bf16.msra.mxu1 %v21668_v7  ;;  %17563 = vmatprep.subr.bf16.mxu0 %v21673_v31  ;;  %v17154_v31 = vadd.f32 %v17153_v35, %v10316_v24 }
 0xa40   :  { %17606 = vmatprep.subr.bf16.mxu1 %v21676_v54 }
 0xa42   :  { %17564 = vmatpush1.bf16.msra.mxu0 %v21671_v50 }
 0xa43   :  { %17607 = vmatpush1.bf16.msra.mxu1 %v21674_v40  ;;  %17565 = vmatprep.subr.bf16.mxu0 %v21679_v62  ;;  %v17156_v40 = vadd.f32 %v17155_v63, %v10320_v26 }
 0xa44   :  { %17608 = vmatprep.subr.bf16.mxu1 %v21682_v15  ;;  %v17197_v15 = vadd.f32 %v17196_v16, %v17154_v31 }
 0xa46   :  { %17566 = vmatpush2.bf16.msra.mxu0 %v21677_v41  ;;  %v17158_v41 = vadd.f32 %v17157_v58, %v10316_v24 }
 0xa47   :  { %17609 = vmatpush2.bf16.msra.mxu1 %v21680_v3  ;;  %17567 = vmatprep.subr.bf16.mxu0 %v21685_v13  ;;  %v17199_v13 = vadd.f32 %v17198_v34, %v17156_v40 }
 0xa48   :  { %17610 = vmatprep.subr.bf16.mxu1 %v21688_v57  ;;  %v17160_v57 = vadd.f32 %v17159_v36, %v10320_v26 }
 0xa4a   :  { %17568 = vmatpush2.bf16.msra.mxu0 %v21683_v38  ;;  %v17240_v38 = vadd.f32 %v17239_v17, %v17197_v15 }
 0xa4b   :  { %17611 = vmatpush2.bf16.msra.mxu1 %v21686_v37  ;;  %17569 = vmatprep.subr.bf16.mxu0 %v21691_v42  ;;  %v17201_v42 = vadd.f32 %v17200_v23, %v17158_v41 }
 0xa4c   :  { %17612 = vmatprep.subr.bf16.mxu1 %v21694_v39  ;;  %v17242_v39 = vadd.f32 %v17241_v10, %v17199_v13 }
 0xa4e   :  { %17570 = vmatpush2.bf16.msra.mxu0 %v21689_v18 }
 0xa4f   :  { %17613 = vmatpush2.bf16.msra.mxu1 %v21692_v22  ;;  %17571 = vmatprep.subr.bf16.mxu0 %v21697_v30  ;;  %v17203_v22 = vadd.f32 %v17202_v12, %v17160_v57  ;;  %v17283_v30 = vadd.f32 %v17282_v8, %v17240_v38 }
 0xa50   :  { %17614 = vmatprep.subr.bf16.mxu1 %v21700_v19  ;;  %v17244_v19 = vadd.f32 %v17243_v14, %v17201_v42  ;;  %v21855_v42 = vld [vmem:[#allocation2 + $0x50] sm:$0xff] }
 0xa52   :  { %17572 = vmatpush2.bf16.msra.mxu0 %v21695_v28 }
 0xa53   :  { %17615 = vmatpush2.bf16.msra.mxu1 %v21698_v53  ;;  %17573 = vmatprep.subr.bf16.mxu0 %v21703_v52  ;;  %v17285_v53 = vadd.f32 %v17284_v29, %v17242_v39  ;;  %v17246_v52 = vadd.f32 %v17245_v4, %v17203_v22  ;;  %v21856_v22 = vld [vmem:[#allocation2 + $0x58] sm:$0xff] }
 0xa54   :  { %17616 = vmatprep.subr.bf16.mxu1 %v21706_v0 }
 0xa56   :  { %17574 = vmatpush2.bf16.msra.mxu0 %v21701_v51 }
 0xa57   :  { %17617 = vmatpush2.bf16.msra.mxu1 %v21704_v47  ;;  %17575 = vmatprep.subr.bf16.mxu0 %v21709_v44  ;;  %v17287_v47 = vadd.f32 %v17286_v25, %v17244_v19 }
 0xa58   :  { %17618 = vmatprep.subr.bf16.mxu1 %v21712_v45 }
 0xa5a   :  { %17576 = vmatpush2.bf16.msra.mxu0 %v21707_v33 }
 0xa5b   :  { %17619 = vmatpush2.bf16.msra.mxu1 %v21710_v61  ;;  %17577 = vmatprep.subr.bf16.mxu0 %v21715_v1  ;;  %v17289_v61 = vadd.f32 %v17288_v5, %v17246_v52 }
 0xa5c   :  { %17620 = vmatprep.subr.bf16.mxu1 %v21718_v6 }
 0xa5e   :  { %17578 = vmatpush2.bf16.msra.mxu0 %v21713_v2 }
 0xa5f   :  { %17621 = vmatpush2.bf16.msra.mxu1 %v21716_v49  ;;  %17579 = vmatprep.subr.bf16.mxu0 %v21721_v59 }
 0xa60   :  { %17622 = vmatprep.subr.bf16.mxu1 %v21724_v56 }
 0xa62   :  { %17580 = vmatpush2.bf16.msra.mxu0 %v21719_v20 }
 0xa63   :  { %17623 = vmatpush2.bf16.msra.mxu1 %v21722_v9 }
 0xa65   :  { %17582 = vmatmul.mubr.bf16.vlgmr.msra.gmra.mxu0 %v22755_v11  ;;  %v17325_v46 = vpop.f32.mrf.mxu0 }
 0xa66   :  { %17625 = vmatmul.mubr.bf16.vlgmr.msra.gmra.mxu1 %v22825_v21  ;;  %v17368_v11 = vpop.f32.mrf.mxu1  ;;  %v17326_v0 = vadd.f32 %v17325_v46, %v17283_v30 }
 0xa67   :  { %v17327_v60 = vpop.f32.mrf.mxu0 }
 0xa68   :  { %v17370_v21 = vpop.f32.mrf.mxu1  ;;  %v17328_v44 = vadd.f32 %v17327_v60, %v17285_v53  ;;  %v17369_v1 = vadd.f32 %v17368_v11, %v17326_v0 }
 0xa69   :  { %v17329_v32 = vpop.f32.mrf.mxu0 }
 0xa6a   :  { %v17372_v48 = vpop.f32.mrf.mxu1  ;;  %v17330_v6 = vadd.f32 %v17329_v32, %v17287_v47  ;;  %v17371_v49 = vadd.f32 %v17370_v21, %v17328_v44 }
 0xa6b   :  { %v17331_v7 = vpop.f32.mrf.mxu0 }
 0xa6c   :  { %v17374_v54 = vpop.f32.mrf.mxu1  ;;  %v17332_v59 = vadd.f32 %v17331_v7, %v17289_v61  ;;  %v17373_v9 = vadd.f32 %v17372_v48, %v17330_v6 }
 0xa6e   :  { %v17375_v63 = vadd.f32 %v17374_v54, %v17332_v59  ;;  %v21853_v54 = vld [vmem:[#allocation2 + $0x20] sm:$0xff] }
 0xaa5   :  { %v17411_v50 = vpop.f32.mrf.mxu0 }
 0xaa6   :  { %v17454_v62 = vpop.f32.mrf.mxu1  ;;  %v17412_v56 = vadd.f32 %v17411_v50, %v17369_v1 }
 0xaa7   :  { %v17413_v3 = vpop.f32.mrf.mxu0 }
 0xaa8   :  { %v17456_v37 = vpop.f32.mrf.mxu1  ;;  %v17414_v35 = vadd.f32 %v17413_v3, %v17371_v49  ;;  %v17455_v34 = vadd.f32 %v17454_v62, %v17412_v56  ;;  %v21854_v3 = vld [vmem:[#allocation2 + $0x28] sm:$0xff] }
 0xaa9   :  { %v17415_v18 = vpop.f32.mrf.mxu0 }
 0xaaa   :  { %v17458_v28 = vpop.f32.mrf.mxu1  ;;  %v17416_v58 = vadd.f32 %v17415_v18, %v17373_v9  ;;  %v17457_v36 = vadd.f32 %v17456_v37, %v17414_v35 }
 0xaab   :  { %v17417_v51 = vpop.f32.mrf.mxu0 }
 0xaac   :  { %v17460_v45 = vpop.f32.mrf.mxu1  ;;  %v17418_v12 = vadd.f32 %v17417_v51, %v17375_v63  ;;  %v17459_v10 = vadd.f32 %v17458_v28, %v17416_v58 }
 0xaae   :  { %v17461_v25 = vadd.f32 %v17460_v45, %v17418_v12 }
 0xae5   :  { %v17497_v33 = vpop.f32.mrf.mxu0 }
 0xae6   :  { %v17540_v2 = vpop.f32.mrf.mxu1  ;;  %v17498_v17 = vadd.f32 %v17497_v33, %v17455_v34 }
 0xae7   :  { %v17499_v20 = vpop.f32.mrf.mxu0 }
 0xae8   :  { %v17542_v16 = vpop.f32.mrf.mxu1  ;;  %v17500_v29 = vadd.f32 %v17499_v20, %v17457_v36  ;;  %v17541_v4 = vadd.f32 %v17540_v2, %v17498_v17 }
 0xae9   :  { %v17501_v23 = vpop.f32.mrf.mxu0 }
 0xaea   :  { %v17544_v8 = vpop.f32.mrf.mxu1  ;;  %v17502_v5 = vadd.f32 %v17501_v23, %v17459_v10  ;;  %v17543_v60 = vadd.f32 %v17542_v16, %v17500_v29 }
 0xaeb   :  { %v17503_v14 = vpop.f32.mrf.mxu0 }
 0xaec   :  { %v17546_v46 = vpop.f32.mrf.mxu1  ;;  %v17504_v21 = vadd.f32 %v17503_v14, %v17461_v25  ;;  %v17545_v24 = vadd.f32 %v17544_v8, %v17502_v5 }
 0xaee   :  { %v17547_v31 = vadd.f32 %v17546_v46, %v17504_v21 }
 0xb25   :  { %v17583_v11 = vpop.f32.mrf.mxu0 }
 0xb26   :  { %v17584_v32 = vadd.f32 %v17583_v11, %v17541_v4  ;;  %v17626_v27 = vpop.f32.mrf.mxu1 }
 0xb27   :  { %v17585_v55 = vpop.f32.mrf.mxu0 }
 0xb28   :  { %v17627_v48 = vadd.f32 %v17626_v27, %v17584_v32  ;;  %v17586_v43 = vadd.f32 %v17585_v55, %v17543_v60  ;;  %v17628_v26 = vpop.f32.mrf.mxu1 }
 0xb29   :  { %v17587_v7 = vpop.f32.mrf.mxu0 }
 0xb2a   :  { %v17639_v50 = vadd.f32 %v21853_v54, %v17627_v48  ;;  %v17629_v40 = vadd.f32 %v17628_v26, %v17586_v43  ;;  %v17588_v62 = vadd.f32 %v17587_v7, %v17545_v24  ;;  %v17630_v15 = vpop.f32.mrf.mxu1 }
 0xb2b   :  { %v17589_v41 = vpop.f32.mrf.mxu0 }
 0xb2c   :  { %17651 = vst [vmem:[#allocation14 + $0x20] sm:$0xff] %v17639_v50  ;;  %v17640_v13 = vadd.f32 %v21854_v3, %v17629_v40  ;;  %v17631_v57 = vadd.f32 %v17630_v15, %v17588_v62  ;;  %v17590_v38 = vadd.f32 %v17589_v41, %v17547_v31  ;;  %v17632_v37 = vpop.f32.mrf.mxu1 }
 0xb2e   :  { %17652 = vst [vmem:[#allocation14 + $0x28] sm:$0xff] %v17640_v13  ;;  %v17645_v39 = vadd.f32 %v21855_v42, %v17631_v57  ;;  %v17633_v18 = vadd.f32 %v17632_v37, %v17590_v38 }
 0xb30   :  { %17657 = vst [vmem:[#allocation14 + $0x50] sm:$0xff] %v17645_v39  ;;  %v17646_v30 = vadd.f32 %v21856_v22, %v17633_v18 }
 0xb32   :  { %17658 = vst [vmem:[#allocation14 + $0x58] sm:$0xff] %v17646_v30 }
 0xb33   :  { %22008 = shalt.err (!%p22005_p11)
}
 0xb34   :  { %17670 = dma.vmem_to_hbm [thread:$0]  %s17665_s6, 1536, %s23110_s7, [#allocation4], %s22035_s21, %s22035_s21, %s22036_s22  }
 0xb35   :  { %22025 = dma.done.wait [#allocation4], 1536  }
 0xb36   :  { %22026 = vsyncadd [#allocation4], 4294965760 }
 0xb37   :  { %17674 = vsyncpa [#allocation3], 1 }
 0xb38   :  { %17675 = vsyncpa [#allocation6], 1 }
 0xb39   :  { %17676 = vsyncpa [#allocation9], 1 }
 0xb3a   :  { %17677 = vsyncpa [#allocation12], 1 }
 0xb3b   :  { %17678 = vsyncpa [#allocation4], 1 }

</bundles_post_ra>
